<compile_context>
chip_gen: v5e
topology: v5e:2x2
jax: 0.10.0
libtpu: 0.0.40
codegen_flags: <defaults>
</compile_context>

<pallas_src>
import functools

import jax
import jax.numpy as jnp
from jax.experimental import pallas as pl
from jax.experimental.pallas import tpu as pltpu


# ---------------- architecture constants (fixed by the PyTorch module) -------------
CONV_COUT = (16, 32, 64, 128, 254)
CONV_STRIDE = (1, 2, 2, 2, 2)
CONV_LRELU = (True, True, True, True, False)   # last conv's BN has no LeakyReLU
FC_LRELU = (True, True, False)


def _round_up(x, m):
    return (x + m - 1) // m * m


def _pick_tm(M):
    """Row-tile sized to the real M (8-aligned); >=2 blocks for big M (v7x megacore)."""
    Mr = _round_up(M, 8)
    if Mr <= 256:
        return Mr
    nb = max(2, -(-Mr // 512))           # cap tiles at ~512 rows, keep >=2 blocks
    return _round_up(-(-Mr // nb), 8)


def _padded_n(N):
    """Pick lane-dense output padding: tn=512 for wide FC outputs, else one 128-mult tile."""
    tn = 512 if N > 512 else _round_up(N, 128)
    return _round_up(N, tn)


# ---------------- fused matmul + scale/shift (+ LeakyReLU) kernel ------------------
def _fused_kernel(apply_lrelu, negative_slope=0.01):
    """y = maybe_leaky_relu((x @ w) * scale + shift); bf16 MXU, f32 epilogue."""
    def kernel(x_ref, w_ref, scale_ref, shift_ref, o_ref):
        acc = jnp.dot(x_ref[...], w_ref[...], preferred_element_type=jnp.float32)
        y = acc * scale_ref[...] + shift_ref[...]
        if apply_lrelu:
            y = jnp.where(y > 0, y, negative_slope * y)
        o_ref[...] = y.astype(o_ref.dtype)
    return kernel


def fused_matmul_scale_shift(x, wp, sp, bp, n_real, apply_lrelu):
    """x:(M,K) activations; wp:(Kp,Np) bf16 pre-padded weight; sp/bp:(1,Np) f32.

    Returns (M, n_real) f32. K is kept as a single block (max K here is 2048)."""
    M, K = x.shape
    Kp, Np = wp.shape
    tm = _pick_tm(M)
    Mp = _round_up(M, tm)
    tn = min(512, Np)                    # Np is a multiple of tn by construction
    xp = jnp.pad(x, ((0, Mp - M), (0, Kp - K))).astype(jnp.bfloat16)
    grid = (Mp // tm, Np // tn)
    out = pl.pallas_call(
        _fused_kernel(apply_lrelu),
        out_shape=jax.ShapeDtypeStruct((Mp, Np), jnp.float32),
        grid_spec=pltpu.PrefetchScalarGridSpec(
            num_scalar_prefetch=0,
            grid=grid,
            in_specs=[
                pl.BlockSpec((tm, Kp), lambda i, j: (i, 0)),   # x row-tile, full K
                pl.BlockSpec((Kp, tn), lambda i, j: (0, j)),   # w col-tile, full K
                pl.BlockSpec((1, tn), lambda i, j: (0, j)),    # scale
                pl.BlockSpec((1, tn), lambda i, j: (0, j)),    # shift
            ],
            out_specs=pl.BlockSpec((tm, tn), lambda i, j: (i, j)),
        ),
        compiler_params=pltpu.CompilerParams(
            dimension_semantics=("parallel", "parallel"),
            vmem_limit_bytes=32 * 1024 * 1024,
        ),
    )(xp, wp, sp, bp)
    return out[:M, :n_real]


# ---------------- conv (im2col) wrapper --------------------------------------------
def conv3x3_bn_lrelu(x_nhwc, wp, scale, shift, stride, cout, apply_lrelu):
    """Conv2d(k=3, pad=1, stride) + folded BN (eval) + optional LeakyReLU via im2col."""
    B, H, W, Cin = x_nhwc.shape
    Ho = (H + 2 - 3) // stride + 1
    Wo = (W + 2 - 3) // stride + 1
    xp = jnp.pad(x_nhwc, ((0, 0), (1, 1), (1, 1), (0, 0)))
    slices = []
    for kh in range(3):
        for kw in range(3):
            sl = xp[:, kh:kh + (Ho - 1) * stride + 1:stride,
                       kw:kw + (Wo - 1) * stride + 1:stride, :]
            slices.append(sl)
    patches = jnp.stack(slices, axis=3)                 # (B, Ho, Wo, 9, Cin)
    patches = patches.reshape(B * Ho * Wo, 9 * Cin)     # (M, K) matches (kh,kw,Cin) weight order
    y = fused_matmul_scale_shift(patches, wp, scale, shift, cout, apply_lrelu)
    return y.reshape(B, Ho, Wo, cout)


# ---------------- parameter init (PyTorch layout) + one-time prepare ----------------
def init_params(key, input_channel, output_size):
    params = {}
    chans = [input_channel, 16, 32, 64, 128, 254]
    keys = jax.random.split(key, 8)
    for i in range(5):
        cin, cout = chans[i], chans[i + 1]
        k1, k2 = jax.random.split(keys[i])
        params[f"conv{i}"] = dict(
            w=jax.random.normal(k1, (cout, cin, 3, 3), jnp.float32) * 0.05,
            b=jax.random.normal(k2, (cout,), jnp.float32) * 0.05,
            gamma=jnp.ones((cout,), jnp.float32),
            beta=jnp.zeros((cout,), jnp.float32),
            mean=jnp.zeros((cout,), jnp.float32),
            var=jnp.ones((cout,), jnp.float32),
        )
    fc_dims = [(1016, 2000), (2000, 1000), (1000, output_size)]
    for i, (fin, fout) in enumerate(fc_dims):
        k1, k2 = jax.random.split(keys[5 + i])
        params[f"fc{i}"] = dict(
            w=jax.random.normal(k1, (fout, fin), jnp.float32) * 0.02,  # PyTorch (out, in)
            b=jax.random.normal(k2, (fout,), jnp.float32) * 0.02,
        )
    return params


def prepare_params(params, eps=1e-5):
    """One-time: fold BN, transpose to (K,N), pad to (Kp,Np), cast weights to bf16."""
    prep = {}
    for i in range(5):
        p = params[f"conv{i}"]
        cout, cin = p["w"].shape[0], p["w"].shape[1]
        K = 9 * cin
        Kp = _round_up(K, 128)
        Np = _padded_n(cout)
        # PyTorch weight (Cout, Cin, kh, kw) -> (kh, kw, Cin, Cout) -> (9*Cin, Cout)
        w_mat = jnp.transpose(p["w"], (2, 3, 1, 0)).reshape(K, cout)
        inv_std = p["gamma"] / jnp.sqrt(p["var"] + eps)
        scale = inv_std
        shift = (p["b"] - p["mean"]) * inv_std + p["beta"]
        prep[f"conv{i}"] = dict(
            w=jnp.pad(w_mat, ((0, Kp - K), (0, Np - cout))).astype(jnp.bfloat16),
            scale=jnp.pad(scale, (0, Np - cout)).reshape(1, Np).astype(jnp.float32),
            shift=jnp.pad(shift, (0, Np - cout)).reshape(1, Np).astype(jnp.float32),
        )
    for i in range(3):
        p = params[f"fc{i}"]
        fout, fin = p["w"].shape
        Kp = _round_up(fin, 128)
        Np = _padded_n(fout)
        prep[f"fc{i}"] = dict(
            w=jnp.pad(p["w"].T, ((0, Kp - fin), (0, Np - fout))).astype(jnp.bfloat16),
            scale=jnp.pad(jnp.ones((fout,), jnp.float32), (0, Np - fout)).reshape(1, Np),
            shift=jnp.pad(p["b"], (0, Np - fout)).reshape(1, Np).astype(jnp.float32),
        )
    return prep


# ---------------- full forward (jitted as one executable) ---------------------------
def model_naive_forward(prep, x_nchw, output_size):
    x = jnp.transpose(x_nchw, (0, 2, 3, 1))            # NCHW -> NHWC
    for i in range(5):
        p = prep[f"conv{i}"]
        x = conv3x3_bn_lrelu(x, p["w"], p["scale"], p["shift"],
                             CONV_STRIDE[i], CONV_COUT[i], CONV_LRELU[i])
    # nn.Flatten on NCHW: back to (B, C, H, W) then flatten -> (B, 254*2*2) = (B, 1016)
    B = x.shape[0]
    x = jnp.transpose(x, (0, 3, 1, 2)).reshape(B, -1)
    fc_outs = (2000, 1000, output_size)
    for i in range(3):
        p = prep[f"fc{i}"]
        x = fused_matmul_scale_shift(x, p["w"], p["scale"], p["shift"],
                                     fc_outs[i], FC_LRELU[i])
    return x


if __name__ == "__main__":
    key = jax.random.PRNGKey(0)
    pkey, xkey = jax.random.split(key)
    # Linear(1016, 2000) forces the 28x28 MNIST spatial size (254 * 2 * 2 = 1016).
    batch, input_channel, output_size = 2, 1, 10
    params = init_params(pkey, input_channel, output_size)
    prep = prepare_params(params)                       # one-time pad/transpose/fold
    x = jax.random.normal(xkey, (batch, input_channel, 28, 28), jnp.float32)

    forward = jax.jit(functools.partial(model_naive_forward, output_size=output_size))
    out = forward(prep, x)
    out = jax.block_until_ready(out)

    assert out.shape == (batch, output_size)
    assert bool(jnp.all(jnp.isfinite(out)))
    print("KERNEL_OK")
</pallas_src>

<mosaic_0001>
module attributes {stable_mosaic.version = 11 : i64} {
  func.func @kernel(%arg0: i32, %arg1: i32, %arg2: memref<392x128xbf16, #tpu.memory_space<vmem>>, %arg3: memref<128x128xbf16, #tpu.memory_space<vmem>>, %arg4: memref<1x128xf32, #tpu.memory_space<vmem>>, %arg5: memref<1x128xf32, #tpu.memory_space<vmem>>, %arg6: memref<392x128xf32, #tpu.memory_space<vmem>>) attributes {dimension_semantics = [#tpu.dimension_semantics<parallel>, #tpu.dimension_semantics<parallel>], iteration_bounds = array<i64: 4, 1>, scalar_prefetch = 0 : i64, scratch_operands = 0 : i64, tpu.core_type = #tpu.core_type<tc>, window_params = [{transform_indices = @transform_0, window_bounds = array<i64: 392, 128>}, {transform_indices = @transform_1, window_bounds = array<i64: 128, 128>}, {transform_indices = @transform_2, window_bounds = array<i64: 1, 128>}, {transform_indices = @transform_3, window_bounds = array<i64: 1, 128>}, {transform_indices = @transform_4, window_bounds = array<i64: 392, 128>}]} {
    %c0 = arith.constant 0 : index
    %c0_0 = arith.constant 0 : index
    %0 = vector.load %arg2[%c0, %c0_0] : memref<392x128xbf16, #tpu.memory_space<vmem>>, vector<392x128xbf16>
    %c0_1 = arith.constant 0 : index
    %c0_2 = arith.constant 0 : index
    %1 = vector.load %arg3[%c0_1, %c0_2] : memref<128x128xbf16, #tpu.memory_space<vmem>>, vector<128x128xbf16>
    %cst = arith.constant dense<0.000000e+00> : vector<392x128xf32>
    %2 = tpu.matmul %0, %1, %cst {dimension_numbers = #tpu.dot_dimension_numbers<[1], [0], [0], [1], [0, 0, 1, 1], [], []>} : vector<392x128xbf16>, vector<128x128xbf16>, vector<392x128xf32> -> vector<392x128xf32>
    %c0_3 = arith.constant 0 : index
    %c0_4 = arith.constant 0 : index
    %3 = vector.load %arg4[%c0_3, %c0_4] : memref<1x128xf32, #tpu.memory_space<vmem>>, vector<1x128xf32>
    %4 = vector.broadcast %3 : vector<1x128xf32> to vector<392x128xf32>
    %5 = arith.mulf %2, %4 : vector<392x128xf32>
    %c0_5 = arith.constant 0 : index
    %c0_6 = arith.constant 0 : index
    %6 = vector.load %arg5[%c0_5, %c0_6] : memref<1x128xf32, #tpu.memory_space<vmem>>, vector<1x128xf32>
    %7 = vector.broadcast %6 : vector<1x128xf32> to vector<392x128xf32>
    %8 = arith.addf %5, %7 : vector<392x128xf32>
    %cst_7 = arith.constant 0.000000e+00 : f32
    %9 = vector.broadcast %cst_7 : f32 to vector<392x128xf32>
    %10 = arith.cmpf ogt, %8, %9 : vector<392x128xf32>
    %cst_8 = arith.constant 0.00999999977 : f32
    %11 = vector.broadcast %cst_8 : f32 to vector<392x128xf32>
    %12 = arith.mulf %11, %8 : vector<392x128xf32>
    %13 = arith.select %10, %8, %12 : vector<392x128xi1>, vector<392x128xf32>
    %c0_9 = arith.constant 0 : index
    %c0_10 = arith.constant 0 : index
    %14 = vector.load %arg6[%c0_9, %c0_10] : memref<392x128xf32, #tpu.memory_space<vmem>>, vector<392x128xf32>
    tpu.vector_store %arg6[%c0_9, %c0_10], %13 {strides = array<i32>} : memref<392x128xf32, #tpu.memory_space<vmem>>, vector<392x128xf32>,
    return
  }
  func.func @transform_0(%arg0: i32, %arg1: i32) -> (i32, i32) {
    %c0_i32 = arith.constant 0 : i32
    %c0_i32_0 = arith.constant 0 : i32
    return %arg0, %c0_i32 : i32, i32
  }
  func.func @transform_1(%arg0: i32, %arg1: i32) -> (i32, i32) {
    %c0_i32 = arith.constant 0 : i32
    %c0_i32_0 = arith.constant 0 : i32
    return %c0_i32, %arg1 : i32, i32
  }
  func.func @transform_2(%arg0: i32, %arg1: i32) -> (i32, i32) {
    %c0_i32 = arith.constant 0 : i32
    %c0_i32_0 = arith.constant 0 : i32
    return %c0_i32, %arg1 : i32, i32
  }
  func.func @transform_3(%arg0: i32, %arg1: i32) -> (i32, i32) {
    %c0_i32 = arith.constant 0 : i32
    %c0_i32_0 = arith.constant 0 : i32
    return %c0_i32, %arg1 : i32, i32
  }
  func.func @transform_4(%arg0: i32, %arg1: i32) -> (i32, i32) {
    %c0_i32 = arith.constant 0 : i32
    return %arg0, %arg1 : i32, i32
  }
}

module attributes {stable_mosaic.version = 11 : i64} {
  func.func @kernel(%arg0: i32, %arg1: i32, %arg2: memref<200x256xbf16, #tpu.memory_space<vmem>>, %arg3: memref<256x128xbf16, #tpu.memory_space<vmem>>, %arg4: memref<1x128xf32, #tpu.memory_space<vmem>>, %arg5: memref<1x128xf32, #tpu.memory_space<vmem>>, %arg6: memref<200x128xf32, #tpu.memory_space<vmem>>) attributes {dimension_semantics = [#tpu.dimension_semantics<parallel>, #tpu.dimension_semantics<parallel>], iteration_bounds = array<i64: 2, 1>, scalar_prefetch = 0 : i64, scratch_operands = 0 : i64, tpu.core_type = #tpu.core_type<tc>, window_params = [{transform_indices = @transform_0, window_bounds = array<i64: 200, 256>}, {transform_indices = @transform_1, window_bounds = array<i64: 256, 128>}, {transform_indices = @transform_2, window_bounds = array<i64: 1, 128>}, {transform_indices = @transform_3, window_bounds = array<i64: 1, 128>}, {transform_indices = @transform_4, window_bounds = array<i64: 200, 128>}]} {
    %c0 = arith.constant 0 : index
    %c0_0 = arith.constant 0 : index
    %0 = vector.load %arg2[%c0, %c0_0] : memref<200x256xbf16, #tpu.memory_space<vmem>>, vector<200x256xbf16>
    %c0_1 = arith.constant 0 : index
    %c0_2 = arith.constant 0 : index
    %1 = vector.load %arg3[%c0_1, %c0_2] : memref<256x128xbf16, #tpu.memory_space<vmem>>, vector<256x128xbf16>
    %cst = arith.constant dense<0.000000e+00> : vector<200x128xf32>
    %2 = tpu.matmul %0, %1, %cst {dimension_numbers = #tpu.dot_dimension_numbers<[1], [0], [0], [1], [0, 0, 1, 1], [], []>} : vector<200x256xbf16>, vector<256x128xbf16>, vector<200x128xf32> -> vector<200x128xf32>
    %c0_3 = arith.constant 0 : index
    %c0_4 = arith.constant 0 : index
    %3 = vector.load %arg4[%c0_3, %c0_4] : memref<1x128xf32, #tpu.memory_space<vmem>>, vector<1x128xf32>
    %4 = vector.broadcast %3 : vector<1x128xf32> to vector<200x128xf32>
    %5 = arith.mulf %2, %4 : vector<200x128xf32>
    %c0_5 = arith.constant 0 : index
    %c0_6 = arith.constant 0 : index
    %6 = vector.load %arg5[%c0_5, %c0_6] : memref<1x128xf32, #tpu.memory_space<vmem>>, vector<1x128xf32>
    %7 = vector.broadcast %6 : vector<1x128xf32> to vector<200x128xf32>
    %8 = arith.addf %5, %7 : vector<200x128xf32>
    %cst_7 = arith.constant 0.000000e+00 : f32
    %9 = vector.broadcast %cst_7 : f32 to vector<200x128xf32>
    %10 = arith.cmpf ogt, %8, %9 : vector<200x128xf32>
    %cst_8 = arith.constant 0.00999999977 : f32
    %11 = vector.broadcast %cst_8 : f32 to vector<200x128xf32>
    %12 = arith.mulf %11, %8 : vector<200x128xf32>
    %13 = arith.select %10, %8, %12 : vector<200x128xi1>, vector<200x128xf32>
    %c0_9 = arith.constant 0 : index
    %c0_10 = arith.constant 0 : index
    %14 = vector.load %arg6[%c0_9, %c0_10] : memref<200x128xf32, #tpu.memory_space<vmem>>, vector<200x128xf32>
    tpu.vector_store %arg6[%c0_9, %c0_10], %13 {strides = array<i32>} : memref<200x128xf32, #tpu.memory_space<vmem>>, vector<200x128xf32>,
    return
  }
  func.func @transform_0(%arg0: i32, %arg1: i32) -> (i32, i32) {
    %c0_i32 = arith.constant 0 : i32
    %c0_i32_0 = arith.constant 0 : i32
    return %arg0, %c0_i32 : i32, i32
  }
  func.func @transform_1(%arg0: i32, %arg1: i32) -> (i32, i32) {
    %c0_i32 = arith.constant 0 : i32
    %c0_i32_0 = arith.constant 0 : i32
    return %c0_i32, %arg1 : i32, i32
  }
  func.func @transform_2(%arg0: i32, %arg1: i32) -> (i32, i32) {
    %c0_i32 = arith.constant 0 : i32
    %c0_i32_0 = arith.constant 0 : i32
    return %c0_i32, %arg1 : i32, i32
  }
  func.func @transform_3(%arg0: i32, %arg1: i32) -> (i32, i32) {
    %c0_i32 = arith.constant 0 : i32
    %c0_i32_0 = arith.constant 0 : i32
    return %c0_i32, %arg1 : i32, i32
  }
  func.func @transform_4(%arg0: i32, %arg1: i32) -> (i32, i32) {
    %c0_i32 = arith.constant 0 : i32
    return %arg0, %arg1 : i32, i32
  }
}

module attributes {stable_mosaic.version = 11 : i64} {
  func.func @kernel(%arg0: i32, %arg1: i32, %arg2: memref<104x384xbf16, #tpu.memory_space<vmem>>, %arg3: memref<384x128xbf16, #tpu.memory_space<vmem>>, %arg4: memref<1x128xf32, #tpu.memory_space<vmem>>, %arg5: memref<1x128xf32, #tpu.memory_space<vmem>>, %arg6: memref<104x128xf32, #tpu.memory_space<vmem>>) attributes {dimension_semantics = [#tpu.dimension_semantics<parallel>, #tpu.dimension_semantics<parallel>], iteration_bounds = array<i64: 1, 1>, scalar_prefetch = 0 : i64, scratch_operands = 0 : i64, tpu.core_type = #tpu.core_type<tc>, window_params = [{transform_indices = @transform_0, window_bounds = array<i64: 104, 384>}, {transform_indices = @transform_1, window_bounds = array<i64: 384, 128>}, {transform_indices = @transform_2, window_bounds = array<i64: 1, 128>}, {transform_indices = @transform_3, window_bounds = array<i64: 1, 128>}, {transform_indices = @transform_4, window_bounds = array<i64: 104, 128>}]} {
    %c0 = arith.constant 0 : index
    %c0_0 = arith.constant 0 : index
    %0 = vector.load %arg2[%c0, %c0_0] : memref<104x384xbf16, #tpu.memory_space<vmem>>, vector<104x384xbf16>
    %c0_1 = arith.constant 0 : index
    %c0_2 = arith.constant 0 : index
    %1 = vector.load %arg3[%c0_1, %c0_2] : memref<384x128xbf16, #tpu.memory_space<vmem>>, vector<384x128xbf16>
    %cst = arith.constant dense<0.000000e+00> : vector<104x128xf32>
    %2 = tpu.matmul %0, %1, %cst {dimension_numbers = #tpu.dot_dimension_numbers<[1], [0], [0], [1], [0, 0, 1, 1], [], []>} : vector<104x384xbf16>, vector<384x128xbf16>, vector<104x128xf32> -> vector<104x128xf32>
    %c0_3 = arith.constant 0 : index
    %c0_4 = arith.constant 0 : index
    %3 = vector.load %arg4[%c0_3, %c0_4] : memref<1x128xf32, #tpu.memory_space<vmem>>, vector<1x128xf32>
    %4 = vector.broadcast %3 : vector<1x128xf32> to vector<104x128xf32>
    %5 = arith.mulf %2, %4 : vector<104x128xf32>
    %c0_5 = arith.constant 0 : index
    %c0_6 = arith.constant 0 : index
    %6 = vector.load %arg5[%c0_5, %c0_6] : memref<1x128xf32, #tpu.memory_space<vmem>>, vector<1x128xf32>
    %7 = vector.broadcast %6 : vector<1x128xf32> to vector<104x128xf32>
    %8 = arith.addf %5, %7 : vector<104x128xf32>
    %cst_7 = arith.constant 0.000000e+00 : f32
    %9 = vector.broadcast %cst_7 : f32 to vector<104x128xf32>
    %10 = arith.cmpf ogt, %8, %9 : vector<104x128xf32>
    %cst_8 = arith.constant 0.00999999977 : f32
    %11 = vector.broadcast %cst_8 : f32 to vector<104x128xf32>
    %12 = arith.mulf %11, %8 : vector<104x128xf32>
    %13 = arith.select %10, %8, %12 : vector<104x128xi1>, vector<104x128xf32>
    %c0_9 = arith.constant 0 : index
    %c0_10 = arith.constant 0 : index
    %14 = vector.load %arg6[%c0_9, %c0_10] : memref<104x128xf32, #tpu.memory_space<vmem>>, vector<104x128xf32>
    tpu.vector_store %arg6[%c0_9, %c0_10], %13 {strides = array<i32>} : memref<104x128xf32, #tpu.memory_space<vmem>>, vector<104x128xf32>,
    return
  }
  func.func @transform_0(%arg0: i32, %arg1: i32) -> (i32, i32) {
    %c0_i32 = arith.constant 0 : i32
    %c0_i32_0 = arith.constant 0 : i32
    return %arg0, %c0_i32 : i32, i32
  }
  func.func @transform_1(%arg0: i32, %arg1: i32) -> (i32, i32) {
    %c0_i32 = arith.constant 0 : i32
    %c0_i32_0 = arith.constant 0 : i32
    return %c0_i32, %arg1 : i32, i32
  }
  func.func @transform_2(%arg0: i32, %arg1: i32) -> (i32, i32) {
    %c0_i32 = arith.constant 0 : i32
    %c0_i32_0 = arith.constant 0 : i32
    return %c0_i32, %arg1 : i32, i32
  }
  func.func @transform_3(%arg0: i32, %arg1: i32) -> (i32, i32) {
    %c0_i32 = arith.constant 0 : i32
    %c0_i32_0 = arith.constant 0 : i32
    return %c0_i32, %arg1 : i32, i32
  }
  func.func @transform_4(%arg0: i32, %arg1: i32) -> (i32, i32) {
    %c0_i32 = arith.constant 0 : i32
    return %arg0, %arg1 : i32, i32
  }
}

module attributes {stable_mosaic.version = 11 : i64} {
  func.func @kernel(%arg0: i32, %arg1: i32, %arg2: memref<32x640xbf16, #tpu.memory_space<vmem>>, %arg3: memref<640x128xbf16, #tpu.memory_space<vmem>>, %arg4: memref<1x128xf32, #tpu.memory_space<vmem>>, %arg5: memref<1x128xf32, #tpu.memory_space<vmem>>, %arg6: memref<32x128xf32, #tpu.memory_space<vmem>>) attributes {dimension_semantics = [#tpu.dimension_semantics<parallel>, #tpu.dimension_semantics<parallel>], iteration_bounds = array<i64: 1, 1>, scalar_prefetch = 0 : i64, scratch_operands = 0 : i64, tpu.core_type = #tpu.core_type<tc>, window_params = [{transform_indices = @transform_0, window_bounds = array<i64: 32, 640>}, {transform_indices = @transform_1, window_bounds = array<i64: 640, 128>}, {transform_indices = @transform_2, window_bounds = array<i64: 1, 128>}, {transform_indices = @transform_3, window_bounds = array<i64: 1, 128>}, {transform_indices = @transform_4, window_bounds = array<i64: 32, 128>}]} {
    %c0 = arith.constant 0 : index
    %c0_0 = arith.constant 0 : index
    %0 = vector.load %arg2[%c0, %c0_0] : memref<32x640xbf16, #tpu.memory_space<vmem>>, vector<32x640xbf16>
    %c0_1 = arith.constant 0 : index
    %c0_2 = arith.constant 0 : index
    %1 = vector.load %arg3[%c0_1, %c0_2] : memref<640x128xbf16, #tpu.memory_space<vmem>>, vector<640x128xbf16>
    %cst = arith.constant dense<0.000000e+00> : vector<32x128xf32>
    %2 = tpu.matmul %0, %1, %cst {dimension_numbers = #tpu.dot_dimension_numbers<[1], [0], [0], [1], [0, 0, 1, 1], [], []>} : vector<32x640xbf16>, vector<640x128xbf16>, vector<32x128xf32> -> vector<32x128xf32>
    %c0_3 = arith.constant 0 : index
    %c0_4 = arith.constant 0 : index
    %3 = vector.load %arg4[%c0_3, %c0_4] : memref<1x128xf32, #tpu.memory_space<vmem>>, vector<1x128xf32>
    %4 = vector.broadcast %3 : vector<1x128xf32> to vector<32x128xf32>
    %5 = arith.mulf %2, %4 : vector<32x128xf32>
    %c0_5 = arith.constant 0 : index
    %c0_6 = arith.constant 0 : index
    %6 = vector.load %arg5[%c0_5, %c0_6] : memref<1x128xf32, #tpu.memory_space<vmem>>, vector<1x128xf32>
    %7 = vector.broadcast %6 : vector<1x128xf32> to vector<32x128xf32>
    %8 = arith.addf %5, %7 : vector<32x128xf32>
    %cst_7 = arith.constant 0.000000e+00 : f32
    %9 = vector.broadcast %cst_7 : f32 to vector<32x128xf32>
    %10 = arith.cmpf ogt, %8, %9 : vector<32x128xf32>
    %cst_8 = arith.constant 0.00999999977 : f32
    %11 = vector.broadcast %cst_8 : f32 to vector<32x128xf32>
    %12 = arith.mulf %11, %8 : vector<32x128xf32>
    %13 = arith.select %10, %8, %12 : vector<32x128xi1>, vector<32x128xf32>
    %c0_9 = arith.constant 0 : index
    %c0_10 = arith.constant 0 : index
    %14 = vector.load %arg6[%c0_9, %c0_10] : memref<32x128xf32, #tpu.memory_space<vmem>>, vector<32x128xf32>
    tpu.vector_store %arg6[%c0_9, %c0_10], %13 {strides = array<i32>} : memref<32x128xf32, #tpu.memory_space<vmem>>, vector<32x128xf32>,
    return
  }
  func.func @transform_0(%arg0: i32, %arg1: i32) -> (i32, i32) {
    %c0_i32 = arith.constant 0 : i32
    %c0_i32_0 = arith.constant 0 : i32
    return %arg0, %c0_i32 : i32, i32
  }
  func.func @transform_1(%arg0: i32, %arg1: i32) -> (i32, i32) {
    %c0_i32 = arith.constant 0 : i32
    %c0_i32_0 = arith.constant 0 : i32
    return %c0_i32, %arg1 : i32, i32
  }
  func.func @transform_2(%arg0: i32, %arg1: i32) -> (i32, i32) {
    %c0_i32 = arith.constant 0 : i32
    %c0_i32_0 = arith.constant 0 : i32
    return %c0_i32, %arg1 : i32, i32
  }
  func.func @transform_3(%arg0: i32, %arg1: i32) -> (i32, i32) {
    %c0_i32 = arith.constant 0 : i32
    %c0_i32_0 = arith.constant 0 : i32
    return %c0_i32, %arg1 : i32, i32
  }
  func.func @transform_4(%arg0: i32, %arg1: i32) -> (i32, i32) {
    %c0_i32 = arith.constant 0 : i32
    return %arg0, %arg1 : i32, i32
  }
}

module attributes {stable_mosaic.version = 11 : i64} {
  func.func @kernel(%arg0: i32, %arg1: i32, %arg2: memref<8x1152xbf16, #tpu.memory_space<vmem>>, %arg3: memref<1152x256xbf16, #tpu.memory_space<vmem>>, %arg4: memref<1x256xf32, #tpu.memory_space<vmem>>, %arg5: memref<1x256xf32, #tpu.memory_space<vmem>>, %arg6: memref<8x256xf32, #tpu.memory_space<vmem>>) attributes {dimension_semantics = [#tpu.dimension_semantics<parallel>, #tpu.dimension_semantics<parallel>], iteration_bounds = array<i64: 1, 1>, scalar_prefetch = 0 : i64, scratch_operands = 0 : i64, tpu.core_type = #tpu.core_type<tc>, window_params = [{transform_indices = @transform_0, window_bounds = array<i64: 8, 1152>}, {transform_indices = @transform_1, window_bounds = array<i64: 1152, 256>}, {transform_indices = @transform_2, window_bounds = array<i64: 1, 256>}, {transform_indices = @transform_3, window_bounds = array<i64: 1, 256>}, {transform_indices = @transform_4, window_bounds = array<i64: 8, 256>}]} {
    %c0 = arith.constant 0 : index
    %c0_0 = arith.constant 0 : index
    %0 = vector.load %arg2[%c0, %c0_0] : memref<8x1152xbf16, #tpu.memory_space<vmem>>, vector<8x1152xbf16>
    %c0_1 = arith.constant 0 : index
    %c0_2 = arith.constant 0 : index
    %1 = vector.load %arg3[%c0_1, %c0_2] : memref<1152x256xbf16, #tpu.memory_space<vmem>>, vector<1152x256xbf16>
    %cst = arith.constant dense<0.000000e+00> : vector<8x256xf32>
    %2 = tpu.matmul %0, %1, %cst {dimension_numbers = #tpu.dot_dimension_numbers<[1], [0], [0], [1], [0, 0, 1, 1], [], []>} : vector<8x1152xbf16>, vector<1152x256xbf16>, vector<8x256xf32> -> vector<8x256xf32>
    %c0_3 = arith.constant 0 : index
    %c0_4 = arith.constant 0 : index
    %3 = vector.load %arg4[%c0_3, %c0_4] : memref<1x256xf32, #tpu.memory_space<vmem>>, vector<1x256xf32>
    %4 = vector.broadcast %3 : vector<1x256xf32> to vector<8x256xf32>
    %5 = arith.mulf %2, %4 : vector<8x256xf32>
    %c0_5 = arith.constant 0 : index
    %c0_6 = arith.constant 0 : index
    %6 = vector.load %arg5[%c0_5, %c0_6] : memref<1x256xf32, #tpu.memory_space<vmem>>, vector<1x256xf32>
    %7 = vector.broadcast %6 : vector<1x256xf32> to vector<8x256xf32>
    %8 = arith.addf %5, %7 : vector<8x256xf32>
    %c0_7 = arith.constant 0 : index
    %c0_8 = arith.constant 0 : index
    %9 = vector.load %arg6[%c0_7, %c0_8] : memref<8x256xf32, #tpu.memory_space<vmem>>, vector<8x256xf32>
    tpu.vector_store %arg6[%c0_7, %c0_8], %8 {strides = array<i32>} : memref<8x256xf32, #tpu.memory_space<vmem>>, vector<8x256xf32>,
    return
  }
  func.func @transform_0(%arg0: i32, %arg1: i32) -> (i32, i32) {
    %c0_i32 = arith.constant 0 : i32
    %c0_i32_0 = arith.constant 0 : i32
    return %arg0, %c0_i32 : i32, i32
  }
  func.func @transform_1(%arg0: i32, %arg1: i32) -> (i32, i32) {
    %c0_i32 = arith.constant 0 : i32
    %c0_i32_0 = arith.constant 0 : i32
    return %c0_i32, %arg1 : i32, i32
  }
  func.func @transform_2(%arg0: i32, %arg1: i32) -> (i32, i32) {
    %c0_i32 = arith.constant 0 : i32
    %c0_i32_0 = arith.constant 0 : i32
    return %c0_i32, %arg1 : i32, i32
  }
  func.func @transform_3(%arg0: i32, %arg1: i32) -> (i32, i32) {
    %c0_i32 = arith.constant 0 : i32
    %c0_i32_0 = arith.constant 0 : i32
    return %c0_i32, %arg1 : i32, i32
  }
  func.func @transform_4(%arg0: i32, %arg1: i32) -> (i32, i32) {
    %c0_i32 = arith.constant 0 : i32
    return %arg0, %arg1 : i32, i32
  }
}

module attributes {stable_mosaic.version = 11 : i64} {
  func.func @kernel(%arg0: i32, %arg1: i32, %arg2: memref<8x1024xbf16, #tpu.memory_space<vmem>>, %arg3: memref<1024x512xbf16, #tpu.memory_space<vmem>>, %arg4: memref<1x512xf32, #tpu.memory_space<vmem>>, %arg5: memref<1x512xf32, #tpu.memory_space<vmem>>, %arg6: memref<8x512xf32, #tpu.memory_space<vmem>>) attributes {dimension_semantics = [#tpu.dimension_semantics<parallel>, #tpu.dimension_semantics<parallel>], iteration_bounds = array<i64: 1, 4>, scalar_prefetch = 0 : i64, scratch_operands = 0 : i64, tpu.core_type = #tpu.core_type<tc>, window_params = [{transform_indices = @transform_0, window_bounds = array<i64: 8, 1024>}, {transform_indices = @transform_1, window_bounds = array<i64: 1024, 512>}, {transform_indices = @transform_2, window_bounds = array<i64: 1, 512>}, {transform_indices = @transform_3, window_bounds = array<i64: 1, 512>}, {transform_indices = @transform_4, window_bounds = array<i64: 8, 512>}]} {
    %c0 = arith.constant 0 : index
    %c0_0 = arith.constant 0 : index
    %0 = vector.load %arg2[%c0, %c0_0] : memref<8x1024xbf16, #tpu.memory_space<vmem>>, vector<8x1024xbf16>
    %c0_1 = arith.constant 0 : index
    %c0_2 = arith.constant 0 : index
    %1 = vector.load %arg3[%c0_1, %c0_2] : memref<1024x512xbf16, #tpu.memory_space<vmem>>, vector<1024x512xbf16>
    %cst = arith.constant dense<0.000000e+00> : vector<8x512xf32>
    %2 = tpu.matmul %0, %1, %cst {dimension_numbers = #tpu.dot_dimension_numbers<[1], [0], [0], [1], [0, 0, 1, 1], [], []>} : vector<8x1024xbf16>, vector<1024x512xbf16>, vector<8x512xf32> -> vector<8x512xf32>
    %c0_3 = arith.constant 0 : index
    %c0_4 = arith.constant 0 : index
    %3 = vector.load %arg4[%c0_3, %c0_4] : memref<1x512xf32, #tpu.memory_space<vmem>>, vector<1x512xf32>
    %4 = vector.broadcast %3 : vector<1x512xf32> to vector<8x512xf32>
    %5 = arith.mulf %2, %4 : vector<8x512xf32>
    %c0_5 = arith.constant 0 : index
    %c0_6 = arith.constant 0 : index
    %6 = vector.load %arg5[%c0_5, %c0_6] : memref<1x512xf32, #tpu.memory_space<vmem>>, vector<1x512xf32>
    %7 = vector.broadcast %6 : vector<1x512xf32> to vector<8x512xf32>
    %8 = arith.addf %5, %7 : vector<8x512xf32>
    %cst_7 = arith.constant 0.000000e+00 : f32
    %9 = vector.broadcast %cst_7 : f32 to vector<8x512xf32>
    %10 = arith.cmpf ogt, %8, %9 : vector<8x512xf32>
    %cst_8 = arith.constant 0.00999999977 : f32
    %11 = vector.broadcast %cst_8 : f32 to vector<8x512xf32>
    %12 = arith.mulf %11, %8 : vector<8x512xf32>
    %13 = arith.select %10, %8, %12 : vector<8x512xi1>, vector<8x512xf32>
    %c0_9 = arith.constant 0 : index
    %c0_10 = arith.constant 0 : index
    %14 = vector.load %arg6[%c0_9, %c0_10] : memref<8x512xf32, #tpu.memory_space<vmem>>, vector<8x512xf32>
    tpu.vector_store %arg6[%c0_9, %c0_10], %13 {strides = array<i32>} : memref<8x512xf32, #tpu.memory_space<vmem>>, vector<8x512xf32>,
    return
  }
  func.func @transform_0(%arg0: i32, %arg1: i32) -> (i32, i32) {
    %c0_i32 = arith.constant 0 : i32
    %c0_i32_0 = arith.constant 0 : i32
    return %arg0, %c0_i32 : i32, i32
  }
  func.func @transform_1(%arg0: i32, %arg1: i32) -> (i32, i32) {
    %c0_i32 = arith.constant 0 : i32
    %c0_i32_0 = arith.constant 0 : i32
    return %c0_i32, %arg1 : i32, i32
  }
  func.func @transform_2(%arg0: i32, %arg1: i32) -> (i32, i32) {
    %c0_i32 = arith.constant 0 : i32
    %c0_i32_0 = arith.constant 0 : i32
    return %c0_i32, %arg1 : i32, i32
  }
  func.func @transform_3(%arg0: i32, %arg1: i32) -> (i32, i32) {
    %c0_i32 = arith.constant 0 : i32
    %c0_i32_0 = arith.constant 0 : i32
    return %c0_i32, %arg1 : i32, i32
  }
  func.func @transform_4(%arg0: i32, %arg1: i32) -> (i32, i32) {
    %c0_i32 = arith.constant 0 : i32
    return %arg0, %arg1 : i32, i32
  }
}

module attributes {stable_mosaic.version = 11 : i64} {
  func.func @kernel(%arg0: i32, %arg1: i32, %arg2: memref<8x2048xbf16, #tpu.memory_space<vmem>>, %arg3: memref<2048x512xbf16, #tpu.memory_space<vmem>>, %arg4: memref<1x512xf32, #tpu.memory_space<vmem>>, %arg5: memref<1x512xf32, #tpu.memory_space<vmem>>, %arg6: memref<8x512xf32, #tpu.memory_space<vmem>>) attributes {dimension_semantics = [#tpu.dimension_semantics<parallel>, #tpu.dimension_semantics<parallel>], iteration_bounds = array<i64: 1, 2>, scalar_prefetch = 0 : i64, scratch_operands = 0 : i64, tpu.core_type = #tpu.core_type<tc>, window_params = [{transform_indices = @transform_0, window_bounds = array<i64: 8, 2048>}, {transform_indices = @transform_1, window_bounds = array<i64: 2048, 512>}, {transform_indices = @transform_2, window_bounds = array<i64: 1, 512>}, {transform_indices = @transform_3, window_bounds = array<i64: 1, 512>}, {transform_indices = @transform_4, window_bounds = array<i64: 8, 512>}]} {
    %c0 = arith.constant 0 : index
    %c0_0 = arith.constant 0 : index
    %0 = vector.load %arg2[%c0, %c0_0] : memref<8x2048xbf16, #tpu.memory_space<vmem>>, vector<8x2048xbf16>
    %c0_1 = arith.constant 0 : index
    %c0_2 = arith.constant 0 : index
    %1 = vector.load %arg3[%c0_1, %c0_2] : memref<2048x512xbf16, #tpu.memory_space<vmem>>, vector<2048x512xbf16>
    %cst = arith.constant dense<0.000000e+00> : vector<8x512xf32>
    %2 = tpu.matmul %0, %1, %cst {dimension_numbers = #tpu.dot_dimension_numbers<[1], [0], [0], [1], [0, 0, 1, 1], [], []>} : vector<8x2048xbf16>, vector<2048x512xbf16>, vector<8x512xf32> -> vector<8x512xf32>
    %c0_3 = arith.constant 0 : index
    %c0_4 = arith.constant 0 : index
    %3 = vector.load %arg4[%c0_3, %c0_4] : memref<1x512xf32, #tpu.memory_space<vmem>>, vector<1x512xf32>
    %4 = vector.broadcast %3 : vector<1x512xf32> to vector<8x512xf32>
    %5 = arith.mulf %2, %4 : vector<8x512xf32>
    %c0_5 = arith.constant 0 : index
    %c0_6 = arith.constant 0 : index
    %6 = vector.load %arg5[%c0_5, %c0_6] : memref<1x512xf32, #tpu.memory_space<vmem>>, vector<1x512xf32>
    %7 = vector.broadcast %6 : vector<1x512xf32> to vector<8x512xf32>
    %8 = arith.addf %5, %7 : vector<8x512xf32>
    %cst_7 = arith.constant 0.000000e+00 : f32
    %9 = vector.broadcast %cst_7 : f32 to vector<8x512xf32>
    %10 = arith.cmpf ogt, %8, %9 : vector<8x512xf32>
    %cst_8 = arith.constant 0.00999999977 : f32
    %11 = vector.broadcast %cst_8 : f32 to vector<8x512xf32>
    %12 = arith.mulf %11, %8 : vector<8x512xf32>
    %13 = arith.select %10, %8, %12 : vector<8x512xi1>, vector<8x512xf32>
    %c0_9 = arith.constant 0 : index
    %c0_10 = arith.constant 0 : index
    %14 = vector.load %arg6[%c0_9, %c0_10] : memref<8x512xf32, #tpu.memory_space<vmem>>, vector<8x512xf32>
    tpu.vector_store %arg6[%c0_9, %c0_10], %13 {strides = array<i32>} : memref<8x512xf32, #tpu.memory_space<vmem>>, vector<8x512xf32>,
    return
  }
  func.func @transform_0(%arg0: i32, %arg1: i32) -> (i32, i32) {
    %c0_i32 = arith.constant 0 : i32
    %c0_i32_0 = arith.constant 0 : i32
    return %arg0, %c0_i32 : i32, i32
  }
  func.func @transform_1(%arg0: i32, %arg1: i32) -> (i32, i32) {
    %c0_i32 = arith.constant 0 : i32
    %c0_i32_0 = arith.constant 0 : i32
    return %c0_i32, %arg1 : i32, i32
  }
  func.func @transform_2(%arg0: i32, %arg1: i32) -> (i32, i32) {
    %c0_i32 = arith.constant 0 : i32
    %c0_i32_0 = arith.constant 0 : i32
    return %c0_i32, %arg1 : i32, i32
  }
  func.func @transform_3(%arg0: i32, %arg1: i32) -> (i32, i32) {
    %c0_i32 = arith.constant 0 : i32
    %c0_i32_0 = arith.constant 0 : i32
    return %c0_i32, %arg1 : i32, i32
  }
  func.func @transform_4(%arg0: i32, %arg1: i32) -> (i32, i32) {
    %c0_i32 = arith.constant 0 : i32
    return %arg0, %arg1 : i32, i32
  }
}

module attributes {stable_mosaic.version = 11 : i64} {
  func.func @kernel(%arg0: i32, %arg1: i32, %arg2: memref<8x1024xbf16, #tpu.memory_space<vmem>>, %arg3: memref<1024x128xbf16, #tpu.memory_space<vmem>>, %arg4: memref<1x128xf32, #tpu.memory_space<vmem>>, %arg5: memref<1x128xf32, #tpu.memory_space<vmem>>, %arg6: memref<8x128xf32, #tpu.memory_space<vmem>>) attributes {dimension_semantics = [#tpu.dimension_semantics<parallel>, #tpu.dimension_semantics<parallel>], iteration_bounds = array<i64: 1, 1>, scalar_prefetch = 0 : i64, scratch_operands = 0 : i64, tpu.core_type = #tpu.core_type<tc>, window_params = [{transform_indices = @transform_0, window_bounds = array<i64: 8, 1024>}, {transform_indices = @transform_1, window_bounds = array<i64: 1024, 128>}, {transform_indices = @transform_2, window_bounds = array<i64: 1, 128>}, {transform_indices = @transform_3, window_bounds = array<i64: 1, 128>}, {transform_indices = @transform_4, window_bounds = array<i64: 8, 128>}]} {
    %c0 = arith.constant 0 : index
    %c0_0 = arith.constant 0 : index
    %0 = vector.load %arg2[%c0, %c0_0] : memref<8x1024xbf16, #tpu.memory_space<vmem>>, vector<8x1024xbf16>
    %c0_1 = arith.constant 0 : index
    %c0_2 = arith.constant 0 : index
    %1 = vector.load %arg3[%c0_1, %c0_2] : memref<1024x128xbf16, #tpu.memory_space<vmem>>, vector<1024x128xbf16>
    %cst = arith.constant dense<0.000000e+00> : vector<8x128xf32>
    %2 = tpu.matmul %0, %1, %cst {dimension_numbers = #tpu.dot_dimension_numbers<[1], [0], [0], [1], [0, 0, 1, 1], [], []>} : vector<8x1024xbf16>, vector<1024x128xbf16>, vector<8x128xf32> -> vector<8x128xf32>
    %c0_3 = arith.constant 0 : index
    %c0_4 = arith.constant 0 : index
    %3 = vector.load %arg4[%c0_3, %c0_4] : memref<1x128xf32, #tpu.memory_space<vmem>>, vector<1x128xf32>
    %4 = vector.broadcast %3 : vector<1x128xf32> to vector<8x128xf32>
    %5 = arith.mulf %2, %4 : vector<8x128xf32>
    %c0_5 = arith.constant 0 : index
    %c0_6 = arith.constant 0 : index
    %6 = vector.load %arg5[%c0_5, %c0_6] : memref<1x128xf32, #tpu.memory_space<vmem>>, vector<1x128xf32>
    %7 = vector.broadcast %6 : vector<1x128xf32> to vector<8x128xf32>
    %8 = arith.addf %5, %7 : vector<8x128xf32>
    %c0_7 = arith.constant 0 : index
    %c0_8 = arith.constant 0 : index
    %9 = vector.load %arg6[%c0_7, %c0_8] : memref<8x128xf32, #tpu.memory_space<vmem>>, vector<8x128xf32>
    tpu.vector_store %arg6[%c0_7, %c0_8], %8 {strides = array<i32>} : memref<8x128xf32, #tpu.memory_space<vmem>>, vector<8x128xf32>,
    return
  }
  func.func @transform_0(%arg0: i32, %arg1: i32) -> (i32, i32) {
    %c0_i32 = arith.constant 0 : i32
    %c0_i32_0 = arith.constant 0 : i32
    return %arg0, %c0_i32 : i32, i32
  }
  func.func @transform_1(%arg0: i32, %arg1: i32) -> (i32, i32) {
    %c0_i32 = arith.constant 0 : i32
    %c0_i32_0 = arith.constant 0 : i32
    return %c0_i32, %arg1 : i32, i32
  }
  func.func @transform_2(%arg0: i32, %arg1: i32) -> (i32, i32) {
    %c0_i32 = arith.constant 0 : i32
    %c0_i32_0 = arith.constant 0 : i32
    return %c0_i32, %arg1 : i32, i32
  }
  func.func @transform_3(%arg0: i32, %arg1: i32) -> (i32, i32) {
    %c0_i32 = arith.constant 0 : i32
    %c0_i32_0 = arith.constant 0 : i32
    return %c0_i32, %arg1 : i32, i32
  }
  func.func @transform_4(%arg0: i32, %arg1: i32) -> (i32, i32) {
    %c0_i32 = arith.constant 0 : i32
    return %arg0, %arg1 : i32, i32
  }
}

</mosaic_0001>

<bundles_post_ra>
// kernel: model_naive_forward.8
= control target key start
LH: loop header
LB: loop body
LE: loop exit
PB: predicated region body
PF: predicated region fallthrough
CT: control target
= control target key end

     0   :  { %s1347_s15 = smov 0   ;;  %s1349_s16 = smov 0   ;;  %s1597_s0 = inlined_call_operand.vmem [shape: bf16[1568,128], index: 0, kind: input, shape index: {}]   ;;  %s1598_s1 = inlined_call_operand.vmem [shape: bf16[128,128], index: 1, kind: input, shape index: {}]   ;;  %s1599_s2 = inlined_call_operand.vmem [shape: f32[1,128], index: 2, kind: input, shape index: {}]   ;;  %s1600_s3 = inlined_call_operand.vmem [shape: f32[1,128], index: 3, kind: input, shape index: {}]   ;;  %s1601_s4 = inlined_call_operand.vmem [shape: f32[1568,128], index: 4, kind: output, shape index: {}]  }
   0x1   :  { %s1351_s17 = smov 0  }
   0x2 LB: > { %s26_s18 = sadd.s32 1, %s1316_s16  ;;  %p1083_p0 = scmp.ge.s32.totalorder %s1320_s17, 1  ;;  %s1320_s17 = sphi %s1351_s17, %s14_s17   ;;  %s1316_s16 = sphi %s1349_s16, %s1603_s16   ;;  %s1312_s15 = sphi %s1347_s15, %s1602_s15  }
   0x3   : > { %p28_p1 = scmp.ge.s32.totalorder %s26_s18, 4  ;;  %p202_p2 = scmp.lt.s32.totalorder %s1320_s17, 5 }
   0x5   : > { %s1605_s18 = smov (%p28_p1, %s26_s18), 0  ;;  %p203_p3 = pnand %p1083_p0, %p202_p2 }
   0x6   : > { %s241_s27 = smul.u32 (!%p203_p3), 49, %s1312_s15 }
   0x7   : > { %206 = sbr.rel (%p203_p3) target bundleno = 288 (0x120), region = 36 }
   0x8   : > { %p242_p4 = scmp.lt.s32.totalorder (!%p203_p3), %s241_s27, 195 }
   0xc   : > { %v1247_v0 = vld [vmem:[%s1598_s1 + $0x38] sm:$0xff]  ;;  %v1246_v1 = vld [vmem:[%s1598_s1 + $0x30] sm:$0xff]  ;;  %v1245_v2 = vld [vmem:[%s1598_s1 + $0x28] sm:$0xff]  ;;  %s1607_s27 = smov (!%p242_p4, %s241_s27), 195 }
   0xd   : > { %1249 = vmatpush.bf16.msra.mxu2 %v1247_v0  ;;  %527 = vmatpush.bf16.msra.mxu0 %v1247_v0  ;;  %v1244_v3 = vld [vmem:[%s1598_s1 + $0x20] sm:$0xff]  ;;  %v1243_v4 = vld [vmem:[%s1598_s1 + $0x18] sm:$0xff]  ;;  %v1242_v5 = vld [vmem:[%s1598_s1 + $0x10] sm:$0xff]  ;;  %s1084_s8 = sshll.u32 %s1607_s27, 2  ;;  %s1085_s21 = sshll.u32 %s1607_s27, 3 }
   0xe   : > { %1248 = vmatpush.bf16.msra.mxu1 %v1247_v0  ;;  %1250 = vmatpush.bf16.msra.mxu3 %v1247_v0  ;;  %v1241_v6 = vld [vmem:[%s1598_s1 + $0x8] sm:$0xff]  ;;  %v1240_v7 = vld [vmem:[%s1598_s1] sm:$0xff]  ;;  %s1398_s13 = scalar_lea.vmem %s1597_s0, %s1084_s8  ;;  %s1443_s24 = scalar_lea.vmem %s1601_s4, %s1085_s21 }
   0xf   : > { %v1228_v8 = vld [vmem:[%s1398_s13 + $0x60] sm:$0xff]  ;;  %v1222_v10 = vld [vmem:[%s1398_s13 + $0x30] sm:$0xff]  ;;  %v1235_v11 = vld [vmem:[%s1398_s13 + $0x98] sm:$0xff] }
  0x10   : > { %v1216_v9 = vld [vmem:[%s1398_s13] sm:$0xff]  ;;  %v1229_v12 = vld [vmem:[%s1398_s13 + $0x68] sm:$0xff]  ;;  %v1223_v14 = vld [vmem:[%s1398_s13 + $0x38] sm:$0xff] }
  0x11   : > { %1252 = vmatpush.bf16.msra.mxu2 %v1246_v1  ;;  %528 = vmatpush.bf16.msra.mxu0 %v1246_v1  ;;  %v1217_v13 = vld [vmem:[%s1398_s13 + $0x8] sm:$0xff]  ;;  %v1236_v15 = vld [vmem:[%s1398_s13 + $0xa0] sm:$0xff]  ;;  %v1230_v16 = vld [vmem:[%s1398_s13 + $0x70] sm:$0xff] }
  0x12   : > { %1251 = vmatpush.bf16.msra.mxu1 %v1246_v1  ;;  %1253 = vmatpush.bf16.msra.mxu3 %v1246_v1  ;;  %v1218_v17 = vld [vmem:[%s1398_s13 + $0x10] sm:$0xff]  ;;  %v1224_v18 = vld [vmem:[%s1398_s13 + $0x40] sm:$0xff]  ;;  %v1237_v19 = vld [vmem:[%s1398_s13 + $0xa8] sm:$0xff] }
  0x13   : > { %v1231_v20 = vld [vmem:[%s1398_s13 + $0x78] sm:$0xff]  ;;  %v1225_v22 = vld [vmem:[%s1398_s13 + $0x48] sm:$0xff]  ;;  %v1238_v23 = vld [vmem:[%s1398_s13 + $0xb0] sm:$0xff] }
  0x14   : > { %v1219_v21 = vld [vmem:[%s1398_s13 + $0x18] sm:$0xff]  ;;  %v1232_v24 = vld [vmem:[%s1398_s13 + $0x80] sm:$0xff]  ;;  %v1226_v26 = vld [vmem:[%s1398_s13 + $0x50] sm:$0xff] }
  0x15   : > { %1255 = vmatpush.bf16.msra.mxu2 %v1245_v2  ;;  %529 = vmatpush.bf16.msra.mxu0 %v1245_v2  ;;  %v1220_v25 = vld [vmem:[%s1398_s13 + $0x20] sm:$0xff]  ;;  %v1239_v27 = vld [vmem:[%s1398_s13 + $0xb8] sm:$0xff]  ;;  %v1233_v30 = vld [vmem:[%s1398_s13 + $0x88] sm:$0xff] }
  0x16   : > { %1254 = vmatpush.bf16.msra.mxu1 %v1245_v2  ;;  %1256 = vmatpush.bf16.msra.mxu3 %v1245_v2  ;;  %v314_v28 = vld [vmem:[%s1398_s13 + $0xc0] sm:$0xf]  ;;  %v1221_v31 = vld [vmem:[%s1398_s13 + $0x28] sm:$0xff]  ;;  %v1227_v32 = vld [vmem:[%s1398_s13 + $0x58] sm:$0xff] }
  0x17   : > { %v428_v29 = vunpack.c.l.b16 %v314_v28  ;;  %v1234_v34 = vld [vmem:[%s1398_s13 + $0x90] sm:$0xff]  ;;  %v1428_v35 = vld [vmem:[%s1599_s2] ss:$0 sm:$0xff] }
  0x18   : > { %v1433_v37 = vld [vmem:[%s1600_s3] ss:$0 sm:$0xff] }
  0x19   : > { %1258 = vmatpush.bf16.msra.mxu2 %v1244_v3  ;;  %530 = vmatpush.bf16.msra.mxu0 %v1244_v3  ;;  %v453_v33 = vpack.c.b16 %v428_v29, %v428_v29 }
  0x1a   : > { %1257 = vmatpush.bf16.msra.mxu1 %v1244_v3  ;;  %1259 = vmatpush.bf16.msra.mxu3 %v1244_v3 }
  0x1d   : > { %1261 = vmatpush.bf16.msra.mxu2 %v1243_v4  ;;  %531 = vmatpush.bf16.msra.mxu0 %v1243_v4 }
  0x1e   : > { %1260 = vmatpush.bf16.msra.mxu1 %v1243_v4  ;;  %1262 = vmatpush.bf16.msra.mxu3 %v1243_v4 }
  0x21   : > { %1264 = vmatpush.bf16.msra.mxu2 %v1242_v5  ;;  %532 = vmatpush.bf16.msra.mxu0 %v1242_v5 }
  0x22   : > { %1263 = vmatpush.bf16.msra.mxu1 %v1242_v5  ;;  %1265 = vmatpush.bf16.msra.mxu3 %v1242_v5 }
  0x25   : > { %1267 = vmatpush.bf16.msra.mxu2 %v1241_v6  ;;  %533 = vmatpush.bf16.msra.mxu0 %v1241_v6 }
  0x26   : > { %1266 = vmatpush.bf16.msra.mxu1 %v1241_v6  ;;  %1268 = vmatpush.bf16.msra.mxu3 %v1241_v6 }
  0x29   : > { %1270 = vmatpush.bf16.msra.mxu2 %v1240_v7  ;;  %534 = vmatpush.bf16.msra.mxu0 %v1240_v7 }
  0x2a   : > { %1269 = vmatpush.bf16.msra.mxu1 %v1240_v7  ;;  %1271 = vmatpush.bf16.msra.mxu3 %v1240_v7 }
  0x2c   : > { %595 = vmatmul.bf16.vlgmr.msra.gmra.mxu2 %v1228_v8  ;;  %535 = vmatmul.bf16.vlgmr.msra.gmra.mxu0 %v1216_v9 }
  0x2d   : > { %565 = vmatmul.bf16.vlgmr.msra.gmra.mxu1 %v1222_v10  ;;  %630 = vmatmul.bf16.vlgmr.msra.gmra.mxu3 %v1235_v11 }
  0x3c   : > { %600 = vmatmul.bf16.gmra.mxu2 %v1229_v12  ;;  %540 = vmatmul.bf16.gmra.mxu0 %v1217_v13 }
  0x3d   : > { %570 = vmatmul.bf16.gmra.mxu1 %v1223_v14  ;;  %635 = vmatmul.bf16.gmra.mxu3 %v1236_v15 }
  0x4c   : > { %605 = vmatmul.bf16.gmra.mxu2 %v1230_v16  ;;  %545 = vmatmul.bf16.gmra.mxu0 %v1218_v17 }
  0x4d   : > { %575 = vmatmul.bf16.gmra.mxu1 %v1224_v18  ;;  %640 = vmatmul.bf16.gmra.mxu3 %v1237_v19 }
  0x5c   : > { %610 = vmatmul.bf16.gmra.mxu2 %v1231_v20  ;;  %550 = vmatmul.bf16.gmra.mxu0 %v1219_v21 }
  0x5d   : > { %580 = vmatmul.bf16.gmra.mxu1 %v1225_v22  ;;  %645 = vmatmul.bf16.gmra.mxu3 %v1238_v23 }
  0x6c   : > { %615 = vmatmul.bf16.gmra.mxu2 %v1232_v24  ;;  %555 = vmatmul.bf16.gmra.mxu0 %v1220_v25 }
  0x6d   : > { %585 = vmatmul.bf16.gmra.mxu1 %v1226_v26  ;;  %650 = vmatmul.bf16.gmra.mxu3 %v1239_v27 }
  0x7c   : > { %620 = vmatmul.bf16.gmra.mxu2 %v1233_v30  ;;  %560 = vmatmul.bf16.gmra.mxu0 %v1221_v31 }
  0x7d   : > { %590 = vmatmul.bf16.gmra.mxu1 %v1227_v32  ;;  %655 = vmatmul.bf16.gmra.mxu3 %v453_v33 }
  0x8c   : > { %625 = vmatmul.bf16.gmra.mxu2 %v1234_v34 }
  0xa9   : > { %v536_v36 = vpop.f32.mrf.mxu0 }
  0xaa   : > { %v664_v38 = vmul.f32 %v1428_v35, %v536_v36  ;;  %v566_v39 = vpop.f32.mrf.mxu1 }
  0xab   : > { %v676_v40 = vmul.f32 %v1428_v35, %v566_v39 }
  0xac   : > { %v717_v41 = vadd.f32 %v1433_v37, %v664_v38 }
  0xad   : > { %v729_v42 = vadd.f32 %v1433_v37, %v676_v40 }
  0xae   : > { %vm766_vm0 = vcmp.gt.f32.partialorder %v717_v41, 0.0  ;;  %v815_v43 = vmul.f32 0.01, %v717_v41 }
  0xaf   : > { %v596_v44 = vpop.f32.mrf.mxu2  ;;  %vm778_vm1 = vcmp.gt.f32.partialorder %v729_v42, 0.0  ;;  %v827_v45 = vmul.f32 0.01, %v729_v42 }
  0xb0   : > { %v688_v46 = vmul.f32 %v1428_v35, %v596_v44  ;;  %v864_v47 = vsel %vm766_vm0, %v717_v41, %v815_v43  ;;  %v631_v48 = vpop.f32.mrf.mxu3 }
  0xb1   : > { %913 = vst [vmem:[%s1443_s24] sm:$0xff] %v864_v47  ;;  %v876_v49 = vsel %vm778_vm1, %v729_v42, %v827_v45  ;;  %v538_v50 = vpop.f32.mrf.mxu0  ;;  %v702_v51 = vmul.f32 %v1428_v35, %v631_v48 }
  0xb2   : > { %v741_v52 = vadd.f32 %v1433_v37, %v688_v46  ;;  %925 = vst [vmem:[%s1443_s24 + $0x60] sm:$0xff] %v876_v49  ;;  %v665_v53 = vmul.f32 %v1428_v35, %v538_v50  ;;  %v568_v54 = vpop.f32.mrf.mxu1 }
  0xb3   : > { %v677_v55 = vmul.f32 %v1428_v35, %v568_v54  ;;  %v755_v56 = vadd.f32 %v1433_v37, %v702_v51 }
  0xb4   : > { %vm790_vm2 = vcmp.gt.f32.partialorder %v741_v52, 0.0  ;;  %v839_v57 = vmul.f32 0.01, %v741_v52  ;;  %v718_v58 = vadd.f32 %v1433_v37, %v665_v53 }
  0xb5   : > { %v730_v59 = vadd.f32 %v1433_v37, %v677_v55  ;;  %vm804_vm3 = vcmp.gt.f32.partialorder %v755_v56, 0.0  ;;  %v853_v60 = vmul.f32 0.01, %v755_v56 }
  0xb6   : > { %v888_v61 = vsel %vm790_vm2, %v741_v52, %v839_v57  ;;  %vm767_vm4 = vcmp.gt.f32.partialorder %v718_v58, 0.0  ;;  %v816_v62 = vmul.f32 0.01, %v718_v58 }
  0xb7   : > { %937 = vst [vmem:[%s1443_s24 + $0xc0] sm:$0xff] %v888_v61  ;;  %v598_v63 = vpop.f32.mrf.mxu2  ;;  %vm779_vm5 = vcmp.gt.f32.partialorder %v730_v59, 0.0  ;;  %v828_v0 = vmul.f32 0.01, %v730_v59  ;;  %v902_v1 = vsel %vm804_vm3, %v755_v56, %v853_v60 }
  0xb8   : > { %v689_v2 = vmul.f32 %v1428_v35, %v598_v63  ;;  %v865_v3 = vsel %vm767_vm4, %v718_v58, %v816_v62  ;;  %951 = vst [vmem:[%s1443_s24 + $0x130] sm:$0xff] %v902_v1  ;;  %v633_v4 = vpop.f32.mrf.mxu3 }
  0xb9   : > { %914 = vst [vmem:[%s1443_s24 + $0x8] sm:$0xff] %v865_v3  ;;  %v877_v5 = vsel %vm779_vm5, %v730_v59, %v828_v0  ;;  %v541_v6 = vpop.f32.mrf.mxu0  ;;  %v703_v7 = vmul.f32 %v1428_v35, %v633_v4 }
  0xba   : > { %v742_v8 = vadd.f32 %v1433_v37, %v689_v2  ;;  %926 = vst [vmem:[%s1443_s24 + $0x68] sm:$0xff] %v877_v5  ;;  %v666_v9 = vmul.f32 %v1428_v35, %v541_v6  ;;  %v571_v10 = vpop.f32.mrf.mxu1 }
  0xbb   : > { %v678_v11 = vmul.f32 %v1428_v35, %v571_v10  ;;  %v756_v12 = vadd.f32 %v1433_v37, %v703_v7 }
  0xbc   : > { %vm791_vm6 = vcmp.gt.f32.partialorder %v742_v8, 0.0  ;;  %v840_v13 = vmul.f32 0.01, %v742_v8  ;;  %v719_v14 = vadd.f32 %v1433_v37, %v666_v9 }
  0xbd   : > { %v731_v15 = vadd.f32 %v1433_v37, %v678_v11  ;;  %vm805_vm7 = vcmp.gt.f32.partialorder %v756_v12, 0.0  ;;  %v854_v16 = vmul.f32 0.01, %v756_v12 }
  0xbe   : > { %v889_v17 = vsel %vm791_vm6, %v742_v8, %v840_v13  ;;  %vm768_vm8 = vcmp.gt.f32.partialorder %v719_v14, 0.0  ;;  %v817_v18 = vmul.f32 0.01, %v719_v14 }
  0xbf   : > { %938 = vst [vmem:[%s1443_s24 + $0xc8] sm:$0xff] %v889_v17  ;;  %v601_v19 = vpop.f32.mrf.mxu2  ;;  %vm780_vm9 = vcmp.gt.f32.partialorder %v731_v15, 0.0  ;;  %v829_v20 = vmul.f32 0.01, %v731_v15  ;;  %v903_v21 = vsel %vm805_vm7, %v756_v12, %v854_v16 }
  0xc0   : > { %v690_v22 = vmul.f32 %v1428_v35, %v601_v19  ;;  %v866_v23 = vsel %vm768_vm8, %v719_v14, %v817_v18  ;;  %952 = vst [vmem:[%s1443_s24 + $0x138] sm:$0xff] %v903_v21  ;;  %v636_v24 = vpop.f32.mrf.mxu3 }
  0xc1   : > { %915 = vst [vmem:[%s1443_s24 + $0x10] sm:$0xff] %v866_v23  ;;  %v878_v25 = vsel %vm780_vm9, %v731_v15, %v829_v20  ;;  %v543_v26 = vpop.f32.mrf.mxu0  ;;  %v704_v27 = vmul.f32 %v1428_v35, %v636_v24 }
  0xc2   : > { %v743_v28 = vadd.f32 %v1433_v37, %v690_v22  ;;  %927 = vst [vmem:[%s1443_s24 + $0x70] sm:$0xff] %v878_v25  ;;  %v667_v29 = vmul.f32 %v1428_v35, %v543_v26  ;;  %v573_v30 = vpop.f32.mrf.mxu1 }
  0xc3   : > { %v679_v31 = vmul.f32 %v1428_v35, %v573_v30  ;;  %v757_v32 = vadd.f32 %v1433_v37, %v704_v27 }
  0xc4   : > { %vm792_vm10 = vcmp.gt.f32.partialorder %v743_v28, 0.0  ;;  %v841_v33 = vmul.f32 0.01, %v743_v28  ;;  %v720_v34 = vadd.f32 %v1433_v37, %v667_v29 }
  0xc5   : > { %v732_v36 = vadd.f32 %v1433_v37, %v679_v31  ;;  %vm806_vm11 = vcmp.gt.f32.partialorder %v757_v32, 0.0  ;;  %v855_v38 = vmul.f32 0.01, %v757_v32 }
  0xc6   : > { %v890_v39 = vsel %vm792_vm10, %v743_v28, %v841_v33  ;;  %vm769_vm12 = vcmp.gt.f32.partialorder %v720_v34, 0.0  ;;  %v818_v40 = vmul.f32 0.01, %v720_v34 }
  0xc7   : > { %939 = vst [vmem:[%s1443_s24 + $0xd0] sm:$0xff] %v890_v39  ;;  %v603_v41 = vpop.f32.mrf.mxu2  ;;  %vm781_vm13 = vcmp.gt.f32.partialorder %v732_v36, 0.0  ;;  %v830_v42 = vmul.f32 0.01, %v732_v36  ;;  %v904_v43 = vsel %vm806_vm11, %v757_v32, %v855_v38 }
  0xc8   : > { %v691_v44 = vmul.f32 %v1428_v35, %v603_v41  ;;  %v867_v45 = vsel %vm769_vm12, %v720_v34, %v818_v40  ;;  %953 = vst [vmem:[%s1443_s24 + $0x140] sm:$0xff] %v904_v43  ;;  %v638_v46 = vpop.f32.mrf.mxu3 }
  0xc9   : > { %916 = vst [vmem:[%s1443_s24 + $0x18] sm:$0xff] %v867_v45  ;;  %v879_v47 = vsel %vm781_vm13, %v732_v36, %v830_v42  ;;  %v546_v48 = vpop.f32.mrf.mxu0  ;;  %v705_v49 = vmul.f32 %v1428_v35, %v638_v46 }
  0xca   : > { %v744_v50 = vadd.f32 %v1433_v37, %v691_v44  ;;  %928 = vst [vmem:[%s1443_s24 + $0x78] sm:$0xff] %v879_v47  ;;  %v668_v51 = vmul.f32 %v1428_v35, %v546_v48  ;;  %v576_v52 = vpop.f32.mrf.mxu1 }
  0xcb   : > { %v680_v53 = vmul.f32 %v1428_v35, %v576_v52  ;;  %v758_v54 = vadd.f32 %v1433_v37, %v705_v49 }
  0xcc   : > { %vm793_vm14 = vcmp.gt.f32.partialorder %v744_v50, 0.0  ;;  %v842_v55 = vmul.f32 0.01, %v744_v50  ;;  %v721_v56 = vadd.f32 %v1433_v37, %v668_v51 }
  0xcd   : > { %v733_v57 = vadd.f32 %v1433_v37, %v680_v53  ;;  %vm807_vm15 = vcmp.gt.f32.partialorder %v758_v54, 0.0  ;;  %v856_v58 = vmul.f32 0.01, %v758_v54 }
  0xce   : > { %v891_v59 = vsel %vm793_vm14, %v744_v50, %v842_v55  ;;  %vm770_vm0 = vcmp.gt.f32.partialorder %v721_v56, 0.0  ;;  %v819_v60 = vmul.f32 0.01, %v721_v56 }
  0xcf   : > { %940 = vst [vmem:[%s1443_s24 + $0xd8] sm:$0xff] %v891_v59  ;;  %v606_v61 = vpop.f32.mrf.mxu2  ;;  %vm782_vm1 = vcmp.gt.f32.partialorder %v733_v57, 0.0  ;;  %v831_v62 = vmul.f32 0.01, %v733_v57  ;;  %v905_v63 = vsel %vm807_vm15, %v758_v54, %v856_v58 }
  0xd0   : > { %v692_v0 = vmul.f32 %v1428_v35, %v606_v61  ;;  %v868_v1 = vsel %vm770_vm0, %v721_v56, %v819_v60  ;;  %954 = vst [vmem:[%s1443_s24 + $0x148] sm:$0xff] %v905_v63  ;;  %v641_v2 = vpop.f32.mrf.mxu3 }
  0xd1   : > { %917 = vst [vmem:[%s1443_s24 + $0x20] sm:$0xff] %v868_v1  ;;  %v880_v3 = vsel %vm782_vm1, %v733_v57, %v831_v62  ;;  %v548_v4 = vpop.f32.mrf.mxu0  ;;  %v706_v5 = vmul.f32 %v1428_v35, %v641_v2 }
  0xd2   : > { %v745_v6 = vadd.f32 %v1433_v37, %v692_v0  ;;  %929 = vst [vmem:[%s1443_s24 + $0x80] sm:$0xff] %v880_v3  ;;  %v669_v7 = vmul.f32 %v1428_v35, %v548_v4  ;;  %v578_v8 = vpop.f32.mrf.mxu1 }
  0xd3   : > { %v681_v9 = vmul.f32 %v1428_v35, %v578_v8  ;;  %v759_v10 = vadd.f32 %v1433_v37, %v706_v5 }
  0xd4   : > { %vm794_vm2 = vcmp.gt.f32.partialorder %v745_v6, 0.0  ;;  %v843_v11 = vmul.f32 0.01, %v745_v6  ;;  %v722_v12 = vadd.f32 %v1433_v37, %v669_v7 }
  0xd5   : > { %v734_v13 = vadd.f32 %v1433_v37, %v681_v9  ;;  %vm808_vm3 = vcmp.gt.f32.partialorder %v759_v10, 0.0  ;;  %v857_v14 = vmul.f32 0.01, %v759_v10 }
  0xd6   : > { %v892_v15 = vsel %vm794_vm2, %v745_v6, %v843_v11  ;;  %vm771_vm4 = vcmp.gt.f32.partialorder %v722_v12, 0.0  ;;  %v820_v16 = vmul.f32 0.01, %v722_v12 }
  0xd7   : > { %941 = vst [vmem:[%s1443_s24 + $0xe0] sm:$0xff] %v892_v15  ;;  %v608_v17 = vpop.f32.mrf.mxu2  ;;  %vm783_vm5 = vcmp.gt.f32.partialorder %v734_v13, 0.0  ;;  %v832_v18 = vmul.f32 0.01, %v734_v13  ;;  %v906_v19 = vsel %vm808_vm3, %v759_v10, %v857_v14 }
  0xd8   : > { %v693_v20 = vmul.f32 %v1428_v35, %v608_v17  ;;  %v869_v21 = vsel %vm771_vm4, %v722_v12, %v820_v16  ;;  %955 = vst [vmem:[%s1443_s24 + $0x150] sm:$0xff] %v906_v19  ;;  %v643_v22 = vpop.f32.mrf.mxu3 }
  0xd9   : > { %918 = vst [vmem:[%s1443_s24 + $0x28] sm:$0xff] %v869_v21  ;;  %v881_v23 = vsel %vm783_vm5, %v734_v13, %v832_v18  ;;  %v551_v24 = vpop.f32.mrf.mxu0  ;;  %v707_v25 = vmul.f32 %v1428_v35, %v643_v22 }
  0xda   : > { %v746_v26 = vadd.f32 %v1433_v37, %v693_v20  ;;  %930 = vst [vmem:[%s1443_s24 + $0x88] sm:$0xff] %v881_v23  ;;  %v670_v27 = vmul.f32 %v1428_v35, %v551_v24  ;;  %v581_v28 = vpop.f32.mrf.mxu1 }
  0xdb   : > { %v682_v29 = vmul.f32 %v1428_v35, %v581_v28  ;;  %v760_v30 = vadd.f32 %v1433_v37, %v707_v25 }
  0xdc   : > { %vm795_vm6 = vcmp.gt.f32.partialorder %v746_v26, 0.0  ;;  %v844_v31 = vmul.f32 0.01, %v746_v26  ;;  %v723_v32 = vadd.f32 %v1433_v37, %v670_v27 }
  0xdd   : > { %v735_v33 = vadd.f32 %v1433_v37, %v682_v29  ;;  %vm809_vm7 = vcmp.gt.f32.partialorder %v760_v30, 0.0  ;;  %v858_v34 = vmul.f32 0.01, %v760_v30 }
  0xde   : > { %v893_v36 = vsel %vm795_vm6, %v746_v26, %v844_v31  ;;  %vm772_vm8 = vcmp.gt.f32.partialorder %v723_v32, 0.0  ;;  %v821_v38 = vmul.f32 0.01, %v723_v32 }
  0xdf   : > { %942 = vst [vmem:[%s1443_s24 + $0xe8] sm:$0xff] %v893_v36  ;;  %v611_v39 = vpop.f32.mrf.mxu2  ;;  %vm784_vm9 = vcmp.gt.f32.partialorder %v735_v33, 0.0  ;;  %v833_v40 = vmul.f32 0.01, %v735_v33  ;;  %v907_v41 = vsel %vm809_vm7, %v760_v30, %v858_v34 }
  0xe0   : > { %v694_v42 = vmul.f32 %v1428_v35, %v611_v39  ;;  %v870_v43 = vsel %vm772_vm8, %v723_v32, %v821_v38  ;;  %956 = vst [vmem:[%s1443_s24 + $0x158] sm:$0xff] %v907_v41  ;;  %v646_v44 = vpop.f32.mrf.mxu3 }
  0xe1   : > { %919 = vst [vmem:[%s1443_s24 + $0x30] sm:$0xff] %v870_v43  ;;  %v882_v45 = vsel %vm784_vm9, %v735_v33, %v833_v40  ;;  %v553_v46 = vpop.f32.mrf.mxu0  ;;  %v708_v47 = vmul.f32 %v1428_v35, %v646_v44 }
  0xe2   : > { %v747_v48 = vadd.f32 %v1433_v37, %v694_v42  ;;  %931 = vst [vmem:[%s1443_s24 + $0x90] sm:$0xff] %v882_v45  ;;  %v671_v49 = vmul.f32 %v1428_v35, %v553_v46  ;;  %v583_v50 = vpop.f32.mrf.mxu1 }
  0xe3   : > { %v683_v51 = vmul.f32 %v1428_v35, %v583_v50  ;;  %v761_v52 = vadd.f32 %v1433_v37, %v708_v47 }
  0xe4   : > { %vm796_vm10 = vcmp.gt.f32.partialorder %v747_v48, 0.0  ;;  %v845_v53 = vmul.f32 0.01, %v747_v48  ;;  %v724_v54 = vadd.f32 %v1433_v37, %v671_v49 }
  0xe5   : > { %v736_v55 = vadd.f32 %v1433_v37, %v683_v51  ;;  %vm810_vm11 = vcmp.gt.f32.partialorder %v761_v52, 0.0  ;;  %v859_v56 = vmul.f32 0.01, %v761_v52 }
  0xe6   : > { %v894_v57 = vsel %vm796_vm10, %v747_v48, %v845_v53  ;;  %vm773_vm12 = vcmp.gt.f32.partialorder %v724_v54, 0.0  ;;  %v822_v58 = vmul.f32 0.01, %v724_v54 }
  0xe7   : > { %943 = vst [vmem:[%s1443_s24 + $0xf0] sm:$0xff] %v894_v57  ;;  %v613_v59 = vpop.f32.mrf.mxu2  ;;  %vm785_vm13 = vcmp.gt.f32.partialorder %v736_v55, 0.0  ;;  %v834_v60 = vmul.f32 0.01, %v736_v55  ;;  %v908_v61 = vsel %vm810_vm11, %v761_v52, %v859_v56 }
  0xe8   : > { %v695_v62 = vmul.f32 %v1428_v35, %v613_v59  ;;  %v871_v63 = vsel %vm773_vm12, %v724_v54, %v822_v58  ;;  %957 = vst [vmem:[%s1443_s24 + $0x160] sm:$0xff] %v908_v61  ;;  %v648_v0 = vpop.f32.mrf.mxu3 }
  0xe9   : > { %920 = vst [vmem:[%s1443_s24 + $0x38] sm:$0xff] %v871_v63  ;;  %v883_v1 = vsel %vm785_vm13, %v736_v55, %v834_v60  ;;  %v556_v2 = vpop.f32.mrf.mxu0  ;;  %v709_v3 = vmul.f32 %v1428_v35, %v648_v0 }
  0xea   : > { %v748_v4 = vadd.f32 %v1433_v37, %v695_v62  ;;  %932 = vst [vmem:[%s1443_s24 + $0x98] sm:$0xff] %v883_v1  ;;  %v672_v5 = vmul.f32 %v1428_v35, %v556_v2  ;;  %v586_v6 = vpop.f32.mrf.mxu1 }
  0xeb   : > { %v684_v7 = vmul.f32 %v1428_v35, %v586_v6  ;;  %v762_v8 = vadd.f32 %v1433_v37, %v709_v3 }
  0xec   : > { %vm797_vm14 = vcmp.gt.f32.partialorder %v748_v4, 0.0  ;;  %v846_v9 = vmul.f32 0.01, %v748_v4  ;;  %v725_v10 = vadd.f32 %v1433_v37, %v672_v5 }
  0xed   : > { %v737_v11 = vadd.f32 %v1433_v37, %v684_v7  ;;  %vm811_vm15 = vcmp.gt.f32.partialorder %v762_v8, 0.0  ;;  %v860_v12 = vmul.f32 0.01, %v762_v8 }
  0xee   : > { %v895_v13 = vsel %vm797_vm14, %v748_v4, %v846_v9  ;;  %vm774_vm0 = vcmp.gt.f32.partialorder %v725_v10, 0.0  ;;  %v823_v14 = vmul.f32 0.01, %v725_v10 }
  0xef   : > { %944 = vst [vmem:[%s1443_s24 + $0xf8] sm:$0xff] %v895_v13  ;;  %v616_v15 = vpop.f32.mrf.mxu2  ;;  %vm786_vm1 = vcmp.gt.f32.partialorder %v737_v11, 0.0  ;;  %v835_v16 = vmul.f32 0.01, %v737_v11  ;;  %v909_v17 = vsel %vm811_vm15, %v762_v8, %v860_v12 }
  0xf0   : > { %v696_v18 = vmul.f32 %v1428_v35, %v616_v15  ;;  %v872_v19 = vsel %vm774_vm0, %v725_v10, %v823_v14  ;;  %958 = vst [vmem:[%s1443_s24 + $0x168] sm:$0xff] %v909_v17  ;;  %v651_v20 = vpop.f32.mrf.mxu3 }
  0xf1   : > { %921 = vst [vmem:[%s1443_s24 + $0x40] sm:$0xff] %v872_v19  ;;  %v884_v21 = vsel %vm786_vm1, %v737_v11, %v835_v16  ;;  %v558_v22 = vpop.f32.mrf.mxu0  ;;  %v710_v23 = vmul.f32 %v1428_v35, %v651_v20 }
  0xf2   : > { %v749_v24 = vadd.f32 %v1433_v37, %v696_v18  ;;  %933 = vst [vmem:[%s1443_s24 + $0xa0] sm:$0xff] %v884_v21  ;;  %v673_v25 = vmul.f32 %v1428_v35, %v558_v22  ;;  %v588_v26 = vpop.f32.mrf.mxu1 }
  0xf3   : > { %v685_v27 = vmul.f32 %v1428_v35, %v588_v26  ;;  %v763_v28 = vadd.f32 %v1433_v37, %v710_v23 }
  0xf4   : > { %vm798_vm2 = vcmp.gt.f32.partialorder %v749_v24, 0.0  ;;  %v847_v29 = vmul.f32 0.01, %v749_v24  ;;  %v726_v30 = vadd.f32 %v1433_v37, %v673_v25 }
  0xf5   : > { %v738_v31 = vadd.f32 %v1433_v37, %v685_v27  ;;  %vm812_vm3 = vcmp.gt.f32.partialorder %v763_v28, 0.0  ;;  %v861_v32 = vmul.f32 0.01, %v763_v28 }
  0xf6   : > { %v896_v33 = vsel %vm798_vm2, %v749_v24, %v847_v29  ;;  %vm775_vm4 = vcmp.gt.f32.partialorder %v726_v30, 0.0  ;;  %v824_v34 = vmul.f32 0.01, %v726_v30 }
  0xf7   : > { %945 = vst [vmem:[%s1443_s24 + $0x100] sm:$0xff] %v896_v33  ;;  %v618_v36 = vpop.f32.mrf.mxu2  ;;  %vm787_vm5 = vcmp.gt.f32.partialorder %v738_v31, 0.0  ;;  %v836_v38 = vmul.f32 0.01, %v738_v31  ;;  %v910_v39 = vsel %vm812_vm3, %v763_v28, %v861_v32 }
  0xf8   : > { %v697_v40 = vmul.f32 %v1428_v35, %v618_v36  ;;  %v873_v41 = vsel %vm775_vm4, %v726_v30, %v824_v34  ;;  %959 = vst [vmem:[%s1443_s24 + $0x170] sm:$0xff] %v910_v39  ;;  %v653_v42 = vpop.f32.mrf.mxu3 }
  0xf9   : > { %922 = vst [vmem:[%s1443_s24 + $0x48] sm:$0xff] %v873_v41  ;;  %v885_v43 = vsel %vm787_vm5, %v738_v31, %v836_v38  ;;  %v561_v44 = vpop.f32.mrf.mxu0  ;;  %v711_v45 = vmul.f32 %v1428_v35, %v653_v42 }
  0xfa   : > { %v750_v46 = vadd.f32 %v1433_v37, %v697_v40  ;;  %934 = vst [vmem:[%s1443_s24 + $0xa8] sm:$0xff] %v885_v43  ;;  %v674_v47 = vmul.f32 %v1428_v35, %v561_v44  ;;  %v591_v48 = vpop.f32.mrf.mxu1 }
  0xfb   : > { %v686_v49 = vmul.f32 %v1428_v35, %v591_v48  ;;  %v764_v50 = vadd.f32 %v1433_v37, %v711_v45 }
  0xfc   : > { %vm799_vm6 = vcmp.gt.f32.partialorder %v750_v46, 0.0  ;;  %v848_v51 = vmul.f32 0.01, %v750_v46  ;;  %v727_v52 = vadd.f32 %v1433_v37, %v674_v47 }
  0xfd   : > { %v739_v53 = vadd.f32 %v1433_v37, %v686_v49  ;;  %vm813_vm7 = vcmp.gt.f32.partialorder %v764_v50, 0.0  ;;  %v862_v54 = vmul.f32 0.01, %v764_v50 }
  0xfe   : > { %v897_v55 = vsel %vm799_vm6, %v750_v46, %v848_v51  ;;  %vm776_vm8 = vcmp.gt.f32.partialorder %v727_v52, 0.0  ;;  %v825_v56 = vmul.f32 0.01, %v727_v52 }
  0xff   : > { %946 = vst [vmem:[%s1443_s24 + $0x108] sm:$0xff] %v897_v55  ;;  %v621_v57 = vpop.f32.mrf.mxu2  ;;  %vm788_vm9 = vcmp.gt.f32.partialorder %v739_v53, 0.0  ;;  %v837_v58 = vmul.f32 0.01, %v739_v53  ;;  %v911_v59 = vsel %vm813_vm7, %v764_v50, %v862_v54 }
 0x100   : > { %v698_v60 = vmul.f32 %v1428_v35, %v621_v57  ;;  %v874_v61 = vsel %vm776_vm8, %v727_v52, %v825_v56  ;;  %960 = vst [vmem:[%s1443_s24 + $0x178] sm:$0xff] %v911_v59  ;;  %v656_v62 = vpop.f32.mrf.mxu3 }
 0x101   : > { %923 = vst [vmem:[%s1443_s24 + $0x50] sm:$0xff] %v874_v61  ;;  %v886_v63 = vsel %vm788_vm9, %v739_v53, %v837_v58  ;;  %v563_v0 = vpop.f32.mrf.mxu0  ;;  %v712_v1 = vmul.f32 %v1428_v35, %v656_v62 }
 0x102   : > { %v751_v2 = vadd.f32 %v1433_v37, %v698_v60  ;;  %935 = vst [vmem:[%s1443_s24 + $0xb0] sm:$0xff] %v886_v63  ;;  %v675_v3 = vmul.f32 %v1428_v35, %v563_v0  ;;  %v593_v4 = vpop.f32.mrf.mxu1 }
 0x103   : > { %v687_v5 = vmul.f32 %v1428_v35, %v593_v4  ;;  %v765_v6 = vadd.f32 %v1433_v37, %v712_v1 }
 0x104   : > { %vm800_vm10 = vcmp.gt.f32.partialorder %v751_v2, 0.0  ;;  %v849_v7 = vmul.f32 0.01, %v751_v2  ;;  %v728_v8 = vadd.f32 %v1433_v37, %v675_v3 }
 0x105   : > { %v740_v9 = vadd.f32 %v1433_v37, %v687_v5  ;;  %vm814_vm11 = vcmp.gt.f32.partialorder %v765_v6, 0.0  ;;  %v863_v10 = vmul.f32 0.01, %v765_v6 }
 0x106   : > { %v898_v11 = vsel %vm800_vm10, %v751_v2, %v849_v7  ;;  %vm777_vm12 = vcmp.gt.f32.partialorder %v728_v8, 0.0  ;;  %v826_v12 = vmul.f32 0.01, %v728_v8 }
 0x107   : > { %947 = vst [vmem:[%s1443_s24 + $0x110] sm:$0xff] %v898_v11  ;;  %v623_v13 = vpop.f32.mrf.mxu2  ;;  %vm789_vm13 = vcmp.gt.f32.partialorder %v740_v9, 0.0  ;;  %v838_v14 = vmul.f32 0.01, %v740_v9  ;;  %v912_v15 = vsel %vm814_vm11, %v765_v6, %v863_v10 }
 0x108   : > { %v699_v16 = vmul.f32 %v1428_v35, %v623_v13  ;;  %v875_v17 = vsel %vm777_vm12, %v728_v8, %v826_v12  ;;  %961 = vst [vmem:[%s1443_s24 + $0x180] sm:$0xff] %v912_v15  ;;  %v658_v18 = vpop.f32.mrf.mxu3 }
 0x109   : > { %924 = vst [vmem:[%s1443_s24 + $0x58] sm:$0xff] %v875_v17  ;;  %v887_v19 = vsel %vm789_vm13, %v740_v9, %v838_v14 }
 0x10a   : > { %v752_v20 = vadd.f32 %v1433_v37, %v699_v16  ;;  %936 = vst [vmem:[%s1443_s24 + $0xb8] sm:$0xff] %v887_v19 }
 0x10c   : > { %vm801_vm14 = vcmp.gt.f32.partialorder %v752_v20, 0.0  ;;  %v850_v21 = vmul.f32 0.01, %v752_v20 }
 0x10e   : > { %v899_v22 = vsel %vm801_vm14, %v752_v20, %v850_v21 }
 0x10f   : > { %948 = vst [vmem:[%s1443_s24 + $0x118] sm:$0xff] %v899_v22  ;;  %v626_v23 = vpop.f32.mrf.mxu2 }
 0x110   : > { %v700_v24 = vmul.f32 %v1428_v35, %v626_v23 }
 0x112   : > { %v753_v25 = vadd.f32 %v1433_v37, %v700_v24 }
 0x114   : > { %vm802_vm15 = vcmp.gt.f32.partialorder %v753_v25, 0.0  ;;  %v851_v26 = vmul.f32 0.01, %v753_v25 }
 0x116   : > { %v900_v27 = vsel %vm802_vm15, %v753_v25, %v851_v26 }
 0x117   : > { %949 = vst [vmem:[%s1443_s24 + $0x120] sm:$0xff] %v900_v27  ;;  %v628_v28 = vpop.f32.mrf.mxu2 }
 0x118   : > { %v701_v29 = vmul.f32 %v1428_v35, %v628_v28 }
 0x11a   : > { %v754_v30 = vadd.f32 %v1433_v37, %v701_v29 }
 0x11c   : > { %vm803_vm0 = vcmp.gt.f32.partialorder %v754_v30, 0.0  ;;  %v852_v31 = vmul.f32 0.01, %v754_v30 }
 0x11e   : > { %v901_v32 = vsel %vm803_vm0, %v754_v30, %v852_v31 }
 0x11f   : > { %950 = vst [vmem:[%s1443_s24 + $0x128] sm:$0xff] %v901_v32 }
 0x120 PF: > { %s14_s17 = sadd.s32 1, %s1320_s17   ;;  %s1602_s15 = smov %s1316_s16 }
 0x121   : > { %p11_p5 = scmp.ge.s32.totalorder %s14_s17, 6   ;;  %s1603_s16 = smov %s1605_s18 }
 0x123   :  { %13 = sbr.rel (!%p11_p5) target bundleno = 2 (0x2), region = 75 }

// kernel: model_naive_forward.9
= control target key start
LH: loop header
LB: loop body
LE: loop exit
PB: predicated region body
PF: predicated region fallthrough
CT: control target
= control target key end

     0   :  { %s1272_s15 = smov 0   ;;  %s1274_s16 = smov 0   ;;  %s1507_s0 = inlined_call_operand.vmem [shape: bf16[400,256], index: 0, kind: input, shape index: {}]   ;;  %s1508_s1 = inlined_call_operand.vmem [shape: bf16[256,128], index: 1, kind: input, shape index: {}]   ;;  %s1509_s2 = inlined_call_operand.vmem [shape: f32[1,128], index: 2, kind: input, shape index: {}]   ;;  %s1510_s3 = inlined_call_operand.vmem [shape: f32[1,128], index: 3, kind: input, shape index: {}]   ;;  %s1511_s4 = inlined_call_operand.vmem [shape: f32[400,128], index: 4, kind: output, shape index: {}]  }
   0x1   :  { %s1276_s17 = smov 0  }
   0x2 LB: > { %s26_s18 = sadd.s32 1, %s1241_s16  ;;  %p974_p0 = scmp.ge.s32.totalorder %s1245_s17, 1  ;;  %s1245_s17 = sphi %s1276_s17, %s14_s17   ;;  %s1241_s16 = sphi %s1274_s16, %s1513_s16   ;;  %s1237_s15 = sphi %s1272_s15, %s1512_s15  }
   0x3   : > { %p28_p1 = scmp.ge.s32.totalorder %s26_s18, 2  ;;  %p203_p2 = scmp.lt.s32.totalorder %s1245_s17, 3 }
   0x5   : > { %s1515_s18 = smov (%p28_p1, %s26_s18), 0  ;;  %p204_p3 = pnand %p974_p0, %p203_p2 }
   0x6   : > { %s243_s5 = smul.u32 (!%p204_p3), 25, %s1237_s15 }
   0x7   : > { %207 = sbr.rel (%p204_p3) target bundleno = 285 (0x11d), region = 36 }
   0x8   : > { %p244_p4 = scmp.lt.s32.totalorder (!%p204_p3), %s243_s5, 49 }
   0xc   : > { %v1172_v0 = vld [vmem:[%s1508_s1 + $0x38] sm:$0xff]  ;;  %v1171_v2 = vld [vmem:[%s1508_s1 + $0x30] sm:$0xff]  ;;  %v1170_v4 = vld [vmem:[%s1508_s1 + $0x28] sm:$0xff]  ;;  %s1517_s5 = smov (!%p244_p4, %s243_s5), 49 }
   0xd   : > { %v1180_v1 = vld [vmem:[%s1508_s1 + $0x78] sm:$0xff]  ;;  %549 = vmatpush.bf16.msra.mxu0 %v1172_v0  ;;  %1181 = vmatpush.bf16.msra.mxu2 %v1172_v0  ;;  %v1179_v3 = vld [vmem:[%s1508_s1 + $0x70] sm:$0xff]  ;;  %v1178_v5 = vld [vmem:[%s1508_s1 + $0x68] sm:$0xff]  ;;  %s1140_s21 = sshll.u32 %s1517_s5, 3 }
   0xe   : > { %622 = vmatpush.bf16.msra.mxu1 %v1180_v1  ;;  %1189 = vmatpush.bf16.msra.mxu3 %v1180_v1  ;;  %v1169_v6 = vld [vmem:[%s1508_s1 + $0x20] sm:$0xff]  ;;  %v1168_v8 = vld [vmem:[%s1508_s1 + $0x18] sm:$0xff]  ;;  %v1167_v10 = vld [vmem:[%s1508_s1 + $0x10] sm:$0xff]  ;;  %s1340_s26 = scalar_lea.vmem %s1507_s0, %s1140_s21  ;;  %s1419_s14 = scalar_lea.vmem %s1511_s4, %s1140_s21 }
   0xf   : > { %v1177_v7 = vld [vmem:[%s1508_s1 + $0x60] sm:$0xff]  ;;  %v1176_v9 = vld [vmem:[%s1508_s1 + $0x58] sm:$0xff]  ;;  %v1175_v11 = vld [vmem:[%s1508_s1 + $0x50] sm:$0xff] }
  0x10   : > { %v1166_v12 = vld [vmem:[%s1508_s1 + $0x8] sm:$0xff]  ;;  %v1165_v14 = vld [vmem:[%s1508_s1] sm:$0xff]  ;;  %v1155_v22 = vld [vmem:[%s1340_s26 + $0x74] sm:$0xf] }
  0x11   : > { %550 = vmatpush.bf16.msra.mxu0 %v1171_v2  ;;  %1182 = vmatpush.bf16.msra.mxu2 %v1171_v2  ;;  %v1174_v13 = vld [vmem:[%s1508_s1 + $0x48] sm:$0xff]  ;;  %v1173_v15 = vld [vmem:[%s1508_s1 + $0x40] sm:$0xff]  ;;  %v1038_v23 = vld [vmem:[%s1340_s26 + $0x78] sm:$0xf0] }
  0x12   : > { %623 = vmatpush.bf16.msra.mxu1 %v1179_v3  ;;  %1190 = vmatpush.bf16.msra.mxu3 %v1179_v3  ;;  %v980_v16 = vld [vmem:[%s1340_s26] sm:$0xf]  ;;  %v1142_v17 = vld [vmem:[%s1340_s26 + $0x4] sm:$0xf0]  ;;  %v1141_v20 = vld [vmem:[%s1340_s26 + $0x4] sm:$0xf]  ;;  %v1041_v27 = vor.u32 %v1155_v22, %v1038_v23 }
  0x13   : > { %v1028_v18 = vld [vmem:[%s1340_s26 + $0x60] sm:$0xf]  ;;  %v1154_v19 = vld [vmem:[%s1340_s26 + $0x64] sm:$0xf0]  ;;  %v982_v21 = vld [vmem:[%s1340_s26 + $0x8] sm:$0xf0]  ;;  %v981_v24 = vor.u32 %v1142_v17, %v980_v16 }
  0x14   : > { %v1029_v25 = vor.u32 %v1154_v19, %v1028_v18  ;;  %v985_v26 = vor.u32 %v1141_v20, %v982_v21  ;;  %v988_v28 = vld [vmem:[%s1340_s26 + $0x10] sm:$0xf]  ;;  %v1144_v29 = vld [vmem:[%s1340_s26 + $0x14] sm:$0xf0]  ;;  %v1143_v32 = vld [vmem:[%s1340_s26 + $0x14] sm:$0xf] }
  0x15   : > { %551 = vmatpush.bf16.msra.mxu0 %v1170_v4  ;;  %1183 = vmatpush.bf16.msra.mxu2 %v1170_v4  ;;  %v1036_v30 = vld [vmem:[%s1340_s26 + $0x70] sm:$0xf]  ;;  %v1156_v31 = vld [vmem:[%s1340_s26 + $0x74] sm:$0xf0]  ;;  %v990_v33 = vld [vmem:[%s1340_s26 + $0x18] sm:$0xf0]  ;;  %v989_v36 = vor.u32 %v1144_v29, %v988_v28 }
  0x16   : > { %624 = vmatpush.bf16.msra.mxu1 %v1178_v5  ;;  %1191 = vmatpush.bf16.msra.mxu3 %v1178_v5  ;;  %v1157_v34 = vld [vmem:[%s1340_s26 + $0x84] sm:$0xf]  ;;  %v1046_v35 = vld [vmem:[%s1340_s26 + $0x88] sm:$0xf0]  ;;  %v1037_v37 = vor.u32 %v1156_v31, %v1036_v30  ;;  %v993_v38 = vor.u32 %v1143_v32, %v990_v33  ;;  %v996_v40 = vld [vmem:[%s1340_s26 + $0x20] sm:$0xf] }
  0x17   : > { %v1049_v39 = vor.u32 %v1157_v34, %v1046_v35  ;;  %v1146_v41 = vld [vmem:[%s1340_s26 + $0x24] sm:$0xf0]  ;;  %v1044_v42 = vld [vmem:[%s1340_s26 + $0x80] sm:$0xf]  ;;  %v1145_v44 = vld [vmem:[%s1340_s26 + $0x24] sm:$0xf] }
  0x18   : > { %v1158_v43 = vld [vmem:[%s1340_s26 + $0x84] sm:$0xf0]  ;;  %v998_v45 = vld [vmem:[%s1340_s26 + $0x28] sm:$0xf0]  ;;  %v1159_v46 = vld [vmem:[%s1340_s26 + $0x94] sm:$0xf]  ;;  %v997_v48 = vor.u32 %v1146_v41, %v996_v40 }
  0x19   : > { %552 = vmatpush.bf16.msra.mxu0 %v1169_v6  ;;  %1184 = vmatpush.bf16.msra.mxu2 %v1169_v6  ;;  %v1054_v47 = vld [vmem:[%s1340_s26 + $0x98] sm:$0xf0]  ;;  %v1045_v49 = vor.u32 %v1158_v43, %v1044_v42  ;;  %v1001_v50 = vor.u32 %v1145_v44, %v998_v45  ;;  %v1004_v52 = vld [vmem:[%s1340_s26 + $0x30] sm:$0xf]  ;;  %v1148_v53 = vld [vmem:[%s1340_s26 + $0x34] sm:$0xf0] }
  0x1a   : > { %625 = vmatpush.bf16.msra.mxu1 %v1177_v7  ;;  %1192 = vmatpush.bf16.msra.mxu3 %v1177_v7  ;;  %v1057_v51 = vor.u32 %v1159_v46, %v1054_v47  ;;  %v1052_v54 = vld [vmem:[%s1340_s26 + $0x90] sm:$0xf]  ;;  %v1160_v55 = vld [vmem:[%s1340_s26 + $0x94] sm:$0xf0]  ;;  %v1147_v56 = vld [vmem:[%s1340_s26 + $0x34] sm:$0xf]  ;;  %v1005_v60 = vor.u32 %v1148_v53, %v1004_v52 }
  0x1b   : > { %v1006_v57 = vld [vmem:[%s1340_s26 + $0x38] sm:$0xf0]  ;;  %v1161_v58 = vld [vmem:[%s1340_s26 + $0xa4] sm:$0xf]  ;;  %v1062_v59 = vld [vmem:[%s1340_s26 + $0xa8] sm:$0xf0]  ;;  %v1053_v61 = vor.u32 %v1160_v55, %v1052_v54 }
  0x1c   : > { %v1009_v62 = vor.u32 %v1147_v56, %v1006_v57  ;;  %v1065_v63 = vor.u32 %v1161_v58, %v1062_v59  ;;  %v1012_v0 = vld [vmem:[%s1340_s26 + $0x40] sm:$0xf]  ;;  %v1150_v1 = vld [vmem:[%s1340_s26 + $0x44] sm:$0xf0]  ;;  %v1149_v4 = vld [vmem:[%s1340_s26 + $0x44] sm:$0xf] }
  0x1d   : > { %553 = vmatpush.bf16.msra.mxu0 %v1168_v8  ;;  %1185 = vmatpush.bf16.msra.mxu2 %v1168_v8  ;;  %v1060_v2 = vld [vmem:[%s1340_s26 + $0xa0] sm:$0xf]  ;;  %v1162_v3 = vld [vmem:[%s1340_s26 + $0xa4] sm:$0xf0]  ;;  %v1014_v5 = vld [vmem:[%s1340_s26 + $0x48] sm:$0xf0]  ;;  %v1013_v8 = vor.u32 %v1150_v1, %v1012_v0 }
  0x1e   : > { %626 = vmatpush.bf16.msra.mxu1 %v1176_v9  ;;  %1193 = vmatpush.bf16.msra.mxu3 %v1176_v9  ;;  %v1163_v6 = vld [vmem:[%s1340_s26 + $0xb4] sm:$0xf]  ;;  %v1070_v7 = vld [vmem:[%s1340_s26 + $0xb8] sm:$0xf0]  ;;  %v1061_v9 = vor.u32 %v1162_v3, %v1060_v2  ;;  %v1164_v16 = vld [vmem:[%s1340_s26 + $0xb4] sm:$0xf0] }
  0x1f   : > { %v1151_v18 = vld [vmem:[%s1340_s26 + $0x54] sm:$0xf]  ;;  %v1022_v19 = vld [vmem:[%s1340_s26 + $0x58] sm:$0xf0]  ;;  %v1403_v30 = vld [vmem:[%s1509_s2] ss:$0 sm:$0xff] }
  0x20   : > { %v1025_v22 = vor.u32 %v1151_v18, %v1022_v19  ;;  %v1408_v33 = vld [vmem:[%s1510_s3] ss:$0 sm:$0xff] }
  0x21   : > { %554 = vmatpush.bf16.msra.mxu0 %v1167_v10  ;;  %1186 = vmatpush.bf16.msra.mxu2 %v1167_v10  ;;  %v1017_v10 = vor.u32 %v1149_v4, %v1014_v5 }
  0x22   : > { %627 = vmatpush.bf16.msra.mxu1 %v1175_v11  ;;  %1194 = vmatpush.bf16.msra.mxu3 %v1175_v11  ;;  %v1073_v11 = vor.u32 %v1163_v6, %v1070_v7 }
  0x25   : > { %555 = vmatpush.bf16.msra.mxu0 %v1166_v12  ;;  %1187 = vmatpush.bf16.msra.mxu2 %v1166_v12  ;;  %v293_v12 = vld [vmem:[%s1340_s26 + $0xc0] sm:$0xff] }
  0x26   : > { %628 = vmatpush.bf16.msra.mxu1 %v1174_v13  ;;  %1195 = vmatpush.bf16.msra.mxu3 %v1174_v13  ;;  %v1020_v13 = vld [vmem:[%s1340_s26 + $0x50] sm:$0xf]  ;;  %v400_v17 = vunpack.c.h.b16 %v293_v12 }
  0x28   : > { %v426_v23 = vpack.c.b16 %v400_v17, %v400_v17 }
  0x29   : > { %556 = vmatpush.bf16.msra.mxu0 %v1165_v14  ;;  %1188 = vmatpush.bf16.msra.mxu2 %v1165_v14  ;;  %v1152_v14 = vld [vmem:[%s1340_s26 + $0x54] sm:$0xf0] }
  0x2a   : > { %629 = vmatpush.bf16.msra.mxu1 %v1173_v15  ;;  %1196 = vmatpush.bf16.msra.mxu3 %v1173_v15  ;;  %v1068_v15 = vld [vmem:[%s1340_s26 + $0xb0] sm:$0xf]  ;;  %v1021_v20 = vor.u32 %v1152_v14, %v1020_v13 }
  0x2b   : > { %v1069_v21 = vor.u32 %v1164_v16, %v1068_v15 }
  0x2c   : > { %557 = vmatmul.bf16.vlgmr.msra.gmra.mxu0 %v981_v24  ;;  %587 = vmatmul.bf16.vlgmr.msra.gmra.mxu2 %v1029_v25  ;;  %v399_v24 = vunpack.c.l.b16 %v293_v12  ;;  %v1153_v25 = vld [vmem:[%s1340_s26 + $0x64] sm:$0xf] }
  0x2d   : > { %630 = vmatmul.bf16.vlgmr.msra.gmra.mxu1 %v985_v26  ;;  %665 = vmatmul.bf16.vlgmr.msra.gmra.mxu3 %v1041_v27  ;;  %v1030_v26 = vld [vmem:[%s1340_s26 + $0x68] sm:$0xf0] }
  0x2e   : > { %v425_v27 = vpack.c.b16 %v399_v24, %v399_v24  ;;  %v1033_v28 = vor.u32 %v1153_v25, %v1030_v26 }
  0x3c   : > { %562 = vmatmul.bf16.gmra.mxu0 %v989_v36  ;;  %592 = vmatmul.bf16.gmra.mxu2 %v1037_v37 }
  0x3d   : > { %635 = vmatmul.bf16.gmra.mxu1 %v993_v38  ;;  %670 = vmatmul.bf16.gmra.mxu3 %v1049_v39 }
  0x4c   : > { %567 = vmatmul.bf16.gmra.mxu0 %v997_v48  ;;  %597 = vmatmul.bf16.gmra.mxu2 %v1045_v49 }
  0x4d   : > { %640 = vmatmul.bf16.gmra.mxu1 %v1001_v50  ;;  %675 = vmatmul.bf16.gmra.mxu3 %v1057_v51 }
  0x5c   : > { %572 = vmatmul.bf16.gmra.mxu0 %v1005_v60  ;;  %602 = vmatmul.bf16.gmra.mxu2 %v1053_v61 }
  0x5d   : > { %645 = vmatmul.bf16.gmra.mxu1 %v1009_v62  ;;  %680 = vmatmul.bf16.gmra.mxu3 %v1065_v63 }
  0x6c   : > { %577 = vmatmul.bf16.gmra.mxu0 %v1013_v8  ;;  %607 = vmatmul.bf16.gmra.mxu2 %v1061_v9 }
  0x6d   : > { %650 = vmatmul.bf16.gmra.mxu1 %v1017_v10  ;;  %685 = vmatmul.bf16.gmra.mxu3 %v1073_v11 }
  0x7c   : > { %582 = vmatmul.bf16.gmra.mxu0 %v1021_v20  ;;  %612 = vmatmul.bf16.gmra.mxu2 %v1069_v21 }
  0x7d   : > { %655 = vmatmul.bf16.gmra.mxu1 %v1025_v22  ;;  %690 = vmatmul.bf16.gmra.mxu3 %v426_v23 }
  0x8c   : > { %617 = vmatmul.bf16.gmra.mxu2 %v425_v27 }
  0x8d   : > { %660 = vmatmul.bf16.gmra.mxu1 %v1033_v28 }
  0xa9   : > { %v558_v29 = vpop.f32.mrf.mxu0 }
  0xaa   : > { %v631_v31 = vpop.f32.mrf.mxu1 }
  0xab   : > { %v632_v32 = vadd.f32 %v631_v31, %v558_v29 }
  0xad   : > { %v699_v34 = vmul.f32 %v1403_v30, %v632_v32 }
  0xaf   : > { %v728_v35 = vadd.f32 %v1408_v33, %v699_v34  ;;  %v1412_v36 = vpop.f32.mrf.mxu2 }
  0xb0   : > { %v666_v37 = vpop.f32.mrf.mxu3 }
  0xb1   : > { %vm753_vm0 = vcmp.gt.f32.partialorder %v728_v35, 0.0  ;;  %v778_v38 = vmul.f32 0.01, %v728_v35  ;;  %v560_v39 = vpop.f32.mrf.mxu0 }
  0xb2   : > { %v633_v40 = vpop.f32.mrf.mxu1 }
  0xb3   : > { %v803_v41 = vsel %vm753_vm0, %v728_v35, %v778_v38  ;;  %v634_v42 = vadd.f32 %v633_v40, %v560_v39 }
  0xb4   : > { %828 = vst [vmem:[%s1419_s14] sm:$0xff] %v803_v41 }
  0xb5   : > { %v700_v43 = vmul.f32 %v1403_v30, %v634_v42 }
  0xb7   : > { %v729_v44 = vadd.f32 %v1408_v33, %v700_v43  ;;  %v1424_v45 = vpop.f32.mrf.mxu2 }
  0xb8   : > { %v668_v46 = vpop.f32.mrf.mxu3 }
  0xb9   : > { %vm754_vm1 = vcmp.gt.f32.partialorder %v729_v44, 0.0  ;;  %v779_v47 = vmul.f32 0.01, %v729_v44  ;;  %v563_v48 = vpop.f32.mrf.mxu0 }
  0xba   : > { %v636_v49 = vpop.f32.mrf.mxu1 }
  0xbb   : > { %v804_v50 = vsel %vm754_vm1, %v729_v44, %v779_v47  ;;  %v637_v51 = vadd.f32 %v636_v49, %v563_v48 }
  0xbc   : > { %829 = vst [vmem:[%s1419_s14 + $0x8] sm:$0xff] %v804_v50 }
  0xbd   : > { %v701_v52 = vmul.f32 %v1403_v30, %v637_v51 }
  0xbf   : > { %v730_v53 = vadd.f32 %v1408_v33, %v701_v52  ;;  %v593_v54 = vpop.f32.mrf.mxu2 }
  0xc0   : > { %v667_v55 = vadd.f32 %v666_v37, %v593_v54  ;;  %v671_v56 = vpop.f32.mrf.mxu3 }
  0xc1   : > { %vm755_vm2 = vcmp.gt.f32.partialorder %v730_v53, 0.0  ;;  %v780_v57 = vmul.f32 0.01, %v730_v53  ;;  %v565_v58 = vpop.f32.mrf.mxu0 }
  0xc2   : > { %v713_v59 = vmul.f32 %v1403_v30, %v667_v55  ;;  %v638_v60 = vpop.f32.mrf.mxu1 }
  0xc3   : > { %v805_v61 = vsel %vm755_vm2, %v730_v53, %v780_v57  ;;  %v639_v62 = vadd.f32 %v638_v60, %v565_v58 }
  0xc4   : > { %830 = vst [vmem:[%s1419_s14 + $0x10] sm:$0xff] %v805_v61  ;;  %v742_v63 = vadd.f32 %v1408_v33, %v713_v59 }
  0xc5   : > { %v702_v0 = vmul.f32 %v1403_v30, %v639_v62 }
  0xc6   : > { %vm767_vm3 = vcmp.gt.f32.partialorder %v742_v63, 0.0  ;;  %v792_v1 = vmul.f32 0.01, %v742_v63 }
  0xc7   : > { %v731_v2 = vadd.f32 %v1408_v33, %v702_v0  ;;  %v595_v3 = vpop.f32.mrf.mxu2 }
  0xc8   : > { %v817_v4 = vsel %vm767_vm3, %v742_v63, %v792_v1  ;;  %v669_v5 = vadd.f32 %v668_v46, %v595_v3  ;;  %v673_v6 = vpop.f32.mrf.mxu3 }
  0xc9   : > { %842 = vst [vmem:[%s1419_s14 + $0x70] sm:$0xff] %v817_v4  ;;  %vm756_vm4 = vcmp.gt.f32.partialorder %v731_v2, 0.0  ;;  %v781_v7 = vmul.f32 0.01, %v731_v2  ;;  %v568_v8 = vpop.f32.mrf.mxu0 }
  0xca   : > { %v714_v9 = vmul.f32 %v1403_v30, %v669_v5  ;;  %v641_v10 = vpop.f32.mrf.mxu1 }
  0xcb   : > { %v806_v11 = vsel %vm756_vm4, %v731_v2, %v781_v7  ;;  %v642_v12 = vadd.f32 %v641_v10, %v568_v8 }
  0xcc   : > { %831 = vst [vmem:[%s1419_s14 + $0x18] sm:$0xff] %v806_v11  ;;  %v743_v13 = vadd.f32 %v1408_v33, %v714_v9 }
  0xcd   : > { %v703_v14 = vmul.f32 %v1403_v30, %v642_v12 }
  0xce   : > { %vm768_vm5 = vcmp.gt.f32.partialorder %v743_v13, 0.0  ;;  %v793_v15 = vmul.f32 0.01, %v743_v13 }
  0xcf   : > { %v732_v16 = vadd.f32 %v1408_v33, %v703_v14  ;;  %v598_v17 = vpop.f32.mrf.mxu2 }
  0xd0   : > { %v818_v18 = vsel %vm768_vm5, %v743_v13, %v793_v15  ;;  %v672_v19 = vadd.f32 %v671_v56, %v598_v17  ;;  %v676_v20 = vpop.f32.mrf.mxu3 }
  0xd1   : > { %843 = vst [vmem:[%s1419_s14 + $0x78] sm:$0xff] %v818_v18  ;;  %vm757_vm6 = vcmp.gt.f32.partialorder %v732_v16, 0.0  ;;  %v782_v21 = vmul.f32 0.01, %v732_v16  ;;  %v570_v22 = vpop.f32.mrf.mxu0 }
  0xd2   : > { %v715_v23 = vmul.f32 %v1403_v30, %v672_v19  ;;  %v643_v24 = vpop.f32.mrf.mxu1 }
  0xd3   : > { %v807_v25 = vsel %vm757_vm6, %v732_v16, %v782_v21  ;;  %v644_v26 = vadd.f32 %v643_v24, %v570_v22 }
  0xd4   : > { %832 = vst [vmem:[%s1419_s14 + $0x20] sm:$0xff] %v807_v25  ;;  %v744_v27 = vadd.f32 %v1408_v33, %v715_v23 }
  0xd5   : > { %v704_v28 = vmul.f32 %v1403_v30, %v644_v26 }
  0xd6   : > { %vm769_vm7 = vcmp.gt.f32.partialorder %v744_v27, 0.0  ;;  %v794_v29 = vmul.f32 0.01, %v744_v27 }
  0xd7   : > { %v733_v31 = vadd.f32 %v1408_v33, %v704_v28  ;;  %v600_v32 = vpop.f32.mrf.mxu2 }
  0xd8   : > { %v819_v34 = vsel %vm769_vm7, %v744_v27, %v794_v29  ;;  %v674_v35 = vadd.f32 %v673_v6, %v600_v32  ;;  %v678_v37 = vpop.f32.mrf.mxu3 }
  0xd9   : > { %844 = vst [vmem:[%s1419_s14 + $0x80] sm:$0xff] %v819_v34  ;;  %vm758_vm8 = vcmp.gt.f32.partialorder %v733_v31, 0.0  ;;  %v783_v38 = vmul.f32 0.01, %v733_v31  ;;  %v573_v39 = vpop.f32.mrf.mxu0 }
  0xda   : > { %v716_v40 = vmul.f32 %v1403_v30, %v674_v35  ;;  %v646_v41 = vpop.f32.mrf.mxu1 }
  0xdb   : > { %v808_v42 = vsel %vm758_vm8, %v733_v31, %v783_v38  ;;  %v647_v43 = vadd.f32 %v646_v41, %v573_v39 }
  0xdc   : > { %833 = vst [vmem:[%s1419_s14 + $0x28] sm:$0xff] %v808_v42  ;;  %v745_v44 = vadd.f32 %v1408_v33, %v716_v40 }
  0xdd   : > { %v705_v46 = vmul.f32 %v1403_v30, %v647_v43 }
  0xde   : > { %vm770_vm9 = vcmp.gt.f32.partialorder %v745_v44, 0.0  ;;  %v795_v47 = vmul.f32 0.01, %v745_v44 }
  0xdf   : > { %v734_v48 = vadd.f32 %v1408_v33, %v705_v46  ;;  %v603_v49 = vpop.f32.mrf.mxu2 }
  0xe0   : > { %v820_v50 = vsel %vm770_vm9, %v745_v44, %v795_v47  ;;  %v677_v51 = vadd.f32 %v676_v20, %v603_v49  ;;  %v681_v52 = vpop.f32.mrf.mxu3 }
  0xe1   : > { %845 = vst [vmem:[%s1419_s14 + $0x88] sm:$0xff] %v820_v50  ;;  %vm759_vm10 = vcmp.gt.f32.partialorder %v734_v48, 0.0  ;;  %v784_v53 = vmul.f32 0.01, %v734_v48  ;;  %v575_v54 = vpop.f32.mrf.mxu0 }
  0xe2   : > { %v717_v55 = vmul.f32 %v1403_v30, %v677_v51  ;;  %v648_v56 = vpop.f32.mrf.mxu1 }
  0xe3   : > { %v809_v57 = vsel %vm759_vm10, %v734_v48, %v784_v53  ;;  %v649_v58 = vadd.f32 %v648_v56, %v575_v54 }
  0xe4   : > { %834 = vst [vmem:[%s1419_s14 + $0x30] sm:$0xff] %v809_v57  ;;  %v746_v59 = vadd.f32 %v1408_v33, %v717_v55 }
  0xe5   : > { %v706_v60 = vmul.f32 %v1403_v30, %v649_v58 }
  0xe6   : > { %vm771_vm11 = vcmp.gt.f32.partialorder %v746_v59, 0.0  ;;  %v796_v61 = vmul.f32 0.01, %v746_v59 }
  0xe7   : > { %v735_v62 = vadd.f32 %v1408_v33, %v706_v60  ;;  %v605_v63 = vpop.f32.mrf.mxu2 }
  0xe8   : > { %v821_v0 = vsel %vm771_vm11, %v746_v59, %v796_v61  ;;  %v679_v1 = vadd.f32 %v678_v37, %v605_v63  ;;  %v683_v2 = vpop.f32.mrf.mxu3 }
  0xe9   : > { %846 = vst [vmem:[%s1419_s14 + $0x90] sm:$0xff] %v821_v0  ;;  %vm760_vm12 = vcmp.gt.f32.partialorder %v735_v62, 0.0  ;;  %v785_v3 = vmul.f32 0.01, %v735_v62  ;;  %v578_v4 = vpop.f32.mrf.mxu0 }
  0xea   : > { %v718_v5 = vmul.f32 %v1403_v30, %v679_v1  ;;  %v651_v6 = vpop.f32.mrf.mxu1 }
  0xeb   : > { %v810_v7 = vsel %vm760_vm12, %v735_v62, %v785_v3  ;;  %v652_v8 = vadd.f32 %v651_v6, %v578_v4 }
  0xec   : > { %835 = vst [vmem:[%s1419_s14 + $0x38] sm:$0xff] %v810_v7  ;;  %v747_v9 = vadd.f32 %v1408_v33, %v718_v5 }
  0xed   : > { %v707_v10 = vmul.f32 %v1403_v30, %v652_v8 }
  0xee   : > { %vm772_vm13 = vcmp.gt.f32.partialorder %v747_v9, 0.0  ;;  %v797_v11 = vmul.f32 0.01, %v747_v9 }
  0xef   : > { %v736_v12 = vadd.f32 %v1408_v33, %v707_v10  ;;  %v608_v13 = vpop.f32.mrf.mxu2 }
  0xf0   : > { %v822_v14 = vsel %vm772_vm13, %v747_v9, %v797_v11  ;;  %v682_v15 = vadd.f32 %v681_v52, %v608_v13  ;;  %v686_v16 = vpop.f32.mrf.mxu3 }
  0xf1   : > { %847 = vst [vmem:[%s1419_s14 + $0x98] sm:$0xff] %v822_v14  ;;  %vm761_vm14 = vcmp.gt.f32.partialorder %v736_v12, 0.0  ;;  %v786_v17 = vmul.f32 0.01, %v736_v12  ;;  %v580_v18 = vpop.f32.mrf.mxu0 }
  0xf2   : > { %v719_v19 = vmul.f32 %v1403_v30, %v682_v15  ;;  %v653_v20 = vpop.f32.mrf.mxu1 }
  0xf3   : > { %v811_v21 = vsel %vm761_vm14, %v736_v12, %v786_v17  ;;  %v654_v22 = vadd.f32 %v653_v20, %v580_v18 }
  0xf4   : > { %836 = vst [vmem:[%s1419_s14 + $0x40] sm:$0xff] %v811_v21  ;;  %v748_v23 = vadd.f32 %v1408_v33, %v719_v19 }
  0xf5   : > { %v708_v24 = vmul.f32 %v1403_v30, %v654_v22 }
  0xf6   : > { %vm773_vm15 = vcmp.gt.f32.partialorder %v748_v23, 0.0  ;;  %v798_v25 = vmul.f32 0.01, %v748_v23 }
  0xf7   : > { %v737_v26 = vadd.f32 %v1408_v33, %v708_v24  ;;  %v610_v27 = vpop.f32.mrf.mxu2 }
  0xf8   : > { %v823_v28 = vsel %vm773_vm15, %v748_v23, %v798_v25  ;;  %v684_v29 = vadd.f32 %v683_v2, %v610_v27  ;;  %v688_v31 = vpop.f32.mrf.mxu3 }
  0xf9   : > { %848 = vst [vmem:[%s1419_s14 + $0xa0] sm:$0xff] %v823_v28  ;;  %vm762_vm0 = vcmp.gt.f32.partialorder %v737_v26, 0.0  ;;  %v787_v32 = vmul.f32 0.01, %v737_v26  ;;  %v583_v34 = vpop.f32.mrf.mxu0 }
  0xfa   : > { %v720_v35 = vmul.f32 %v1403_v30, %v684_v29  ;;  %v656_v37 = vpop.f32.mrf.mxu1 }
  0xfb   : > { %v812_v38 = vsel %vm762_vm0, %v737_v26, %v787_v32  ;;  %v657_v39 = vadd.f32 %v656_v37, %v583_v34 }
  0xfc   : > { %837 = vst [vmem:[%s1419_s14 + $0x48] sm:$0xff] %v812_v38  ;;  %v749_v40 = vadd.f32 %v1408_v33, %v720_v35 }
  0xfd   : > { %v709_v41 = vmul.f32 %v1403_v30, %v657_v39 }
  0xfe   : > { %vm774_vm1 = vcmp.gt.f32.partialorder %v749_v40, 0.0  ;;  %v799_v42 = vmul.f32 0.01, %v749_v40 }
  0xff   : > { %v738_v43 = vadd.f32 %v1408_v33, %v709_v41  ;;  %v613_v44 = vpop.f32.mrf.mxu2 }
 0x100   : > { %v824_v46 = vsel %vm774_vm1, %v749_v40, %v799_v42  ;;  %v687_v47 = vadd.f32 %v686_v16, %v613_v44  ;;  %v691_v48 = vpop.f32.mrf.mxu3 }
 0x101   : > { %849 = vst [vmem:[%s1419_s14 + $0xa8] sm:$0xff] %v824_v46  ;;  %vm763_vm2 = vcmp.gt.f32.partialorder %v738_v43, 0.0  ;;  %v788_v49 = vmul.f32 0.01, %v738_v43  ;;  %v585_v50 = vpop.f32.mrf.mxu0 }
 0x102   : > { %v721_v51 = vmul.f32 %v1403_v30, %v687_v47  ;;  %v658_v52 = vpop.f32.mrf.mxu1 }
 0x103   : > { %v813_v53 = vsel %vm763_vm2, %v738_v43, %v788_v49  ;;  %v659_v54 = vadd.f32 %v658_v52, %v585_v50 }
 0x104   : > { %838 = vst [vmem:[%s1419_s14 + $0x50] sm:$0xff] %v813_v53  ;;  %v750_v55 = vadd.f32 %v1408_v33, %v721_v51 }
 0x105   : > { %v710_v56 = vmul.f32 %v1403_v30, %v659_v54 }
 0x106   : > { %vm775_vm3 = vcmp.gt.f32.partialorder %v750_v55, 0.0  ;;  %v800_v57 = vmul.f32 0.01, %v750_v55 }
 0x107   : > { %v739_v58 = vadd.f32 %v1408_v33, %v710_v56  ;;  %v615_v59 = vpop.f32.mrf.mxu2 }
 0x108   : > { %v825_v60 = vsel %vm775_vm3, %v750_v55, %v800_v57  ;;  %v689_v61 = vadd.f32 %v688_v31, %v615_v59  ;;  %v693_v62 = vpop.f32.mrf.mxu3 }
 0x109   : > { %850 = vst [vmem:[%s1419_s14 + $0xb0] sm:$0xff] %v825_v60  ;;  %vm764_vm4 = vcmp.gt.f32.partialorder %v739_v58, 0.0  ;;  %v789_v63 = vmul.f32 0.01, %v739_v58 }
 0x10a   : > { %v722_v0 = vmul.f32 %v1403_v30, %v689_v61  ;;  %v661_v1 = vpop.f32.mrf.mxu1 }
 0x10b   : > { %v814_v2 = vsel %vm764_vm4, %v739_v58, %v789_v63  ;;  %v662_v3 = vadd.f32 %v661_v1, %v1412_v36 }
 0x10c   : > { %839 = vst [vmem:[%s1419_s14 + $0x58] sm:$0xff] %v814_v2  ;;  %v751_v4 = vadd.f32 %v1408_v33, %v722_v0 }
 0x10d   : > { %v711_v5 = vmul.f32 %v1403_v30, %v662_v3 }
 0x10e   : > { %vm776_vm5 = vcmp.gt.f32.partialorder %v751_v4, 0.0  ;;  %v801_v6 = vmul.f32 0.01, %v751_v4 }
 0x10f   : > { %v740_v7 = vadd.f32 %v1408_v33, %v711_v5  ;;  %v618_v8 = vpop.f32.mrf.mxu2 }
 0x110   : > { %v826_v9 = vsel %vm776_vm5, %v751_v4, %v801_v6  ;;  %v692_v10 = vadd.f32 %v691_v48, %v618_v8 }
 0x111   : > { %851 = vst [vmem:[%s1419_s14 + $0xb8] sm:$0xff] %v826_v9  ;;  %vm765_vm6 = vcmp.gt.f32.partialorder %v740_v7, 0.0  ;;  %v790_v11 = vmul.f32 0.01, %v740_v7 }
 0x112   : > { %v723_v12 = vmul.f32 %v1403_v30, %v692_v10  ;;  %v663_v36 = vpop.f32.mrf.mxu1 }
 0x113   : > { %v815_v13 = vsel %vm765_vm6, %v740_v7, %v790_v11  ;;  %v664_v14 = vadd.f32 %v663_v36, %v1424_v45 }
 0x114   : > { %840 = vst [vmem:[%s1419_s14 + $0x60] sm:$0xff] %v815_v13  ;;  %v752_v15 = vadd.f32 %v1408_v33, %v723_v12 }
 0x115   : > { %v712_v16 = vmul.f32 %v1403_v30, %v664_v14 }
 0x116   : > { %vm777_vm7 = vcmp.gt.f32.partialorder %v752_v15, 0.0  ;;  %v802_v17 = vmul.f32 0.01, %v752_v15 }
 0x117   : > { %v741_v18 = vadd.f32 %v1408_v33, %v712_v16  ;;  %v620_v19 = vpop.f32.mrf.mxu2 }
 0x118   : > { %v827_v20 = vsel %vm777_vm7, %v752_v15, %v802_v17 }
 0x119   : > { %852 = vst [vmem:[%s1419_s14 + $0xc0] sm:$0xff] %v827_v20  ;;  %vm766_vm8 = vcmp.gt.f32.partialorder %v741_v18, 0.0  ;;  %v791_v21 = vmul.f32 0.01, %v741_v18 }
 0x11b   : > { %v816_v22 = vsel %vm766_vm8, %v741_v18, %v791_v21 }
 0x11c   : > { %841 = vst [vmem:[%s1419_s14 + $0x68] sm:$0xff] %v816_v22 }
 0x11d PF: > { %s14_s17 = sadd.s32 1, %s1245_s17   ;;  %s1512_s15 = smov %s1241_s16 }
 0x11e   : > { %p11_p5 = scmp.ge.s32.totalorder %s14_s17, 4   ;;  %s1513_s16 = smov %s1515_s18 }
 0x120   :  { %13 = sbr.rel (!%p11_p5) target bundleno = 2 (0x2), region = 75 }

// kernel: model_naive_forward.10
= control target key start
LH: loop header
LB: loop body
LE: loop exit
PB: predicated region body
PF: predicated region fallthrough
CT: control target
= control target key end

     0   :  { %s1123_s1 = inlined_call_operand.vmem [shape: bf16[384,128], index: 1, kind: input, shape index: {}]   ;;  %s1124_s0 = inlined_call_operand.vmem [shape: bf16[104,384], index: 0, kind: input, shape index: {}]   ;;  %s1125_s2 = inlined_call_operand.vmem [shape: f32[1,128], index: 2, kind: input, shape index: {}]   ;;  %s1126_s3 = inlined_call_operand.vmem [shape: f32[1,128], index: 3, kind: input, shape index: {}]   ;;  %s1127_s4 = inlined_call_operand.vmem [shape: f32[104,128], index: 4, kind: output, shape index: {}]  }
   0x1   :  { %v754_v0 = vld [vmem:[%s1123_s1 + $0x38] sm:$0xff]  ;;  %v753_v3 = vld [vmem:[%s1123_s1 + $0x30] sm:$0xff]  ;;  %v752_v6 = vld [vmem:[%s1123_s1 + $0x28] sm:$0xff] }
   0x2   :  { %v828_v1 = vld [vmem:[%s1123_s1 + $0x78] sm:$0xff]  ;;  %342 = vmatpush.bf16.msra.mxu0 %v754_v0  ;;  %771 = vmatpush.bf16.msra.mxu3 %v754_v0  ;;  %v843_v4 = vld [vmem:[%s1123_s1 + $0x70] sm:$0xff]  ;;  %v760_v7 = vld [vmem:[%s1123_s1 + $0x68] sm:$0xff] }
   0x3   :  { %v833_v2 = vld [vmem:[%s1123_s1 + $0xb8] sm:$0xff]  ;;  %779 = vmatpush.bf16.msra.mxu1 %v828_v1  ;;  %v848_v5 = vld [vmem:[%s1123_s1 + $0xb0] sm:$0xff]  ;;  %v861_v8 = vld [vmem:[%s1123_s1 + $0xa8] sm:$0xff] }
   0x4   :  { %787 = vmatpush.bf16.msra.mxu2 %v833_v2  ;;  %v751_v9 = vld [vmem:[%s1123_s1 + $0x20] sm:$0xff]  ;;  %v750_v12 = vld [vmem:[%s1123_s1 + $0x18] sm:$0xff]  ;;  %v749_v15 = vld [vmem:[%s1123_s1 + $0x10] sm:$0xff] }
   0x5   :  { %v759_v10 = vld [vmem:[%s1123_s1 + $0x60] sm:$0xff]  ;;  %v758_v13 = vld [vmem:[%s1123_s1 + $0x58] sm:$0xff]  ;;  %v757_v16 = vld [vmem:[%s1123_s1 + $0x50] sm:$0xff] }
   0x6   :  { %343 = vmatpush.bf16.msra.mxu0 %v753_v3  ;;  %772 = vmatpush.bf16.msra.mxu3 %v753_v3  ;;  %v873_v11 = vld [vmem:[%s1123_s1 + $0xa0] sm:$0xff]  ;;  %v885_v14 = vld [vmem:[%s1123_s1 + $0x98] sm:$0xff]  ;;  %v897_v17 = vld [vmem:[%s1123_s1 + $0x90] sm:$0xff] }
   0x7   :  { %780 = vmatpush.bf16.msra.mxu1 %v843_v4  ;;  %v748_v18 = vld [vmem:[%s1123_s1 + $0x8] sm:$0xff]  ;;  %v747_v21 = vld [vmem:[%s1123_s1] sm:$0xff]  ;;  %v575_v24 = vld [vmem:[%s1124_s0 + $0x18] sm:$0xf] }
   0x8   :  { %788 = vmatpush.bf16.msra.mxu2 %v848_v5  ;;  %v756_v19 = vld [vmem:[%s1123_s1 + $0x48] sm:$0xff]  ;;  %v755_v22 = vld [vmem:[%s1123_s1 + $0x40] sm:$0xff]  ;;  %v732_v26 = vld [vmem:[%s1124_s0 + $0x1c] sm:$0xf] }
   0x9   :  { %v909_v20 = vld [vmem:[%s1123_s1 + $0x88] sm:$0xff]  ;;  %v920_v23 = vld [vmem:[%s1123_s1 + $0x80] sm:$0xff]  ;;  %v587_v36 = vld [vmem:[%s1124_s0 + $0x30] sm:$0xf] }
   0xa   :  { %344 = vmatpush.bf16.msra.mxu0 %v752_v6  ;;  %773 = vmatpush.bf16.msra.mxu3 %v752_v6  ;;  %v733_v25 = vld [vmem:[%s1124_s0 + $0x20] sm:$0xf0]  ;;  %v563_v27 = vld [vmem:[%s1124_s0] sm:$0xf]  ;;  %v730_v28 = vld [vmem:[%s1124_s0 + $0x8] sm:$0xf0] }
   0xb   :  { %781 = vmatpush.bf16.msra.mxu1 %v760_v7  ;;  %v577_v29 = vld [vmem:[%s1124_s0 + $0x24] sm:$0xf0]  ;;  %v583_v30 = vld [vmem:[%s1124_s0 + $0x20] sm:$0xf]  ;;  %v734_v31 = vld [vmem:[%s1124_s0 + $0x28] sm:$0xf0]  ;;  %v576_v32 = vor.u32 %v733_v25, %v575_v24  ;;  %v564_v33 = vor.u32 %v730_v28, %v563_v27 }
   0xc   :  { %789 = vmatpush.bf16.msra.mxu2 %v861_v8  ;;  %v580_v34 = vor.u32 %v732_v26, %v577_v29  ;;  %v584_v35 = vor.u32 %v734_v31, %v583_v30  ;;  %v736_v37 = vld [vmem:[%s1124_s0 + $0x38] sm:$0xf0]  ;;  %v735_v38 = vld [vmem:[%s1124_s0 + $0x34] sm:$0xf]  ;;  %v589_v39 = vld [vmem:[%s1124_s0 + $0x3c] sm:$0xf0] }
   0xd   :  { %v595_v40 = vld [vmem:[%s1124_s0 + $0x38] sm:$0xf]  ;;  %v737_v41 = vld [vmem:[%s1124_s0 + $0x40] sm:$0xf0]  ;;  %v588_v42 = vor.u32 %v736_v37, %v587_v36  ;;  %v592_v43 = vor.u32 %v735_v38, %v589_v39  ;;  %v565_v46 = vld [vmem:[%s1124_s0 + $0xc] sm:$0xf0] }
   0xe   :  { %345 = vmatpush.bf16.msra.mxu0 %v751_v9  ;;  %774 = vmatpush.bf16.msra.mxu3 %v751_v9  ;;  %v596_v44 = vor.u32 %v737_v41, %v595_v40  ;;  %v729_v45 = vld [vmem:[%s1124_s0 + $0x4] sm:$0xf]  ;;  %v599_v47 = vld [vmem:[%s1124_s0 + $0x48] sm:$0xf]  ;;  %v739_v48 = vld [vmem:[%s1124_s0 + $0x50] sm:$0xf0] }
   0xf   :  { %782 = vmatpush.bf16.msra.mxu1 %v759_v10  ;;  %v738_v49 = vld [vmem:[%s1124_s0 + $0x4c] sm:$0xf]  ;;  %v601_v50 = vld [vmem:[%s1124_s0 + $0x54] sm:$0xf0]  ;;  %v607_v51 = vld [vmem:[%s1124_s0 + $0x50] sm:$0xf]  ;;  %v568_v53 = vor.u32 %v729_v45, %v565_v46  ;;  %v600_v54 = vor.u32 %v739_v48, %v599_v47 }
  0x10   :  { %790 = vmatpush.bf16.msra.mxu2 %v873_v11  ;;  %v740_v52 = vld [vmem:[%s1124_s0 + $0x58] sm:$0xf0]  ;;  %v604_v55 = vor.u32 %v738_v49, %v601_v50  ;;  %v611_v57 = vld [vmem:[%s1124_s0 + $0x60] sm:$0xf]  ;;  %v742_v58 = vld [vmem:[%s1124_s0 + $0x68] sm:$0xf0] }
  0x11   :  { %v608_v56 = vor.u32 %v740_v52, %v607_v51  ;;  %v741_v59 = vld [vmem:[%s1124_s0 + $0x64] sm:$0xf]  ;;  %v613_v60 = vld [vmem:[%s1124_s0 + $0x6c] sm:$0xf0]  ;;  %v619_v61 = vld [vmem:[%s1124_s0 + $0x68] sm:$0xf]  ;;  %v612_v63 = vor.u32 %v742_v58, %v611_v57 }
  0x12   :  { %346 = vmatpush.bf16.msra.mxu0 %v750_v12  ;;  %775 = vmatpush.bf16.msra.mxu3 %v750_v12  ;;  %v743_v62 = vld [vmem:[%s1124_s0 + $0x70] sm:$0xf0]  ;;  %v616_v0 = vor.u32 %v741_v59, %v613_v60  ;;  %v745_v6 = vld [vmem:[%s1124_s0 + $0x80] sm:$0xf0]  ;;  %v631_v9 = vld [vmem:[%s1124_s0 + $0x80] sm:$0xf] }
  0x13   :  { %783 = vmatpush.bf16.msra.mxu1 %v758_v13  ;;  %v731_v3 = vld [vmem:[%s1124_s0 + $0x10] sm:$0xf0]  ;;  %v1051_v26 = vld [vmem:[%s1125_s2] ss:$0 sm:$0xff] }
  0x14   :  { %791 = vmatpush.bf16.msra.mxu2 %v885_v14  ;;  %v1056_v28 = vld [vmem:[%s1126_s3] ss:$0 sm:$0xff] }
  0x16   :  { %347 = vmatpush.bf16.msra.mxu0 %v749_v15  ;;  %776 = vmatpush.bf16.msra.mxu3 %v749_v15  ;;  %v42_v15 = vld [vmem:[%s1124_s0 + $0x98] sm:$0xf] }
  0x17   :  { %784 = vmatpush.bf16.msra.mxu1 %v757_v16 }
  0x18   :  { %792 = vmatpush.bf16.msra.mxu2 %v897_v17 }
  0x1a   :  { %348 = vmatpush.bf16.msra.mxu0 %v748_v18  ;;  %777 = vmatpush.bf16.msra.mxu3 %v748_v18  ;;  %v155_v18 = vunpack.c.l.b16 %v42_v15 }
  0x1b   :  { %785 = vmatpush.bf16.msra.mxu1 %v756_v19 }
  0x1c   :  { %793 = vmatpush.bf16.msra.mxu2 %v909_v20 }
  0x1e   :  { %349 = vmatpush.bf16.msra.mxu0 %v747_v21  ;;  %778 = vmatpush.bf16.msra.mxu3 %v747_v21  ;;  %v176_v21 = vpack.c.b16 %v155_v18, %v155_v18 }
  0x1f   :  { %786 = vmatpush.bf16.msra.mxu1 %v755_v22 }
  0x20   :  { %794 = vmatpush.bf16.msra.mxu2 %v920_v23 }
  0x21   :  { %355 = vmatmul.bf16.vlgmr.msra.gmra.mxu3 %v576_v32  ;;  %350 = vmatmul.bf16.vlgmr.msra.gmra.mxu0 %v564_v33 }
  0x22   :  { %385 = vmatpush.bf16.msrb.mxu0 %v828_v1  ;;  %398 = vmatmul.bf16.vlgmr.msra.gmra.mxu1 %v580_v34  ;;  %v620_v1 = vor.u32 %v743_v62, %v619_v61 }
  0x23   :  { %441 = vmatmul.bf16.vlgmr.msra.gmra.mxu2 %v584_v35 }
  0x26   :  { %386 = vmatpush.bf16.msrb.mxu0 %v843_v4 }
  0x2a   :  { %387 = vmatpush.bf16.msrb.mxu0 %v760_v7  ;;  %v744_v7 = vld [vmem:[%s1124_s0 + $0x7c] sm:$0xf] }
  0x2e   :  { %388 = vmatpush.bf16.msrb.mxu0 %v759_v10  ;;  %v746_v10 = vld [vmem:[%s1124_s0 + $0x88] sm:$0xf0] }
  0x31   :  { %360 = vmatmul.bf16.gmra.mxu3 %v588_v42 }
  0x32   :  { %389 = vmatpush.bf16.msrb.mxu0 %v758_v13  ;;  %403 = vmatmul.bf16.gmra.mxu1 %v592_v43  ;;  %v632_v13 = vor.u32 %v746_v10, %v631_v9 }
  0x33   :  { %446 = vmatmul.bf16.gmra.mxu2 %v596_v44 }
  0x36   :  { %390 = vmatpush.bf16.msrb.mxu0 %v757_v16 }
  0x3a   :  { %391 = vmatpush.bf16.msrb.mxu0 %v756_v19 }
  0x3e   :  { %392 = vmatpush.bf16.msrb.mxu0 %v755_v22 }
  0x41   :  { %393 = vmatmul.bf16.vlgmr.msrb.gmra.mxu0 %v568_v53  ;;  %365 = vmatmul.bf16.gmra.mxu3 %v600_v54 }
  0x42   :  { %428 = vmatpush.bf16.msra.mxu0 %v833_v2  ;;  %408 = vmatmul.bf16.gmra.mxu1 %v604_v55  ;;  %v571_v2 = vld [vmem:[%s1124_s0 + $0x8] sm:$0xf] }
  0x43   :  { %451 = vmatmul.bf16.gmra.mxu2 %v608_v56  ;;  %v572_v4 = vor.u32 %v731_v3, %v571_v2 }
  0x46   :  { %429 = vmatpush.bf16.msra.mxu0 %v848_v5  ;;  %v623_v5 = vld [vmem:[%s1124_s0 + $0x78] sm:$0xf] }
  0x4a   :  { %430 = vmatpush.bf16.msra.mxu0 %v861_v8  ;;  %v625_v8 = vld [vmem:[%s1124_s0 + $0x84] sm:$0xf0] }
  0x4b   :  { %v628_v12 = vor.u32 %v744_v7, %v625_v8 }
  0x4e   :  { %431 = vmatpush.bf16.msra.mxu0 %v873_v11  ;;  %v624_v11 = vor.u32 %v745_v6, %v623_v5 }
  0x51   :  { %370 = vmatmul.bf16.gmra.mxu3 %v612_v63 }
  0x52   :  { %432 = vmatpush.bf16.msra.mxu0 %v885_v14  ;;  %413 = vmatmul.bf16.gmra.mxu1 %v616_v0  ;;  %v41_v14 = vld [vmem:[%s1124_s0 + $0x90] sm:$0xff] }
  0x53   :  { %456 = vmatmul.bf16.gmra.mxu2 %v620_v1  ;;  %v153_v16 = vunpack.c.l.b16 %v41_v14 }
  0x55   :  { %v174_v19 = vpack.c.b16 %v153_v16, %v153_v16 }
  0x56   :  { %433 = vmatpush.bf16.msra.mxu0 %v897_v17  ;;  %v154_v17 = vunpack.c.h.b16 %v41_v14 }
  0x5a   :  { %434 = vmatpush.bf16.msra.mxu0 %v909_v20  ;;  %v175_v20 = vpack.c.b16 %v154_v17, %v154_v17 }
  0x5e   :  { %435 = vmatpush.bf16.msra.mxu0 %v920_v23 }
  0x61   :  { %436 = vmatmul.bf16.vlgmr.msra.gmra.mxu0 %v572_v4  ;;  %375 = vmatmul.bf16.gmra.mxu3 %v624_v11 }
  0x62   :  { %418 = vmatmul.bf16.gmra.mxu1 %v628_v12 }
  0x63   :  { %461 = vmatmul.bf16.gmra.mxu2 %v632_v13 }
  0x71   :  { %380 = vmatmul.bf16.gmra.mxu3 %v174_v19 }
  0x72   :  { %423 = vmatmul.bf16.gmra.mxu1 %v175_v20 }
  0x73   :  { %466 = vmatmul.bf16.gmra.mxu2 %v176_v21 }
  0x9e   :  { %v351_v41 = vpop.f32.mrf.mxu0 }
  0x9f   :  { %v399_v22 = vpop.f32.mrf.mxu1 }
  0xa4   :  { %v356_v23 = vpop.f32.mrf.mxu3 }
  0xa5   :  { %v400_v24 = vadd.f32 %v399_v22, %v356_v23 }
  0xa6   :  { %v442_v25 = vpop.f32.mrf.mxu2  ;;  %v353_v55 = vpop.f32.mrf.mxu0 }
  0xa7   :  { %v443_v27 = vadd.f32 %v442_v25, %v400_v24  ;;  %v401_v29 = vpop.f32.mrf.mxu1 }
  0xa9   :  { %v477_v30 = vmul.f32 %v1051_v26, %v443_v27 }
  0xab   :  { %v494_v31 = vadd.f32 %v1056_v28, %v477_v30 }
  0xac   :  { %v358_v32 = vpop.f32.mrf.mxu3 }
  0xad   :  { %vm507_vm0 = vcmp.gt.f32.partialorder %v494_v31, 0.0  ;;  %v520_v33 = vmul.f32 0.01, %v494_v31  ;;  %v402_v34 = vadd.f32 %v401_v29, %v358_v32 }
  0xae   :  { %v444_v35 = vpop.f32.mrf.mxu2 }
  0xaf   :  { %v533_v36 = vsel %vm507_vm0, %v494_v31, %v520_v33  ;;  %v445_v37 = vadd.f32 %v444_v35, %v402_v34  ;;  %v404_v38 = vpop.f32.mrf.mxu1 }
  0xb0   :  { %546 = vst [vmem:[%s1127_s4 + $0x10] sm:$0xff] %v533_v36 }
  0xb1   :  { %v478_v39 = vmul.f32 %v1051_v26, %v445_v37 }
  0xb3   :  { %v495_v40 = vadd.f32 %v1056_v28, %v478_v39 }
  0xb4   :  { %v361_v42 = vpop.f32.mrf.mxu3 }
  0xb5   :  { %vm508_vm1 = vcmp.gt.f32.partialorder %v495_v40, 0.0  ;;  %v521_v43 = vmul.f32 0.01, %v495_v40  ;;  %v405_v44 = vadd.f32 %v404_v38, %v361_v42 }
  0xb6   :  { %v447_v45 = vpop.f32.mrf.mxu2 }
  0xb7   :  { %v534_v46 = vsel %vm508_vm1, %v495_v40, %v521_v43  ;;  %v448_v47 = vadd.f32 %v447_v45, %v405_v44  ;;  %v406_v48 = vpop.f32.mrf.mxu1 }
  0xb8   :  { %547 = vst [vmem:[%s1127_s4 + $0x18] sm:$0xff] %v534_v46 }
  0xb9   :  { %v479_v49 = vmul.f32 %v1051_v26, %v448_v47 }
  0xbb   :  { %v496_v50 = vadd.f32 %v1056_v28, %v479_v49 }
  0xbc   :  { %v363_v51 = vpop.f32.mrf.mxu3 }
  0xbd   :  { %vm509_vm2 = vcmp.gt.f32.partialorder %v496_v50, 0.0  ;;  %v522_v52 = vmul.f32 0.01, %v496_v50  ;;  %v407_v53 = vadd.f32 %v406_v48, %v363_v51 }
  0xbe   :  { %v449_v54 = vpop.f32.mrf.mxu2  ;;  %v394_v3 = vpop.f32.mrf.mxu0 }
  0xbf   :  { %v535_v56 = vsel %vm509_vm2, %v496_v50, %v522_v52  ;;  %v450_v57 = vadd.f32 %v449_v54, %v407_v53  ;;  %v409_v58 = vpop.f32.mrf.mxu1  ;;  %v395_v24 = vadd.f32 %v394_v3, %v351_v41 }
  0xc0   :  { %548 = vst [vmem:[%s1127_s4 + $0x20] sm:$0xff] %v535_v56 }
  0xc1   :  { %v480_v59 = vmul.f32 %v1051_v26, %v450_v57 }
  0xc3   :  { %v497_v60 = vadd.f32 %v1056_v28, %v480_v59 }
  0xc4   :  { %v366_v61 = vpop.f32.mrf.mxu3 }
  0xc5   :  { %vm510_vm3 = vcmp.gt.f32.partialorder %v497_v60, 0.0  ;;  %v523_v62 = vmul.f32 0.01, %v497_v60  ;;  %v410_v63 = vadd.f32 %v409_v58, %v366_v61 }
  0xc6   :  { %v452_v0 = vpop.f32.mrf.mxu2  ;;  %v396_v15 = vpop.f32.mrf.mxu0 }
  0xc7   :  { %v536_v1 = vsel %vm510_vm3, %v497_v60, %v523_v62  ;;  %v453_v2 = vadd.f32 %v452_v0, %v410_v63  ;;  %v411_v4 = vpop.f32.mrf.mxu1  ;;  %v397_v40 = vadd.f32 %v396_v15, %v353_v55 }
  0xc8   :  { %549 = vst [vmem:[%s1127_s4 + $0x28] sm:$0xff] %v536_v1 }
  0xc9   :  { %v481_v5 = vmul.f32 %v1051_v26, %v453_v2 }
  0xcb   :  { %v498_v6 = vadd.f32 %v1056_v28, %v481_v5 }
  0xcc   :  { %v368_v7 = vpop.f32.mrf.mxu3 }
  0xcd   :  { %vm511_vm4 = vcmp.gt.f32.partialorder %v498_v6, 0.0  ;;  %v524_v8 = vmul.f32 0.01, %v498_v6  ;;  %v412_v9 = vadd.f32 %v411_v4, %v368_v7 }
  0xce   :  { %v454_v10 = vpop.f32.mrf.mxu2 }
  0xcf   :  { %v537_v11 = vsel %vm511_vm4, %v498_v6, %v524_v8  ;;  %v455_v12 = vadd.f32 %v454_v10, %v412_v9  ;;  %v414_v13 = vpop.f32.mrf.mxu1 }
  0xd0   :  { %550 = vst [vmem:[%s1127_s4 + $0x30] sm:$0xff] %v537_v11 }
  0xd1   :  { %v482_v14 = vmul.f32 %v1051_v26, %v455_v12 }
  0xd3   :  { %v499_v16 = vadd.f32 %v1056_v28, %v482_v14 }
  0xd4   :  { %v371_v17 = vpop.f32.mrf.mxu3 }
  0xd5   :  { %vm512_vm5 = vcmp.gt.f32.partialorder %v499_v16, 0.0  ;;  %v525_v18 = vmul.f32 0.01, %v499_v16  ;;  %v415_v19 = vadd.f32 %v414_v13, %v371_v17 }
  0xd6   :  { %v457_v20 = vpop.f32.mrf.mxu2 }
  0xd7   :  { %v538_v21 = vsel %vm512_vm5, %v499_v16, %v525_v18  ;;  %v458_v22 = vadd.f32 %v457_v20, %v415_v19  ;;  %v416_v23 = vpop.f32.mrf.mxu1 }
  0xd8   :  { %551 = vst [vmem:[%s1127_s4 + $0x38] sm:$0xff] %v538_v21 }
  0xd9   :  { %v483_v25 = vmul.f32 %v1051_v26, %v458_v22 }
  0xdb   :  { %v500_v30 = vadd.f32 %v1056_v28, %v483_v25 }
  0xdc   :  { %v373_v32 = vpop.f32.mrf.mxu3 }
  0xdd   :  { %vm513_vm6 = vcmp.gt.f32.partialorder %v500_v30, 0.0  ;;  %v526_v33 = vmul.f32 0.01, %v500_v30  ;;  %v417_v34 = vadd.f32 %v416_v23, %v373_v32 }
  0xde   :  { %v437_v27 = vpop.f32.mrf.mxu0  ;;  %v459_v35 = vpop.f32.mrf.mxu2 }
  0xdf   :  { %v438_v29 = vadd.f32 %v437_v27, %v395_v24  ;;  %v539_v37 = vsel %vm513_vm6, %v500_v30, %v526_v33  ;;  %v460_v38 = vadd.f32 %v459_v35, %v417_v34  ;;  %v419_v39 = vpop.f32.mrf.mxu1 }
  0xe0   :  { %552 = vst [vmem:[%s1127_s4 + $0x40] sm:$0xff] %v539_v37 }
  0xe1   :  { %v475_v31 = vmul.f32 %v1051_v26, %v438_v29  ;;  %v484_v42 = vmul.f32 %v1051_v26, %v460_v38 }
  0xe3   :  { %v492_v36 = vadd.f32 %v1056_v28, %v475_v31  ;;  %v501_v46 = vadd.f32 %v1056_v28, %v484_v42 }
  0xe4   :  { %v376_v48 = vpop.f32.mrf.mxu3 }
  0xe5   :  { %vm505_vm7 = vcmp.gt.f32.partialorder %v492_v36, 0.0  ;;  %v518_v41 = vmul.f32 0.01, %v492_v36  ;;  %vm514_vm8 = vcmp.gt.f32.partialorder %v501_v46, 0.0  ;;  %v527_v49 = vmul.f32 0.01, %v501_v46 }
  0xe6   :  { %v439_v43 = vpop.f32.mrf.mxu0  ;;  %v420_v50 = vadd.f32 %v419_v39, %v376_v48  ;;  %v462_v51 = vpop.f32.mrf.mxu2 }
  0xe7   :  { %v531_v44 = vsel %vm505_vm7, %v492_v36, %v518_v41  ;;  %v440_v45 = vadd.f32 %v439_v43, %v397_v40  ;;  %v540_v53 = vsel %vm514_vm8, %v501_v46, %v527_v49  ;;  %v421_v55 = vpop.f32.mrf.mxu1 }
  0xe8   :  { %544 = vst [vmem:[%s1127_s4] sm:$0xff] %v531_v44  ;;  %v463_v54 = vadd.f32 %v462_v51, %v420_v50 }
  0xe9   :  { %v476_v47 = vmul.f32 %v1051_v26, %v440_v45  ;;  %553 = vst [vmem:[%s1127_s4 + $0x48] sm:$0xff] %v540_v53 }
  0xea   :  { %v485_v57 = vmul.f32 %v1051_v26, %v463_v54 }
  0xeb   :  { %v493_v52 = vadd.f32 %v1056_v28, %v476_v47 }
  0xec   :  { %v502_v59 = vadd.f32 %v1056_v28, %v485_v57  ;;  %v378_v60 = vpop.f32.mrf.mxu3 }
  0xed   :  { %vm506_vm9 = vcmp.gt.f32.partialorder %v493_v52, 0.0  ;;  %v519_v56 = vmul.f32 0.01, %v493_v52  ;;  %v422_v62 = vadd.f32 %v421_v55, %v378_v60 }
  0xee   :  { %vm515_vm10 = vcmp.gt.f32.partialorder %v502_v59, 0.0  ;;  %v528_v61 = vmul.f32 0.01, %v502_v59  ;;  %v464_v63 = vpop.f32.mrf.mxu2 }
  0xef   :  { %v532_v58 = vsel %vm506_vm9, %v493_v52, %v519_v56  ;;  %v465_v1 = vadd.f32 %v464_v63, %v422_v62  ;;  %v424_v2 = vpop.f32.mrf.mxu1 }
  0xf0   :  { %545 = vst [vmem:[%s1127_s4 + $0x8] sm:$0xff] %v532_v58  ;;  %v541_v0 = vsel %vm515_vm10, %v502_v59, %v528_v61 }
  0xf1   :  { %554 = vst [vmem:[%s1127_s4 + $0x50] sm:$0xff] %v541_v0  ;;  %v486_v3 = vmul.f32 %v1051_v26, %v465_v1 }
  0xf3   :  { %v503_v4 = vadd.f32 %v1056_v28, %v486_v3 }
  0xf4   :  { %v381_v5 = vpop.f32.mrf.mxu3 }
  0xf5   :  { %vm516_vm11 = vcmp.gt.f32.partialorder %v503_v4, 0.0  ;;  %v529_v6 = vmul.f32 0.01, %v503_v4  ;;  %v425_v7 = vadd.f32 %v424_v2, %v381_v5 }
  0xf6   :  { %v467_v8 = vpop.f32.mrf.mxu2 }
  0xf7   :  { %v542_v9 = vsel %vm516_vm11, %v503_v4, %v529_v6  ;;  %v468_v10 = vadd.f32 %v467_v8, %v425_v7  ;;  %v426_v11 = vpop.f32.mrf.mxu1 }
  0xf8   :  { %555 = vst [vmem:[%s1127_s4 + $0x58] sm:$0xff] %v542_v9 }
  0xf9   :  { %v487_v12 = vmul.f32 %v1051_v26, %v468_v10 }
  0xfb   :  { %v504_v13 = vadd.f32 %v1056_v28, %v487_v12 }
  0xfc   :  { %v383_v14 = vpop.f32.mrf.mxu3 }
  0xfd   :  { %vm517_vm12 = vcmp.gt.f32.partialorder %v504_v13, 0.0  ;;  %v530_v15 = vmul.f32 0.01, %v504_v13 }
  0xfe   :  { %v469_v16 = vpop.f32.mrf.mxu2 }
  0xff   :  { %v543_v17 = vsel %vm517_vm12, %v504_v13, %v530_v15 }
 0x100   :  { %556 = vst [vmem:[%s1127_s4 + $0x60] sm:$0xff] %v543_v17 }

// kernel: model_naive_forward.11
= control target key start
LH: loop header
LB: loop body
LE: loop exit
PB: predicated region body
PF: predicated region fallthrough
CT: control target
= control target key end

     0   :  { %s1015_s1 = inlined_call_operand.vmem [shape: bf16[640,128], index: 1, kind: input, shape index: {}]   ;;  %s1016_s0 = inlined_call_operand.vmem [shape: bf16[32,640], index: 0, kind: input, shape index: {}]   ;;  %s1017_s2 = inlined_call_operand.vmem [shape: f32[1,128], index: 2, kind: input, shape index: {}]   ;;  %s1018_s3 = inlined_call_operand.vmem [shape: f32[1,128], index: 3, kind: input, shape index: {}]   ;;  %s1019_s4 = inlined_call_operand.vmem [shape: f32[32,128], index: 4, kind: output, shape index: {}]  }
   0x1   :  { %v749_v0 = vld [vmem:[%s1015_s1 + $0x38] sm:$0xff]  ;;  %v748_v4 = vld [vmem:[%s1015_s1 + $0x30] sm:$0xff]  ;;  %v747_v8 = vld [vmem:[%s1015_s1 + $0x28] sm:$0xff] }
   0x2   :  { %v757_v1 = vld [vmem:[%s1015_s1 + $0x78] sm:$0xff]  ;;  %401 = vmatpush.bf16.msra.mxu0 %v749_v0  ;;  %v756_v5 = vld [vmem:[%s1015_s1 + $0x70] sm:$0xff]  ;;  %v755_v9 = vld [vmem:[%s1015_s1 + $0x68] sm:$0xff] }
   0x3   :  { %v765_v2 = vld [vmem:[%s1015_s1 + $0xb8] sm:$0xff]  ;;  %420 = vmatpush.bf16.msra.mxu1 %v757_v1  ;;  %v764_v6 = vld [vmem:[%s1015_s1 + $0xb0] sm:$0xff]  ;;  %v763_v10 = vld [vmem:[%s1015_s1 + $0xa8] sm:$0xff] }
   0x4   :  { %v773_v3 = vld [vmem:[%s1015_s1 + $0xf8] sm:$0xff]  ;;  %439 = vmatpush.bf16.msra.mxu2 %v765_v2  ;;  %v772_v7 = vld [vmem:[%s1015_s1 + $0xf0] sm:$0xff]  ;;  %v771_v11 = vld [vmem:[%s1015_s1 + $0xe8] sm:$0xff] }
   0x5   :  { %458 = vmatpush.bf16.msra.mxu3 %v773_v3  ;;  %v746_v12 = vld [vmem:[%s1015_s1 + $0x20] sm:$0xff]  ;;  %v745_v16 = vld [vmem:[%s1015_s1 + $0x18] sm:$0xff]  ;;  %v744_v20 = vld [vmem:[%s1015_s1 + $0x10] sm:$0xff] }
   0x6   :  { %402 = vmatpush.bf16.msra.mxu0 %v748_v4  ;;  %v754_v13 = vld [vmem:[%s1015_s1 + $0x60] sm:$0xff]  ;;  %v753_v17 = vld [vmem:[%s1015_s1 + $0x58] sm:$0xff]  ;;  %v752_v21 = vld [vmem:[%s1015_s1 + $0x50] sm:$0xff] }
   0x7   :  { %421 = vmatpush.bf16.msra.mxu1 %v756_v5  ;;  %v762_v14 = vld [vmem:[%s1015_s1 + $0xa0] sm:$0xff]  ;;  %v761_v18 = vld [vmem:[%s1015_s1 + $0x98] sm:$0xff]  ;;  %v760_v22 = vld [vmem:[%s1015_s1 + $0x90] sm:$0xff] }
   0x8   :  { %440 = vmatpush.bf16.msra.mxu2 %v764_v6  ;;  %v770_v15 = vld [vmem:[%s1015_s1 + $0xe0] sm:$0xff]  ;;  %v769_v19 = vld [vmem:[%s1015_s1 + $0xd8] sm:$0xff]  ;;  %v768_v23 = vld [vmem:[%s1015_s1 + $0xd0] sm:$0xff] }
   0x9   :  { %459 = vmatpush.bf16.msra.mxu3 %v772_v7  ;;  %v743_v24 = vld [vmem:[%s1015_s1 + $0x8] sm:$0xff]  ;;  %v742_v28 = vld [vmem:[%s1015_s1] sm:$0xff]  ;;  %v734_v33 = vld [vmem:[%s1016_s0 + $0x10] sm:$0xf0] }
   0xa   :  { %403 = vmatpush.bf16.msra.mxu0 %v747_v8  ;;  %v751_v25 = vld [vmem:[%s1015_s1 + $0x48] sm:$0xff]  ;;  %v750_v29 = vld [vmem:[%s1015_s1 + $0x40] sm:$0xff]  ;;  %v536_v35 = vld [vmem:[%s1016_s0 + $0x14] sm:$0xf0] }
   0xb   :  { %422 = vmatpush.bf16.msra.mxu1 %v755_v9  ;;  %v759_v26 = vld [vmem:[%s1015_s1 + $0x88] sm:$0xff]  ;;  %v758_v30 = vld [vmem:[%s1015_s1 + $0x80] sm:$0xff]  ;;  %v735_v37 = vld [vmem:[%s1016_s0 + $0x18] sm:$0xf0] }
   0xc   :  { %441 = vmatpush.bf16.msra.mxu2 %v763_v10  ;;  %v767_v27 = vld [vmem:[%s1015_s1 + $0xc8] sm:$0xff]  ;;  %v766_v31 = vld [vmem:[%s1015_s1 + $0xc0] sm:$0xff]  ;;  %v781_v40 = vld [vmem:[%s1015_s1 + $0x138] sm:$0xff] }
   0xd   :  { %460 = vmatpush.bf16.msra.mxu3 %v771_v11  ;;  %v534_v32 = vld [vmem:[%s1016_s0] sm:$0xf]  ;;  %v732_v34 = vld [vmem:[%s1016_s0 + $0x4] sm:$0xf]  ;;  %v542_v36 = vld [vmem:[%s1016_s0 + $0x8] sm:$0xf] }
   0xe   :  { %404 = vmatpush.bf16.msra.mxu0 %v746_v12  ;;  %v733_v38 = vld [vmem:[%s1016_s0 + $0xc] sm:$0xf]  ;;  %v544_v39 = vld [vmem:[%s1016_s0 + $0x1c] sm:$0xf0]  ;;  %v535_v41 = vor.u32 %v734_v33, %v534_v32  ;;  %v539_v42 = vor.u32 %v732_v34, %v536_v35  ;;  %v543_v43 = vor.u32 %v735_v37, %v542_v36  ;;  %v780_v45 = vld [vmem:[%s1015_s1 + $0x130] sm:$0xff] }
   0xf   :  { %423 = vmatpush.bf16.msra.mxu1 %v754_v13  ;;  %v547_v44 = vor.u32 %v733_v38, %v544_v39  ;;  %v779_v46 = vld [vmem:[%s1015_s1 + $0x128] sm:$0xff]  ;;  %v778_v47 = vld [vmem:[%s1015_s1 + $0x120] sm:$0xff]  ;;  %v739_v49 = vld [vmem:[%s1016_s0 + $0x38] sm:$0xf0] }
  0x10   :  { %442 = vmatpush.bf16.msra.mxu2 %v762_v14  ;;  %v554_v48 = vld [vmem:[%s1016_s0 + $0x28] sm:$0xf]  ;;  %v737_v50 = vld [vmem:[%s1016_s0 + $0x2c] sm:$0xf]  ;;  %v556_v51 = vld [vmem:[%s1016_s0 + $0x3c] sm:$0xf0] }
  0x11   :  { %461 = vmatpush.bf16.msra.mxu3 %v770_v15  ;;  %v562_v52 = vld [vmem:[%s1016_s0 + $0x30] sm:$0xf]  ;;  %v740_v53 = vld [vmem:[%s1016_s0 + $0x40] sm:$0xf0]  ;;  %v738_v54 = vld [vmem:[%s1016_s0 + $0x34] sm:$0xf]  ;;  %v555_v57 = vor.u32 %v739_v49, %v554_v48  ;;  %v559_v58 = vor.u32 %v737_v50, %v556_v51 }
  0x12   :  { %405 = vmatpush.bf16.msra.mxu0 %v745_v16  ;;  %v564_v55 = vld [vmem:[%s1016_s0 + $0x44] sm:$0xf0]  ;;  %v777_v56 = vld [vmem:[%s1015_s1 + $0x118] sm:$0xff]  ;;  %v563_v59 = vor.u32 %v740_v53, %v562_v52  ;;  %v776_v61 = vld [vmem:[%s1015_s1 + $0x110] sm:$0xff] }
  0x13   :  { %424 = vmatpush.bf16.msra.mxu1 %v753_v17  ;;  %v567_v60 = vor.u32 %v738_v54, %v564_v55  ;;  %v775_v62 = vld [vmem:[%s1015_s1 + $0x108] sm:$0xff]  ;;  %v774_v63 = vld [vmem:[%s1015_s1 + $0x100] sm:$0xff]  ;;  %v550_v0 = vld [vmem:[%s1016_s0 + $0x10] sm:$0xf] }
  0x14   :  { %443 = vmatpush.bf16.msra.mxu2 %v761_v18  ;;  %v736_v1 = vld [vmem:[%s1016_s0 + $0x20] sm:$0xf0]  ;;  %v570_v2 = vld [vmem:[%s1016_s0 + $0x38] sm:$0xf]  ;;  %v741_v3 = vld [vmem:[%s1016_s0 + $0x48] sm:$0xf0] }
  0x15   :  { %462 = vmatpush.bf16.msra.mxu3 %v769_v19  ;;  %v551_v4 = vor.u32 %v736_v1, %v550_v0  ;;  %v571_v5 = vor.u32 %v741_v3, %v570_v2  ;;  %v791_v33 = vld [vmem:[%s1018_s3] ss:$0 sm:$0xff] }
  0x16   :  { %406 = vmatpush.bf16.msra.mxu0 %v744_v20 }
  0x17   :  { %425 = vmatpush.bf16.msra.mxu1 %v752_v21 }
  0x18   :  { %444 = vmatpush.bf16.msra.mxu2 %v760_v22 }
  0x19   :  { %463 = vmatpush.bf16.msra.mxu3 %v768_v23 }
  0x1a   :  { %407 = vmatpush.bf16.msra.mxu0 %v743_v24 }
  0x1b   :  { %426 = vmatpush.bf16.msra.mxu1 %v751_v25 }
  0x1c   :  { %445 = vmatpush.bf16.msra.mxu2 %v759_v26 }
  0x1d   :  { %464 = vmatpush.bf16.msra.mxu3 %v767_v27  ;;  %v790_v27 = vld [vmem:[%s1017_s2] ss:$0 sm:$0xff] }
  0x1e   :  { %408 = vmatpush.bf16.msra.mxu0 %v742_v28 }
  0x1f   :  { %427 = vmatpush.bf16.msra.mxu1 %v750_v29 }
  0x20   :  { %446 = vmatpush.bf16.msra.mxu2 %v758_v30 }
  0x21   :  { %465 = vmatpush.bf16.msra.mxu3 %v766_v31  ;;  %409 = vmatmul.bf16.vlgmr.msra.gmra.mxu0 %v535_v41 }
  0x22   :  { %477 = vmatpush.bf16.msrb.mxu0 %v781_v40  ;;  %428 = vmatmul.bf16.vlgmr.msra.gmra.mxu1 %v539_v42 }
  0x23   :  { %782 = vmatpush.bf16.msrb.mxu1 %v781_v40  ;;  %447 = vmatmul.bf16.vlgmr.msra.gmra.mxu2 %v543_v43 }
  0x24   :  { %466 = vmatmul.bf16.vlgmr.msra.gmra.mxu3 %v547_v44 }
  0x26   :  { %478 = vmatpush.bf16.msrb.mxu0 %v780_v45 }
  0x27   :  { %783 = vmatpush.bf16.msrb.mxu1 %v780_v45 }
  0x2a   :  { %479 = vmatpush.bf16.msrb.mxu0 %v779_v46 }
  0x2b   :  { %784 = vmatpush.bf16.msrb.mxu1 %v779_v46 }
  0x2e   :  { %480 = vmatpush.bf16.msrb.mxu0 %v778_v47 }
  0x2f   :  { %785 = vmatpush.bf16.msrb.mxu1 %v778_v47 }
  0x31   :  { %414 = vmatmul.bf16.gmra.mxu0 %v555_v57 }
  0x32   :  { %481 = vmatpush.bf16.msrb.mxu0 %v777_v56  ;;  %433 = vmatmul.bf16.gmra.mxu1 %v559_v58 }
  0x33   :  { %786 = vmatpush.bf16.msrb.mxu1 %v777_v56  ;;  %452 = vmatmul.bf16.gmra.mxu2 %v563_v59 }
  0x34   :  { %471 = vmatmul.bf16.gmra.mxu3 %v567_v60 }
  0x36   :  { %482 = vmatpush.bf16.msrb.mxu0 %v776_v61 }
  0x37   :  { %787 = vmatpush.bf16.msrb.mxu1 %v776_v61 }
  0x3a   :  { %483 = vmatpush.bf16.msrb.mxu0 %v775_v62 }
  0x3b   :  { %788 = vmatpush.bf16.msrb.mxu1 %v775_v62 }
  0x3e   :  { %484 = vmatpush.bf16.msrb.mxu0 %v774_v63 }
  0x3f   :  { %789 = vmatpush.bf16.msrb.mxu1 %v774_v63 }
  0x41   :  { %485 = vmatmul.bf16.vlgmr.msrb.gmra.mxu0 %v551_v4 }
  0x42   :  { %490 = vmatmul.bf16.vlgmr.msrb.gmra.mxu1 %v571_v5 }
  0x9e   :  { %v410_v6 = vpop.f32.mrf.mxu0 }
  0x9f   :  { %v429_v7 = vpop.f32.mrf.mxu1 }
  0xa0   :  { %v430_v19 = vadd.f32 %v429_v7, %v410_v6 }
  0xa6   :  { %v448_v8 = vpop.f32.mrf.mxu2  ;;  %v412_v10 = vpop.f32.mrf.mxu0 }
  0xa7   :  { %v467_v9 = vpop.f32.mrf.mxu3  ;;  %v431_v11 = vpop.f32.mrf.mxu1  ;;  %v449_v21 = vadd.f32 %v448_v8, %v430_v19 }
  0xa8   :  { %v432_v28 = vadd.f32 %v431_v11, %v412_v10 }
  0xa9   :  { %v468_v24 = vadd.f32 %v467_v9, %v449_v21 }
  0xae   :  { %v450_v12 = vpop.f32.mrf.mxu2  ;;  %v415_v13 = vpop.f32.mrf.mxu0 }
  0xaf   :  { %v434_v14 = vpop.f32.mrf.mxu1  ;;  %v469_v15 = vpop.f32.mrf.mxu3  ;;  %v451_v35 = vadd.f32 %v450_v12, %v432_v28 }
  0xb0   :  { %v435_v20 = vadd.f32 %v434_v14, %v415_v13 }
  0xb1   :  { %v470_v42 = vadd.f32 %v469_v15, %v451_v35 }
  0xb6   :  { %v453_v16 = vpop.f32.mrf.mxu2  ;;  %v417_v17 = vpop.f32.mrf.mxu0 }
  0xb7   :  { %v436_v18 = vpop.f32.mrf.mxu1  ;;  %v454_v22 = vadd.f32 %v453_v16, %v435_v20  ;;  %v472_v23 = vpop.f32.mrf.mxu3 }
  0xb8   :  { %v437_v29 = vadd.f32 %v436_v18, %v417_v17 }
  0xb9   :  { %v473_v25 = vadd.f32 %v472_v23, %v454_v22 }
  0xbe   :  { %v455_v26 = vpop.f32.mrf.mxu2  ;;  %v486_v30 = vpop.f32.mrf.mxu0 }
  0xbf   :  { %v491_v31 = vpop.f32.mrf.mxu1  ;;  %v487_v32 = vadd.f32 %v486_v30, %v468_v24  ;;  %v456_v36 = vadd.f32 %v455_v26, %v437_v29  ;;  %v474_v39 = vpop.f32.mrf.mxu3 }
  0xc0   :  { %v492_v34 = vadd.f32 %v491_v31, %v473_v25 }
  0xc1   :  { %v500_v37 = vmul.f32 %v790_v27, %v487_v32  ;;  %v475_v43 = vadd.f32 %v474_v39, %v456_v36 }
  0xc2   :  { %v502_v38 = vmul.f32 %v790_v27, %v492_v34 }
  0xc3   :  { %v508_v40 = vadd.f32 %v791_v33, %v500_v37 }
  0xc4   :  { %v510_v41 = vadd.f32 %v791_v33, %v502_v38 }
  0xc5   :  { %vm512_vm0 = vcmp.gt.f32.partialorder %v508_v40, 0.0  ;;  %v516_v44 = vmul.f32 0.01, %v508_v40 }
  0xc6   :  { %vm514_vm1 = vcmp.gt.f32.partialorder %v510_v41, 0.0  ;;  %v518_v45 = vmul.f32 0.01, %v510_v41  ;;  %v488_v46 = vpop.f32.mrf.mxu0 }
  0xc7   :  { %v493_v47 = vpop.f32.mrf.mxu1  ;;  %v520_v48 = vsel %vm512_vm0, %v508_v40, %v516_v44  ;;  %v489_v50 = vadd.f32 %v488_v46, %v470_v42 }
  0xc8   :  { %v522_v49 = vsel %vm514_vm1, %v510_v41, %v518_v45  ;;  %v494_v51 = vadd.f32 %v493_v47, %v475_v43  ;;  %524 = vst [vmem:[%s1019_s4] sm:$0xff] %v520_v48 }
  0xc9   :  { %526 = vst [vmem:[%s1019_s4 + $0x10] sm:$0xff] %v522_v49  ;;  %v501_v52 = vmul.f32 %v790_v27, %v489_v50 }
  0xca   :  { %v503_v53 = vmul.f32 %v790_v27, %v494_v51 }
  0xcb   :  { %v509_v54 = vadd.f32 %v791_v33, %v501_v52 }
  0xcc   :  { %v511_v55 = vadd.f32 %v791_v33, %v503_v53 }
  0xcd   :  { %vm513_vm2 = vcmp.gt.f32.partialorder %v509_v54, 0.0  ;;  %v517_v56 = vmul.f32 0.01, %v509_v54 }
  0xce   :  { %vm515_vm3 = vcmp.gt.f32.partialorder %v511_v55, 0.0  ;;  %v519_v57 = vmul.f32 0.01, %v511_v55 }
  0xcf   :  { %v521_v58 = vsel %vm513_vm2, %v509_v54, %v517_v56 }
  0xd0   :  { %v523_v59 = vsel %vm515_vm3, %v511_v55, %v519_v57  ;;  %525 = vst [vmem:[%s1019_s4 + $0x8] sm:$0xff] %v521_v58 }
  0xd1   :  { %527 = vst [vmem:[%s1019_s4 + $0x18] sm:$0xff] %v523_v59 }

// kernel: model_naive_forward.12
= control target key start
LH: loop header
LB: loop body
LE: loop exit
PB: predicated region body
PF: predicated region fallthrough
CT: control target
= control target key end

     0   :  { %s2846_s1 = inlined_call_operand.vmem [shape: bf16[1152,256], index: 1, kind: input, shape index: {}]   ;;  %s2847_s0 = inlined_call_operand.vmem [shape: bf16[8,1152], index: 0, kind: input, shape index: {}]   ;;  %s2848_s2 = inlined_call_operand.vmem [shape: f32[1,256], index: 2, kind: input, shape index: {}]   ;;  %s2849_s3 = inlined_call_operand.vmem [shape: f32[1,256], index: 3, kind: input, shape index: {}]   ;;  %s2850_s4 = inlined_call_operand.vmem [shape: f32[8,256], index: 4, kind: output, shape index: {}]  }
   0x1   :  { %v1232_v0 = vld [vmem:[%s2846_s1 + $0x70] sm:$0xf]  ;;  %v1765_v1 = vld [vmem:[%s2846_s1 + $0x74] sm:$0xf0]  ;;  %v1224_v11 = vld [vmem:[%s2846_s1 + $0x60] sm:$0xf] }
   0x2   :  { %v1296_v2 = vld [vmem:[%s2846_s1 + $0xf0] sm:$0xf]  ;;  %v1233_v3 = vor.u32 %v1765_v1, %v1232_v0  ;;  %v1781_v4 = vld [vmem:[%s2846_s1 + $0xf4] sm:$0xf0]  ;;  %v1763_v13 = vld [vmem:[%s2846_s1 + $0x64] sm:$0xf0] }
   0x3   :  { %v1360_v5 = vld [vmem:[%s2846_s1 + $0x170] sm:$0xf]  ;;  %v1797_v6 = vld [vmem:[%s2846_s1 + $0x174] sm:$0xf0]  ;;  %v1297_v7 = vor.u32 %v1781_v4, %v1296_v2  ;;  %v1288_v14 = vld [vmem:[%s2846_s1 + $0xe0] sm:$0xf]  ;;  %v1225_v16 = vor.u32 %v1763_v13, %v1224_v11 }
   0x4   :  { %v1361_v8 = vor.u32 %v1797_v6, %v1360_v5  ;;  %v1424_v9 = vld [vmem:[%s2846_s1 + $0x1f0] sm:$0xf]  ;;  %v1813_v10 = vld [vmem:[%s2846_s1 + $0x1f4] sm:$0xf0]  ;;  %918 = vmatpush.bf16.msra.mxu0 %v1233_v3  ;;  %v1779_v15 = vld [vmem:[%s2846_s1 + $0xe4] sm:$0xf0] }
   0x5   :  { %v1425_v12 = vor.u32 %v1813_v10, %v1424_v9  ;;  %931 = vmatpush.bf16.msra.mxu1 %v1297_v7  ;;  %v1289_v17 = vor.u32 %v1779_v15, %v1288_v14  ;;  %v1352_v18 = vld [vmem:[%s2846_s1 + $0x160] sm:$0xf]  ;;  %v1795_v19 = vld [vmem:[%s2846_s1 + $0x164] sm:$0xf0]  ;;  %v1216_v23 = vld [vmem:[%s2846_s1 + $0x50] sm:$0xf] }
   0x6   :  { %944 = vmatpush.bf16.msra.mxu2 %v1361_v8  ;;  %v1416_v20 = vld [vmem:[%s2846_s1 + $0x1e0] sm:$0xf]  ;;  %v1353_v21 = vor.u32 %v1795_v19, %v1352_v18  ;;  %v1811_v22 = vld [vmem:[%s2846_s1 + $0x1e4] sm:$0xf0]  ;;  %v1761_v24 = vld [vmem:[%s2846_s1 + $0x54] sm:$0xf0] }
   0x7   :  { %957 = vmatpush.bf16.msra.mxu3 %v1425_v12  ;;  %v1417_v25 = vor.u32 %v1811_v22, %v1416_v20  ;;  %v1280_v26 = vld [vmem:[%s2846_s1 + $0xd0] sm:$0xf]  ;;  %v1777_v27 = vld [vmem:[%s2846_s1 + $0xd4] sm:$0xf0]  ;;  %v1217_v29 = vor.u32 %v1761_v24, %v1216_v23  ;;  %v1208_v35 = vld [vmem:[%s2846_s1 + $0x40] sm:$0xf] }
   0x8   :  { %v1344_v28 = vld [vmem:[%s2846_s1 + $0x150] sm:$0xf]  ;;  %919 = vmatpush.bf16.msra.mxu0 %v1225_v16  ;;  %v1793_v30 = vld [vmem:[%s2846_s1 + $0x154] sm:$0xf0]  ;;  %v1281_v33 = vor.u32 %v1777_v27, %v1280_v26  ;;  %v1759_v36 = vld [vmem:[%s2846_s1 + $0x44] sm:$0xf0] }
   0x9   :  { %v1408_v31 = vld [vmem:[%s2846_s1 + $0x1d0] sm:$0xf]  ;;  %v1809_v32 = vld [vmem:[%s2846_s1 + $0x1d4] sm:$0xf0]  ;;  %932 = vmatpush.bf16.msra.mxu1 %v1289_v17  ;;  %v1345_v34 = vor.u32 %v1793_v30, %v1344_v28  ;;  %v1272_v37 = vld [vmem:[%s2846_s1 + $0xc0] sm:$0xf]  ;;  %v1209_v44 = vor.u32 %v1759_v36, %v1208_v35 }
   0xa   :  { %945 = vmatpush.bf16.msra.mxu2 %v1353_v21  ;;  %v1409_v38 = vor.u32 %v1809_v32, %v1408_v31  ;;  %v1775_v39 = vld [vmem:[%s2846_s1 + $0xc4] sm:$0xf0]  ;;  %v1336_v40 = vld [vmem:[%s2846_s1 + $0x140] sm:$0xf]  ;;  %v1200_v47 = vld [vmem:[%s2846_s1 + $0x30] sm:$0xf] }
   0xb   :  { %958 = vmatpush.bf16.msra.mxu3 %v1417_v25  ;;  %v1791_v41 = vld [vmem:[%s2846_s1 + $0x144] sm:$0xf0]  ;;  %v1400_v42 = vld [vmem:[%s2846_s1 + $0x1c0] sm:$0xf]  ;;  %v1273_v45 = vor.u32 %v1775_v39, %v1272_v37  ;;  %v1757_v48 = vld [vmem:[%s2846_s1 + $0x34] sm:$0xf0] }
   0xc   :  { %v1807_v43 = vld [vmem:[%s2846_s1 + $0x1c4] sm:$0xf0]  ;;  %920 = vmatpush.bf16.msra.mxu0 %v1217_v29  ;;  %v1337_v46 = vor.u32 %v1791_v41, %v1336_v40  ;;  %v1264_v49 = vld [vmem:[%s2846_s1 + $0xb0] sm:$0xf]  ;;  %v1773_v51 = vld [vmem:[%s2846_s1 + $0xb4] sm:$0xf0]  ;;  %v1201_v56 = vor.u32 %v1757_v48, %v1200_v47 }
   0xd   :  { %933 = vmatpush.bf16.msra.mxu1 %v1281_v33  ;;  %v1401_v50 = vor.u32 %v1807_v43, %v1400_v42  ;;  %v1328_v52 = vld [vmem:[%s2846_s1 + $0x130] sm:$0xf]  ;;  %v1789_v53 = vld [vmem:[%s2846_s1 + $0x134] sm:$0xf0]  ;;  %v1265_v57 = vor.u32 %v1773_v51, %v1264_v49  ;;  %v1192_v59 = vld [vmem:[%s2846_s1 + $0x20] sm:$0xf] }
   0xe   :  { %946 = vmatpush.bf16.msra.mxu2 %v1345_v34  ;;  %v1392_v54 = vld [vmem:[%s2846_s1 + $0x1b0] sm:$0xf]  ;;  %v1805_v55 = vld [vmem:[%s2846_s1 + $0x1b4] sm:$0xf0]  ;;  %v1329_v58 = vor.u32 %v1789_v53, %v1328_v52  ;;  %v1755_v60 = vld [vmem:[%s2846_s1 + $0x24] sm:$0xf0] }
   0xf   :  { %959 = vmatpush.bf16.msra.mxu3 %v1409_v38  ;;  %v1256_v61 = vld [vmem:[%s2846_s1 + $0xa0] sm:$0xf]  ;;  %v1393_v62 = vor.u32 %v1805_v55, %v1392_v54  ;;  %v1771_v63 = vld [vmem:[%s2846_s1 + $0xa4] sm:$0xf0]  ;;  %v1193_v4 = vor.u32 %v1755_v60, %v1192_v59  ;;  %v1184_v7 = vld [vmem:[%s2846_s1 + $0x10] sm:$0xf] }
  0x10   :  { %921 = vmatpush.bf16.msra.mxu0 %v1209_v44  ;;  %v1320_v0 = vld [vmem:[%s2846_s1 + $0x120] sm:$0xf]  ;;  %v1787_v1 = vld [vmem:[%s2846_s1 + $0x124] sm:$0xf0]  ;;  %v1257_v5 = vor.u32 %v1771_v63, %v1256_v61  ;;  %v1753_v8 = vld [vmem:[%s2846_s1 + $0x14] sm:$0xf0] }
  0x11   :  { %934 = vmatpush.bf16.msra.mxu1 %v1273_v45  ;;  %v1384_v2 = vld [vmem:[%s2846_s1 + $0x1a0] sm:$0xf]  ;;  %v1803_v3 = vld [vmem:[%s2846_s1 + $0x1a4] sm:$0xf0]  ;;  %v1321_v6 = vor.u32 %v1787_v1, %v1320_v0  ;;  %v1248_v9 = vld [vmem:[%s2846_s1 + $0x90] sm:$0xf]  ;;  %v1185_v16 = vor.u32 %v1753_v8, %v1184_v7 }
  0x12   :  { %947 = vmatpush.bf16.msra.mxu2 %v1337_v46  ;;  %v1385_v10 = vor.u32 %v1803_v3, %v1384_v2  ;;  %v1769_v11 = vld [vmem:[%s2846_s1 + $0x94] sm:$0xf0]  ;;  %v1312_v12 = vld [vmem:[%s2846_s1 + $0x110] sm:$0xf]  ;;  %v1176_v17 = vld [vmem:[%s2846_s1] sm:$0xf] }
  0x13   :  { %960 = vmatpush.bf16.msra.mxu3 %v1401_v50  ;;  %v1785_v13 = vld [vmem:[%s2846_s1 + $0x114] sm:$0xf0]  ;;  %v1376_v14 = vld [vmem:[%s2846_s1 + $0x190] sm:$0xf]  ;;  %v1751_v18 = vld [vmem:[%s2846_s1 + $0x4] sm:$0xf0]  ;;  %v1249_v19 = vor.u32 %v1769_v11, %v1248_v9 }
  0x14   :  { %922 = vmatpush.bf16.msra.mxu0 %v1201_v56  ;;  %v1801_v15 = vld [vmem:[%s2846_s1 + $0x194] sm:$0xf0]  ;;  %v1313_v20 = vor.u32 %v1785_v13, %v1312_v12  ;;  %v1240_v21 = vld [vmem:[%s2846_s1 + $0x80] sm:$0xf]  ;;  %v1767_v22 = vld [vmem:[%s2846_s1 + $0x84] sm:$0xf0]  ;;  %v1177_v31 = vor.u32 %v1751_v18, %v1176_v17 }
  0x15   :  { %935 = vmatpush.bf16.msra.mxu1 %v1265_v57  ;;  %v1304_v23 = vld [vmem:[%s2846_s1 + $0x100] sm:$0xf]  ;;  %v1377_v24 = vor.u32 %v1801_v15, %v1376_v14  ;;  %v1783_v25 = vld [vmem:[%s2846_s1 + $0x104] sm:$0xf0]  ;;  %v1488_v26 = vld [vmem:[%s2846_s1 + $0x270] sm:$0xf]  ;;  %v1241_v35 = vor.u32 %v1767_v22, %v1240_v21 }
  0x16   :  { %948 = vmatpush.bf16.msra.mxu2 %v1329_v58  ;;  %v1829_v27 = vld [vmem:[%s2846_s1 + $0x274] sm:$0xf0]  ;;  %v1552_v28 = vld [vmem:[%s2846_s1 + $0x2f0] sm:$0xf]  ;;  %v1368_v33 = vld [vmem:[%s2846_s1 + $0x180] sm:$0xf]  ;;  %v1305_v36 = vor.u32 %v1783_v25, %v1304_v23 }
  0x17   :  { %961 = vmatpush.bf16.msra.mxu3 %v1393_v62  ;;  %v1845_v29 = vld [vmem:[%s2846_s1 + $0x2f4] sm:$0xf0]  ;;  %v1616_v30 = vld [vmem:[%s2846_s1 + $0x370] sm:$0xf]  ;;  %v1799_v34 = vld [vmem:[%s2846_s1 + $0x184] sm:$0xf0]  ;;  %v1489_v39 = vor.u32 %v1829_v27, %v1488_v26 }
  0x18   :  { %923 = vmatpush.bf16.msra.mxu0 %v1193_v4  ;;  %v1861_v32 = vld [vmem:[%s2846_s1 + $0x374] sm:$0xf0]  ;;  %v1680_v37 = vld [vmem:[%s2846_s1 + $0x3f0] sm:$0xf]  ;;  %v1553_v40 = vor.u32 %v1845_v29, %v1552_v28  ;;  %v1480_v41 = vld [vmem:[%s2846_s1 + $0x260] sm:$0xf]  ;;  %v1369_v43 = vor.u32 %v1799_v34, %v1368_v33 }
  0x19   :  { %936 = vmatpush.bf16.msra.mxu1 %v1257_v5  ;;  %v1877_v38 = vld [vmem:[%s2846_s1 + $0x3f4] sm:$0xf0]  ;;  %v1617_v42 = vor.u32 %v1861_v32, %v1616_v30  ;;  %v1827_v44 = vld [vmem:[%s2846_s1 + $0x264] sm:$0xf0]  ;;  %v1544_v45 = vld [vmem:[%s2846_s1 + $0x2e0] sm:$0xf] }
  0x1a   :  { %949 = vmatpush.bf16.msra.mxu2 %v1321_v6  ;;  %v1843_v46 = vld [vmem:[%s2846_s1 + $0x2e4] sm:$0xf0]  ;;  %v1681_v47 = vor.u32 %v1877_v38, %v1680_v37  ;;  %v1608_v48 = vld [vmem:[%s2846_s1 + $0x360] sm:$0xf]  ;;  %v1481_v52 = vor.u32 %v1827_v44, %v1480_v41  ;;  %v1472_v54 = vld [vmem:[%s2846_s1 + $0x250] sm:$0xf] }
  0x1b   :  { %962 = vmatpush.bf16.msra.mxu3 %v1385_v10  ;;  %v1859_v49 = vld [vmem:[%s2846_s1 + $0x364] sm:$0xf0]  ;;  %v1672_v50 = vld [vmem:[%s2846_s1 + $0x3e0] sm:$0xf]  ;;  %v1545_v53 = vor.u32 %v1843_v46, %v1544_v45  ;;  %v1825_v55 = vld [vmem:[%s2846_s1 + $0x254] sm:$0xf0] }
  0x1c   :  { %924 = vmatpush.bf16.msra.mxu0 %v1185_v16  ;;  %v1875_v51 = vld [vmem:[%s2846_s1 + $0x3e4] sm:$0xf0]  ;;  %v1609_v56 = vor.u32 %v1859_v49, %v1608_v48  ;;  %v1536_v57 = vld [vmem:[%s2846_s1 + $0x2d0] sm:$0xf]  ;;  %v1841_v58 = vld [vmem:[%s2846_s1 + $0x2d4] sm:$0xf0]  ;;  %v1473_v2 = vor.u32 %v1825_v55, %v1472_v54 }
  0x1d   :  { %937 = vmatpush.bf16.msra.mxu1 %v1249_v19  ;;  %v18_v59 = vld [vmem:[%s2847_s0 + $0x8] sm:$0xff]  ;;  %v1673_v60 = vor.u32 %v1875_v51, %v1672_v50  ;;  %v1600_v61 = vld [vmem:[%s2846_s1 + $0x350] sm:$0xf]  ;;  %v1857_v62 = vld [vmem:[%s2846_s1 + $0x354] sm:$0xf0]  ;;  %v1537_v7 = vor.u32 %v1841_v58, %v1536_v57 }
  0x1e   :  { %950 = vmatpush.bf16.msra.mxu2 %v1313_v20  ;;  %v173_v63 = vunpack.c.l.b16 %v18_v59  ;;  %v17_v0 = vld [vmem:[%s2847_s0] sm:$0xff]  ;;  %v174_v1 = vunpack.c.h.b16 %v18_v59  ;;  %v1664_v3 = vld [vmem:[%s2846_s1 + $0x3d0] sm:$0xf]  ;;  %v1873_v4 = vld [vmem:[%s2846_s1 + $0x3d4] sm:$0xf0]  ;;  %v1601_v11 = vor.u32 %v1857_v62, %v1600_v61 }
  0x1f   :  { %963 = vmatpush.bf16.msra.mxu3 %v1377_v24  ;;  %v171_v5 = vunpack.c.l.b16 %v17_v0  ;;  %v172_v6 = vunpack.c.h.b16 %v17_v0  ;;  %v1464_v8 = vld [vmem:[%s2846_s1 + $0x240] sm:$0xf]  ;;  %v1823_v12 = vld [vmem:[%s2846_s1 + $0x244] sm:$0xf0]  ;;  %v1665_v17 = vor.u32 %v1873_v4, %v1664_v3  ;;  %v1456_v24 = vld [vmem:[%s2846_s1 + $0x230] sm:$0xf] }
  0x20   :  { %925 = vmatpush.bf16.msra.mxu0 %v1177_v31  ;;  %v2192_v9 = vpack.c.b16 %v173_v63, %v173_v63  ;;  %v2194_v10 = vpack.c.b16 %v174_v1, %v174_v1  ;;  %v1528_v13 = vld [vmem:[%s2846_s1 + $0x2c0] sm:$0xf]  ;;  %v1839_v14 = vld [vmem:[%s2846_s1 + $0x2c4] sm:$0xf0]  ;;  %v1465_v22 = vor.u32 %v1823_v12, %v1464_v8  ;;  %v1821_v26 = vld [vmem:[%s2846_s1 + $0x234] sm:$0xf0] }
  0x21   :  { %938 = vmatpush.bf16.msra.mxu1 %v1241_v35  ;;  %v2205_v15 = vpack.c.b16 %v171_v5, %v171_v5  ;;  %v2207_v16 = vpack.c.b16 %v172_v6, %v172_v6  ;;  %v1592_v18 = vld [vmem:[%s2846_s1 + $0x340] sm:$0xf]  ;;  %v1855_v19 = vld [vmem:[%s2846_s1 + $0x344] sm:$0xf0]  ;;  %v1529_v23 = vor.u32 %v1839_v14, %v1528_v13  ;;  %v1520_v27 = vld [vmem:[%s2846_s1 + $0x2b0] sm:$0xf]  ;;  %v1457_v34 = vor.u32 %v1821_v26, %v1456_v24 }
  0x22   :  { %951 = vmatpush.bf16.msra.mxu2 %v1305_v36  ;;  %v1656_v20 = vld [vmem:[%s2846_s1 + $0x3c0] sm:$0xf]  ;;  %v1871_v21 = vld [vmem:[%s2846_s1 + $0x3c4] sm:$0xf0]  ;;  %v1593_v25 = vor.u32 %v1855_v19, %v1592_v18  ;;  %v1837_v28 = vld [vmem:[%s2846_s1 + $0x2b4] sm:$0xf0] }
  0x23   :  { %964 = vmatpush.bf16.msra.mxu3 %v1369_v43  ;;  %926 = vmatmul.bf16.vlgmr.msra.gmra.mxu0 %v2205_v15  ;;  %v1657_v29 = vor.u32 %v1871_v21, %v1656_v20  ;;  %v1584_v30 = vld [vmem:[%s2846_s1 + $0x330] sm:$0xf]  ;;  %v1853_v31 = vld [vmem:[%s2846_s1 + $0x334] sm:$0xf0]  ;;  %v1521_v35 = vor.u32 %v1837_v28, %v1520_v27  ;;  %v1448_v36 = vld [vmem:[%s2846_s1 + $0x220] sm:$0xf] }
  0x24   :  { %970 = vmatpush.bf16.msrb.mxu0 %v1489_v39  ;;  %939 = vmatmul.bf16.vlgmr.msra.gmra.mxu1 %v2207_v16  ;;  %v1648_v32 = vld [vmem:[%s2846_s1 + $0x3b0] sm:$0xf]  ;;  %v1869_v33 = vld [vmem:[%s2846_s1 + $0x3b4] sm:$0xf0]  ;;  %v1585_v37 = vor.u32 %v1853_v31, %v1584_v30  ;;  %v1819_v38 = vld [vmem:[%s2846_s1 + $0x224] sm:$0xf0] }
  0x25   :  { %983 = vmatpush.bf16.msrb.mxu1 %v1553_v40  ;;  %952 = vmatmul.bf16.vlgmr.msra.gmra.mxu2 %v2192_v9  ;;  %v1512_v39 = vld [vmem:[%s2846_s1 + $0x2a0] sm:$0xf]  ;;  %v1835_v40 = vld [vmem:[%s2846_s1 + $0x2a4] sm:$0xf0]  ;;  %v1649_v41 = vor.u32 %v1869_v33, %v1648_v32  ;;  %v1449_v46 = vor.u32 %v1819_v38, %v1448_v36  ;;  %v1440_v48 = vld [vmem:[%s2846_s1 + $0x210] sm:$0xf] }
  0x26   :  { %996 = vmatpush.bf16.msrb.mxu2 %v1617_v42  ;;  %965 = vmatmul.bf16.vlgmr.msra.gmra.mxu3 %v2194_v10  ;;  %v1576_v42 = vld [vmem:[%s2846_s1 + $0x320] sm:$0xf]  ;;  %v1851_v43 = vld [vmem:[%s2846_s1 + $0x324] sm:$0xf0]  ;;  %v1817_v50 = vld [vmem:[%s2846_s1 + $0x214] sm:$0xf0] }
  0x27   :  { %1009 = vmatpush.bf16.msrb.mxu3 %v1681_v47  ;;  %v1640_v44 = vld [vmem:[%s2846_s1 + $0x3a0] sm:$0xf]  ;;  %v1867_v45 = vld [vmem:[%s2846_s1 + $0x3a4] sm:$0xf0]  ;;  %v1513_v47 = vor.u32 %v1835_v40, %v1512_v39  ;;  %v1577_v49 = vor.u32 %v1851_v43, %v1576_v42  ;;  %v1504_v51 = vld [vmem:[%s2846_s1 + $0x290] sm:$0xf] }
  0x28   :  { %971 = vmatpush.bf16.msrb.mxu0 %v1481_v52  ;;  %v1833_v52 = vld [vmem:[%s2846_s1 + $0x294] sm:$0xf0]  ;;  %v1568_v54 = vld [vmem:[%s2846_s1 + $0x310] sm:$0xf]  ;;  %v1432_v58 = vld [vmem:[%s2846_s1 + $0x200] sm:$0xf] }
  0x29   :  { %984 = vmatpush.bf16.msrb.mxu1 %v1545_v53  ;;  %v1641_v53 = vor.u32 %v1867_v45, %v1640_v44  ;;  %v1849_v55 = vld [vmem:[%s2846_s1 + $0x314] sm:$0xf0]  ;;  %v1815_v59 = vld [vmem:[%s2846_s1 + $0x204] sm:$0xf0]  ;;  %v1505_v61 = vor.u32 %v1833_v52, %v1504_v51  ;;  %v1496_v62 = vld [vmem:[%s2846_s1 + $0x280] sm:$0xf] }
  0x2a   :  { %997 = vmatpush.bf16.msrb.mxu2 %v1609_v56  ;;  %v1632_v56 = vld [vmem:[%s2846_s1 + $0x390] sm:$0xf]  ;;  %v1865_v57 = vld [vmem:[%s2846_s1 + $0x394] sm:$0xf0]  ;;  %v1831_v63 = vld [vmem:[%s2846_s1 + $0x284] sm:$0xf0]  ;;  %v1569_v1 = vor.u32 %v1849_v55, %v1568_v54 }
  0x2b   :  { %1010 = vmatpush.bf16.msrb.mxu3 %v1673_v60  ;;  %v1441_v60 = vor.u32 %v1817_v50, %v1440_v48  ;;  %v19_v0 = vld [vmem:[%s2847_s0 + $0x10] sm:$0xff]  ;;  %v1847_v3 = vld [vmem:[%s2846_s1 + $0x304] sm:$0xf0]  ;;  %v20_v4 = vld [vmem:[%s2847_s0 + $0x18] sm:$0xff]  ;;  %v1633_v5 = vor.u32 %v1865_v57, %v1632_v56  ;;  %v1497_v18 = vor.u32 %v1831_v63, %v1496_v62 }
  0x2c   :  { %972 = vmatpush.bf16.msrb.mxu0 %v1473_v2  ;;  %v1560_v2 = vld [vmem:[%s2846_s1 + $0x300] sm:$0xf]  ;;  %v1744_v6 = vld [vmem:[%s2846_s1 + $0x470] sm:$0xf]  ;;  %v1764_v8 = vld [vmem:[%s2846_s1 + $0x74] sm:$0xf]  ;;  %v175_v14 = vunpack.c.l.b16 %v19_v0  ;;  %v177_v21 = vunpack.c.l.b16 %v20_v4  ;;  %v176_v26 = vunpack.c.h.b16 %v19_v0 }
  0x2d   :  { %985 = vmatpush.bf16.msrb.mxu1 %v1537_v7  ;;  %v1893_v7 = vld [vmem:[%s2846_s1 + $0x474] sm:$0xf0]  ;;  %v1780_v12 = vld [vmem:[%s2846_s1 + $0xf4] sm:$0xf]  ;;  %v1298_v13 = vld [vmem:[%s2846_s1 + $0xf8] sm:$0xf0] }
  0x2e   :  { %998 = vmatpush.bf16.msrb.mxu2 %v1601_v11  ;;  %v1234_v11 = vld [vmem:[%s2846_s1 + $0x78] sm:$0xf0]  ;;  %v1624_v19 = vld [vmem:[%s2846_s1 + $0x380] sm:$0xf]  ;;  %v1863_v20 = vld [vmem:[%s2846_s1 + $0x384] sm:$0xf0]  ;;  %v1301_v28 = vor.u32 %v1780_v12, %v1298_v13  ;;  %v2369_v36 = vpack.c.b16 %v175_v14, %v175_v14  ;;  %v2371_v39 = vpack.c.b16 %v177_v21, %v177_v21  ;;  %v2379_v43 = vpack.c.b16 %v176_v26, %v176_v26 }
  0x2f   :  { %1011 = vmatpush.bf16.msrb.mxu3 %v1665_v17  ;;  %v1433_v17 = vor.u32 %v1815_v59, %v1432_v58  ;;  %v1796_v24 = vld [vmem:[%s2846_s1 + $0x174] sm:$0xf]  ;;  %v1237_v27 = vor.u32 %v1764_v8, %v1234_v11  ;;  %v1891_v30 = vld [vmem:[%s2846_s1 + $0x464] sm:$0xf0]  ;;  %v1762_v31 = vld [vmem:[%s2846_s1 + $0x64] sm:$0xf]  ;;  %v1625_v32 = vor.u32 %v1863_v20, %v1624_v19 }
  0x30   :  { %973 = vmatpush.bf16.msrb.mxu0 %v1465_v22  ;;  %v1561_v22 = vor.u32 %v1847_v3, %v1560_v2  ;;  %v1226_v33 = vld [vmem:[%s2846_s1 + $0x68] sm:$0xf0]  ;;  %v1760_v48 = vld [vmem:[%s2846_s1 + $0x54] sm:$0xf]  ;;  %v1218_v50 = vld [vmem:[%s2846_s1 + $0x58] sm:$0xf0] }
  0x31   :  { %986 = vmatpush.bf16.msrb.mxu1 %v1529_v23  ;;  %v1745_v23 = vor.u32 %v1893_v7, %v1744_v6  ;;  %v1354_v42 = vld [vmem:[%s2846_s1 + $0x168] sm:$0xf0]  ;;  %v1229_v44 = vor.u32 %v1762_v31, %v1226_v33  ;;  %v1776_v51 = vld [vmem:[%s2846_s1 + $0xd4] sm:$0xf]  ;;  %v1282_v52 = vld [vmem:[%s2846_s1 + $0xd8] sm:$0xf0]  ;;  %v1221_v57 = vor.u32 %v1760_v48, %v1218_v50 }
  0x32   :  { %999 = vmatpush.bf16.msrb.mxu2 %v1593_v25  ;;  %v1362_v25 = vld [vmem:[%s2846_s1 + $0x178] sm:$0xf0]  ;;  %v1792_v55 = vld [vmem:[%s2846_s1 + $0x154] sm:$0xf]  ;;  %v1285_v58 = vor.u32 %v1776_v51, %v1282_v52  ;;  %v1720_v59 = vld [vmem:[%s2846_s1 + $0x440] sm:$0xf] }
  0x33   :  { %1012 = vmatpush.bf16.msrb.mxu3 %v1657_v29  ;;  %v1736_v29 = vld [vmem:[%s2846_s1 + $0x460] sm:$0xf]  ;;  %v1365_v38 = vor.u32 %v1796_v24, %v1362_v25  ;;  %v1346_v56 = vld [vmem:[%s2846_s1 + $0x158] sm:$0xf0]  ;;  %v1210_v62 = vld [vmem:[%s2846_s1 + $0x48] sm:$0xf0] }
  0x34   :  { %974 = vmatpush.bf16.msrb.mxu0 %v1457_v34  ;;  %v1778_v34 = vld [vmem:[%s2846_s1 + $0xe4] sm:$0xf]  ;;  %v1737_v40 = vor.u32 %v1891_v30, %v1736_v29  ;;  %v1274_v0 = vld [vmem:[%s2846_s1 + $0xc8] sm:$0xf0]  ;;  %v1712_v7 = vld [vmem:[%s2846_s1 + $0x430] sm:$0xf] }
  0x35   :  { %987 = vmatpush.bf16.msrb.mxu1 %v1521_v35  ;;  %v1290_v35 = vld [vmem:[%s2846_s1 + $0xe8] sm:$0xf0]  ;;  %v1774_v63 = vld [vmem:[%s2846_s1 + $0xc4] sm:$0xf]  ;;  %v1885_v8 = vld [vmem:[%s2846_s1 + $0x434] sm:$0xf0] }
  0x36   :  { %1000 = vmatpush.bf16.msrb.mxu2 %v1585_v37  ;;  %v178_v37 = vunpack.c.h.b16 %v20_v4  ;;  %v1293_v45 = vor.u32 %v1778_v34, %v1290_v35  ;;  %v1790_v3 = vld [vmem:[%s2846_s1 + $0x144] sm:$0xf]  ;;  %v1338_v4 = vld [vmem:[%s2846_s1 + $0x148] sm:$0xf0]  ;;  %v1277_v6 = vor.u32 %v1774_v63, %v1274_v0  ;;  %v1756_v11 = vld [vmem:[%s2846_s1 + $0x34] sm:$0xf] }
  0x37   :  { %1013 = vmatpush.bf16.msrb.mxu3 %v1649_v41  ;;  %v1794_v41 = vld [vmem:[%s2846_s1 + $0x164] sm:$0xf]  ;;  %v1202_v12 = vld [vmem:[%s2846_s1 + $0x38] sm:$0xf0]  ;;  %v1772_v13 = vld [vmem:[%s2846_s1 + $0xb4] sm:$0xf] }
  0x38   :  { %975 = vmatpush.bf16.msrb.mxu0 %v1449_v46  ;;  %v1728_v46 = vld [vmem:[%s2846_s1 + $0x450] sm:$0xf]  ;;  %v1266_v14 = vld [vmem:[%s2846_s1 + $0xb8] sm:$0xf0]  ;;  %v1788_v19 = vld [vmem:[%s2846_s1 + $0x134] sm:$0xf]  ;;  %v1205_v21 = vor.u32 %v1756_v11, %v1202_v12 }
  0x39   :  { %988 = vmatpush.bf16.msrb.mxu1 %v1513_v47  ;;  %v1889_v47 = vld [vmem:[%s2846_s1 + $0x454] sm:$0xf0]  ;;  %v1330_v20 = vld [vmem:[%s2846_s1 + $0x138] sm:$0xf0]  ;;  %v1883_v24 = vld [vmem:[%s2846_s1 + $0x424] sm:$0xf0] }
  0x3a   :  { %1001 = vmatpush.bf16.msrb.mxu2 %v1577_v49  ;;  %v2391_v49 = vpack.c.b16 %v178_v37, %v178_v37  ;;  %v1729_v54 = vor.u32 %v1889_v47, %v1728_v46  ;;  %v1754_v25 = vld [vmem:[%s2846_s1 + $0x24] sm:$0xf]  ;;  %v1194_v26 = vld [vmem:[%s2846_s1 + $0x28] sm:$0xf0]  ;;  %v1333_v29 = vor.u32 %v1788_v19, %v1330_v20  ;;  %v1696_v35 = vld [vmem:[%s2846_s1 + $0x410] sm:$0xf] }
  0x3b   :  { %1014 = vmatpush.bf16.msrb.mxu3 %v1641_v53  ;;  %v1357_v53 = vor.u32 %v1794_v41, %v1354_v42  ;;  %v1786_v31 = vld [vmem:[%s2846_s1 + $0x124] sm:$0xf]  ;;  %v1197_v33 = vor.u32 %v1754_v25, %v1194_v26  ;;  %v1881_v37 = vld [vmem:[%s2846_s1 + $0x414] sm:$0xf0]  ;;  %v1768_v41 = vld [vmem:[%s2846_s1 + $0x94] sm:$0xf] }
  0x3c   :  { %976 = vmatpush.bf16.msrb.mxu0 %v1441_v60  ;;  %v1887_v60 = vld [vmem:[%s2846_s1 + $0x444] sm:$0xf0]  ;;  %v1250_v42 = vld [vmem:[%s2846_s1 + $0x98] sm:$0xf0]  ;;  %v1697_v47 = vor.u32 %v1881_v37, %v1696_v35  ;;  %v1688_v48 = vld [vmem:[%s2846_s1 + $0x400] sm:$0xf] }
  0x3d   :  { %989 = vmatpush.bf16.msrb.mxu1 %v1505_v61  ;;  %v1758_v61 = vld [vmem:[%s2846_s1 + $0x44] sm:$0xf]  ;;  %v1721_v2 = vor.u32 %v1887_v60, %v1720_v59  ;;  %v1314_v46 = vld [vmem:[%s2846_s1 + $0x118] sm:$0xf0]  ;;  %v1879_v50 = vld [vmem:[%s2846_s1 + $0x404] sm:$0xf0] }
  0x3e   :  { %1002 = vmatpush.bf16.msrb.mxu2 %v1569_v1  ;;  %v1349_v1 = vor.u32 %v1792_v55, %v1346_v56  ;;  %v1750_v51 = vld [vmem:[%s2846_s1 + $0x4] sm:$0xf]  ;;  %v21_v56 = vld [vmem:[%s2847_s0 + $0x20] sm:$0xf]  ;;  %v1426_v59 = vld [vmem:[%s2846_s1 + $0x1f8] sm:$0xf0]  ;;  %v1689_v0 = vor.u32 %v1879_v50, %v1688_v48 }
  0x3f   :  { %1015 = vmatpush.bf16.msrb.mxu3 %v1633_v5  ;;  %v1213_v5 = vor.u32 %v1758_v61, %v1210_v62  ;;  %v1766_v55 = vld [vmem:[%s2846_s1 + $0x84] sm:$0xf]  ;;  %v1828_v61 = vld [vmem:[%s2846_s1 + $0x274] sm:$0xf]  ;;  %v1490_v62 = vld [vmem:[%s2846_s1 + $0x278] sm:$0xf0] }
  0x40   :  { %977 = vmatpush.bf16.msrb.mxu0 %v1433_v17  ;;  %v1341_v17 = vor.u32 %v1790_v3, %v1338_v4  ;;  %v1844_v63 = vld [vmem:[%s2846_s1 + $0x2f4] sm:$0xf]  ;;  %v1306_v3 = vld [vmem:[%s2846_s1 + $0x108] sm:$0xf0]  ;;  %v179_v4 = vunpack.c.l.b16 %v21_v56  ;;  %v1493_v12 = vor.u32 %v1828_v61, %v1490_v62  ;;  %v1826_v19 = vld [vmem:[%s2846_s1 + $0x264] sm:$0xf] }
  0x41   :  { %990 = vmatpush.bf16.msrb.mxu1 %v1497_v18  ;;  %v1713_v18 = vor.u32 %v1885_v8, %v1712_v7  ;;  %v1860_v7 = vld [vmem:[%s2846_s1 + $0x374] sm:$0xf]  ;;  %v1618_v8 = vld [vmem:[%s2846_s1 + $0x378] sm:$0xf0]  ;;  %v1482_v20 = vld [vmem:[%s2846_s1 + $0x268] sm:$0xf0] }
  0x42   :  { %1003 = vmatpush.bf16.msrb.mxu2 %v1561_v22  ;;  %v1269_v22 = vor.u32 %v1772_v13, %v1266_v14  ;;  %v1810_v13 = vld [vmem:[%s2846_s1 + $0x1e4] sm:$0xf]  ;;  %v1610_v26 = vld [vmem:[%s2846_s1 + $0x368] sm:$0xf0]  ;;  %v1840_v35 = vld [vmem:[%s2846_s1 + $0x2d4] sm:$0xf] }
  0x43   :  { %1016 = vmatpush.bf16.msrb.mxu3 %v1625_v32  ;;  %978 = vmatmul.bf16.vlgmr.msrb.gmra.mxu0 %v2369_v36  ;;  %v1322_v32 = vld [vmem:[%s2846_s1 + $0x128] sm:$0xf0]  ;;  %v1858_v25 = vld [vmem:[%s2846_s1 + $0x364] sm:$0xf]  ;;  %v1538_v37 = vld [vmem:[%s2846_s1 + $0x2d8] sm:$0xf0] }
  0x44   :  { %1022 = vmatpush.bf16.msra.mxu0 %v1745_v23  ;;  %991 = vmatmul.bf16.vlgmr.msrb.gmra.mxu1 %v2379_v43  ;;  %v1704_v23 = vld [vmem:[%s2846_s1 + $0x420] sm:$0xf]  ;;  %v1838_v48 = vld [vmem:[%s2846_s1 + $0x2c4] sm:$0xf]  ;;  %v1530_v50 = vld [vmem:[%s2846_s1 + $0x2c8] sm:$0xf0] }
  0x45   :  { %1035 = vmatpush.bf16.msra.mxu1 %v1237_v27  ;;  %1004 = vmatmul.bf16.vlgmr.msrb.gmra.mxu2 %v2371_v39  ;;  %v1770_v27 = vld [vmem:[%s2846_s1 + $0xa4] sm:$0xf]  ;;  %v1705_v30 = vor.u32 %v1883_v24, %v1704_v23  ;;  %v1546_v24 = vld [vmem:[%s2846_s1 + $0x2e8] sm:$0xf0]  ;;  %v1394_v56 = vld [vmem:[%s2846_s1 + $0x1b8] sm:$0xf0] }
  0x46   :  { %1048 = vmatpush.bf16.msra.mxu2 %v1301_v28  ;;  %1017 = vmatmul.bf16.vlgmr.msrb.gmra.mxu3 %v2391_v49  ;;  %v1258_v28 = vld [vmem:[%s2846_s1 + $0xa8] sm:$0xf0]  ;;  %v1842_v23 = vld [vmem:[%s2846_s1 + $0x2e4] sm:$0xf]  ;;  %v1522_v61 = vld [vmem:[%s2846_s1 + $0x2b8] sm:$0xf0] }
  0x47   :  { %1061 = vmatpush.bf16.msra.mxu3 %v1365_v38  ;;  %v1261_v34 = vor.u32 %v1770_v27, %v1258_v28  ;;  %v1752_v38 = vld [vmem:[%s2846_s1 + $0x14] sm:$0xf]  ;;  %v1485_v28 = vor.u32 %v1826_v19, %v1482_v20  ;;  %v1378_v20 = vld [vmem:[%s2846_s1 + $0x198] sm:$0xf0] }
  0x48   :  { %1023 = vmatpush.bf16.msra.mxu0 %v1737_v40  ;;  %v1186_v40 = vld [vmem:[%s2846_s1 + $0x18] sm:$0xf0]  ;;  %v1852_v62 = vld [vmem:[%s2846_s1 + $0x334] sm:$0xf] }
  0x49   :  { %1036 = vmatpush.bf16.msra.mxu1 %v1229_v44  ;;  %v1325_v44 = vor.u32 %v1786_v31, %v1322_v32  ;;  %v1189_v52 = vor.u32 %v1752_v38, %v1186_v40  ;;  %v1410_v31 = vld [vmem:[%s2846_s1 + $0x1d8] sm:$0xf0]  ;;  %v1824_v32 = vld [vmem:[%s2846_s1 + $0x254] sm:$0xf] }
  0x4a   :  { %1049 = vmatpush.bf16.msra.mxu2 %v1293_v45  ;;  %v1784_v45 = vld [vmem:[%s2846_s1 + $0x114] sm:$0xf]  ;;  %v1602_v40 = vld [vmem:[%s2846_s1 + $0x358] sm:$0xf0] }
  0x4b   :  { %1062 = vmatpush.bf16.msra.mxu3 %v1357_v53  ;;  %v1253_v53 = vor.u32 %v1768_v41, %v1250_v42  ;;  %v1317_v60 = vor.u32 %v1784_v45, %v1314_v46  ;;  %v1856_v38 = vld [vmem:[%s2846_s1 + $0x354] sm:$0xf]  ;;  %v1541_v45 = vor.u32 %v1840_v35, %v1538_v37  ;;  %v1402_v46 = vld [vmem:[%s2846_s1 + $0x1c8] sm:$0xf0]  ;;  %v1830_v37 = vld [vmem:[%s2846_s1 + $0x284] sm:$0xf] }
  0x4c   :  { %1024 = vmatpush.bf16.msra.mxu0 %v1729_v54  ;;  %v1178_v54 = vld [vmem:[%s2846_s1 + $0x8] sm:$0xf0] }
  0x4d   :  { %1037 = vmatpush.bf16.msra.mxu1 %v1221_v57  ;;  %v1242_v57 = vld [vmem:[%s2846_s1 + $0x88] sm:$0xf0] }
  0x4e   :  { %1050 = vmatpush.bf16.msra.mxu2 %v1285_v58  ;;  %v1812_v58 = vld [vmem:[%s2846_s1 + $0x1f4] sm:$0xf]  ;;  %v1434_v35 = vld [vmem:[%s2846_s1 + $0x208] sm:$0xf0] }
  0x4f   :  { %1063 = vmatpush.bf16.msra.mxu3 %v1349_v1  ;;  %v1554_v1 = vld [vmem:[%s2846_s1 + $0x2f8] sm:$0xf0]  ;;  %v1429_v11 = vor.u32 %v1812_v58, %v1426_v59 }
  0x50   :  { %1025 = vmatpush.bf16.msra.mxu0 %v1721_v2  ;;  %v1782_v2 = vld [vmem:[%s2846_s1 + $0x104] sm:$0xf]  ;;  %v1557_v14 = vor.u32 %v1844_v63, %v1554_v1  ;;  %v1458_v58 = vld [vmem:[%s2846_s1 + $0x238] sm:$0xf0] }
  0x51   :  { %1038 = vmatpush.bf16.msra.mxu1 %v1213_v5  ;;  %v1181_v5 = vor.u32 %v1750_v51, %v1178_v54  ;;  %v1854_v51 = vld [vmem:[%s2846_s1 + $0x344] sm:$0xf]  ;;  %v1804_v54 = vld [vmem:[%s2846_s1 + $0x1b4] sm:$0xf]  ;;  %v1586_v63 = vld [vmem:[%s2846_s1 + $0x338] sm:$0xf0] }
  0x52   :  { %1051 = vmatpush.bf16.msra.mxu2 %v1277_v6  ;;  %v1245_v6 = vor.u32 %v1766_v55, %v1242_v57  ;;  %v1533_v55 = vor.u32 %v1838_v48, %v1530_v50  ;;  %v1820_v57 = vld [vmem:[%s2846_s1 + $0x234] sm:$0xf] }
  0x53   :  { %1064 = vmatpush.bf16.msra.mxu3 %v1341_v17  ;;  %v1309_v17 = vor.u32 %v1782_v2, %v1306_v3  ;;  %v1461_v1 = vor.u32 %v1820_v57, %v1458_v58  ;;  %v1802_v2 = vld [vmem:[%s2846_s1 + $0x1a4] sm:$0xf]  ;;  %v1872_v58 = vld [vmem:[%s2846_s1 + $0x3d4] sm:$0xf] }
  0x54   :  { %1026 = vmatpush.bf16.msra.mxu0 %v1713_v18  ;;  %v1418_v18 = vld [vmem:[%s2846_s1 + $0x1e8] sm:$0xf0] }
  0x55   :  { %1039 = vmatpush.bf16.msra.mxu1 %v1205_v21  ;;  %v2570_v21 = vpack.c.b16 %v179_v4, %v179_v4  ;;  %v1421_v27 = vor.u32 %v1810_v13, %v1418_v18  ;;  %v1386_v4 = vld [vmem:[%s2846_s1 + $0x1a8] sm:$0xf0]  ;;  %v1800_v18 = vld [vmem:[%s2846_s1 + $0x194] sm:$0xf] }
  0x56   :  { %1052 = vmatpush.bf16.msra.mxu2 %v1269_v22  ;;  %v1621_v22 = vor.u32 %v1860_v7, %v1618_v8  ;;  %v1589_v7 = vor.u32 %v1852_v62, %v1586_v63  ;;  %v1834_v8 = vld [vmem:[%s2846_s1 + $0x2a4] sm:$0xf]  ;;  %v1578_v13 = vld [vmem:[%s2846_s1 + $0x328] sm:$0xf0] }
  0x57   :  { %1065 = vmatpush.bf16.msra.mxu3 %v1333_v29  ;;  %v1808_v29 = vld [vmem:[%s2846_s1 + $0x1d4] sm:$0xf] }
  0x58   :  { %1027 = vmatpush.bf16.msra.mxu0 %v1705_v30  ;;  %v1549_v30 = vor.u32 %v1842_v23, %v1546_v24  ;;  %v1413_v41 = vor.u32 %v1808_v29, %v1410_v31  ;;  %v1442_v23 = vld [vmem:[%s2846_s1 + $0x218] sm:$0xf0]  ;;  %v1381_v29 = vor.u32 %v1800_v18, %v1378_v20  ;;  %v1798_v31 = vld [vmem:[%s2846_s1 + $0x184] sm:$0xf]  ;;  %v1864_v18 = vld [vmem:[%s2846_s1 + $0x394] sm:$0xf] }
  0x59   :  { %1040 = vmatpush.bf16.msra.mxu1 %v1197_v33  ;;  %v1474_v33 = vld [vmem:[%s2846_s1 + $0x258] sm:$0xf0]  ;;  %v1880_v20 = vld [vmem:[%s2846_s1 + $0x414] sm:$0xf] }
  0x5a   :  { %1053 = vmatpush.bf16.msra.mxu2 %v1261_v34  ;;  %v1613_v34 = vor.u32 %v1858_v25, %v1610_v26  ;;  %v1477_v42 = vor.u32 %v1824_v32, %v1474_v33  ;;  %v1832_v25 = vld [vmem:[%s2846_s1 + $0x294] sm:$0xf]  ;;  %v1506_v26 = vld [vmem:[%s2846_s1 + $0x298] sm:$0xf0]  ;;  %v1370_v32 = vld [vmem:[%s2846_s1 + $0x188] sm:$0xf0] }
  0x5b   :  { %1066 = vmatpush.bf16.msra.mxu3 %v1325_v44  ;;  %v1806_v44 = vld [vmem:[%s2846_s1 + $0x1c4] sm:$0xf] }
  0x5c   :  { %1028 = vmatpush.bf16.msra.mxu0 %v1697_v47  ;;  %v1605_v47 = vor.u32 %v1856_v38, %v1602_v40  ;;  %v1814_v33 = vld [vmem:[%s2846_s1 + $0x204] sm:$0xf]  ;;  %v1498_v38 = vld [vmem:[%s2846_s1 + $0x288] sm:$0xf0] }
  0x5d   :  { %1041 = vmatpush.bf16.msra.mxu1 %v1189_v52  ;;  %v1594_v52 = vld [vmem:[%s2846_s1 + $0x348] sm:$0xf0]  ;;  %v1501_v48 = vor.u32 %v1830_v37, %v1498_v38 }
  0x5e   :  { %1054 = vmatpush.bf16.msra.mxu2 %v1253_v53  ;;  %v1597_v59 = vor.u32 %v1854_v51, %v1594_v52 }
  0x5f   :  { %1067 = vmatpush.bf16.msra.mxu3 %v1317_v60  ;;  %v1836_v60 = vld [vmem:[%s2846_s1 + $0x2b4] sm:$0xf] }
  0x60   :  { %1029 = vmatpush.bf16.msra.mxu0 %v1689_v0  ;;  %v1397_v0 = vor.u32 %v1804_v54, %v1394_v56  ;;  %v1525_v3 = vor.u32 %v1836_v60, %v1522_v61  ;;  %v1890_v54 = vld [vmem:[%s2846_s1 + $0x464] sm:$0xf]  ;;  %v1888_v60 = vld [vmem:[%s2846_s1 + $0x454] sm:$0xf]  ;;  %v1730_v61 = vld [vmem:[%s2846_s1 + $0x458] sm:$0xf0] }
  0x61   :  { %1042 = vmatpush.bf16.msra.mxu1 %v1181_v5  ;;  %v1818_v5 = vld [vmem:[%s2846_s1 + $0x224] sm:$0xf]  ;;  %v1733_v63 = vor.u32 %v1888_v60, %v1730_v61 }
  0x62   :  { %1055 = vmatpush.bf16.msra.mxu2 %v1245_v6  ;;  %v1450_v6 = vld [vmem:[%s2846_s1 + $0x228] sm:$0xf0] }
  0x63   :  { %1068 = vmatpush.bf16.msra.mxu3 %v1309_v17  ;;  %1030 = vmatmul.bf16.vlgmr.msra.gmra.mxu0 %v2570_v21  ;;  %v1453_v17 = vor.u32 %v1818_v5, %v1450_v6  ;;  %v1714_v5 = vld [vmem:[%s2846_s1 + $0x438] sm:$0xf0] }
  0x64   :  { %1074 = vmatpush.bf16.msrb.mxu0 %v1429_v11  ;;  %1043 = vmatmul.bf16.vlgmr.msra.gmra.mxu1 %v2205_v15  ;;  %v1466_v15 = vld [vmem:[%s2846_s1 + $0x248] sm:$0xf0] }
  0x65   :  { %1087 = vmatpush.bf16.msrb.mxu1 %v1493_v12  ;;  %1056 = vmatmul.bf16.vlgmr.msra.gmra.mxu2 %v2207_v16  ;;  %v1822_v16 = vld [vmem:[%s2846_s1 + $0x244] sm:$0xf]  ;;  %v1514_v11 = vld [vmem:[%s2846_s1 + $0x2a8] sm:$0xf0] }
  0x66   :  { %1100 = vmatpush.bf16.msrb.mxu2 %v1557_v14  ;;  %1069 = vmatmul.bf16.vlgmr.msra.gmra.mxu3 %v2192_v9  ;;  %v1405_v9 = vor.u32 %v1806_v44, %v1402_v46  ;;  %v1469_v53 = vor.u32 %v1822_v16, %v1466_v15  ;;  %v1850_v12 = vld [vmem:[%s2846_s1 + $0x324] sm:$0xf]  ;;  %v1389_v14 = vor.u32 %v1802_v2, %v1386_v4  ;;  %v1892_v44 = vld [vmem:[%s2846_s1 + $0x474] sm:$0xf]  ;;  %v1562_v16 = vld [vmem:[%s2846_s1 + $0x308] sm:$0xf0] }
  0x67   :  { %1113 = vmatpush.bf16.msrb.mxu3 %v1621_v22  ;;  %v1517_v19 = vor.u32 %v1834_v8, %v1514_v11  ;;  %v1816_v22 = vld [vmem:[%s2846_s1 + $0x214] sm:$0xf]  ;;  %v1581_v24 = vor.u32 %v1850_v12, %v1578_v13  ;;  %v1846_v46 = vld [vmem:[%s2846_s1 + $0x304] sm:$0xf]  ;;  %v1373_v15 = vor.u32 %v1798_v31, %v1370_v32  ;;  %v1642_v11 = vld [vmem:[%s2846_s1 + $0x3a8] sm:$0xf0] }
  0x68   :  { %1075 = vmatpush.bf16.msrb.mxu0 %v1421_v27  ;;  %v1848_v27 = vld [vmem:[%s2846_s1 + $0x314] sm:$0xf]  ;;  %v1565_v52 = vor.u32 %v1846_v46, %v1562_v16  ;;  %v1866_v8 = vld [vmem:[%s2846_s1 + $0x3a4] sm:$0xf]  ;;  %v1706_v13 = vld [vmem:[%s2846_s1 + $0x428] sm:$0xf0] }
  0x69   :  { %1088 = vmatpush.bf16.msrb.mxu1 %v1485_v28  ;;  %v1570_v28 = vld [vmem:[%s2846_s1 + $0x318] sm:$0xf0]  ;;  %v1868_v2 = vld [vmem:[%s2846_s1 + $0x3b4] sm:$0xf]  ;;  %v1882_v12 = vld [vmem:[%s2846_s1 + $0x424] sm:$0xf] }
  0x6a   :  { %1101 = vmatpush.bf16.msrb.mxu2 %v1549_v30  ;;  %v1445_v30 = vor.u32 %v1816_v22, %v1442_v23  ;;  %v1573_v40 = vor.u32 %v1848_v27, %v1570_v28  ;;  %v1884_v4 = vld [vmem:[%s2846_s1 + $0x434] sm:$0xf]  ;;  %v1698_v22 = vld [vmem:[%s2846_s1 + $0x418] sm:$0xf0]  ;;  %v1878_v27 = vld [vmem:[%s2846_s1 + $0x404] sm:$0xf] }
  0x6b   :  { %1114 = vmatpush.bf16.msrb.mxu3 %v1613_v34  ;;  %v1509_v34 = vor.u32 %v1832_v25, %v1506_v26  ;;  %v1862_v25 = vld [vmem:[%s2846_s1 + $0x384] sm:$0xf]  ;;  %v1626_v26 = vld [vmem:[%s2846_s1 + $0x388] sm:$0xf0] }
  0x6c   :  { %1076 = vmatpush.bf16.msrb.mxu0 %v1413_v41  ;;  %v1876_v41 = vld [vmem:[%s2846_s1 + $0x3f4] sm:$0xf]  ;;  %v1690_v28 = vld [vmem:[%s2846_s1 + $0x408] sm:$0xf0] }
  0x6d   :  { %1089 = vmatpush.bf16.msrb.mxu1 %v1477_v42  ;;  %v1682_v42 = vld [vmem:[%s2846_s1 + $0x3f8] sm:$0xf0] }
  0x6e   :  { %1102 = vmatpush.bf16.msrb.mxu2 %v1541_v45  ;;  %v1746_v45 = vld [vmem:[%s2846_s1 + $0x478] sm:$0xf0]  ;;  %v1685_v50 = vor.u32 %v1876_v41, %v1682_v42 }
  0x6f   :  { %1115 = vmatpush.bf16.msrb.mxu3 %v1605_v47  ;;  %v1437_v47 = vor.u32 %v1814_v33, %v1434_v35  ;;  %v1749_v51 = vor.u32 %v1892_v44, %v1746_v45 }
  0x70   :  { %1077 = vmatpush.bf16.msrb.mxu0 %v1405_v9  ;;  %v1874_v9 = vld [vmem:[%s2846_s1 + $0x3e4] sm:$0xf] }
  0x71   :  { %1090 = vmatpush.bf16.msrb.mxu1 %v1469_v53  ;;  %v1674_v53 = vld [vmem:[%s2846_s1 + $0x3e8] sm:$0xf0] }
  0x72   :  { %1103 = vmatpush.bf16.msrb.mxu2 %v1533_v55  ;;  %v1738_v55 = vld [vmem:[%s2846_s1 + $0x468] sm:$0xf0]  ;;  %v1677_v56 = vor.u32 %v1874_v9, %v1674_v53  ;;  %v1152_v9 = vld [vmem:[%s2848_s2] sm:$0x3] }
  0x73   :  { %1116 = vmatpush.bf16.msrb.mxu3 %v1597_v59  ;;  %v1741_v57 = vor.u32 %v1890_v54, %v1738_v55  ;;  %v1666_v59 = vld [vmem:[%s2846_s1 + $0x3d8] sm:$0xf0]  ;;  %v1160_v53 = vld [vmem:[%s2849_s3] sm:$0x3]  ;;  %v1154_v55 = vperm.slane %v1152_v9, 0 }
  0x74   :  { %1078 = vmatpush.bf16.msrb.mxu0 %v1397_v0  ;;  %v1669_v62 = vor.u32 %v1872_v58, %v1666_v59  ;;  %v1886_v0 = vld [vmem:[%s2846_s1 + $0x444] sm:$0xf]  ;;  %v1162_v58 = vperm.slane %v1160_v53, 0 }
  0x75   :  { %1091 = vmatpush.bf16.msrb.mxu1 %v1461_v1 }
  0x76   :  { %1104 = vmatpush.bf16.msrb.mxu2 %v1525_v3  ;;  %v1650_v3 = vld [vmem:[%s2846_s1 + $0x3b8] sm:$0xf0] }
  0x77   :  { %1117 = vmatpush.bf16.msrb.mxu3 %v1589_v7  ;;  %v1653_v6 = vor.u32 %v1868_v2, %v1650_v3  ;;  %v1717_v7 = vor.u32 %v1884_v4, %v1714_v5 }
  0x78   :  { %1079 = vmatpush.bf16.msrb.mxu0 %v1389_v14  ;;  %v1645_v14 = vor.u32 %v1866_v8, %v1642_v11 }
  0x79   :  { %1092 = vmatpush.bf16.msrb.mxu1 %v1453_v17  ;;  %v1709_v17 = vor.u32 %v1882_v12, %v1706_v13 }
  0x7a   :  { %1105 = vmatpush.bf16.msrb.mxu2 %v1517_v19  ;;  %v1634_v19 = vld [vmem:[%s2846_s1 + $0x398] sm:$0xf0] }
  0x7b   :  { %1118 = vmatpush.bf16.msrb.mxu3 %v1581_v24  ;;  %v1637_v23 = vor.u32 %v1864_v18, %v1634_v19  ;;  %v1701_v24 = vor.u32 %v1880_v20, %v1698_v22  ;;  %v1155_v22 = vperm.slane %v1152_v9, 1 }
  0x7c   :  { %1080 = vmatpush.bf16.msrb.mxu0 %v1381_v29  ;;  %v1629_v29 = vor.u32 %v1862_v25, %v1626_v26 }
  0x7d   :  { %1093 = vmatpush.bf16.msrb.mxu1 %v1445_v30  ;;  %v1693_v30 = vor.u32 %v1878_v27, %v1690_v28 }
  0x7e   :  { %1106 = vmatpush.bf16.msrb.mxu2 %v1509_v34 }
  0x7f   :  { %1119 = vmatpush.bf16.msrb.mxu3 %v1573_v40 }
  0x80   :  { %1081 = vmatpush.bf16.msrb.mxu0 %v1373_v15 }
  0x81   :  { %1094 = vmatpush.bf16.msrb.mxu1 %v1437_v47 }
  0x82   :  { %1107 = vmatpush.bf16.msrb.mxu2 %v1501_v48 }
  0x83   :  { %1120 = vmatpush.bf16.msrb.mxu3 %v1565_v52  ;;  %1082 = vmatmul.bf16.vlgmr.msrb.gmra.mxu0 %v2194_v10  ;;  %v1870_v10 = vld [vmem:[%s2846_s1 + $0x3c4] sm:$0xf] }
  0x84   :  { %1126 = vmatpush.bf16.msra.mxu0 %v1685_v50  ;;  %1095 = vmatmul.bf16.vlgmr.msrb.gmra.mxu1 %v2369_v36  ;;  %v1658_v36 = vld [vmem:[%s2846_s1 + $0x3c8] sm:$0xf0] }
  0x85   :  { %1139 = vmatpush.bf16.msra.mxu1 %v1749_v51  ;;  %1108 = vmatmul.bf16.vlgmr.msrb.gmra.mxu2 %v2379_v43  ;;  %v1661_v43 = vor.u32 %v1870_v10, %v1658_v36 }
  0x86   :  { %1121 = vmatmul.bf16.vlgmr.msrb.gmra.mxu3 %v2371_v39  ;;  %v1722_v39 = vld [vmem:[%s2846_s1 + $0x448] sm:$0xf0] }
  0x87   :  { %v1725_v1 = vor.u32 %v1886_v0, %v1722_v39 }
  0x88   :  { %1127 = vmatpush.bf16.msra.mxu0 %v1677_v56 }
  0x89   :  { %1140 = vmatpush.bf16.msra.mxu1 %v1741_v57 }
  0x8c   :  { %1128 = vmatpush.bf16.msra.mxu0 %v1669_v62 }
  0x8d   :  { %1141 = vmatpush.bf16.msra.mxu1 %v1733_v63 }
  0x90   :  { %1129 = vmatpush.bf16.msra.mxu0 %v1661_v43 }
  0x91   :  { %1142 = vmatpush.bf16.msra.mxu1 %v1725_v1 }
  0x94   :  { %1130 = vmatpush.bf16.msra.mxu0 %v1653_v6 }
  0x95   :  { %1143 = vmatpush.bf16.msra.mxu1 %v1717_v7 }
  0x98   :  { %1131 = vmatpush.bf16.msra.mxu0 %v1645_v14 }
  0x99   :  { %1144 = vmatpush.bf16.msra.mxu1 %v1709_v17 }
  0x9c   :  { %1132 = vmatpush.bf16.msra.mxu0 %v1637_v23 }
  0x9d   :  { %1145 = vmatpush.bf16.msra.mxu1 %v1701_v24  ;;  %v1163_v24 = vperm.slane %v1160_v53, 1 }
  0xa0   :  { %1133 = vmatpush.bf16.msra.mxu0 %v1629_v29  ;;  %v927_v31 = vpop.f32.mrf.mxu0 }
  0xa1   :  { %1146 = vmatpush.bf16.msra.mxu1 %v1693_v30  ;;  %v940_v32 = vpop.f32.mrf.mxu1 }
  0xa2   :  { %v941_v44 = vadd.f32 %v940_v32, %v927_v31 }
  0xa3   :  { %1134 = vmatmul.bf16.vlgmr.msra.gmra.mxu0 %v2391_v49 }
  0xa4   :  { %1147 = vmatmul.bf16.vlgmr.msra.gmra.mxu1 %v2570_v21 }
  0xa8   :  { %v953_v33 = vpop.f32.mrf.mxu2  ;;  %v929_v35 = vpop.f32.mrf.mxu0 }
  0xa9   :  { %v966_v34 = vpop.f32.mrf.mxu3  ;;  %v942_v37 = vpop.f32.mrf.mxu1  ;;  %v954_v16 = vadd.f32 %v953_v33, %v941_v44 }
  0xab   :  { %v967_v48 = vadd.f32 %v966_v34, %v954_v16 }
  0xb0   :  { %v955_v38 = vpop.f32.mrf.mxu2 }
  0xb1   :  { %v968_v40 = vpop.f32.mrf.mxu3 }
  0xc0   :  { %v979_v41 = vpop.f32.mrf.mxu0 }
  0xc1   :  { %v992_v42 = vpop.f32.mrf.mxu1  ;;  %v980_v50 = vadd.f32 %v979_v41, %v967_v48 }
  0xc3   :  { %v993_v51 = vadd.f32 %v992_v42, %v980_v50 }
  0xc8   :  { %v1005_v45 = vpop.f32.mrf.mxu2  ;;  %v981_v46 = vpop.f32.mrf.mxu0 }
  0xc9   :  { %v1018_v15 = vpop.f32.mrf.mxu3  ;;  %v994_v47 = vpop.f32.mrf.mxu1  ;;  %v1006_v52 = vadd.f32 %v1005_v45, %v993_v51 }
  0xcb   :  { %v1019_v54 = vadd.f32 %v1018_v15, %v1006_v52 }
  0xd0   :  { %v1007_v49 = vpop.f32.mrf.mxu2 }
  0xd1   :  { %v1020_v21 = vpop.f32.mrf.mxu3 }
  0xe0   :  { %v1031_v56 = vpop.f32.mrf.mxu0 }
  0xe1   :  { %v1032_v57 = vadd.f32 %v1031_v56, %v1019_v54  ;;  %v1044_v59 = vpop.f32.mrf.mxu1 }
  0xe3   :  { %v1158_v60 = vmul.f32 %v1154_v55, %v1032_v57 }
  0xe5   :  { %v1166_v61 = vadd.f32 %v1162_v58, %v1158_v60 }
  0xe7   :  { %1168 = vst [vmem:[%s2850_s4] sm:$0xff] %v1166_v61 }
  0xe8   :  { %v1057_v62 = vpop.f32.mrf.mxu2  ;;  %v1033_v63 = vpop.f32.mrf.mxu0 }
  0xe9   :  { %v1070_v10 = vpop.f32.mrf.mxu3  ;;  %v1046_v36 = vpop.f32.mrf.mxu1  ;;  %v1058_v3 = vadd.f32 %v1057_v62, %v1044_v59 }
  0xeb   :  { %v1071_v7 = vadd.f32 %v1070_v10, %v1058_v3 }
  0xf0   :  { %v1059_v0 = vpop.f32.mrf.mxu2 }
  0xf1   :  { %v1072_v39 = vpop.f32.mrf.mxu3 }
 0x100   :  { %v1083_v43 = vpop.f32.mrf.mxu0 }
 0x101   :  { %v1096_v1 = vpop.f32.mrf.mxu1  ;;  %v1084_v11 = vadd.f32 %v1083_v43, %v1071_v7 }
 0x103   :  { %v1097_v13 = vadd.f32 %v1096_v1, %v1084_v11 }
 0x108   :  { %v1109_v2 = vpop.f32.mrf.mxu2  ;;  %v1085_v5 = vpop.f32.mrf.mxu0 }
 0x109   :  { %v1122_v4 = vpop.f32.mrf.mxu3  ;;  %v1098_v6 = vpop.f32.mrf.mxu1  ;;  %v1110_v14 = vadd.f32 %v1109_v2, %v1097_v13 }
 0x10b   :  { %v1123_v17 = vadd.f32 %v1122_v4, %v1110_v14 }
 0x110   :  { %v1111_v8 = vpop.f32.mrf.mxu2 }
 0x111   :  { %v1124_v12 = vpop.f32.mrf.mxu3 }
 0x120   :  { %v1135_v18 = vpop.f32.mrf.mxu0 }
 0x121   :  { %v1136_v19 = vadd.f32 %v1135_v18, %v1123_v17  ;;  %v1148_v20 = vpop.f32.mrf.mxu1 }
 0x123   :  { %v1149_v23 = vadd.f32 %v1148_v20, %v1136_v19 }
 0x125   :  { %v1159_v25 = vmul.f32 %v1155_v22, %v1149_v23 }
 0x127   :  { %v1167_v26 = vadd.f32 %v1163_v24, %v1159_v25 }
 0x128   :  { %v1137_v27 = vpop.f32.mrf.mxu0 }
 0x129   :  { %1169 = vst [vmem:[%s2850_s4 + $0x8] sm:$0xff] %v1167_v26  ;;  %v1150_v28 = vpop.f32.mrf.mxu1 }

// kernel: model_naive_forward.13
= control target key start
LH: loop header
LB: loop body
LE: loop exit
PB: predicated region body
PF: predicated region fallthrough
CT: control target
= control target key end

     0   :  { %s4360_s15 = smov 0   ;;  %s4362_s16 = smov 0   ;;  %s5574_s0 = inlined_call_operand.vmem [shape: bf16[8,1024], index: 0, kind: input, shape index: {}]   ;;  %s5575_s1 = inlined_call_operand.vmem [shape: bf16[1024,2048], index: 1, kind: input, shape index: {}]   ;;  %s5576_s2 = inlined_call_operand.vmem [shape: f32[1,2048], index: 2, kind: input, shape index: {}]   ;;  %s5577_s3 = inlined_call_operand.vmem [shape: f32[1,2048], index: 3, kind: input, shape index: {}]   ;;  %s5578_s4 = inlined_call_operand.vmem [shape: f32[8,2048], index: 4, kind: output, shape index: {}]  }
   0x1   :  { %s4364_s17 = smov 0   ;;  %s4366_s18 = smov 0  }
   0x2   :  { %s4368_s19 = smov 0  }
   0x3 LB: > { %s23_s20 = sadd.s32 1, %s4329_s18  ;;  %p66_p1 = scmp.ne.s32.totalorder %s4321_s16, %s4317_s15  ;;  %s4333_s19 = sphi %s4368_s19, %s14_s19   ;;  %s4329_s18 = sphi %s4366_s18, %s5583_s18   ;;  %s4325_s17 = sphi %s4364_s17, %s5582_s17   ;;  %s4321_s16 = sphi %s4362_s16, %s5581_s16   ;;  %s4317_s15 = sphi %s4360_s15, %s5580_s15  }
   0x4   : > { %p24_p0 = scmp.ge.s32.totalorder %s23_s20, 4  ;;  %p67_p2 = scmp.eq.s32.totalorder %s4333_s19, 0 }
   0x5   : > { %s59_s22 = sadd.s32 1, %s4321_s16  ;;  %p2962_p5 = scmp.ge.s32.totalorder %s4333_s19, 4 }
   0x6   : > { %s5585_s20 = smov (%p24_p0, %s23_s20), 0  ;;  %p68_p3 = por %p67_p2, %p66_p1 }
   0x7   : > { %s56_s21 = ssub.s32 %s4329_s18, %s5585_s20  ;;  %180 = sbr.rel (%p2962_p5) target bundleno = 272 (0x110), region = 20 }
   0x8   : > { %p57_p4 = scmp.eq.s32.totalorder %s56_s21, 0 }
   0xa   : > { %s4395_s23 = scalar_select %p57_p4, %s4321_s16, %s59_s22  }
   0xc   : > { %183 = sbr.rel (!%p68_p3) target bundleno = 272 (0x110), region = 24  ;;  %s185_s24 = sand.u32 (%p68_p3), 1, %s4321_s16  }
   0xd   : > { %s3998_s25 = sshll.u32 (%p68_p3), %s4329_s18, 4  ;;  %s2963_s26 = sshll.u32 (%p68_p3), %s185_s24, 11 }
   0xe   : > { %s4403_s29 = scalar_lea.vmem (%p68_p3), %s5575_s1, %s3998_s25  ;;  %s4408_s30 = scalar_lea.vmem (%p68_p3), [#allocation2], %s2963_s26 }
   0xf   : > { %v203_v0 = vld [vmem:[%s4403_s29] sm:$0xff] (%p68_p3)  ;;  %v205_v1 = vld [vmem:[%s4403_s29 + $0x8] sm:$0xff] (%p68_p3) }
  0x10   : > { %v207_v2 = vld [vmem:[%s4403_s29 + $0x40] sm:$0xff] (%p68_p3)  ;;  %204 = vst [vmem:[%s4408_s30] sm:$0xff] (%p68_p3), %v203_v0  ;;  %v209_v3 = vld [vmem:[%s4403_s29 + $0x48] sm:$0xff] (%p68_p3) }
  0x11   : > { %206 = vst [vmem:[%s4408_s30 + $0x8] sm:$0xff] %v205_v1  ;;  %v211_v4 = vld [vmem:[%s4403_s29 + $0x80] sm:$0xff]  ;;  %v213_v5 = vld [vmem:[%s4403_s29 + $0x88] sm:$0xff] }
  0x12   : > { %208 = vst [vmem:[%s4408_s30 + $0x10] sm:$0xff] %v207_v2  ;;  %v215_v6 = vld [vmem:[%s4403_s29 + $0xc0] sm:$0xff]  ;;  %v217_v7 = vld [vmem:[%s4403_s29 + $0xc8] sm:$0xff] }
  0x13   : > { %210 = vst [vmem:[%s4408_s30 + $0x18] sm:$0xff] %v209_v3  ;;  %v219_v8 = vld [vmem:[%s4403_s29 + $0x100] sm:$0xff]  ;;  %v221_v9 = vld [vmem:[%s4403_s29 + $0x108] sm:$0xff] }
  0x14   : > { %212 = vst [vmem:[%s4408_s30 + $0x20] sm:$0xff] %v211_v4  ;;  %v223_v10 = vld [vmem:[%s4403_s29 + $0x140] sm:$0xff]  ;;  %v225_v11 = vld [vmem:[%s4403_s29 + $0x148] sm:$0xff] }
  0x15   : > { %214 = vst [vmem:[%s4408_s30 + $0x28] sm:$0xff] %v213_v5  ;;  %v227_v12 = vld [vmem:[%s4403_s29 + $0x180] sm:$0xff]  ;;  %v229_v13 = vld [vmem:[%s4403_s29 + $0x188] sm:$0xff] }
  0x16   : > { %216 = vst [vmem:[%s4408_s30 + $0x30] sm:$0xff] %v215_v6  ;;  %v231_v14 = vld [vmem:[%s4403_s29 + $0x1c0] sm:$0xff]  ;;  %v233_v15 = vld [vmem:[%s4403_s29 + $0x1c8] sm:$0xff] }
  0x17   : > { %218 = vst [vmem:[%s4408_s30 + $0x38] sm:$0xff] %v217_v7  ;;  %v235_v16 = vld [vmem:[%s4403_s29 + $0x200] sm:$0xff]  ;;  %v237_v17 = vld [vmem:[%s4403_s29 + $0x208] sm:$0xff] }
  0x18   : > { %220 = vst [vmem:[%s4408_s30 + $0x40] sm:$0xff] %v219_v8  ;;  %v239_v18 = vld [vmem:[%s4403_s29 + $0x240] sm:$0xff]  ;;  %v241_v19 = vld [vmem:[%s4403_s29 + $0x248] sm:$0xff] }
  0x19   : > { %222 = vst [vmem:[%s4408_s30 + $0x48] sm:$0xff] %v221_v9  ;;  %v243_v20 = vld [vmem:[%s4403_s29 + $0x280] sm:$0xff]  ;;  %v245_v21 = vld [vmem:[%s4403_s29 + $0x288] sm:$0xff] }
  0x1a   : > { %224 = vst [vmem:[%s4408_s30 + $0x50] sm:$0xff] %v223_v10  ;;  %v247_v22 = vld [vmem:[%s4403_s29 + $0x2c0] sm:$0xff]  ;;  %v249_v23 = vld [vmem:[%s4403_s29 + $0x2c8] sm:$0xff] }
  0x1b   : > { %226 = vst [vmem:[%s4408_s30 + $0x58] sm:$0xff] %v225_v11  ;;  %v251_v24 = vld [vmem:[%s4403_s29 + $0x300] sm:$0xff]  ;;  %v253_v25 = vld [vmem:[%s4403_s29 + $0x308] sm:$0xff] }
  0x1c   : > { %228 = vst [vmem:[%s4408_s30 + $0x60] sm:$0xff] %v227_v12  ;;  %v255_v26 = vld [vmem:[%s4403_s29 + $0x340] sm:$0xff]  ;;  %v257_v27 = vld [vmem:[%s4403_s29 + $0x348] sm:$0xff] }
  0x1d   : > { %230 = vst [vmem:[%s4408_s30 + $0x68] sm:$0xff] %v229_v13  ;;  %v259_v28 = vld [vmem:[%s4403_s29 + $0x380] sm:$0xff]  ;;  %v261_v29 = vld [vmem:[%s4403_s29 + $0x388] sm:$0xff] }
  0x1e   : > { %232 = vst [vmem:[%s4408_s30 + $0x70] sm:$0xff] %v231_v14  ;;  %v263_v30 = vld [vmem:[%s4403_s29 + $0x3c0] sm:$0xff]  ;;  %v265_v31 = vld [vmem:[%s4403_s29 + $0x3c8] sm:$0xff] }
  0x1f   : > { %234 = vst [vmem:[%s4408_s30 + $0x78] sm:$0xff] %v233_v15  ;;  %v267_v32 = vld [vmem:[%s4403_s29 + $0x400] sm:$0xff]  ;;  %v269_v33 = vld [vmem:[%s4403_s29 + $0x408] sm:$0xff] }
  0x20   : > { %236 = vst [vmem:[%s4408_s30 + $0x80] sm:$0xff] %v235_v16  ;;  %v271_v34 = vld [vmem:[%s4403_s29 + $0x440] sm:$0xff]  ;;  %v273_v35 = vld [vmem:[%s4403_s29 + $0x448] sm:$0xff] }
  0x21   : > { %238 = vst [vmem:[%s4408_s30 + $0x88] sm:$0xff] %v237_v17  ;;  %v275_v36 = vld [vmem:[%s4403_s29 + $0x480] sm:$0xff]  ;;  %v277_v37 = vld [vmem:[%s4403_s29 + $0x488] sm:$0xff] }
  0x22   : > { %240 = vst [vmem:[%s4408_s30 + $0x90] sm:$0xff] %v239_v18  ;;  %v279_v38 = vld [vmem:[%s4403_s29 + $0x4c0] sm:$0xff]  ;;  %v281_v39 = vld [vmem:[%s4403_s29 + $0x4c8] sm:$0xff] }
  0x23   : > { %242 = vst [vmem:[%s4408_s30 + $0x98] sm:$0xff] %v241_v19  ;;  %v283_v40 = vld [vmem:[%s4403_s29 + $0x500] sm:$0xff]  ;;  %v285_v41 = vld [vmem:[%s4403_s29 + $0x508] sm:$0xff] }
  0x24   : > { %244 = vst [vmem:[%s4408_s30 + $0xa0] sm:$0xff] %v243_v20  ;;  %v287_v42 = vld [vmem:[%s4403_s29 + $0x540] sm:$0xff]  ;;  %v289_v43 = vld [vmem:[%s4403_s29 + $0x548] sm:$0xff] }
  0x25   : > { %246 = vst [vmem:[%s4408_s30 + $0xa8] sm:$0xff] %v245_v21  ;;  %v291_v44 = vld [vmem:[%s4403_s29 + $0x580] sm:$0xff]  ;;  %v293_v45 = vld [vmem:[%s4403_s29 + $0x588] sm:$0xff] }
  0x26   : > { %248 = vst [vmem:[%s4408_s30 + $0xb0] sm:$0xff] %v247_v22  ;;  %v295_v46 = vld [vmem:[%s4403_s29 + $0x5c0] sm:$0xff]  ;;  %v297_v47 = vld [vmem:[%s4403_s29 + $0x5c8] sm:$0xff] }
  0x27   : > { %250 = vst [vmem:[%s4408_s30 + $0xb8] sm:$0xff] %v249_v23  ;;  %v299_v48 = vld [vmem:[%s4403_s29 + $0x600] sm:$0xff]  ;;  %v301_v49 = vld [vmem:[%s4403_s29 + $0x608] sm:$0xff] }
  0x28   : > { %252 = vst [vmem:[%s4408_s30 + $0xc0] sm:$0xff] %v251_v24  ;;  %v303_v50 = vld [vmem:[%s4403_s29 + $0x640] sm:$0xff]  ;;  %v305_v51 = vld [vmem:[%s4403_s29 + $0x648] sm:$0xff] }
  0x29   : > { %254 = vst [vmem:[%s4408_s30 + $0xc8] sm:$0xff] %v253_v25  ;;  %v307_v52 = vld [vmem:[%s4403_s29 + $0x680] sm:$0xff]  ;;  %v309_v53 = vld [vmem:[%s4403_s29 + $0x688] sm:$0xff] }
  0x2a   : > { %256 = vst [vmem:[%s4408_s30 + $0xd0] sm:$0xff] %v255_v26  ;;  %v311_v54 = vld [vmem:[%s4403_s29 + $0x6c0] sm:$0xff]  ;;  %v313_v55 = vld [vmem:[%s4403_s29 + $0x6c8] sm:$0xff] }
  0x2b   : > { %258 = vst [vmem:[%s4408_s30 + $0xd8] sm:$0xff] %v257_v27  ;;  %v315_v56 = vld [vmem:[%s4403_s29 + $0x700] sm:$0xff]  ;;  %v317_v57 = vld [vmem:[%s4403_s29 + $0x708] sm:$0xff] }
  0x2c   : > { %260 = vst [vmem:[%s4408_s30 + $0xe0] sm:$0xff] %v259_v28  ;;  %v319_v58 = vld [vmem:[%s4403_s29 + $0x740] sm:$0xff]  ;;  %v321_v59 = vld [vmem:[%s4403_s29 + $0x748] sm:$0xff] }
  0x2d   : > { %262 = vst [vmem:[%s4408_s30 + $0xe8] sm:$0xff] %v261_v29  ;;  %v323_v60 = vld [vmem:[%s4403_s29 + $0x780] sm:$0xff]  ;;  %v325_v61 = vld [vmem:[%s4403_s29 + $0x788] sm:$0xff] }
  0x2e   : > { %264 = vst [vmem:[%s4408_s30 + $0xf0] sm:$0xff] %v263_v30  ;;  %v327_v62 = vld [vmem:[%s4403_s29 + $0x7c0] sm:$0xff]  ;;  %v329_v63 = vld [vmem:[%s4403_s29 + $0x7c8] sm:$0xff] }
  0x2f   : > { %266 = vst [vmem:[%s4408_s30 + $0xf8] sm:$0xff] %v265_v31  ;;  %v331_v0 = vld [vmem:[%s4403_s29 + $0x800] sm:$0xff]  ;;  %v333_v1 = vld [vmem:[%s4403_s29 + $0x808] sm:$0xff] }
  0x30   : > { %268 = vst [vmem:[%s4408_s30 + $0x100] sm:$0xff] %v267_v32  ;;  %v335_v2 = vld [vmem:[%s4403_s29 + $0x840] sm:$0xff]  ;;  %v337_v3 = vld [vmem:[%s4403_s29 + $0x848] sm:$0xff] }
  0x31   : > { %270 = vst [vmem:[%s4408_s30 + $0x108] sm:$0xff] %v269_v33  ;;  %v339_v4 = vld [vmem:[%s4403_s29 + $0x880] sm:$0xff]  ;;  %v341_v5 = vld [vmem:[%s4403_s29 + $0x888] sm:$0xff] }
  0x32   : > { %272 = vst [vmem:[%s4408_s30 + $0x110] sm:$0xff] %v271_v34  ;;  %v343_v6 = vld [vmem:[%s4403_s29 + $0x8c0] sm:$0xff]  ;;  %v345_v7 = vld [vmem:[%s4403_s29 + $0x8c8] sm:$0xff] }
  0x33   : > { %274 = vst [vmem:[%s4408_s30 + $0x118] sm:$0xff] %v273_v35  ;;  %v347_v8 = vld [vmem:[%s4403_s29 + $0x900] sm:$0xff]  ;;  %v349_v9 = vld [vmem:[%s4403_s29 + $0x908] sm:$0xff] }
  0x34   : > { %276 = vst [vmem:[%s4408_s30 + $0x120] sm:$0xff] %v275_v36  ;;  %v351_v10 = vld [vmem:[%s4403_s29 + $0x940] sm:$0xff]  ;;  %v353_v11 = vld [vmem:[%s4403_s29 + $0x948] sm:$0xff] }
  0x35   : > { %278 = vst [vmem:[%s4408_s30 + $0x128] sm:$0xff] %v277_v37  ;;  %v355_v12 = vld [vmem:[%s4403_s29 + $0x980] sm:$0xff]  ;;  %v357_v13 = vld [vmem:[%s4403_s29 + $0x988] sm:$0xff] }
  0x36   : > { %280 = vst [vmem:[%s4408_s30 + $0x130] sm:$0xff] %v279_v38  ;;  %v359_v14 = vld [vmem:[%s4403_s29 + $0x9c0] sm:$0xff]  ;;  %v361_v15 = vld [vmem:[%s4403_s29 + $0x9c8] sm:$0xff] }
  0x37   : > { %282 = vst [vmem:[%s4408_s30 + $0x138] sm:$0xff] %v281_v39  ;;  %v363_v16 = vld [vmem:[%s4403_s29 + $0xa00] sm:$0xff]  ;;  %v365_v17 = vld [vmem:[%s4403_s29 + $0xa08] sm:$0xff] }
  0x38   : > { %284 = vst [vmem:[%s4408_s30 + $0x140] sm:$0xff] %v283_v40  ;;  %v367_v18 = vld [vmem:[%s4403_s29 + $0xa40] sm:$0xff]  ;;  %v369_v19 = vld [vmem:[%s4403_s29 + $0xa48] sm:$0xff] }
  0x39   : > { %286 = vst [vmem:[%s4408_s30 + $0x148] sm:$0xff] %v285_v41  ;;  %v371_v20 = vld [vmem:[%s4403_s29 + $0xa80] sm:$0xff]  ;;  %v373_v21 = vld [vmem:[%s4403_s29 + $0xa88] sm:$0xff] }
  0x3a   : > { %288 = vst [vmem:[%s4408_s30 + $0x150] sm:$0xff] %v287_v42  ;;  %v375_v22 = vld [vmem:[%s4403_s29 + $0xac0] sm:$0xff]  ;;  %v377_v23 = vld [vmem:[%s4403_s29 + $0xac8] sm:$0xff] }
  0x3b   : > { %290 = vst [vmem:[%s4408_s30 + $0x158] sm:$0xff] %v289_v43  ;;  %v379_v24 = vld [vmem:[%s4403_s29 + $0xb00] sm:$0xff]  ;;  %v381_v25 = vld [vmem:[%s4403_s29 + $0xb08] sm:$0xff] }
  0x3c   : > { %292 = vst [vmem:[%s4408_s30 + $0x160] sm:$0xff] %v291_v44  ;;  %v383_v26 = vld [vmem:[%s4403_s29 + $0xb40] sm:$0xff]  ;;  %v385_v27 = vld [vmem:[%s4403_s29 + $0xb48] sm:$0xff] }
  0x3d   : > { %294 = vst [vmem:[%s4408_s30 + $0x168] sm:$0xff] %v293_v45  ;;  %v387_v28 = vld [vmem:[%s4403_s29 + $0xb80] sm:$0xff]  ;;  %v389_v29 = vld [vmem:[%s4403_s29 + $0xb88] sm:$0xff] }
  0x3e   : > { %296 = vst [vmem:[%s4408_s30 + $0x170] sm:$0xff] %v295_v46  ;;  %v391_v30 = vld [vmem:[%s4403_s29 + $0xbc0] sm:$0xff]  ;;  %v393_v31 = vld [vmem:[%s4403_s29 + $0xbc8] sm:$0xff] }
  0x3f   : > { %298 = vst [vmem:[%s4408_s30 + $0x178] sm:$0xff] %v297_v47  ;;  %v395_v32 = vld [vmem:[%s4403_s29 + $0xc00] sm:$0xff]  ;;  %v397_v33 = vld [vmem:[%s4403_s29 + $0xc08] sm:$0xff] }
  0x40   : > { %300 = vst [vmem:[%s4408_s30 + $0x180] sm:$0xff] %v299_v48  ;;  %v399_v34 = vld [vmem:[%s4403_s29 + $0xc40] sm:$0xff]  ;;  %v401_v35 = vld [vmem:[%s4403_s29 + $0xc48] sm:$0xff] }
  0x41   : > { %302 = vst [vmem:[%s4408_s30 + $0x188] sm:$0xff] %v301_v49  ;;  %v403_v36 = vld [vmem:[%s4403_s29 + $0xc80] sm:$0xff]  ;;  %v405_v37 = vld [vmem:[%s4403_s29 + $0xc88] sm:$0xff] }
  0x42   : > { %304 = vst [vmem:[%s4408_s30 + $0x190] sm:$0xff] %v303_v50  ;;  %v407_v38 = vld [vmem:[%s4403_s29 + $0xcc0] sm:$0xff]  ;;  %v409_v39 = vld [vmem:[%s4403_s29 + $0xcc8] sm:$0xff] }
  0x43   : > { %306 = vst [vmem:[%s4408_s30 + $0x198] sm:$0xff] %v305_v51  ;;  %v411_v40 = vld [vmem:[%s4403_s29 + $0xd00] sm:$0xff]  ;;  %v413_v41 = vld [vmem:[%s4403_s29 + $0xd08] sm:$0xff] }
  0x44   : > { %308 = vst [vmem:[%s4408_s30 + $0x1a0] sm:$0xff] %v307_v52  ;;  %v415_v42 = vld [vmem:[%s4403_s29 + $0xd40] sm:$0xff]  ;;  %v417_v43 = vld [vmem:[%s4403_s29 + $0xd48] sm:$0xff] }
  0x45   : > { %310 = vst [vmem:[%s4408_s30 + $0x1a8] sm:$0xff] %v309_v53  ;;  %v419_v44 = vld [vmem:[%s4403_s29 + $0xd80] sm:$0xff]  ;;  %v421_v45 = vld [vmem:[%s4403_s29 + $0xd88] sm:$0xff] }
  0x46   : > { %312 = vst [vmem:[%s4408_s30 + $0x1b0] sm:$0xff] %v311_v54  ;;  %v423_v46 = vld [vmem:[%s4403_s29 + $0xdc0] sm:$0xff]  ;;  %v425_v47 = vld [vmem:[%s4403_s29 + $0xdc8] sm:$0xff] }
  0x47   : > { %314 = vst [vmem:[%s4408_s30 + $0x1b8] sm:$0xff] %v313_v55  ;;  %v427_v48 = vld [vmem:[%s4403_s29 + $0xe00] sm:$0xff]  ;;  %v429_v49 = vld [vmem:[%s4403_s29 + $0xe08] sm:$0xff] }
  0x48   : > { %316 = vst [vmem:[%s4408_s30 + $0x1c0] sm:$0xff] %v315_v56  ;;  %v431_v50 = vld [vmem:[%s4403_s29 + $0xe40] sm:$0xff]  ;;  %v433_v51 = vld [vmem:[%s4403_s29 + $0xe48] sm:$0xff] }
  0x49   : > { %318 = vst [vmem:[%s4408_s30 + $0x1c8] sm:$0xff] %v317_v57  ;;  %v435_v52 = vld [vmem:[%s4403_s29 + $0xe80] sm:$0xff]  ;;  %v437_v53 = vld [vmem:[%s4403_s29 + $0xe88] sm:$0xff] }
  0x4a   : > { %320 = vst [vmem:[%s4408_s30 + $0x1d0] sm:$0xff] %v319_v58  ;;  %v439_v54 = vld [vmem:[%s4403_s29 + $0xec0] sm:$0xff]  ;;  %v441_v55 = vld [vmem:[%s4403_s29 + $0xec8] sm:$0xff] }
  0x4b   : > { %322 = vst [vmem:[%s4408_s30 + $0x1d8] sm:$0xff] %v321_v59  ;;  %v443_v56 = vld [vmem:[%s4403_s29 + $0xf00] sm:$0xff]  ;;  %v445_v57 = vld [vmem:[%s4403_s29 + $0xf08] sm:$0xff] }
  0x4c   : > { %324 = vst [vmem:[%s4408_s30 + $0x1e0] sm:$0xff] %v323_v60  ;;  %v447_v58 = vld [vmem:[%s4403_s29 + $0xf40] sm:$0xff]  ;;  %v449_v59 = vld [vmem:[%s4403_s29 + $0xf48] sm:$0xff] }
  0x4d   : > { %326 = vst [vmem:[%s4408_s30 + $0x1e8] sm:$0xff] %v325_v61  ;;  %v451_v60 = vld [vmem:[%s4403_s29 + $0xf80] sm:$0xff]  ;;  %v453_v61 = vld [vmem:[%s4403_s29 + $0xf88] sm:$0xff] }
  0x4e   : > { %328 = vst [vmem:[%s4408_s30 + $0x1f0] sm:$0xff] %v327_v62  ;;  %v455_v62 = vld [vmem:[%s4403_s29 + $0xfc0] sm:$0xff] }
  0x4f   : > { %330 = vst [vmem:[%s4408_s30 + $0x1f8] sm:$0xff] %v329_v63  ;;  %v457_v63 = vld [vmem:[%s4403_s29 + $0xfc8] sm:$0xff] }
  0x50   : > { %332 = vst [vmem:[%s4408_s30 + $0x200] sm:$0xff] %v331_v0  ;;  %v459_v0 = vld [vmem:[%s4403_s29 + $0x1000] sm:$0xff] }
  0x51   : > { %334 = vst [vmem:[%s4408_s30 + $0x208] sm:$0xff] %v333_v1  ;;  %v461_v1 = vld [vmem:[%s4403_s29 + $0x1008] sm:$0xff] }
  0x52   : > { %336 = vst [vmem:[%s4408_s30 + $0x210] sm:$0xff] %v335_v2  ;;  %v463_v2 = vld [vmem:[%s4403_s29 + $0x1040] sm:$0xff] }
  0x53   : > { %338 = vst [vmem:[%s4408_s30 + $0x218] sm:$0xff] %v337_v3  ;;  %v465_v3 = vld [vmem:[%s4403_s29 + $0x1048] sm:$0xff] }
  0x54   : > { %340 = vst [vmem:[%s4408_s30 + $0x220] sm:$0xff] %v339_v4  ;;  %v467_v4 = vld [vmem:[%s4403_s29 + $0x1080] sm:$0xff] }
  0x55   : > { %342 = vst [vmem:[%s4408_s30 + $0x228] sm:$0xff] %v341_v5  ;;  %v469_v5 = vld [vmem:[%s4403_s29 + $0x1088] sm:$0xff] }
  0x56   : > { %344 = vst [vmem:[%s4408_s30 + $0x230] sm:$0xff] %v343_v6  ;;  %v471_v6 = vld [vmem:[%s4403_s29 + $0x10c0] sm:$0xff] }
  0x57   : > { %346 = vst [vmem:[%s4408_s30 + $0x238] sm:$0xff] %v345_v7  ;;  %v473_v7 = vld [vmem:[%s4403_s29 + $0x10c8] sm:$0xff] }
  0x58   : > { %348 = vst [vmem:[%s4408_s30 + $0x240] sm:$0xff] %v347_v8  ;;  %v475_v8 = vld [vmem:[%s4403_s29 + $0x1100] sm:$0xff] }
  0x59   : > { %350 = vst [vmem:[%s4408_s30 + $0x248] sm:$0xff] %v349_v9  ;;  %v477_v9 = vld [vmem:[%s4403_s29 + $0x1108] sm:$0xff] }
  0x5a   : > { %352 = vst [vmem:[%s4408_s30 + $0x250] sm:$0xff] %v351_v10  ;;  %v479_v10 = vld [vmem:[%s4403_s29 + $0x1140] sm:$0xff] }
  0x5b   : > { %354 = vst [vmem:[%s4408_s30 + $0x258] sm:$0xff] %v353_v11  ;;  %v481_v11 = vld [vmem:[%s4403_s29 + $0x1148] sm:$0xff] }
  0x5c   : > { %356 = vst [vmem:[%s4408_s30 + $0x260] sm:$0xff] %v355_v12  ;;  %v483_v12 = vld [vmem:[%s4403_s29 + $0x1180] sm:$0xff] }
  0x5d   : > { %358 = vst [vmem:[%s4408_s30 + $0x268] sm:$0xff] %v357_v13  ;;  %v485_v13 = vld [vmem:[%s4403_s29 + $0x1188] sm:$0xff] }
  0x5e   : > { %360 = vst [vmem:[%s4408_s30 + $0x270] sm:$0xff] %v359_v14  ;;  %v487_v14 = vld [vmem:[%s4403_s29 + $0x11c0] sm:$0xff] }
  0x5f   : > { %362 = vst [vmem:[%s4408_s30 + $0x278] sm:$0xff] %v361_v15  ;;  %v489_v15 = vld [vmem:[%s4403_s29 + $0x11c8] sm:$0xff] }
  0x60   : > { %364 = vst [vmem:[%s4408_s30 + $0x280] sm:$0xff] %v363_v16  ;;  %v491_v16 = vld [vmem:[%s4403_s29 + $0x1200] sm:$0xff] }
  0x61   : > { %366 = vst [vmem:[%s4408_s30 + $0x288] sm:$0xff] %v365_v17  ;;  %v493_v17 = vld [vmem:[%s4403_s29 + $0x1208] sm:$0xff] }
  0x62   : > { %368 = vst [vmem:[%s4408_s30 + $0x290] sm:$0xff] %v367_v18  ;;  %v495_v18 = vld [vmem:[%s4403_s29 + $0x1240] sm:$0xff] }
  0x63   : > { %370 = vst [vmem:[%s4408_s30 + $0x298] sm:$0xff] %v369_v19  ;;  %v497_v19 = vld [vmem:[%s4403_s29 + $0x1248] sm:$0xff] }
  0x64   : > { %372 = vst [vmem:[%s4408_s30 + $0x2a0] sm:$0xff] %v371_v20  ;;  %v499_v20 = vld [vmem:[%s4403_s29 + $0x1280] sm:$0xff] }
  0x65   : > { %374 = vst [vmem:[%s4408_s30 + $0x2a8] sm:$0xff] %v373_v21  ;;  %v501_v21 = vld [vmem:[%s4403_s29 + $0x1288] sm:$0xff] }
  0x66   : > { %376 = vst [vmem:[%s4408_s30 + $0x2b0] sm:$0xff] %v375_v22  ;;  %v503_v22 = vld [vmem:[%s4403_s29 + $0x12c0] sm:$0xff] }
  0x67   : > { %378 = vst [vmem:[%s4408_s30 + $0x2b8] sm:$0xff] %v377_v23  ;;  %v505_v23 = vld [vmem:[%s4403_s29 + $0x12c8] sm:$0xff] }
  0x68   : > { %380 = vst [vmem:[%s4408_s30 + $0x2c0] sm:$0xff] %v379_v24  ;;  %v507_v24 = vld [vmem:[%s4403_s29 + $0x1300] sm:$0xff] }
  0x69   : > { %382 = vst [vmem:[%s4408_s30 + $0x2c8] sm:$0xff] %v381_v25  ;;  %v509_v25 = vld [vmem:[%s4403_s29 + $0x1308] sm:$0xff] }
  0x6a   : > { %384 = vst [vmem:[%s4408_s30 + $0x2d0] sm:$0xff] %v383_v26  ;;  %v511_v26 = vld [vmem:[%s4403_s29 + $0x1340] sm:$0xff] }
  0x6b   : > { %386 = vst [vmem:[%s4408_s30 + $0x2d8] sm:$0xff] %v385_v27  ;;  %v513_v27 = vld [vmem:[%s4403_s29 + $0x1348] sm:$0xff] }
  0x6c   : > { %388 = vst [vmem:[%s4408_s30 + $0x2e0] sm:$0xff] %v387_v28  ;;  %v515_v28 = vld [vmem:[%s4403_s29 + $0x1380] sm:$0xff] }
  0x6d   : > { %390 = vst [vmem:[%s4408_s30 + $0x2e8] sm:$0xff] %v389_v29  ;;  %v517_v29 = vld [vmem:[%s4403_s29 + $0x1388] sm:$0xff] }
  0x6e   : > { %392 = vst [vmem:[%s4408_s30 + $0x2f0] sm:$0xff] %v391_v30  ;;  %v519_v30 = vld [vmem:[%s4403_s29 + $0x13c0] sm:$0xff] }
  0x6f   : > { %394 = vst [vmem:[%s4408_s30 + $0x2f8] sm:$0xff] %v393_v31  ;;  %v521_v31 = vld [vmem:[%s4403_s29 + $0x13c8] sm:$0xff] }
  0x70   : > { %396 = vst [vmem:[%s4408_s30 + $0x300] sm:$0xff] %v395_v32  ;;  %v523_v32 = vld [vmem:[%s4403_s29 + $0x1400] sm:$0xff] }
  0x71   : > { %398 = vst [vmem:[%s4408_s30 + $0x308] sm:$0xff] %v397_v33  ;;  %v525_v33 = vld [vmem:[%s4403_s29 + $0x1408] sm:$0xff] }
  0x72   : > { %400 = vst [vmem:[%s4408_s30 + $0x310] sm:$0xff] %v399_v34  ;;  %v527_v34 = vld [vmem:[%s4403_s29 + $0x1440] sm:$0xff] }
  0x73   : > { %402 = vst [vmem:[%s4408_s30 + $0x318] sm:$0xff] %v401_v35  ;;  %v529_v35 = vld [vmem:[%s4403_s29 + $0x1448] sm:$0xff] }
  0x74   : > { %404 = vst [vmem:[%s4408_s30 + $0x320] sm:$0xff] %v403_v36  ;;  %v531_v36 = vld [vmem:[%s4403_s29 + $0x1480] sm:$0xff] }
  0x75   : > { %406 = vst [vmem:[%s4408_s30 + $0x328] sm:$0xff] %v405_v37  ;;  %v533_v37 = vld [vmem:[%s4403_s29 + $0x1488] sm:$0xff] }
  0x76   : > { %408 = vst [vmem:[%s4408_s30 + $0x330] sm:$0xff] %v407_v38  ;;  %v535_v38 = vld [vmem:[%s4403_s29 + $0x14c0] sm:$0xff] }
  0x77   : > { %410 = vst [vmem:[%s4408_s30 + $0x338] sm:$0xff] %v409_v39  ;;  %v537_v39 = vld [vmem:[%s4403_s29 + $0x14c8] sm:$0xff] }
  0x78   : > { %412 = vst [vmem:[%s4408_s30 + $0x340] sm:$0xff] %v411_v40  ;;  %v539_v40 = vld [vmem:[%s4403_s29 + $0x1500] sm:$0xff] }
  0x79   : > { %414 = vst [vmem:[%s4408_s30 + $0x348] sm:$0xff] %v413_v41  ;;  %v541_v41 = vld [vmem:[%s4403_s29 + $0x1508] sm:$0xff] }
  0x7a   : > { %416 = vst [vmem:[%s4408_s30 + $0x350] sm:$0xff] %v415_v42  ;;  %v543_v42 = vld [vmem:[%s4403_s29 + $0x1540] sm:$0xff] }
  0x7b   : > { %418 = vst [vmem:[%s4408_s30 + $0x358] sm:$0xff] %v417_v43  ;;  %v545_v43 = vld [vmem:[%s4403_s29 + $0x1548] sm:$0xff] }
  0x7c   : > { %420 = vst [vmem:[%s4408_s30 + $0x360] sm:$0xff] %v419_v44  ;;  %v547_v44 = vld [vmem:[%s4403_s29 + $0x1580] sm:$0xff] }
  0x7d   : > { %422 = vst [vmem:[%s4408_s30 + $0x368] sm:$0xff] %v421_v45  ;;  %v549_v45 = vld [vmem:[%s4403_s29 + $0x1588] sm:$0xff] }
  0x7e   : > { %424 = vst [vmem:[%s4408_s30 + $0x370] sm:$0xff] %v423_v46  ;;  %v551_v46 = vld [vmem:[%s4403_s29 + $0x15c0] sm:$0xff] }
  0x7f   : > { %426 = vst [vmem:[%s4408_s30 + $0x378] sm:$0xff] %v425_v47  ;;  %v553_v47 = vld [vmem:[%s4403_s29 + $0x15c8] sm:$0xff] }
  0x80   : > { %428 = vst [vmem:[%s4408_s30 + $0x380] sm:$0xff] %v427_v48  ;;  %v555_v48 = vld [vmem:[%s4403_s29 + $0x1600] sm:$0xff] }
  0x81   : > { %430 = vst [vmem:[%s4408_s30 + $0x388] sm:$0xff] %v429_v49  ;;  %v557_v49 = vld [vmem:[%s4403_s29 + $0x1608] sm:$0xff] }
  0x82   : > { %432 = vst [vmem:[%s4408_s30 + $0x390] sm:$0xff] %v431_v50  ;;  %v559_v50 = vld [vmem:[%s4403_s29 + $0x1640] sm:$0xff] }
  0x83   : > { %434 = vst [vmem:[%s4408_s30 + $0x398] sm:$0xff] %v433_v51  ;;  %v561_v51 = vld [vmem:[%s4403_s29 + $0x1648] sm:$0xff] }
  0x84   : > { %436 = vst [vmem:[%s4408_s30 + $0x3a0] sm:$0xff] %v435_v52  ;;  %v563_v52 = vld [vmem:[%s4403_s29 + $0x1680] sm:$0xff] }
  0x85   : > { %438 = vst [vmem:[%s4408_s30 + $0x3a8] sm:$0xff] %v437_v53  ;;  %v565_v53 = vld [vmem:[%s4403_s29 + $0x1688] sm:$0xff] }
  0x86   : > { %440 = vst [vmem:[%s4408_s30 + $0x3b0] sm:$0xff] %v439_v54  ;;  %v567_v54 = vld [vmem:[%s4403_s29 + $0x16c0] sm:$0xff] }
  0x87   : > { %442 = vst [vmem:[%s4408_s30 + $0x3b8] sm:$0xff] %v441_v55  ;;  %v569_v55 = vld [vmem:[%s4403_s29 + $0x16c8] sm:$0xff] }
  0x88   : > { %444 = vst [vmem:[%s4408_s30 + $0x3c0] sm:$0xff] %v443_v56  ;;  %v571_v56 = vld [vmem:[%s4403_s29 + $0x1700] sm:$0xff] }
  0x89   : > { %446 = vst [vmem:[%s4408_s30 + $0x3c8] sm:$0xff] %v445_v57  ;;  %v573_v57 = vld [vmem:[%s4403_s29 + $0x1708] sm:$0xff] }
  0x8a   : > { %448 = vst [vmem:[%s4408_s30 + $0x3d0] sm:$0xff] %v447_v58  ;;  %v575_v58 = vld [vmem:[%s4403_s29 + $0x1740] sm:$0xff] }
  0x8b   : > { %450 = vst [vmem:[%s4408_s30 + $0x3d8] sm:$0xff] %v449_v59  ;;  %v577_v59 = vld [vmem:[%s4403_s29 + $0x1748] sm:$0xff] }
  0x8c   : > { %452 = vst [vmem:[%s4408_s30 + $0x3e0] sm:$0xff] %v451_v60  ;;  %v579_v60 = vld [vmem:[%s4403_s29 + $0x1780] sm:$0xff] }
  0x8d   : > { %454 = vst [vmem:[%s4408_s30 + $0x3e8] sm:$0xff] %v453_v61  ;;  %v581_v61 = vld [vmem:[%s4403_s29 + $0x1788] sm:$0xff] }
  0x8e   : > { %456 = vst [vmem:[%s4408_s30 + $0x3f0] sm:$0xff] %v455_v62  ;;  %v583_v62 = vld [vmem:[%s4403_s29 + $0x17c0] sm:$0xff] }
  0x8f   : > { %458 = vst [vmem:[%s4408_s30 + $0x3f8] sm:$0xff] %v457_v63  ;;  %v585_v63 = vld [vmem:[%s4403_s29 + $0x17c8] sm:$0xff] }
  0x90   : > { %460 = vst [vmem:[%s4408_s30 + $0x400] sm:$0xff] %v459_v0  ;;  %v587_v0 = vld [vmem:[%s4403_s29 + $0x1800] sm:$0xff] }
  0x91   : > { %462 = vst [vmem:[%s4408_s30 + $0x408] sm:$0xff] %v461_v1  ;;  %v589_v1 = vld [vmem:[%s4403_s29 + $0x1808] sm:$0xff] }
  0x92   : > { %464 = vst [vmem:[%s4408_s30 + $0x410] sm:$0xff] %v463_v2  ;;  %v591_v2 = vld [vmem:[%s4403_s29 + $0x1840] sm:$0xff] }
  0x93   : > { %466 = vst [vmem:[%s4408_s30 + $0x418] sm:$0xff] %v465_v3  ;;  %v593_v3 = vld [vmem:[%s4403_s29 + $0x1848] sm:$0xff] }
  0x94   : > { %468 = vst [vmem:[%s4408_s30 + $0x420] sm:$0xff] %v467_v4  ;;  %v595_v4 = vld [vmem:[%s4403_s29 + $0x1880] sm:$0xff] }
  0x95   : > { %470 = vst [vmem:[%s4408_s30 + $0x428] sm:$0xff] %v469_v5  ;;  %v597_v5 = vld [vmem:[%s4403_s29 + $0x1888] sm:$0xff] }
  0x96   : > { %472 = vst [vmem:[%s4408_s30 + $0x430] sm:$0xff] %v471_v6  ;;  %v599_v6 = vld [vmem:[%s4403_s29 + $0x18c0] sm:$0xff] }
  0x97   : > { %474 = vst [vmem:[%s4408_s30 + $0x438] sm:$0xff] %v473_v7  ;;  %v601_v7 = vld [vmem:[%s4403_s29 + $0x18c8] sm:$0xff] }
  0x98   : > { %476 = vst [vmem:[%s4408_s30 + $0x440] sm:$0xff] %v475_v8  ;;  %v603_v8 = vld [vmem:[%s4403_s29 + $0x1900] sm:$0xff] }
  0x99   : > { %478 = vst [vmem:[%s4408_s30 + $0x448] sm:$0xff] %v477_v9  ;;  %v605_v9 = vld [vmem:[%s4403_s29 + $0x1908] sm:$0xff] }
  0x9a   : > { %480 = vst [vmem:[%s4408_s30 + $0x450] sm:$0xff] %v479_v10  ;;  %v607_v10 = vld [vmem:[%s4403_s29 + $0x1940] sm:$0xff] }
  0x9b   : > { %482 = vst [vmem:[%s4408_s30 + $0x458] sm:$0xff] %v481_v11  ;;  %v609_v11 = vld [vmem:[%s4403_s29 + $0x1948] sm:$0xff] }
  0x9c   : > { %484 = vst [vmem:[%s4408_s30 + $0x460] sm:$0xff] %v483_v12  ;;  %v611_v12 = vld [vmem:[%s4403_s29 + $0x1980] sm:$0xff] }
  0x9d   : > { %486 = vst [vmem:[%s4408_s30 + $0x468] sm:$0xff] %v485_v13  ;;  %v613_v13 = vld [vmem:[%s4403_s29 + $0x1988] sm:$0xff] }
  0x9e   : > { %488 = vst [vmem:[%s4408_s30 + $0x470] sm:$0xff] %v487_v14  ;;  %v615_v14 = vld [vmem:[%s4403_s29 + $0x19c0] sm:$0xff] }
  0x9f   : > { %490 = vst [vmem:[%s4408_s30 + $0x478] sm:$0xff] %v489_v15  ;;  %v617_v15 = vld [vmem:[%s4403_s29 + $0x19c8] sm:$0xff] }
  0xa0   : > { %492 = vst [vmem:[%s4408_s30 + $0x480] sm:$0xff] %v491_v16  ;;  %v619_v16 = vld [vmem:[%s4403_s29 + $0x1a00] sm:$0xff] }
  0xa1   : > { %494 = vst [vmem:[%s4408_s30 + $0x488] sm:$0xff] %v493_v17  ;;  %v621_v17 = vld [vmem:[%s4403_s29 + $0x1a08] sm:$0xff] }
  0xa2   : > { %496 = vst [vmem:[%s4408_s30 + $0x490] sm:$0xff] %v495_v18  ;;  %v623_v18 = vld [vmem:[%s4403_s29 + $0x1a40] sm:$0xff] }
  0xa3   : > { %498 = vst [vmem:[%s4408_s30 + $0x498] sm:$0xff] %v497_v19  ;;  %v625_v19 = vld [vmem:[%s4403_s29 + $0x1a48] sm:$0xff] }
  0xa4   : > { %500 = vst [vmem:[%s4408_s30 + $0x4a0] sm:$0xff] %v499_v20  ;;  %v627_v20 = vld [vmem:[%s4403_s29 + $0x1a80] sm:$0xff] }
  0xa5   : > { %502 = vst [vmem:[%s4408_s30 + $0x4a8] sm:$0xff] %v501_v21  ;;  %v629_v21 = vld [vmem:[%s4403_s29 + $0x1a88] sm:$0xff] }
  0xa6   : > { %504 = vst [vmem:[%s4408_s30 + $0x4b0] sm:$0xff] %v503_v22  ;;  %v631_v22 = vld [vmem:[%s4403_s29 + $0x1ac0] sm:$0xff] }
  0xa7   : > { %506 = vst [vmem:[%s4408_s30 + $0x4b8] sm:$0xff] %v505_v23  ;;  %v633_v23 = vld [vmem:[%s4403_s29 + $0x1ac8] sm:$0xff] }
  0xa8   : > { %508 = vst [vmem:[%s4408_s30 + $0x4c0] sm:$0xff] %v507_v24  ;;  %v635_v24 = vld [vmem:[%s4403_s29 + $0x1b00] sm:$0xff] }
  0xa9   : > { %510 = vst [vmem:[%s4408_s30 + $0x4c8] sm:$0xff] %v509_v25  ;;  %v637_v25 = vld [vmem:[%s4403_s29 + $0x1b08] sm:$0xff] }
  0xaa   : > { %512 = vst [vmem:[%s4408_s30 + $0x4d0] sm:$0xff] %v511_v26  ;;  %v639_v26 = vld [vmem:[%s4403_s29 + $0x1b40] sm:$0xff] }
  0xab   : > { %514 = vst [vmem:[%s4408_s30 + $0x4d8] sm:$0xff] %v513_v27  ;;  %v641_v27 = vld [vmem:[%s4403_s29 + $0x1b48] sm:$0xff] }
  0xac   : > { %516 = vst [vmem:[%s4408_s30 + $0x4e0] sm:$0xff] %v515_v28  ;;  %v643_v28 = vld [vmem:[%s4403_s29 + $0x1b80] sm:$0xff] }
  0xad   : > { %518 = vst [vmem:[%s4408_s30 + $0x4e8] sm:$0xff] %v517_v29  ;;  %v645_v29 = vld [vmem:[%s4403_s29 + $0x1b88] sm:$0xff] }
  0xae   : > { %520 = vst [vmem:[%s4408_s30 + $0x4f0] sm:$0xff] %v519_v30  ;;  %v647_v30 = vld [vmem:[%s4403_s29 + $0x1bc0] sm:$0xff] }
  0xaf   : > { %522 = vst [vmem:[%s4408_s30 + $0x4f8] sm:$0xff] %v521_v31  ;;  %v649_v31 = vld [vmem:[%s4403_s29 + $0x1bc8] sm:$0xff] }
  0xb0   : > { %524 = vst [vmem:[%s4408_s30 + $0x500] sm:$0xff] %v523_v32  ;;  %v651_v32 = vld [vmem:[%s4403_s29 + $0x1c00] sm:$0xff] }
  0xb1   : > { %526 = vst [vmem:[%s4408_s30 + $0x508] sm:$0xff] %v525_v33  ;;  %v653_v33 = vld [vmem:[%s4403_s29 + $0x1c08] sm:$0xff] }
  0xb2   : > { %528 = vst [vmem:[%s4408_s30 + $0x510] sm:$0xff] %v527_v34  ;;  %v655_v34 = vld [vmem:[%s4403_s29 + $0x1c40] sm:$0xff] }
  0xb3   : > { %530 = vst [vmem:[%s4408_s30 + $0x518] sm:$0xff] %v529_v35  ;;  %v657_v35 = vld [vmem:[%s4403_s29 + $0x1c48] sm:$0xff] }
  0xb4   : > { %532 = vst [vmem:[%s4408_s30 + $0x520] sm:$0xff] %v531_v36  ;;  %v659_v36 = vld [vmem:[%s4403_s29 + $0x1c80] sm:$0xff] }
  0xb5   : > { %534 = vst [vmem:[%s4408_s30 + $0x528] sm:$0xff] %v533_v37  ;;  %v661_v37 = vld [vmem:[%s4403_s29 + $0x1c88] sm:$0xff] }
  0xb6   : > { %536 = vst [vmem:[%s4408_s30 + $0x530] sm:$0xff] %v535_v38  ;;  %v663_v38 = vld [vmem:[%s4403_s29 + $0x1cc0] sm:$0xff] }
  0xb7   : > { %538 = vst [vmem:[%s4408_s30 + $0x538] sm:$0xff] %v537_v39  ;;  %v665_v39 = vld [vmem:[%s4403_s29 + $0x1cc8] sm:$0xff] }
  0xb8   : > { %540 = vst [vmem:[%s4408_s30 + $0x540] sm:$0xff] %v539_v40  ;;  %v667_v40 = vld [vmem:[%s4403_s29 + $0x1d00] sm:$0xff] }
  0xb9   : > { %542 = vst [vmem:[%s4408_s30 + $0x548] sm:$0xff] %v541_v41  ;;  %v669_v41 = vld [vmem:[%s4403_s29 + $0x1d08] sm:$0xff] }
  0xba   : > { %544 = vst [vmem:[%s4408_s30 + $0x550] sm:$0xff] %v543_v42  ;;  %v671_v42 = vld [vmem:[%s4403_s29 + $0x1d40] sm:$0xff] }
  0xbb   : > { %546 = vst [vmem:[%s4408_s30 + $0x558] sm:$0xff] %v545_v43  ;;  %v673_v43 = vld [vmem:[%s4403_s29 + $0x1d48] sm:$0xff] }
  0xbc   : > { %548 = vst [vmem:[%s4408_s30 + $0x560] sm:$0xff] %v547_v44  ;;  %v675_v44 = vld [vmem:[%s4403_s29 + $0x1d80] sm:$0xff] }
  0xbd   : > { %550 = vst [vmem:[%s4408_s30 + $0x568] sm:$0xff] %v549_v45  ;;  %v677_v45 = vld [vmem:[%s4403_s29 + $0x1d88] sm:$0xff] }
  0xbe   : > { %552 = vst [vmem:[%s4408_s30 + $0x570] sm:$0xff] %v551_v46  ;;  %v679_v46 = vld [vmem:[%s4403_s29 + $0x1dc0] sm:$0xff] }
  0xbf   : > { %554 = vst [vmem:[%s4408_s30 + $0x578] sm:$0xff] %v553_v47  ;;  %v681_v47 = vld [vmem:[%s4403_s29 + $0x1dc8] sm:$0xff] }
  0xc0   : > { %556 = vst [vmem:[%s4408_s30 + $0x580] sm:$0xff] %v555_v48  ;;  %v683_v48 = vld [vmem:[%s4403_s29 + $0x1e00] sm:$0xff] }
  0xc1   : > { %558 = vst [vmem:[%s4408_s30 + $0x588] sm:$0xff] %v557_v49  ;;  %v685_v49 = vld [vmem:[%s4403_s29 + $0x1e08] sm:$0xff] }
  0xc2   : > { %560 = vst [vmem:[%s4408_s30 + $0x590] sm:$0xff] %v559_v50  ;;  %v687_v50 = vld [vmem:[%s4403_s29 + $0x1e40] sm:$0xff] }
  0xc3   : > { %562 = vst [vmem:[%s4408_s30 + $0x598] sm:$0xff] %v561_v51  ;;  %v689_v51 = vld [vmem:[%s4403_s29 + $0x1e48] sm:$0xff] }
  0xc4   : > { %564 = vst [vmem:[%s4408_s30 + $0x5a0] sm:$0xff] %v563_v52  ;;  %v691_v52 = vld [vmem:[%s4403_s29 + $0x1e80] sm:$0xff] }
  0xc5   : > { %566 = vst [vmem:[%s4408_s30 + $0x5a8] sm:$0xff] %v565_v53  ;;  %v693_v53 = vld [vmem:[%s4403_s29 + $0x1e88] sm:$0xff] }
  0xc6   : > { %568 = vst [vmem:[%s4408_s30 + $0x5b0] sm:$0xff] %v567_v54  ;;  %v695_v54 = vld [vmem:[%s4403_s29 + $0x1ec0] sm:$0xff] }
  0xc7   : > { %570 = vst [vmem:[%s4408_s30 + $0x5b8] sm:$0xff] %v569_v55  ;;  %v697_v55 = vld [vmem:[%s4403_s29 + $0x1ec8] sm:$0xff] }
  0xc8   : > { %572 = vst [vmem:[%s4408_s30 + $0x5c0] sm:$0xff] %v571_v56  ;;  %v699_v56 = vld [vmem:[%s4403_s29 + $0x1f00] sm:$0xff] }
  0xc9   : > { %574 = vst [vmem:[%s4408_s30 + $0x5c8] sm:$0xff] %v573_v57  ;;  %v701_v57 = vld [vmem:[%s4403_s29 + $0x1f08] sm:$0xff] }
  0xca   : > { %576 = vst [vmem:[%s4408_s30 + $0x5d0] sm:$0xff] %v575_v58  ;;  %v703_v58 = vld [vmem:[%s4403_s29 + $0x1f40] sm:$0xff] }
  0xcb   : > { %578 = vst [vmem:[%s4408_s30 + $0x5d8] sm:$0xff] %v577_v59  ;;  %v705_v59 = vld [vmem:[%s4403_s29 + $0x1f48] sm:$0xff] }
  0xcc   : > { %580 = vst [vmem:[%s4408_s30 + $0x5e0] sm:$0xff] %v579_v60  ;;  %v707_v60 = vld [vmem:[%s4403_s29 + $0x1f80] sm:$0xff] }
  0xcd   : > { %582 = vst [vmem:[%s4408_s30 + $0x5e8] sm:$0xff] %v581_v61  ;;  %v709_v61 = vld [vmem:[%s4403_s29 + $0x1f88] sm:$0xff] }
  0xce   : > { %584 = vst [vmem:[%s4408_s30 + $0x5f0] sm:$0xff] %v583_v62  ;;  %v711_v62 = vld [vmem:[%s4403_s29 + $0x1fc0] sm:$0xff] }
  0xcf   : > { %586 = vst [vmem:[%s4408_s30 + $0x5f8] sm:$0xff] %v585_v63  ;;  %v713_v63 = vld [vmem:[%s4403_s29 + $0x1fc8] sm:$0xff] }
  0xd0   : > { %588 = vst [vmem:[%s4408_s30 + $0x600] sm:$0xff] %v587_v0 }
  0xd1   : > { %590 = vst [vmem:[%s4408_s30 + $0x608] sm:$0xff] %v589_v1 }
  0xd2   : > { %592 = vst [vmem:[%s4408_s30 + $0x610] sm:$0xff] %v591_v2 }
  0xd3   : > { %594 = vst [vmem:[%s4408_s30 + $0x618] sm:$0xff] %v593_v3 }
  0xd4   : > { %596 = vst [vmem:[%s4408_s30 + $0x620] sm:$0xff] %v595_v4 }
  0xd5   : > { %598 = vst [vmem:[%s4408_s30 + $0x628] sm:$0xff] %v597_v5 }
  0xd6   : > { %600 = vst [vmem:[%s4408_s30 + $0x630] sm:$0xff] %v599_v6 }
  0xd7   : > { %602 = vst [vmem:[%s4408_s30 + $0x638] sm:$0xff] %v601_v7 }
  0xd8   : > { %604 = vst [vmem:[%s4408_s30 + $0x640] sm:$0xff] %v603_v8 }
  0xd9   : > { %606 = vst [vmem:[%s4408_s30 + $0x648] sm:$0xff] %v605_v9 }
  0xda   : > { %608 = vst [vmem:[%s4408_s30 + $0x650] sm:$0xff] %v607_v10 }
  0xdb   : > { %610 = vst [vmem:[%s4408_s30 + $0x658] sm:$0xff] %v609_v11 }
  0xdc   : > { %612 = vst [vmem:[%s4408_s30 + $0x660] sm:$0xff] %v611_v12 }
  0xdd   : > { %614 = vst [vmem:[%s4408_s30 + $0x668] sm:$0xff] %v613_v13 }
  0xde   : > { %616 = vst [vmem:[%s4408_s30 + $0x670] sm:$0xff] %v615_v14 }
  0xdf   : > { %618 = vst [vmem:[%s4408_s30 + $0x678] sm:$0xff] %v617_v15 }
  0xe0   : > { %620 = vst [vmem:[%s4408_s30 + $0x680] sm:$0xff] %v619_v16 }
  0xe1   : > { %622 = vst [vmem:[%s4408_s30 + $0x688] sm:$0xff] %v621_v17 }
  0xe2   : > { %624 = vst [vmem:[%s4408_s30 + $0x690] sm:$0xff] %v623_v18 }
  0xe3   : > { %626 = vst [vmem:[%s4408_s30 + $0x698] sm:$0xff] %v625_v19 }
  0xe4   : > { %628 = vst [vmem:[%s4408_s30 + $0x6a0] sm:$0xff] %v627_v20 }
  0xe5   : > { %630 = vst [vmem:[%s4408_s30 + $0x6a8] sm:$0xff] %v629_v21 }
  0xe6   : > { %632 = vst [vmem:[%s4408_s30 + $0x6b0] sm:$0xff] %v631_v22 }
  0xe7   : > { %634 = vst [vmem:[%s4408_s30 + $0x6b8] sm:$0xff] %v633_v23 }
  0xe8   : > { %636 = vst [vmem:[%s4408_s30 + $0x6c0] sm:$0xff] %v635_v24 }
  0xe9   : > { %638 = vst [vmem:[%s4408_s30 + $0x6c8] sm:$0xff] %v637_v25 }
  0xea   : > { %640 = vst [vmem:[%s4408_s30 + $0x6d0] sm:$0xff] %v639_v26 }
  0xeb   : > { %642 = vst [vmem:[%s4408_s30 + $0x6d8] sm:$0xff] %v641_v27 }
  0xec   : > { %644 = vst [vmem:[%s4408_s30 + $0x6e0] sm:$0xff] %v643_v28 }
  0xed   : > { %646 = vst [vmem:[%s4408_s30 + $0x6e8] sm:$0xff] %v645_v29 }
  0xee   : > { %648 = vst [vmem:[%s4408_s30 + $0x6f0] sm:$0xff] %v647_v30 }
  0xef   : > { %650 = vst [vmem:[%s4408_s30 + $0x6f8] sm:$0xff] %v649_v31 }
  0xf0   : > { %652 = vst [vmem:[%s4408_s30 + $0x700] sm:$0xff] %v651_v32 }
  0xf1   : > { %654 = vst [vmem:[%s4408_s30 + $0x708] sm:$0xff] %v653_v33 }
  0xf2   : > { %656 = vst [vmem:[%s4408_s30 + $0x710] sm:$0xff] %v655_v34 }
  0xf3   : > { %658 = vst [vmem:[%s4408_s30 + $0x718] sm:$0xff] %v657_v35 }
  0xf4   : > { %660 = vst [vmem:[%s4408_s30 + $0x720] sm:$0xff] %v659_v36 }
  0xf5   : > { %662 = vst [vmem:[%s4408_s30 + $0x728] sm:$0xff] %v661_v37 }
  0xf6   : > { %664 = vst [vmem:[%s4408_s30 + $0x730] sm:$0xff] %v663_v38 }
  0xf7   : > { %666 = vst [vmem:[%s4408_s30 + $0x738] sm:$0xff] %v665_v39 }
  0xf8   : > { %668 = vst [vmem:[%s4408_s30 + $0x740] sm:$0xff] %v667_v40 }
  0xf9   : > { %670 = vst [vmem:[%s4408_s30 + $0x748] sm:$0xff] %v669_v41 }
  0xfa   : > { %672 = vst [vmem:[%s4408_s30 + $0x750] sm:$0xff] %v671_v42 }
  0xfb   : > { %674 = vst [vmem:[%s4408_s30 + $0x758] sm:$0xff] %v673_v43 }
  0xfc   : > { %676 = vst [vmem:[%s4408_s30 + $0x760] sm:$0xff] %v675_v44 }
  0xfd   : > { %678 = vst [vmem:[%s4408_s30 + $0x768] sm:$0xff] %v677_v45 }
  0xfe   : > { %680 = vst [vmem:[%s4408_s30 + $0x770] sm:$0xff] %v679_v46 }
  0xff   : > { %682 = vst [vmem:[%s4408_s30 + $0x778] sm:$0xff] %v681_v47 }
 0x100   : > { %684 = vst [vmem:[%s4408_s30 + $0x780] sm:$0xff] %v683_v48 }
 0x101   : > { %686 = vst [vmem:[%s4408_s30 + $0x788] sm:$0xff] %v685_v49 }
 0x102   : > { %688 = vst [vmem:[%s4408_s30 + $0x790] sm:$0xff] %v687_v50 }
 0x103   : > { %690 = vst [vmem:[%s4408_s30 + $0x798] sm:$0xff] %v689_v51 }
 0x104   : > { %692 = vst [vmem:[%s4408_s30 + $0x7a0] sm:$0xff] %v691_v52 }
 0x105   : > { %694 = vst [vmem:[%s4408_s30 + $0x7a8] sm:$0xff] %v693_v53 }
 0x106   : > { %696 = vst [vmem:[%s4408_s30 + $0x7b0] sm:$0xff] %v695_v54 }
 0x107   : > { %698 = vst [vmem:[%s4408_s30 + $0x7b8] sm:$0xff] %v697_v55 }
 0x108   : > { %700 = vst [vmem:[%s4408_s30 + $0x7c0] sm:$0xff] %v699_v56 }
 0x109   : > { %702 = vst [vmem:[%s4408_s30 + $0x7c8] sm:$0xff] %v701_v57 }
 0x10a   : > { %704 = vst [vmem:[%s4408_s30 + $0x7d0] sm:$0xff] %v703_v58 }
 0x10b   : > { %706 = vst [vmem:[%s4408_s30 + $0x7d8] sm:$0xff] %v705_v59 }
 0x10c   : > { %708 = vst [vmem:[%s4408_s30 + $0x7e0] sm:$0xff] %v707_v60 }
 0x10d   : > { %710 = vst [vmem:[%s4408_s30 + $0x7e8] sm:$0xff] %v709_v61 }
 0x10e   : > { %712 = vst [vmem:[%s4408_s30 + $0x7f0] sm:$0xff] %v711_v62 }
 0x10f   : > { %714 = vst [vmem:[%s4408_s30 + $0x7f8] sm:$0xff] %v713_v63 }
 0x110 PF: > { %p2966_p6 = scmp.ge.s32.totalorder %s4333_s19, 1  ;;  %p735_p7 = scmp.lt.s32.totalorder %s4333_s19, 5 }
 0x112   : > { %p736_p8 = pnand %p2966_p6, %p735_p7 }
 0x113   : > { %s742_s5 = sand.u32 (!%p736_p8), 1, %s4317_s15   ;;  %s2968_s21 = sshll.u32 (!%p736_p8), %s4325_s17, 2 }
 0x114   : > { %739 = sbr.rel (%p736_p8) target bundleno = 686 (0x2ae), region = 55  ;;  %s2967_s6 = sshll.u32 (!%p736_p8), %s742_s5, 11 }
 0x115   : > { %s4922_s7 = scalar_lea.vmem (!%p736_p8), [#allocation2], %s2967_s6  ;;  %p5385_p9 = scmp.lt.s32.totalorder (!%p736_p8), %s2968_s21, 15 }
 0x119   : > { %v3086_v0 = vld [vmem:[%s4922_s7 + $0xe0] sm:$0xf]  ;;  %v4029_v1 = vld [vmem:[%s4922_s7 + $0xec] sm:$0xf0]  ;;  %s5587_s21 = smov (!%p5385_p9, %s2968_s21), 15 }
 0x11a   : > { %v3214_v2 = vld [vmem:[%s4922_s7 + $0x1e0] sm:$0xf]  ;;  %v3087_v3 = vor.u32 %v4029_v1, %v3086_v0  ;;  %v4061_v4 = vld [vmem:[%s4922_s7 + $0x1ec] sm:$0xf0]  ;;  %s793_s25 = scalar_lea.vmem %s5576_s2, %s5587_s21  ;;  %s798_s28 = scalar_lea.vmem %s5577_s3, %s5587_s21 }
 0x11b   : > { %v3342_v5 = vld [vmem:[%s4922_s7 + $0x2e0] sm:$0xf]  ;;  %v4093_v6 = vld [vmem:[%s4922_s7 + $0x2ec] sm:$0xf0]  ;;  %v3215_v7 = vor.u32 %v4061_v4, %v3214_v2  ;;  %s2971_s29 = sshll.u32 %s5587_s21, 3 }
 0x11c   : > { %v3343_v8 = vor.u32 %v4093_v6, %v3342_v5  ;;  %v3470_v9 = vld [vmem:[%s4922_s7 + $0x3e0] sm:$0xf]  ;;  %v4125_v10 = vld [vmem:[%s4922_s7 + $0x3ec] sm:$0xf0]  ;;  %2378 = vmatpush.bf16.msra.mxu0 %v3087_v3  ;;  %s5468_s6 = scalar_lea.vmem %s5578_s4, %s2971_s29 }
 0x11d   : > { %v3070_v11 = vld [vmem:[%s4922_s7 + $0xc0] sm:$0xf]  ;;  %v3471_v12 = vor.u32 %v4125_v10, %v3470_v9  ;;  %v4025_v13 = vld [vmem:[%s4922_s7 + $0xcc] sm:$0xf0]  ;;  %2391 = vmatpush.bf16.msra.mxu1 %v3215_v7 }
 0x11e   : > { %v3198_v14 = vld [vmem:[%s4922_s7 + $0x1c0] sm:$0xf]  ;;  %v4057_v15 = vld [vmem:[%s4922_s7 + $0x1cc] sm:$0xf0]  ;;  %2404 = vmatpush.bf16.msra.mxu2 %v3343_v8  ;;  %v3071_v16 = vor.u32 %v4025_v13, %v3070_v11 }
 0x11f   : > { %v3199_v17 = vor.u32 %v4057_v15, %v3198_v14  ;;  %v3326_v18 = vld [vmem:[%s4922_s7 + $0x2c0] sm:$0xf]  ;;  %v4089_v19 = vld [vmem:[%s4922_s7 + $0x2cc] sm:$0xf0]  ;;  %2417 = vmatpush.bf16.msra.mxu3 %v3471_v12 }
 0x120   : > { %v3454_v20 = vld [vmem:[%s4922_s7 + $0x3c0] sm:$0xf]  ;;  %v3327_v21 = vor.u32 %v4089_v19, %v3326_v18  ;;  %v4121_v22 = vld [vmem:[%s4922_s7 + $0x3cc] sm:$0xf0]  ;;  %2379 = vmatpush.bf16.msra.mxu0 %v3071_v16 }
 0x121   : > { %v3054_v23 = vld [vmem:[%s4922_s7 + $0xa0] sm:$0xf]  ;;  %v4021_v24 = vld [vmem:[%s4922_s7 + $0xac] sm:$0xf0]  ;;  %v3455_v25 = vor.u32 %v4121_v22, %v3454_v20  ;;  %2392 = vmatpush.bf16.msra.mxu1 %v3199_v17 }
 0x122   : > { %v3182_v26 = vld [vmem:[%s4922_s7 + $0x1a0] sm:$0xf]  ;;  %v4053_v27 = vld [vmem:[%s4922_s7 + $0x1ac] sm:$0xf0]  ;;  %v3055_v29 = vor.u32 %v4021_v24, %v3054_v23  ;;  %2405 = vmatpush.bf16.msra.mxu2 %v3327_v21 }
 0x123   : > { %v3310_v28 = vld [vmem:[%s4922_s7 + $0x2a0] sm:$0xf]  ;;  %v4085_v30 = vld [vmem:[%s4922_s7 + $0x2ac] sm:$0xf0]  ;;  %v3183_v33 = vor.u32 %v4053_v27, %v3182_v26  ;;  %2418 = vmatpush.bf16.msra.mxu3 %v3455_v25 }
 0x124   : > { %v3438_v31 = vld [vmem:[%s4922_s7 + $0x3a0] sm:$0xf]  ;;  %v4117_v32 = vld [vmem:[%s4922_s7 + $0x3ac] sm:$0xf0]  ;;  %v3311_v34 = vor.u32 %v4085_v30, %v3310_v28  ;;  %2380 = vmatpush.bf16.msra.mxu0 %v3055_v29 }
 0x125   : > { %v3038_v35 = vld [vmem:[%s4922_s7 + $0x80] sm:$0xf]  ;;  %v4017_v36 = vld [vmem:[%s4922_s7 + $0x8c] sm:$0xf0]  ;;  %v3439_v38 = vor.u32 %v4117_v32, %v3438_v31  ;;  %2393 = vmatpush.bf16.msra.mxu1 %v3183_v33 }
 0x126   : > { %v3166_v37 = vld [vmem:[%s4922_s7 + $0x180] sm:$0xf]  ;;  %v4049_v39 = vld [vmem:[%s4922_s7 + $0x18c] sm:$0xf0]  ;;  %v3039_v44 = vor.u32 %v4017_v36, %v3038_v35  ;;  %2406 = vmatpush.bf16.msra.mxu2 %v3311_v34 }
 0x127   : > { %v3294_v40 = vld [vmem:[%s4922_s7 + $0x280] sm:$0xf]  ;;  %v4081_v41 = vld [vmem:[%s4922_s7 + $0x28c] sm:$0xf0]  ;;  %v3167_v45 = vor.u32 %v4049_v39, %v3166_v37  ;;  %2419 = vmatpush.bf16.msra.mxu3 %v3439_v38 }
 0x128   : > { %v3422_v42 = vld [vmem:[%s4922_s7 + $0x380] sm:$0xf]  ;;  %v4113_v43 = vld [vmem:[%s4922_s7 + $0x38c] sm:$0xf0]  ;;  %v3295_v46 = vor.u32 %v4081_v41, %v3294_v40  ;;  %2381 = vmatpush.bf16.msra.mxu0 %v3039_v44 }
 0x129   : > { %v3022_v47 = vld [vmem:[%s4922_s7 + $0x60] sm:$0xf]  ;;  %v4013_v48 = vld [vmem:[%s4922_s7 + $0x6c] sm:$0xf0]  ;;  %v3423_v50 = vor.u32 %v4113_v43, %v3422_v42  ;;  %2394 = vmatpush.bf16.msra.mxu1 %v3167_v45 }
 0x12a   : > { %v3150_v49 = vld [vmem:[%s4922_s7 + $0x160] sm:$0xf]  ;;  %v4045_v51 = vld [vmem:[%s4922_s7 + $0x16c] sm:$0xf0]  ;;  %v3023_v56 = vor.u32 %v4013_v48, %v3022_v47  ;;  %2407 = vmatpush.bf16.msra.mxu2 %v3295_v46 }
 0x12b   : > { %v3278_v52 = vld [vmem:[%s4922_s7 + $0x260] sm:$0xf]  ;;  %v4077_v53 = vld [vmem:[%s4922_s7 + $0x26c] sm:$0xf0]  ;;  %v3151_v57 = vor.u32 %v4045_v51, %v3150_v49  ;;  %2420 = vmatpush.bf16.msra.mxu3 %v3423_v50 }
 0x12c   : > { %v3406_v54 = vld [vmem:[%s4922_s7 + $0x360] sm:$0xf]  ;;  %v4109_v55 = vld [vmem:[%s4922_s7 + $0x36c] sm:$0xf0]  ;;  %v3279_v58 = vor.u32 %v4077_v53, %v3278_v52  ;;  %2382 = vmatpush.bf16.msra.mxu0 %v3023_v56 }
 0x12d   : > { %v3006_v59 = vld [vmem:[%s4922_s7 + $0x40] sm:$0xf]  ;;  %v4009_v60 = vld [vmem:[%s4922_s7 + $0x4c] sm:$0xf0]  ;;  %v3407_v62 = vor.u32 %v4109_v55, %v3406_v54  ;;  %2395 = vmatpush.bf16.msra.mxu1 %v3151_v57 }
 0x12e   : > { %v3134_v61 = vld [vmem:[%s4922_s7 + $0x140] sm:$0xf]  ;;  %v4041_v63 = vld [vmem:[%s4922_s7 + $0x14c] sm:$0xf0]  ;;  %v3007_v4 = vor.u32 %v4009_v60, %v3006_v59  ;;  %2408 = vmatpush.bf16.msra.mxu2 %v3279_v58  ;;  %v811_v59 = vld [vmem:[%s5574_s0 + $0x8] sm:$0xff] }
 0x12f   : > { %v3262_v0 = vld [vmem:[%s4922_s7 + $0x240] sm:$0xf]  ;;  %v4073_v1 = vld [vmem:[%s4922_s7 + $0x24c] sm:$0xf0]  ;;  %v3135_v5 = vor.u32 %v4041_v63, %v3134_v61  ;;  %2421 = vmatpush.bf16.msra.mxu3 %v3407_v62  ;;  %v1076_v63 = vunpack.c.l.b16 %v811_v59 }
 0x130   : > { %v3390_v2 = vld [vmem:[%s4922_s7 + $0x340] sm:$0xf]  ;;  %v4105_v3 = vld [vmem:[%s4922_s7 + $0x34c] sm:$0xf0]  ;;  %v3263_v6 = vor.u32 %v4073_v1, %v3262_v0  ;;  %2383 = vmatpush.bf16.msra.mxu0 %v3007_v4  ;;  %v1077_v1 = vunpack.c.h.b16 %v811_v59 }
 0x131   : > { %v2990_v7 = vld [vmem:[%s4922_s7 + $0x20] sm:$0xf]  ;;  %v4005_v8 = vld [vmem:[%s4922_s7 + $0x2c] sm:$0xf0]  ;;  %v3391_v10 = vor.u32 %v4105_v3, %v3390_v2  ;;  %2396 = vmatpush.bf16.msra.mxu1 %v3135_v5 }
 0x132   : > { %v3118_v9 = vld [vmem:[%s4922_s7 + $0x120] sm:$0xf]  ;;  %v4037_v11 = vld [vmem:[%s4922_s7 + $0x12c] sm:$0xf0]  ;;  %v2991_v16 = vor.u32 %v4005_v8, %v2990_v7  ;;  %2409 = vmatpush.bf16.msra.mxu2 %v3263_v6  ;;  %v5018_v7 = vpack.c.b16 %v1076_v63, %v1076_v63  ;;  %v5020_v8 = vpack.c.b16 %v1077_v1, %v1077_v1 }
 0x133   : > { %v3246_v12 = vld [vmem:[%s4922_s7 + $0x220] sm:$0xf]  ;;  %v4069_v13 = vld [vmem:[%s4922_s7 + $0x22c] sm:$0xf0]  ;;  %v3119_v19 = vor.u32 %v4037_v11, %v3118_v9  ;;  %2422 = vmatpush.bf16.msra.mxu3 %v3391_v10 }
 0x134   : > { %v3374_v14 = vld [vmem:[%s4922_s7 + $0x320] sm:$0xf]  ;;  %v4101_v15 = vld [vmem:[%s4922_s7 + $0x32c] sm:$0xf0]  ;;  %v3247_v20 = vor.u32 %v4069_v13, %v3246_v12  ;;  %2384 = vmatpush.bf16.msra.mxu0 %v2991_v16 }
 0x135   : > { %v2974_v17 = vld [vmem:[%s4922_s7] sm:$0xf]  ;;  %v4001_v18 = vld [vmem:[%s4922_s7 + $0xc] sm:$0xf0]  ;;  %v3375_v24 = vor.u32 %v4101_v15, %v3374_v14  ;;  %2397 = vmatpush.bf16.msra.mxu1 %v3119_v19 }
 0x136   : > { %v3102_v21 = vld [vmem:[%s4922_s7 + $0x100] sm:$0xf]  ;;  %v4033_v22 = vld [vmem:[%s4922_s7 + $0x10c] sm:$0xf0]  ;;  %v2975_v31 = vor.u32 %v4001_v18, %v2974_v17  ;;  %2410 = vmatpush.bf16.msra.mxu2 %v3247_v20 }
 0x137   : > { %v3230_v23 = vld [vmem:[%s4922_s7 + $0x200] sm:$0xf]  ;;  %v4065_v25 = vld [vmem:[%s4922_s7 + $0x20c] sm:$0xf0]  ;;  %v3103_v35 = vor.u32 %v4033_v22, %v3102_v21  ;;  %2423 = vmatpush.bf16.msra.mxu3 %v3375_v24 }
 0x138   : > { %v3358_v26 = vld [vmem:[%s4922_s7 + $0x300] sm:$0xf]  ;;  %v4097_v27 = vld [vmem:[%s4922_s7 + $0x30c] sm:$0xf0]  ;;  %v3231_v36 = vor.u32 %v4065_v25, %v3230_v23  ;;  %2385 = vmatpush.bf16.msra.mxu0 %v2975_v31 }
 0x139   : > { %v3598_v28 = vld [vmem:[%s4922_s7 + $0x4e0] sm:$0xf]  ;;  %v4157_v29 = vld [vmem:[%s4922_s7 + $0x4ec] sm:$0xf0]  ;;  %v3359_v39 = vor.u32 %v4097_v27, %v3358_v26  ;;  %2398 = vmatpush.bf16.msra.mxu1 %v3103_v35 }
 0x13a   : > { %v3726_v30 = vld [vmem:[%s4922_s7 + $0x5e0] sm:$0xf]  ;;  %v4189_v32 = vld [vmem:[%s4922_s7 + $0x5ec] sm:$0xf0]  ;;  %v3599_v40 = vor.u32 %v4157_v29, %v3598_v28  ;;  %2411 = vmatpush.bf16.msra.mxu2 %v3231_v36 }
 0x13b   : > { %v3854_v33 = vld [vmem:[%s4922_s7 + $0x6e0] sm:$0xf]  ;;  %v4221_v34 = vld [vmem:[%s4922_s7 + $0x6ec] sm:$0xf0]  ;;  %v3727_v41 = vor.u32 %v4189_v32, %v3726_v30  ;;  %2424 = vmatpush.bf16.msra.mxu3 %v3359_v39 }
 0x13c   : > { %v3982_v37 = vld [vmem:[%s4922_s7 + $0x7e0] sm:$0xf]  ;;  %v4253_v38 = vld [vmem:[%s4922_s7 + $0x7ec] sm:$0xf0]  ;;  %v3855_v42 = vor.u32 %v4221_v34, %v3854_v33  ;;  %2430 = vmatpush.bf16.msrb.mxu0 %v3599_v40 }
 0x13d   : > { %v3582_v43 = vld [vmem:[%s4922_s7 + $0x4c0] sm:$0xf]  ;;  %v4153_v44 = vld [vmem:[%s4922_s7 + $0x4cc] sm:$0xf0]  ;;  %v3983_v46 = vor.u32 %v4253_v38, %v3982_v37  ;;  %2443 = vmatpush.bf16.msrb.mxu1 %v3727_v41  ;;  %2412 = vmatmul.bf16.vlgmr.msra.gmra.mxu2 %v5018_v7 }
 0x13e   : > { %v3710_v45 = vld [vmem:[%s4922_s7 + $0x5c0] sm:$0xf]  ;;  %v4185_v47 = vld [vmem:[%s4922_s7 + $0x5cc] sm:$0xf0]  ;;  %v3583_v52 = vor.u32 %v4153_v44, %v3582_v43  ;;  %2456 = vmatpush.bf16.msrb.mxu2 %v3855_v42  ;;  %2425 = vmatmul.bf16.vlgmr.msra.gmra.mxu3 %v5020_v8 }
 0x13f   : > { %v3838_v48 = vld [vmem:[%s4922_s7 + $0x6c0] sm:$0xf]  ;;  %v4217_v49 = vld [vmem:[%s4922_s7 + $0x6cc] sm:$0xf0]  ;;  %v3711_v55 = vor.u32 %v4185_v47, %v3710_v45  ;;  %2469 = vmatpush.bf16.msrb.mxu3 %v3983_v46 }
 0x140   : > { %v3966_v50 = vld [vmem:[%s4922_s7 + $0x7c0] sm:$0xf]  ;;  %v4249_v51 = vld [vmem:[%s4922_s7 + $0x7cc] sm:$0xf0]  ;;  %v3839_v56 = vor.u32 %v4217_v49, %v3838_v48  ;;  %2431 = vmatpush.bf16.msrb.mxu0 %v3583_v52 }
 0x141   : > { %v3566_v53 = vld [vmem:[%s4922_s7 + $0x4a0] sm:$0xf]  ;;  %v4149_v54 = vld [vmem:[%s4922_s7 + $0x4ac] sm:$0xf0]  ;;  %v3967_v60 = vor.u32 %v4249_v51, %v3966_v50  ;;  %2444 = vmatpush.bf16.msrb.mxu1 %v3711_v55 }
 0x142   : > { %v3694_v57 = vld [vmem:[%s4922_s7 + $0x5a0] sm:$0xf]  ;;  %v4181_v58 = vld [vmem:[%s4922_s7 + $0x5ac] sm:$0xf0]  ;;  %v3567_v6 = vor.u32 %v4149_v54, %v3566_v53  ;;  %2457 = vmatpush.bf16.msrb.mxu2 %v3839_v56 }
 0x143   : > { %v3822_v61 = vld [vmem:[%s4922_s7 + $0x6a0] sm:$0xf]  ;;  %v4213_v62 = vld [vmem:[%s4922_s7 + $0x6ac] sm:$0xf0]  ;;  %v3695_v9 = vor.u32 %v4181_v58, %v3694_v57  ;;  %2470 = vmatpush.bf16.msrb.mxu3 %v3967_v60 }
 0x144   : > { %v810_v0 = vld [vmem:[%s5574_s0] sm:$0xff]  ;;  %v4245_v3 = vld [vmem:[%s4922_s7 + $0x7ac] sm:$0xf0]  ;;  %v3823_v10 = vor.u32 %v4213_v62, %v3822_v61  ;;  %2432 = vmatpush.bf16.msrb.mxu0 %v3567_v6 }
 0x145   : > { %v3950_v2 = vld [vmem:[%s4922_s7 + $0x7a0] sm:$0xf]  ;;  %v1074_v4 = vunpack.c.l.b16 %v810_v0  ;;  %v1075_v5 = vunpack.c.h.b16 %v810_v0  ;;  %v4145_v12 = vld [vmem:[%s4922_s7 + $0x48c] sm:$0xf0]  ;;  %2445 = vmatpush.bf16.msrb.mxu1 %v3695_v9 }
 0x146   : > { %v3550_v11 = vld [vmem:[%s4922_s7 + $0x480] sm:$0xf]  ;;  %v3951_v15 = vor.u32 %v4245_v3, %v3950_v2  ;;  %v4177_v16 = vld [vmem:[%s4922_s7 + $0x58c] sm:$0xf0]  ;;  %2458 = vmatpush.bf16.msrb.mxu2 %v3823_v10  ;;  %v813_v3 = vld [vmem:[%s5574_s0 + $0x18] sm:$0xff] }
 0x147   : > { %v3678_v13 = vld [vmem:[%s4922_s7 + $0x580] sm:$0xf]  ;;  %v5025_v14 = vpack.c.b16 %v1074_v4, %v1074_v4  ;;  %v4209_v18 = vld [vmem:[%s4922_s7 + $0x68c] sm:$0xf0]  ;;  %v5031_v19 = vpack.c.b16 %v1075_v5, %v1075_v5  ;;  %v3551_v22 = vor.u32 %v4145_v12, %v3550_v11  ;;  %v4027_v10 = vld [vmem:[%s4922_s7 + $0xe4] sm:$0xf] }
 0x148   : > { %v3806_v17 = vld [vmem:[%s4922_s7 + $0x680] sm:$0xf]  ;;  %v4241_v21 = vld [vmem:[%s4922_s7 + $0x78c] sm:$0xf0]  ;;  %v3679_v23 = vor.u32 %v4177_v16, %v3678_v13  ;;  %2471 = vmatpush.bf16.msrb.mxu3 %v3951_v15  ;;  %v3088_v11 = vld [vmem:[%s4922_s7 + $0xf0] sm:$0xf0] }
 0x149   : > { %v3934_v20 = vld [vmem:[%s4922_s7 + $0x780] sm:$0xf]  ;;  %2386 = vmatmul.bf16.vlgmr.msra.gmra.mxu0 %v5025_v14  ;;  %2399 = vmatmul.bf16.vlgmr.msra.gmra.mxu1 %v5031_v19  ;;  %v3807_v24 = vor.u32 %v4209_v18, %v3806_v17  ;;  %v4141_v26 = vld [vmem:[%s4922_s7 + $0x46c] sm:$0xf0]  ;;  %v4059_v12 = vld [vmem:[%s4922_s7 + $0x1e4] sm:$0xf]  ;;  %v1080_v18 = vunpack.c.l.b16 %v813_v3 }
 0x14a   : > { %v3534_v25 = vld [vmem:[%s4922_s7 + $0x460] sm:$0xf]  ;;  %v3935_v28 = vor.u32 %v4241_v21, %v3934_v20  ;;  %v4173_v29 = vld [vmem:[%s4922_s7 + $0x56c] sm:$0xf0]  ;;  %2433 = vmatpush.bf16.msrb.mxu0 %v3551_v22  ;;  %2446 = vmatpush.bf16.msrb.mxu1 %v3679_v23  ;;  %v3216_v15 = vld [vmem:[%s4922_s7 + $0x1f0] sm:$0xf0] }
 0x14b   : > { %v3662_v27 = vld [vmem:[%s4922_s7 + $0x560] sm:$0xf]  ;;  %v4205_v31 = vld [vmem:[%s4922_s7 + $0x66c] sm:$0xf0]  ;;  %v3535_v34 = vor.u32 %v4141_v26, %v3534_v25  ;;  %2459 = vmatpush.bf16.msrb.mxu2 %v3807_v24  ;;  %v4091_v16 = vld [vmem:[%s4922_s7 + $0x2e4] sm:$0xf]  ;;  %v1081_v25 = vunpack.c.h.b16 %v813_v3 }
 0x14c   : > { %v3790_v30 = vld [vmem:[%s4922_s7 + $0x660] sm:$0xf]  ;;  %v4237_v33 = vld [vmem:[%s4922_s7 + $0x76c] sm:$0xf0]  ;;  %v3663_v35 = vor.u32 %v4173_v29, %v3662_v27  ;;  %2472 = vmatpush.bf16.msrb.mxu3 %v3935_v28  ;;  %v3344_v17 = vld [vmem:[%s4922_s7 + $0x2f0] sm:$0xf0]  ;;  %v3091_v27 = vor.u32 %v4027_v10, %v3088_v11  ;;  %v3219_v29 = vor.u32 %v4059_v12, %v3216_v15 }
 0x14d   : > { %v3918_v32 = vld [vmem:[%s4922_s7 + $0x760] sm:$0xf]  ;;  %v3791_v36 = vor.u32 %v4205_v31, %v3790_v30  ;;  %v4137_v38 = vld [vmem:[%s4922_s7 + $0x44c] sm:$0xf0]  ;;  %v4123_v22 = vld [vmem:[%s4922_s7 + $0x3e4] sm:$0xf]  ;;  %v3347_v30 = vor.u32 %v4091_v16, %v3344_v17 }
 0x14e   : > { %v3518_v37 = vld [vmem:[%s4922_s7 + $0x440] sm:$0xf]  ;;  %v3919_v40 = vor.u32 %v4237_v33, %v3918_v32  ;;  %v4169_v41 = vld [vmem:[%s4922_s7 + $0x54c] sm:$0xf0]  ;;  %2434 = vmatpush.bf16.msrb.mxu0 %v3535_v34  ;;  %2447 = vmatpush.bf16.msrb.mxu1 %v3663_v35  ;;  %v3472_v23 = vld [vmem:[%s4922_s7 + $0x3f0] sm:$0xf0]  ;;  %v5087_v35 = vpack.c.b16 %v1080_v18, %v1080_v18 }
 0x14f   : > { %v3646_v39 = vld [vmem:[%s4922_s7 + $0x540] sm:$0xf]  ;;  %v4201_v43 = vld [vmem:[%s4922_s7 + $0x64c] sm:$0xf0]  ;;  %v3519_v46 = vor.u32 %v4137_v38, %v3518_v37  ;;  %2460 = vmatpush.bf16.msrb.mxu2 %v3791_v36  ;;  %v4023_v31 = vld [vmem:[%s4922_s7 + $0xc4] sm:$0xf]  ;;  %v3475_v34 = vor.u32 %v4123_v22, %v3472_v23 }
 0x150   : > { %v3774_v42 = vld [vmem:[%s4922_s7 + $0x640] sm:$0xf]  ;;  %v4233_v45 = vld [vmem:[%s4922_s7 + $0x74c] sm:$0xf0]  ;;  %v3647_v47 = vor.u32 %v4169_v41, %v3646_v39  ;;  %2473 = vmatpush.bf16.msrb.mxu3 %v3919_v40  ;;  %v3072_v32 = vld [vmem:[%s4922_s7 + $0xd0] sm:$0xf0] }
 0x151   : > { %v3902_v44 = vld [vmem:[%s4922_s7 + $0x740] sm:$0xf]  ;;  %v3775_v48 = vor.u32 %v4201_v43, %v3774_v42  ;;  %v4133_v50 = vld [vmem:[%s4922_s7 + $0x42c] sm:$0xf0]  ;;  %v4055_v33 = vld [vmem:[%s4922_s7 + $0x1c4] sm:$0xf]  ;;  %v5096_v42 = vpack.c.b16 %v1081_v25, %v1081_v25  ;;  %v3075_v43 = vor.u32 %v4023_v31, %v3072_v32 }
 0x152   : > { %v3502_v49 = vld [vmem:[%s4922_s7 + $0x420] sm:$0xf]  ;;  %v3903_v52 = vor.u32 %v4233_v45, %v3902_v44  ;;  %v4165_v53 = vld [vmem:[%s4922_s7 + $0x52c] sm:$0xf0]  ;;  %2435 = vmatpush.bf16.msrb.mxu0 %v3519_v46  ;;  %2448 = vmatpush.bf16.msrb.mxu1 %v3647_v47  ;;  %v3200_v36 = vld [vmem:[%s4922_s7 + $0x1d0] sm:$0xf0] }
 0x153   : > { %v3630_v51 = vld [vmem:[%s4922_s7 + $0x520] sm:$0xf]  ;;  %v4197_v55 = vld [vmem:[%s4922_s7 + $0x62c] sm:$0xf0]  ;;  %v3503_v59 = vor.u32 %v4133_v50, %v3502_v49  ;;  %2461 = vmatpush.bf16.msrb.mxu2 %v3775_v48  ;;  %v4087_v37 = vld [vmem:[%s4922_s7 + $0x2c4] sm:$0xf]  ;;  %v3203_v45 = vor.u32 %v4055_v33, %v3200_v36 }
 0x154   : > { %v3758_v54 = vld [vmem:[%s4922_s7 + $0x620] sm:$0xf]  ;;  %v4229_v57 = vld [vmem:[%s4922_s7 + $0x72c] sm:$0xf0]  ;;  %v3631_v63 = vor.u32 %v4165_v53, %v3630_v51  ;;  %2474 = vmatpush.bf16.msrb.mxu3 %v3903_v52  ;;  %v3328_v38 = vld [vmem:[%s4922_s7 + $0x2d0] sm:$0xf0] }
 0x155   : > { %v3886_v56 = vld [vmem:[%s4922_s7 + $0x720] sm:$0xf]  ;;  %v4129_v60 = vld [vmem:[%s4922_s7 + $0x40c] sm:$0xf0]  ;;  %v3759_v0 = vor.u32 %v4197_v55, %v3758_v54  ;;  %v4119_v39 = vld [vmem:[%s4922_s7 + $0x3c4] sm:$0xf]  ;;  %v3331_v46 = vor.u32 %v4087_v37, %v3328_v38 }
 0x156   : > { %v3486_v58 = vld [vmem:[%s4922_s7 + $0x400] sm:$0xf]  ;;  %v4161_v62 = vld [vmem:[%s4922_s7 + $0x50c] sm:$0xf0]  ;;  %v3887_v4 = vor.u32 %v4229_v57, %v3886_v56  ;;  %2436 = vmatpush.bf16.msrb.mxu0 %v3503_v59  ;;  %2449 = vmatpush.bf16.msrb.mxu1 %v3631_v63  ;;  %v3456_v40 = vld [vmem:[%s4922_s7 + $0x3d0] sm:$0xf0] }
 0x157   : > { %v3614_v61 = vld [vmem:[%s4922_s7 + $0x500] sm:$0xf]  ;;  %v4193_v2 = vld [vmem:[%s4922_s7 + $0x60c] sm:$0xf0]  ;;  %v3487_v13 = vor.u32 %v4129_v60, %v3486_v58  ;;  %2462 = vmatpush.bf16.msrb.mxu2 %v3759_v0  ;;  %v4019_v47 = vld [vmem:[%s4922_s7 + $0xa4] sm:$0xf]  ;;  %v3459_v50 = vor.u32 %v4119_v39, %v3456_v40 }
 0x158   : > { %v3742_v1 = vld [vmem:[%s4922_s7 + $0x600] sm:$0xf]  ;;  %v4225_v6 = vld [vmem:[%s4922_s7 + $0x70c] sm:$0xf0]  ;;  %v3615_v20 = vor.u32 %v4161_v62, %v3614_v61  ;;  %2475 = vmatpush.bf16.msrb.mxu3 %v3887_v4  ;;  %v3056_v48 = vld [vmem:[%s4922_s7 + $0xb0] sm:$0xf0] }
 0x159   : > { %v3870_v5 = vld [vmem:[%s4922_s7 + $0x700] sm:$0xf]  ;;  %v812_v9 = vld [vmem:[%s5574_s0 + $0x10] sm:$0xff]  ;;  %v3743_v21 = vor.u32 %v4193_v2, %v3742_v1  ;;  %v4051_v49 = vld [vmem:[%s4922_s7 + $0x1a4] sm:$0xf]  ;;  %v3059_v56 = vor.u32 %v4019_v47, %v3056_v48 }
 0x15a   : > { %v1078_v24 = vunpack.c.l.b16 %v812_v9  ;;  %v3871_v26 = vor.u32 %v4225_v6, %v3870_v5  ;;  %v1079_v28 = vunpack.c.h.b16 %v812_v9  ;;  %2437 = vmatpush.bf16.msrb.mxu0 %v3487_v13  ;;  %2450 = vmatpush.bf16.msrb.mxu1 %v3615_v20  ;;  %v3184_v51 = vld [vmem:[%s4922_s7 + $0x1b0] sm:$0xf0]  ;;  %v4083_v52 = vld [vmem:[%s4922_s7 + $0x2a4] sm:$0xf] }
 0x15b   : > { %2463 = vmatpush.bf16.msrb.mxu2 %v3743_v21  ;;  %v3312_v53 = vld [vmem:[%s4922_s7 + $0x2b0] sm:$0xf0]  ;;  %v4115_v54 = vld [vmem:[%s4922_s7 + $0x3a4] sm:$0xf]  ;;  %v3187_v57 = vor.u32 %v4051_v49, %v3184_v51 }
 0x15c   : > { %v5094_v41 = vpack.c.b16 %v1078_v24, %v1078_v24  ;;  %2476 = vmatpush.bf16.msrb.mxu3 %v3871_v26  ;;  %v5098_v44 = vpack.c.b16 %v1079_v28, %v1079_v28  ;;  %v3440_v55 = vld [vmem:[%s4922_s7 + $0x3b0] sm:$0xf0]  ;;  %v3315_v58 = vor.u32 %v4083_v52, %v3312_v53  ;;  %v4015_v59 = vld [vmem:[%s4922_s7 + $0x84] sm:$0xf] }
 0x15d   : > { %v3040_v60 = vld [vmem:[%s4922_s7 + $0x90] sm:$0xf0]  ;;  %v4047_v61 = vld [vmem:[%s4922_s7 + $0x184] sm:$0xf]  ;;  %v3443_v62 = vor.u32 %v4115_v54, %v3440_v55 }
 0x15e   : > { %2482 = vmatpush.bf16.msra.mxu0 %v3091_v27  ;;  %2495 = vmatpush.bf16.msra.mxu1 %v3219_v29  ;;  %v3168_v63 = vld [vmem:[%s4922_s7 + $0x190] sm:$0xf0]  ;;  %v4079_v0 = vld [vmem:[%s4922_s7 + $0x284] sm:$0xf]  ;;  %v3043_v4 = vor.u32 %v4015_v59, %v3040_v60 }
 0x15f   : > { %2508 = vmatpush.bf16.msra.mxu2 %v3347_v30  ;;  %2438 = vmatmul.bf16.vlgmr.msrb.gmra.mxu0 %v5094_v41  ;;  %v3296_v1 = vld [vmem:[%s4922_s7 + $0x290] sm:$0xf0]  ;;  %v4111_v2 = vld [vmem:[%s4922_s7 + $0x384] sm:$0xf]  ;;  %v3171_v5 = vor.u32 %v4047_v61, %v3168_v63 }
 0x160   : > { %2521 = vmatpush.bf16.msra.mxu3 %v3475_v34  ;;  %2464 = vmatmul.bf16.vlgmr.msrb.gmra.mxu2 %v5087_v35  ;;  %v3424_v3 = vld [vmem:[%s4922_s7 + $0x390] sm:$0xf0]  ;;  %v3299_v6 = vor.u32 %v4079_v0, %v3296_v1  ;;  %v4011_v9 = vld [vmem:[%s4922_s7 + $0x64] sm:$0xf] }
 0x161   : > { %2477 = vmatmul.bf16.vlgmr.msrb.gmra.mxu3 %v5096_v42  ;;  %2451 = vmatmul.bf16.vlgmr.msrb.gmra.mxu1 %v5098_v44  ;;  %v3024_v10 = vld [vmem:[%s4922_s7 + $0x70] sm:$0xf0]  ;;  %v4043_v11 = vld [vmem:[%s4922_s7 + $0x164] sm:$0xf]  ;;  %v3427_v12 = vor.u32 %v4111_v2, %v3424_v3 }
 0x162   : > { %2483 = vmatpush.bf16.msra.mxu0 %v3075_v43  ;;  %2496 = vmatpush.bf16.msra.mxu1 %v3203_v45  ;;  %v3152_v13 = vld [vmem:[%s4922_s7 + $0x170] sm:$0xf0]  ;;  %v4075_v15 = vld [vmem:[%s4922_s7 + $0x264] sm:$0xf]  ;;  %v3027_v20 = vor.u32 %v4011_v9, %v3024_v10 }
 0x163   : > { %2509 = vmatpush.bf16.msra.mxu2 %v3331_v46  ;;  %v3280_v16 = vld [vmem:[%s4922_s7 + $0x270] sm:$0xf0]  ;;  %v4107_v17 = vld [vmem:[%s4922_s7 + $0x364] sm:$0xf]  ;;  %v3155_v21 = vor.u32 %v4043_v11, %v3152_v13 }
 0x164   : > { %2522 = vmatpush.bf16.msra.mxu3 %v3459_v50  ;;  %v3408_v18 = vld [vmem:[%s4922_s7 + $0x370] sm:$0xf0]  ;;  %v3283_v22 = vor.u32 %v4075_v15, %v3280_v16  ;;  %v4007_v23 = vld [vmem:[%s4922_s7 + $0x44] sm:$0xf] }
 0x165   : > { %v3008_v24 = vld [vmem:[%s4922_s7 + $0x50] sm:$0xf0]  ;;  %v4039_v25 = vld [vmem:[%s4922_s7 + $0x144] sm:$0xf]  ;;  %v3411_v26 = vor.u32 %v4107_v17, %v3408_v18 }
 0x166   : > { %2484 = vmatpush.bf16.msra.mxu0 %v3059_v56  ;;  %2497 = vmatpush.bf16.msra.mxu1 %v3187_v57  ;;  %v3136_v27 = vld [vmem:[%s4922_s7 + $0x150] sm:$0xf0]  ;;  %v4071_v28 = vld [vmem:[%s4922_s7 + $0x244] sm:$0xf]  ;;  %v3011_v32 = vor.u32 %v4007_v23, %v3008_v24 }
 0x167   : > { %2510 = vmatpush.bf16.msra.mxu2 %v3315_v58  ;;  %v3264_v29 = vld [vmem:[%s4922_s7 + $0x250] sm:$0xf0]  ;;  %v4103_v30 = vld [vmem:[%s4922_s7 + $0x344] sm:$0xf]  ;;  %v3139_v33 = vor.u32 %v4039_v25, %v3136_v27 }
 0x168   : > { %2523 = vmatpush.bf16.msra.mxu3 %v3443_v62  ;;  %v3392_v31 = vld [vmem:[%s4922_s7 + $0x350] sm:$0xf0]  ;;  %v3267_v34 = vor.u32 %v4071_v28, %v3264_v29  ;;  %v4003_v36 = vld [vmem:[%s4922_s7 + $0x24] sm:$0xf] }
 0x169   : > { %v2992_v37 = vld [vmem:[%s4922_s7 + $0x30] sm:$0xf0]  ;;  %v4035_v38 = vld [vmem:[%s4922_s7 + $0x124] sm:$0xf]  ;;  %v3395_v39 = vor.u32 %v4103_v30, %v3392_v31 }
 0x16a   : > { %2485 = vmatpush.bf16.msra.mxu0 %v3043_v4  ;;  %2498 = vmatpush.bf16.msra.mxu1 %v3171_v5  ;;  %v3120_v40 = vld [vmem:[%s4922_s7 + $0x130] sm:$0xf0]  ;;  %v4067_v43 = vld [vmem:[%s4922_s7 + $0x224] sm:$0xf]  ;;  %v2995_v48 = vor.u32 %v4003_v36, %v2992_v37 }
 0x16b   : > { %2511 = vmatpush.bf16.msra.mxu2 %v3299_v6  ;;  %v3248_v45 = vld [vmem:[%s4922_s7 + $0x230] sm:$0xf0]  ;;  %v4099_v46 = vld [vmem:[%s4922_s7 + $0x324] sm:$0xf]  ;;  %v3123_v51 = vor.u32 %v4035_v38, %v3120_v40 }
 0x16c   : > { %2524 = vmatpush.bf16.msra.mxu3 %v3427_v12  ;;  %v3376_v47 = vld [vmem:[%s4922_s7 + $0x330] sm:$0xf0]  ;;  %v3999_v49 = vld [vmem:[%s4922_s7 + $0x4] sm:$0xf]  ;;  %v3251_v52 = vor.u32 %v4067_v43, %v3248_v45 }
 0x16d   : > { %v2976_v50 = vld [vmem:[%s4922_s7 + $0x10] sm:$0xf0]  ;;  %v4031_v53 = vld [vmem:[%s4922_s7 + $0x104] sm:$0xf]  ;;  %v3379_v56 = vor.u32 %v4099_v46, %v3376_v47 }
 0x16e   : > { %2486 = vmatpush.bf16.msra.mxu0 %v3027_v20  ;;  %2499 = vmatpush.bf16.msra.mxu1 %v3155_v21  ;;  %v3104_v54 = vld [vmem:[%s4922_s7 + $0x110] sm:$0xf0]  ;;  %v4063_v55 = vld [vmem:[%s4922_s7 + $0x204] sm:$0xf]  ;;  %v2979_v63 = vor.u32 %v3999_v49, %v2976_v50 }
 0x16f   : > { %2512 = vmatpush.bf16.msra.mxu2 %v3283_v22  ;;  %v3232_v57 = vld [vmem:[%s4922_s7 + $0x210] sm:$0xf0]  ;;  %v4095_v58 = vld [vmem:[%s4922_s7 + $0x304] sm:$0xf]  ;;  %v3107_v3 = vor.u32 %v4031_v53, %v3104_v54 }
 0x170   : > { %2525 = vmatpush.bf16.msra.mxu3 %v3411_v26  ;;  %v3360_v59 = vld [vmem:[%s4922_s7 + $0x310] sm:$0xf0]  ;;  %v4155_v60 = vld [vmem:[%s4922_s7 + $0x4e4] sm:$0xf]  ;;  %v3235_v4 = vor.u32 %v4063_v55, %v3232_v57 }
 0x171   : > { %v3600_v61 = vld [vmem:[%s4922_s7 + $0x4f0] sm:$0xf0]  ;;  %v4187_v62 = vld [vmem:[%s4922_s7 + $0x5e4] sm:$0xf]  ;;  %v3363_v9 = vor.u32 %v4095_v58, %v3360_v59 }
 0x172   : > { %2487 = vmatpush.bf16.msra.mxu0 %v3011_v32  ;;  %2500 = vmatpush.bf16.msra.mxu1 %v3139_v33  ;;  %v3728_v0 = vld [vmem:[%s4922_s7 + $0x5f0] sm:$0xf0]  ;;  %v4219_v1 = vld [vmem:[%s4922_s7 + $0x6e4] sm:$0xf]  ;;  %v3603_v10 = vor.u32 %v4155_v60, %v3600_v61 }
 0x173   : > { %2513 = vmatpush.bf16.msra.mxu2 %v3267_v34  ;;  %v3856_v2 = vld [vmem:[%s4922_s7 + $0x6f0] sm:$0xf0]  ;;  %v4251_v5 = vld [vmem:[%s4922_s7 + $0x7e4] sm:$0xf]  ;;  %v3731_v11 = vor.u32 %v4187_v62, %v3728_v0 }
 0x174   : > { %2526 = vmatpush.bf16.msra.mxu3 %v3395_v39  ;;  %v3984_v6 = vld [vmem:[%s4922_s7 + $0x7f0] sm:$0xf0]  ;;  %v3859_v12 = vor.u32 %v4219_v1, %v3856_v2  ;;  %v4151_v13 = vld [vmem:[%s4922_s7 + $0x4c4] sm:$0xf] }
 0x175   : > { %v3584_v15 = vld [vmem:[%s4922_s7 + $0x4d0] sm:$0xf0]  ;;  %v4183_v16 = vld [vmem:[%s4922_s7 + $0x5c4] sm:$0xf]  ;;  %v3987_v17 = vor.u32 %v4251_v5, %v3984_v6 }
 0x176   : > { %2488 = vmatpush.bf16.msra.mxu0 %v2995_v48  ;;  %2501 = vmatpush.bf16.msra.mxu1 %v3123_v51  ;;  %v3712_v18 = vld [vmem:[%s4922_s7 + $0x5d0] sm:$0xf0]  ;;  %v4215_v20 = vld [vmem:[%s4922_s7 + $0x6c4] sm:$0xf]  ;;  %v3587_v24 = vor.u32 %v4151_v13, %v3584_v15 }
 0x177   : > { %2514 = vmatpush.bf16.msra.mxu2 %v3251_v52  ;;  %v3840_v21 = vld [vmem:[%s4922_s7 + $0x6d0] sm:$0xf0]  ;;  %v4247_v22 = vld [vmem:[%s4922_s7 + $0x7c4] sm:$0xf]  ;;  %v3715_v25 = vor.u32 %v4183_v16, %v3712_v18 }
 0x178   : > { %2527 = vmatpush.bf16.msra.mxu3 %v3379_v56  ;;  %v3968_v23 = vld [vmem:[%s4922_s7 + $0x7d0] sm:$0xf0]  ;;  %v3843_v26 = vor.u32 %v4215_v20, %v3840_v21  ;;  %v4147_v27 = vld [vmem:[%s4922_s7 + $0x4a4] sm:$0xf] }
 0x179   : > { %v3568_v28 = vld [vmem:[%s4922_s7 + $0x4b0] sm:$0xf0]  ;;  %v4179_v29 = vld [vmem:[%s4922_s7 + $0x5a4] sm:$0xf]  ;;  %v3971_v30 = vor.u32 %v4247_v22, %v3968_v23 }
 0x17a   : > { %2489 = vmatpush.bf16.msra.mxu0 %v2979_v63  ;;  %2502 = vmatpush.bf16.msra.mxu1 %v3107_v3  ;;  %v3696_v31 = vld [vmem:[%s4922_s7 + $0x5b0] sm:$0xf0]  ;;  %v4211_v32 = vld [vmem:[%s4922_s7 + $0x6a4] sm:$0xf]  ;;  %v3571_v37 = vor.u32 %v4147_v27, %v3568_v28 }
 0x17b   : > { %2515 = vmatpush.bf16.msra.mxu2 %v3235_v4  ;;  %v3824_v33 = vld [vmem:[%s4922_s7 + $0x6b0] sm:$0xf0]  ;;  %v4243_v34 = vld [vmem:[%s4922_s7 + $0x7a4] sm:$0xf]  ;;  %v3699_v38 = vor.u32 %v4179_v29, %v3696_v31 }
 0x17c   : > { %2528 = vmatpush.bf16.msra.mxu3 %v3363_v9  ;;  %v3952_v36 = vld [vmem:[%s4922_s7 + $0x7b0] sm:$0xf0]  ;;  %v3827_v39 = vor.u32 %v4211_v32, %v3824_v33  ;;  %v4143_v40 = vld [vmem:[%s4922_s7 + $0x484] sm:$0xf] }
 0x17d   : > { %2490 = vmatmul.bf16.vlgmr.msra.gmra.mxu0 %v5025_v14  ;;  %2503 = vmatmul.bf16.vlgmr.msra.gmra.mxu1 %v5031_v19  ;;  %v3552_v43 = vld [vmem:[%s4922_s7 + $0x490] sm:$0xf0]  ;;  %v4175_v45 = vld [vmem:[%s4922_s7 + $0x584] sm:$0xf]  ;;  %v3955_v46 = vor.u32 %v4243_v34, %v3952_v36 }
 0x17e   : > { %2534 = vmatpush.bf16.msrb.mxu0 %v3603_v10  ;;  %2547 = vmatpush.bf16.msrb.mxu1 %v3731_v11  ;;  %v3680_v47 = vld [vmem:[%s4922_s7 + $0x590] sm:$0xf0]  ;;  %v4207_v48 = vld [vmem:[%s4922_s7 + $0x684] sm:$0xf]  ;;  %v3555_v52 = vor.u32 %v4143_v40, %v3552_v43  ;;  %v3094_v43 = vld [vmem:[%s4922_s7 + $0xe8] sm:$0xf] }
 0x17f   : > { %2560 = vmatpush.bf16.msrb.mxu2 %v3859_v12  ;;  %2529 = vmatmul.bf16.vlgmr.msra.gmra.mxu3 %v5020_v8  ;;  %v3808_v49 = vld [vmem:[%s4922_s7 + $0x690] sm:$0xf0]  ;;  %v4239_v50 = vld [vmem:[%s4922_s7 + $0x784] sm:$0xf]  ;;  %v3683_v53 = vor.u32 %v4175_v45, %v3680_v47  ;;  %v4030_v45 = vld [vmem:[%s4922_s7 + $0xf4] sm:$0xf0] }
 0x180   : > { %2573 = vmatpush.bf16.msrb.mxu3 %v3987_v17  ;;  %2516 = vmatmul.bf16.vlgmr.msra.gmra.mxu2 %v5018_v7  ;;  %v3936_v51 = vld [vmem:[%s4922_s7 + $0x790] sm:$0xf0]  ;;  %v3811_v54 = vor.u32 %v4207_v48, %v3808_v49  ;;  %v4139_v55 = vld [vmem:[%s4922_s7 + $0x464] sm:$0xf]  ;;  %v4062_v48 = vld [vmem:[%s4922_s7 + $0x1f4] sm:$0xf0] }
 0x181   : > { %v3536_v56 = vld [vmem:[%s4922_s7 + $0x470] sm:$0xf0]  ;;  %v4171_v57 = vld [vmem:[%s4922_s7 + $0x564] sm:$0xf]  ;;  %v3939_v58 = vor.u32 %v4239_v50, %v3936_v51  ;;  %v3350_v49 = vld [vmem:[%s4922_s7 + $0x2e8] sm:$0xf] }
 0x182   : > { %2535 = vmatpush.bf16.msrb.mxu0 %v3587_v24  ;;  %2548 = vmatpush.bf16.msrb.mxu1 %v3715_v25  ;;  %v3664_v59 = vld [vmem:[%s4922_s7 + $0x570] sm:$0xf0]  ;;  %v4203_v60 = vld [vmem:[%s4922_s7 + $0x664] sm:$0xf]  ;;  %v3539_v0 = vor.u32 %v4139_v55, %v3536_v56  ;;  %v4094_v50 = vld [vmem:[%s4922_s7 + $0x2f4] sm:$0xf0]  ;;  %v3095_v56 = vor.u32 %v4030_v45, %v3094_v43 }
 0x183   : > { %2561 = vmatpush.bf16.msrb.mxu2 %v3843_v26  ;;  %v3792_v61 = vld [vmem:[%s4922_s7 + $0x670] sm:$0xf0]  ;;  %v4235_v62 = vld [vmem:[%s4922_s7 + $0x764] sm:$0xf]  ;;  %v3667_v1 = vor.u32 %v4171_v57, %v3664_v59  ;;  %v3078_v59 = vld [vmem:[%s4922_s7 + $0xc8] sm:$0xf] }
 0x184   : > { %2574 = vmatpush.bf16.msrb.mxu3 %v3971_v30  ;;  %v3920_v63 = vld [vmem:[%s4922_s7 + $0x770] sm:$0xf0]  ;;  %v3795_v2 = vor.u32 %v4203_v60, %v3792_v61  ;;  %v4135_v3 = vld [vmem:[%s4922_s7 + $0x444] sm:$0xf]  ;;  %v4026_v60 = vld [vmem:[%s4922_s7 + $0xd4] sm:$0xf0] }
 0x185   : > { %v3520_v4 = vld [vmem:[%s4922_s7 + $0x450] sm:$0xf0]  ;;  %v4167_v5 = vld [vmem:[%s4922_s7 + $0x544] sm:$0xf]  ;;  %v3923_v6 = vor.u32 %v4235_v62, %v3920_v63  ;;  %v3206_v61 = vld [vmem:[%s4922_s7 + $0x1c8] sm:$0xf] }
 0x186   : > { %2536 = vmatpush.bf16.msrb.mxu0 %v3571_v37  ;;  %2549 = vmatpush.bf16.msrb.mxu1 %v3699_v38  ;;  %v3648_v9 = vld [vmem:[%s4922_s7 + $0x550] sm:$0xf0]  ;;  %v4199_v10 = vld [vmem:[%s4922_s7 + $0x644] sm:$0xf]  ;;  %v3523_v15 = vor.u32 %v4135_v3, %v3520_v4  ;;  %v4058_v63 = vld [vmem:[%s4922_s7 + $0x1d4] sm:$0xf0]  ;;  %v3079_v4 = vor.u32 %v4026_v60, %v3078_v59 }
 0x187   : > { %2562 = vmatpush.bf16.msrb.mxu2 %v3827_v39  ;;  %v3776_v11 = vld [vmem:[%s4922_s7 + $0x650] sm:$0xf0]  ;;  %v4231_v12 = vld [vmem:[%s4922_s7 + $0x744] sm:$0xf]  ;;  %v3651_v16 = vor.u32 %v4167_v5, %v3648_v9  ;;  %v4122_v3 = vld [vmem:[%s4922_s7 + $0x3d4] sm:$0xf0]  ;;  %v3207_v5 = vor.u32 %v4058_v63, %v3206_v61 }
 0x188   : > { %2575 = vmatpush.bf16.msrb.mxu3 %v3955_v46  ;;  %v3904_v13 = vld [vmem:[%s4922_s7 + $0x750] sm:$0xf0]  ;;  %v3779_v17 = vor.u32 %v4199_v10, %v3776_v11  ;;  %v4131_v18 = vld [vmem:[%s4922_s7 + $0x424] sm:$0xf]  ;;  %v3222_v46 = vld [vmem:[%s4922_s7 + $0x1e8] sm:$0xf] }
 0x189   : > { %v3504_v20 = vld [vmem:[%s4922_s7 + $0x430] sm:$0xf0]  ;;  %v4163_v21 = vld [vmem:[%s4922_s7 + $0x524] sm:$0xf]  ;;  %v3907_v22 = vor.u32 %v4231_v12, %v3904_v13  ;;  %v3223_v57 = vor.u32 %v4062_v48, %v3222_v46  ;;  %v3062_v9 = vld [vmem:[%s4922_s7 + $0xa8] sm:$0xf] }
 0x18a   : > { %2537 = vmatpush.bf16.msrb.mxu0 %v3555_v52  ;;  %2550 = vmatpush.bf16.msrb.mxu1 %v3683_v53  ;;  %v3632_v23 = vld [vmem:[%s4922_s7 + $0x530] sm:$0xf0]  ;;  %v4195_v24 = vld [vmem:[%s4922_s7 + $0x624] sm:$0xf]  ;;  %v3507_v28 = vor.u32 %v4131_v18, %v3504_v20  ;;  %v3478_v53 = vld [vmem:[%s4922_s7 + $0x3e8] sm:$0xf] }
 0x18b   : > { %2563 = vmatpush.bf16.msrb.mxu2 %v3811_v54  ;;  %v3760_v25 = vld [vmem:[%s4922_s7 + $0x630] sm:$0xf0]  ;;  %v4227_v26 = vld [vmem:[%s4922_s7 + $0x724] sm:$0xf]  ;;  %v3635_v31 = vor.u32 %v4163_v21, %v3632_v23  ;;  %v4126_v54 = vld [vmem:[%s4922_s7 + $0x3f4] sm:$0xf0] }
 0x18c   : > { %2576 = vmatpush.bf16.msrb.mxu3 %v3939_v58  ;;  %v3888_v27 = vld [vmem:[%s4922_s7 + $0x730] sm:$0xf0]  ;;  %v4127_v29 = vld [vmem:[%s4922_s7 + $0x404] sm:$0xf]  ;;  %v3763_v32 = vor.u32 %v4195_v24, %v3760_v25  ;;  %v3351_v58 = vor.u32 %v4094_v50, %v3350_v49  ;;  %v3479_v62 = vor.u32 %v4126_v54, %v3478_v53  ;;  %v4022_v10 = vld [vmem:[%s4922_s7 + $0xb4] sm:$0xf0] }
 0x18d   : > { %v3488_v30 = vld [vmem:[%s4922_s7 + $0x410] sm:$0xf0]  ;;  %v4159_v33 = vld [vmem:[%s4922_s7 + $0x504] sm:$0xf]  ;;  %v3891_v37 = vor.u32 %v4227_v26, %v3888_v27  ;;  %v3190_v11 = vld [vmem:[%s4922_s7 + $0x1a8] sm:$0xf]  ;;  %v3063_v20 = vor.u32 %v4022_v10, %v3062_v9 }
 0x18e   : > { %2538 = vmatpush.bf16.msrb.mxu0 %v3539_v0  ;;  %2551 = vmatpush.bf16.msrb.mxu1 %v3667_v1  ;;  %v3616_v34 = vld [vmem:[%s4922_s7 + $0x510] sm:$0xf0]  ;;  %v4191_v36 = vld [vmem:[%s4922_s7 + $0x604] sm:$0xf]  ;;  %v3491_v47 = vor.u32 %v4127_v29, %v3488_v30  ;;  %v3334_v0 = vld [vmem:[%s4922_s7 + $0x2c8] sm:$0xf] }
 0x18f   : > { %2564 = vmatpush.bf16.msrb.mxu2 %v3795_v2  ;;  %v3744_v38 = vld [vmem:[%s4922_s7 + $0x610] sm:$0xf0]  ;;  %v4223_v39 = vld [vmem:[%s4922_s7 + $0x704] sm:$0xf]  ;;  %v3619_v51 = vor.u32 %v4159_v33, %v3616_v34  ;;  %v4090_v1 = vld [vmem:[%s4922_s7 + $0x2d4] sm:$0xf0] }
 0x190   : > { %2577 = vmatpush.bf16.msrb.mxu3 %v3923_v6  ;;  %v3872_v40 = vld [vmem:[%s4922_s7 + $0x710] sm:$0xf0]  ;;  %v3747_v52 = vor.u32 %v4191_v36, %v3744_v38  ;;  %v3462_v2 = vld [vmem:[%s4922_s7 + $0x3c8] sm:$0xf]  ;;  %v3335_v6 = vor.u32 %v4090_v1, %v3334_v0  ;;  %v4054_v13 = vld [vmem:[%s4922_s7 + $0x1b4] sm:$0xf0] }
 0x191   : > { %v3875_v55 = vor.u32 %v4223_v39, %v3872_v40  ;;  %v3463_v12 = vor.u32 %v4122_v3, %v3462_v2  ;;  %v4118_v18 = vld [vmem:[%s4922_s7 + $0x3b4] sm:$0xf0]  ;;  %v3191_v21 = vor.u32 %v4054_v13, %v3190_v11  ;;  %v3046_v23 = vld [vmem:[%s4922_s7 + $0x88] sm:$0xf] }
 0x192   : > { %2539 = vmatpush.bf16.msrb.mxu0 %v3523_v15  ;;  %2552 = vmatpush.bf16.msrb.mxu1 %v3651_v16  ;;  %v3318_v15 = vld [vmem:[%s4922_s7 + $0x2a8] sm:$0xf]  ;;  %v4086_v16 = vld [vmem:[%s4922_s7 + $0x2b4] sm:$0xf0] }
 0x193   : > { %2565 = vmatpush.bf16.msrb.mxu2 %v3779_v17  ;;  %v3446_v17 = vld [vmem:[%s4922_s7 + $0x3a8] sm:$0xf]  ;;  %v4018_v24 = vld [vmem:[%s4922_s7 + $0x94] sm:$0xf0] }
 0x194   : > { %2578 = vmatpush.bf16.msrb.mxu3 %v3907_v22  ;;  %v3319_v22 = vor.u32 %v4086_v16, %v3318_v15  ;;  %v3174_v25 = vld [vmem:[%s4922_s7 + $0x188] sm:$0xf]  ;;  %v3447_v26 = vor.u32 %v4118_v18, %v3446_v17  ;;  %v4050_v27 = vld [vmem:[%s4922_s7 + $0x194] sm:$0xf0] }
 0x195   : > { %v4082_v29 = vld [vmem:[%s4922_s7 + $0x294] sm:$0xf0]  ;;  %v3430_v30 = vld [vmem:[%s4922_s7 + $0x388] sm:$0xf]  ;;  %v3175_v33 = vor.u32 %v4050_v27, %v3174_v25 }
 0x196   : > { %2540 = vmatpush.bf16.msrb.mxu0 %v3507_v28  ;;  %2553 = vmatpush.bf16.msrb.mxu1 %v3635_v31  ;;  %v3302_v28 = vld [vmem:[%s4922_s7 + $0x288] sm:$0xf]  ;;  %v4114_v31 = vld [vmem:[%s4922_s7 + $0x394] sm:$0xf0] }
 0x197   : > { %2566 = vmatpush.bf16.msrb.mxu2 %v3763_v32  ;;  %v3047_v32 = vor.u32 %v4018_v24, %v3046_v23  ;;  %v3303_v34 = vor.u32 %v4082_v29, %v3302_v28  ;;  %v3030_v36 = vld [vmem:[%s4922_s7 + $0x68] sm:$0xf]  ;;  %v3431_v39 = vor.u32 %v4114_v31, %v3430_v30  ;;  %v4046_v40 = vld [vmem:[%s4922_s7 + $0x174] sm:$0xf0] }
 0x198   : > { %2579 = vmatpush.bf16.msrb.mxu3 %v3891_v37  ;;  %v4014_v37 = vld [vmem:[%s4922_s7 + $0x74] sm:$0xf0]  ;;  %v3158_v38 = vld [vmem:[%s4922_s7 + $0x168] sm:$0xf] }
 0x199   : > { %v3286_v43 = vld [vmem:[%s4922_s7 + $0x268] sm:$0xf]  ;;  %v4078_v45 = vld [vmem:[%s4922_s7 + $0x274] sm:$0xf0]  ;;  %v3031_v48 = vor.u32 %v4014_v37, %v3030_v36  ;;  %v3159_v49 = vor.u32 %v4046_v40, %v3158_v38 }
 0x19a   : > { %2541 = vmatpush.bf16.msrb.mxu0 %v3491_v47  ;;  %2554 = vmatpush.bf16.msrb.mxu1 %v3619_v51  ;;  %v3414_v46 = vld [vmem:[%s4922_s7 + $0x368] sm:$0xf]  ;;  %v4110_v47 = vld [vmem:[%s4922_s7 + $0x374] sm:$0xf0]  ;;  %v3287_v50 = vor.u32 %v4078_v45, %v3286_v43 }
 0x19b   : > { %2567 = vmatpush.bf16.msrb.mxu2 %v3747_v52  ;;  %v3014_v51 = vld [vmem:[%s4922_s7 + $0x48] sm:$0xf]  ;;  %v4010_v52 = vld [vmem:[%s4922_s7 + $0x54] sm:$0xf0]  ;;  %v3415_v54 = vor.u32 %v4110_v47, %v3414_v46 }
 0x19c   : > { %2580 = vmatpush.bf16.msrb.mxu3 %v3875_v55  ;;  %v3142_v53 = vld [vmem:[%s4922_s7 + $0x148] sm:$0xf]  ;;  %v4042_v55 = vld [vmem:[%s4922_s7 + $0x154] sm:$0xf0]  ;;  %v3015_v60 = vor.u32 %v4010_v52, %v3014_v51 }
 0x19d   : > { %2542 = vmatmul.bf16.vlgmr.msrb.gmra.mxu0 %v5094_v41  ;;  %2555 = vmatmul.bf16.vlgmr.msrb.gmra.mxu1 %v5098_v44  ;;  %v4106_v59 = vld [vmem:[%s4922_s7 + $0x354] sm:$0xf0]  ;;  %v3143_v61 = vor.u32 %v4042_v55, %v3142_v53  ;;  %v2998_v63 = vld [vmem:[%s4922_s7 + $0x28] sm:$0xf] }
 0x19e   : > { %2586 = vmatpush.bf16.msra.mxu0 %v3095_v56  ;;  %2599 = vmatpush.bf16.msra.mxu1 %v3223_v57  ;;  %v3270_v56 = vld [vmem:[%s4922_s7 + $0x248] sm:$0xf]  ;;  %v4074_v57 = vld [vmem:[%s4922_s7 + $0x254] sm:$0xf0] }
 0x19f   : > { %2612 = vmatpush.bf16.msra.mxu2 %v3351_v58  ;;  %2581 = vmatmul.bf16.vlgmr.msrb.gmra.mxu3 %v5096_v42  ;;  %v3398_v58 = vld [vmem:[%s4922_s7 + $0x348] sm:$0xf]  ;;  %v4006_v0 = vld [vmem:[%s4922_s7 + $0x34] sm:$0xf0] }
 0x1a0   : > { %2625 = vmatpush.bf16.msra.mxu3 %v3479_v62  ;;  %2568 = vmatmul.bf16.vlgmr.msrb.gmra.mxu2 %v5087_v35  ;;  %v3271_v62 = vor.u32 %v4074_v57, %v3270_v56  ;;  %v3126_v1 = vld [vmem:[%s4922_s7 + $0x128] sm:$0xf]  ;;  %v3399_v2 = vor.u32 %v4106_v59, %v3398_v58  ;;  %v4038_v3 = vld [vmem:[%s4922_s7 + $0x134] sm:$0xf0]  ;;  %v2999_v10 = vor.u32 %v4006_v0, %v2998_v63 }
 0x1a1   : > { %v4102_v9 = vld [vmem:[%s4922_s7 + $0x334] sm:$0xf0]  ;;  %v2982_v11 = vld [vmem:[%s4922_s7 + $0x8] sm:$0xf]  ;;  %v3127_v13 = vor.u32 %v4038_v3, %v3126_v1 }
 0x1a2   : > { %2587 = vmatpush.bf16.msra.mxu0 %v3079_v4  ;;  %2600 = vmatpush.bf16.msra.mxu1 %v3207_v5  ;;  %v3254_v4 = vld [vmem:[%s4922_s7 + $0x228] sm:$0xf]  ;;  %v4070_v5 = vld [vmem:[%s4922_s7 + $0x234] sm:$0xf0] }
 0x1a3   : > { %2613 = vmatpush.bf16.msra.mxu2 %v3335_v6  ;;  %v3382_v6 = vld [vmem:[%s4922_s7 + $0x328] sm:$0xf]  ;;  %v3255_v15 = vor.u32 %v4070_v5, %v3254_v4  ;;  %v4034_v17 = vld [vmem:[%s4922_s7 + $0x114] sm:$0xf0] }
 0x1a4   : > { %2626 = vmatpush.bf16.msra.mxu3 %v3463_v12  ;;  %v4002_v12 = vld [vmem:[%s4922_s7 + $0x14] sm:$0xf0]  ;;  %v3110_v16 = vld [vmem:[%s4922_s7 + $0x108] sm:$0xf] }
 0x1a5   : > { %v3238_v18 = vld [vmem:[%s4922_s7 + $0x208] sm:$0xf]  ;;  %v4098_v23 = vld [vmem:[%s4922_s7 + $0x314] sm:$0xf0]  ;;  %v2983_v27 = vor.u32 %v4002_v12, %v2982_v11  ;;  %v3111_v31 = vor.u32 %v4034_v17, %v3110_v16 }
 0x1a6   : > { %2588 = vmatpush.bf16.msra.mxu0 %v3063_v20  ;;  %2601 = vmatpush.bf16.msra.mxu1 %v3191_v21  ;;  %v3383_v20 = vor.u32 %v4102_v9, %v3382_v6  ;;  %v4066_v21 = vld [vmem:[%s4922_s7 + $0x214] sm:$0xf0]  ;;  %v3606_v24 = vld [vmem:[%s4922_s7 + $0x4e8] sm:$0xf] }
 0x1a7   : > { %2614 = vmatpush.bf16.msra.mxu2 %v3319_v22  ;;  %v3366_v22 = vld [vmem:[%s4922_s7 + $0x308] sm:$0xf]  ;;  %v4158_v25 = vld [vmem:[%s4922_s7 + $0x4f4] sm:$0xf0] }
 0x1a8   : > { %2627 = vmatpush.bf16.msra.mxu3 %v3447_v26  ;;  %v3734_v26 = vld [vmem:[%s4922_s7 + $0x5e8] sm:$0xf]  ;;  %v4190_v28 = vld [vmem:[%s4922_s7 + $0x5f4] sm:$0xf0]  ;;  %v3367_v36 = vor.u32 %v4098_v23, %v3366_v22  ;;  %v3607_v37 = vor.u32 %v4158_v25, %v3606_v24 }
 0x1a9   : > { %v3862_v29 = vld [vmem:[%s4922_s7 + $0x6e8] sm:$0xf]  ;;  %v4222_v30 = vld [vmem:[%s4922_s7 + $0x6f4] sm:$0xf0]  ;;  %v3735_v38 = vor.u32 %v4190_v28, %v3734_v26 }
 0x1aa   : > { %2589 = vmatpush.bf16.msra.mxu0 %v3047_v32  ;;  %2602 = vmatpush.bf16.msra.mxu1 %v3175_v33  ;;  %v3239_v32 = vor.u32 %v4066_v21, %v3238_v18  ;;  %v3990_v33 = vld [vmem:[%s4922_s7 + $0x7e8] sm:$0xf]  ;;  %v4154_v43 = vld [vmem:[%s4922_s7 + $0x4d4] sm:$0xf0] }
 0x1ab   : > { %2615 = vmatpush.bf16.msra.mxu2 %v3303_v34  ;;  %v4254_v34 = vld [vmem:[%s4922_s7 + $0x7f4] sm:$0xf0]  ;;  %v3590_v40 = vld [vmem:[%s4922_s7 + $0x4c8] sm:$0xf] }
 0x1ac   : > { %2628 = vmatpush.bf16.msra.mxu3 %v3431_v39  ;;  %v3863_v39 = vor.u32 %v4222_v30, %v3862_v29  ;;  %v3718_v45 = vld [vmem:[%s4922_s7 + $0x5c8] sm:$0xf]  ;;  %v3991_v46 = vor.u32 %v4254_v34, %v3990_v33  ;;  %v4186_v47 = vld [vmem:[%s4922_s7 + $0x5d4] sm:$0xf0]  ;;  %v3591_v52 = vor.u32 %v4154_v43, %v3590_v40 }
 0x1ad   : > { %v4250_v51 = vld [vmem:[%s4922_s7 + $0x7d4] sm:$0xf0]  ;;  %v3719_v53 = vor.u32 %v4186_v47, %v3718_v45  ;;  %v3574_v55 = vld [vmem:[%s4922_s7 + $0x4a8] sm:$0xf] }
 0x1ae   : > { %2590 = vmatpush.bf16.msra.mxu0 %v3031_v48  ;;  %2603 = vmatpush.bf16.msra.mxu1 %v3159_v49  ;;  %v3846_v48 = vld [vmem:[%s4922_s7 + $0x6c8] sm:$0xf]  ;;  %v4218_v49 = vld [vmem:[%s4922_s7 + $0x6d4] sm:$0xf0] }
 0x1af   : > { %2616 = vmatpush.bf16.msra.mxu2 %v3287_v50  ;;  %v3974_v50 = vld [vmem:[%s4922_s7 + $0x7c8] sm:$0xf]  ;;  %v4150_v56 = vld [vmem:[%s4922_s7 + $0x4b4] sm:$0xf0] }
 0x1b0   : > { %2629 = vmatpush.bf16.msra.mxu3 %v3415_v54  ;;  %v3847_v54 = vor.u32 %v4218_v49, %v3846_v48  ;;  %v3702_v57 = vld [vmem:[%s4922_s7 + $0x5a8] sm:$0xf]  ;;  %v3975_v58 = vor.u32 %v4250_v51, %v3974_v50  ;;  %v4182_v59 = vld [vmem:[%s4922_s7 + $0x5b4] sm:$0xf0]  ;;  %v3575_v0 = vor.u32 %v4150_v56, %v3574_v55 }
 0x1b1   : > { %v4246_v63 = vld [vmem:[%s4922_s7 + $0x7b4] sm:$0xf0]  ;;  %v3703_v1 = vor.u32 %v4182_v59, %v3702_v57  ;;  %v3558_v3 = vld [vmem:[%s4922_s7 + $0x488] sm:$0xf] }
 0x1b2   : > { %2591 = vmatpush.bf16.msra.mxu0 %v3015_v60  ;;  %2604 = vmatpush.bf16.msra.mxu1 %v3143_v61  ;;  %v3830_v60 = vld [vmem:[%s4922_s7 + $0x6a8] sm:$0xf]  ;;  %v4214_v61 = vld [vmem:[%s4922_s7 + $0x6b4] sm:$0xf0] }
 0x1b3   : > { %2617 = vmatpush.bf16.msra.mxu2 %v3271_v62  ;;  %v3958_v62 = vld [vmem:[%s4922_s7 + $0x7a8] sm:$0xf]  ;;  %v4146_v4 = vld [vmem:[%s4922_s7 + $0x494] sm:$0xf0] }
 0x1b4   : > { %2630 = vmatpush.bf16.msra.mxu3 %v3399_v2  ;;  %v3831_v2 = vor.u32 %v4214_v61, %v3830_v60  ;;  %v3686_v5 = vld [vmem:[%s4922_s7 + $0x588] sm:$0xf]  ;;  %v3959_v6 = vor.u32 %v4246_v63, %v3958_v62  ;;  %v4178_v9 = vld [vmem:[%s4922_s7 + $0x594] sm:$0xf0] }
 0x1b5   : > { %v4210_v11 = vld [vmem:[%s4922_s7 + $0x694] sm:$0xf0]  ;;  %v3942_v12 = vld [vmem:[%s4922_s7 + $0x788] sm:$0xf]  ;;  %v3687_v16 = vor.u32 %v4178_v9, %v3686_v5 }
 0x1b6   : > { %2592 = vmatpush.bf16.msra.mxu0 %v2999_v10  ;;  %2605 = vmatpush.bf16.msra.mxu1 %v3127_v13  ;;  %v3814_v10 = vld [vmem:[%s4922_s7 + $0x688] sm:$0xf]  ;;  %v4242_v13 = vld [vmem:[%s4922_s7 + $0x794] sm:$0xf0] }
 0x1b7   : > { %2618 = vmatpush.bf16.msra.mxu2 %v3255_v15  ;;  %v3559_v15 = vor.u32 %v4146_v4, %v3558_v3  ;;  %v3815_v17 = vor.u32 %v4210_v11, %v3814_v10  ;;  %v3542_v18 = vld [vmem:[%s4922_s7 + $0x468] sm:$0xf]  ;;  %v3943_v22 = vor.u32 %v4242_v13, %v3942_v12  ;;  %v4174_v23 = vld [vmem:[%s4922_s7 + $0x574] sm:$0xf0]  ;;  %v4028_v12 = vld [vmem:[%s4922_s7 + $0xec] sm:$0xf] }
 0x1b8   : > { %2631 = vmatpush.bf16.msra.mxu3 %v3383_v20  ;;  %v4142_v20 = vld [vmem:[%s4922_s7 + $0x474] sm:$0xf0]  ;;  %v3670_v21 = vld [vmem:[%s4922_s7 + $0x568] sm:$0xf]  ;;  %v3096_v13 = vld [vmem:[%s4922_s7 + $0xf8] sm:$0xf0] }
 0x1b9   : > { %v3798_v24 = vld [vmem:[%s4922_s7 + $0x668] sm:$0xf]  ;;  %v4206_v25 = vld [vmem:[%s4922_s7 + $0x674] sm:$0xf0]  ;;  %v3543_v28 = vor.u32 %v4142_v20, %v3542_v18  ;;  %v3671_v30 = vor.u32 %v4174_v23, %v3670_v21  ;;  %v4092_v18 = vld [vmem:[%s4922_s7 + $0x2ec] sm:$0xf] }
 0x1ba   : > { %2593 = vmatpush.bf16.msra.mxu0 %v2983_v27  ;;  %2606 = vmatpush.bf16.msra.mxu1 %v3111_v31  ;;  %v3926_v26 = vld [vmem:[%s4922_s7 + $0x768] sm:$0xf]  ;;  %v4238_v27 = vld [vmem:[%s4922_s7 + $0x774] sm:$0xf0]  ;;  %v3799_v31 = vor.u32 %v4206_v25, %v3798_v24  ;;  %v3352_v20 = vld [vmem:[%s4922_s7 + $0x2f8] sm:$0xf0] }
 0x1bb   : > { %2619 = vmatpush.bf16.msra.mxu2 %v3239_v32  ;;  %v3526_v32 = vld [vmem:[%s4922_s7 + $0x448] sm:$0xf]  ;;  %v4138_v33 = vld [vmem:[%s4922_s7 + $0x454] sm:$0xf0]  ;;  %v4124_v23 = vld [vmem:[%s4922_s7 + $0x3ec] sm:$0xf] }
 0x1bc   : > { %2632 = vmatpush.bf16.msra.mxu3 %v3367_v36  ;;  %v3654_v34 = vld [vmem:[%s4922_s7 + $0x548] sm:$0xf]  ;;  %v4202_v40 = vld [vmem:[%s4922_s7 + $0x654] sm:$0xf0]  ;;  %v3480_v24 = vld [vmem:[%s4922_s7 + $0x3f8] sm:$0xf0] }
 0x1bd   : > { %2594 = vmatmul.bf16.vlgmr.msra.gmra.mxu0 %v5025_v14  ;;  %2607 = vmatmul.bf16.vlgmr.msra.gmra.mxu1 %v5031_v19  ;;  %v3910_v43 = vld [vmem:[%s4922_s7 + $0x748] sm:$0xf]  ;;  %v4234_v45 = vld [vmem:[%s4922_s7 + $0x754] sm:$0xf0] }
 0x1be   : > { %2638 = vmatpush.bf16.msrb.mxu0 %v3607_v37  ;;  %2651 = vmatpush.bf16.msrb.mxu1 %v3735_v38  ;;  %v3927_v37 = vor.u32 %v4238_v27, %v3926_v26  ;;  %v4170_v38 = vld [vmem:[%s4922_s7 + $0x554] sm:$0xf0]  ;;  %v3510_v49 = vld [vmem:[%s4922_s7 + $0x428] sm:$0xf]  ;;  %v3099_v27 = vor.u32 %v4028_v12, %v3096_v13 }
 0x1bf   : > { %2664 = vmatpush.bf16.msrb.mxu2 %v3863_v39  ;;  %2633 = vmatmul.bf16.vlgmr.msra.gmra.mxu3 %v5020_v8  ;;  %v3782_v39 = vld [vmem:[%s4922_s7 + $0x648] sm:$0xf]  ;;  %v3655_v47 = vor.u32 %v4170_v38, %v3654_v34  ;;  %v4134_v50 = vld [vmem:[%s4922_s7 + $0x434] sm:$0xf0]  ;;  %v3080_v34 = vld [vmem:[%s4922_s7 + $0xd8] sm:$0xf0]  ;;  %v3483_v38 = vor.u32 %v4124_v23, %v3480_v24 }
 0x1c0   : > { %2677 = vmatpush.bf16.msrb.mxu3 %v3991_v46  ;;  %2620 = vmatmul.bf16.vlgmr.msra.gmra.mxu2 %v5018_v7  ;;  %v3527_v46 = vor.u32 %v4138_v33, %v3526_v32  ;;  %v3783_v48 = vor.u32 %v4202_v40, %v3782_v39  ;;  %v3638_v51 = vld [vmem:[%s4922_s7 + $0x528] sm:$0xf]  ;;  %v4198_v56 = vld [vmem:[%s4922_s7 + $0x634] sm:$0xf0]  ;;  %v3511_v60 = vor.u32 %v4134_v50, %v3510_v49  ;;  %v4024_v33 = vld [vmem:[%s4922_s7 + $0xcc] sm:$0xf] }
 0x1c1   : > { %v3766_v55 = vld [vmem:[%s4922_s7 + $0x628] sm:$0xf]  ;;  %v5352_v57 = vpop.f32.mrf.mxu3  ;;  %v4230_v59 = vld [vmem:[%s4922_s7 + $0x734] sm:$0xf0]  ;;  %v3208_v39 = vld [vmem:[%s4922_s7 + $0x1d8] sm:$0xf0] }
 0x1c2   : > { %2639 = vmatpush.bf16.msrb.mxu0 %v3591_v52  ;;  %2652 = vmatpush.bf16.msrb.mxu1 %v3719_v53  ;;  %v5347_v52 = vpop.f32.mrf.mxu2  ;;  %v3911_v53 = vor.u32 %v4234_v45, %v3910_v43  ;;  %v3494_v61 = vld [vmem:[%s4922_s7 + $0x408] sm:$0xf]  ;;  %v4130_v62 = vld [vmem:[%s4922_s7 + $0x414] sm:$0xf0]  ;;  %v4088_v40 = vld [vmem:[%s4922_s7 + $0x2cc] sm:$0xf] }
 0x1c3   : > { %2665 = vmatpush.bf16.msrb.mxu2 %v3847_v54  ;;  %v4166_v54 = vld [vmem:[%s4922_s7 + $0x534] sm:$0xf0]  ;;  %v3750_v4 = vld [vmem:[%s4922_s7 + $0x608] sm:$0xf]  ;;  %v3336_v43 = vld [vmem:[%s4922_s7 + $0x2d8] sm:$0xf0] }
 0x1c4   : > { %2678 = vmatpush.bf16.msrb.mxu3 %v3975_v58  ;;  %v3894_v58 = vld [vmem:[%s4922_s7 + $0x728] sm:$0xf]  ;;  %v4162_v3 = vld [vmem:[%s4922_s7 + $0x514] sm:$0xf0]  ;;  %v4120_v45 = vld [vmem:[%s4922_s7 + $0x3cc] sm:$0xf] }
 0x1c5   : > { %v4194_v9 = vld [vmem:[%s4922_s7 + $0x614] sm:$0xf0]  ;;  %v3878_v10 = vld [vmem:[%s4922_s7 + $0x708] sm:$0xf]  ;;  %v4020_v49 = vld [vmem:[%s4922_s7 + $0xac] sm:$0xf] }
 0x1c6   : > { %2640 = vmatpush.bf16.msrb.mxu0 %v3575_v0  ;;  %2653 = vmatpush.bf16.msrb.mxu1 %v3703_v1  ;;  %v5332_v29 = vpop.f32.mrf.mxu0  ;;  %v5337_v36 = vpop.f32.mrf.mxu1  ;;  %v3639_v0 = vor.u32 %v4166_v54, %v3638_v51  ;;  %v3767_v1 = vor.u32 %v4198_v56, %v3766_v55  ;;  %v4226_v11 = vld [vmem:[%s4922_s7 + $0x714] sm:$0xf0]  ;;  %v3064_v50 = vld [vmem:[%s4922_s7 + $0xb8] sm:$0xf0]  ;;  %v4052_v51 = vld [vmem:[%s4922_s7 + $0x1ac] sm:$0xf] }
 0x1c7   : > { %2666 = vmatpush.bf16.msrb.mxu2 %v3831_v2  ;;  %v3622_v2 = vld [vmem:[%s4922_s7 + $0x508] sm:$0xf]  ;;  %v3879_v26 = vor.u32 %v4226_v11, %v3878_v10  ;;  %v2401_v32 = vadd.f32 %v5337_v36, %v5332_v29  ;;  %v3083_v29 = vor.u32 %v4024_v33, %v3080_v34  ;;  %v3192_v54 = vld [vmem:[%s4922_s7 + $0x1b8] sm:$0xf0]  ;;  %v4084_v55 = vld [vmem:[%s4922_s7 + $0x2ac] sm:$0xf] }
 0x1c8   : > { %2679 = vmatpush.bf16.msrb.mxu3 %v3959_v6  ;;  %v3895_v6 = vor.u32 %v4230_v59, %v3894_v58  ;;  %v3623_v21 = vor.u32 %v4162_v3, %v3622_v2  ;;  %v3320_v56 = vld [vmem:[%s4922_s7 + $0x2b8] sm:$0xf0]  ;;  %v3067_v59 = vor.u32 %v4020_v49, %v3064_v50  ;;  %v4108_v24 = vld [vmem:[%s4922_s7 + $0x36c] sm:$0xf] }
 0x1c9   : > { %v2414_v36 = vadd.f32 %v5347_v52, %v2401_v32  ;;  %v4116_v52 = vld [vmem:[%s4922_s7 + $0x3ac] sm:$0xf]  ;;  %v3448_v58 = vld [vmem:[%s4922_s7 + $0x3b8] sm:$0xf0] }
 0x1ca   : > { %2641 = vmatpush.bf16.msrb.mxu0 %v3559_v15  ;;  %2654 = vmatpush.bf16.msrb.mxu1 %v3687_v16  ;;  %v4060_v15 = vld [vmem:[%s4922_s7 + $0x1ec] sm:$0xf]  ;;  %v3495_v16 = vor.u32 %v4130_v62, %v3494_v61  ;;  %v2415_v25 = vpop.f32.mrf.mxu2  ;;  %v3195_v61 = vor.u32 %v4052_v51, %v3192_v54  ;;  %v3323_v62 = vor.u32 %v4084_v55, %v3320_v56  ;;  %v3176_v3 = vld [vmem:[%s4922_s7 + $0x198] sm:$0xf0] }
 0x1cb   : > { %2667 = vmatpush.bf16.msrb.mxu2 %v3815_v17  ;;  %v3224_v17 = vld [vmem:[%s4922_s7 + $0x1f8] sm:$0xf0]  ;;  %v3451_v2 = vor.u32 %v4116_v52, %v3448_v58  ;;  %v4004_v56 = vld [vmem:[%s4922_s7 + $0x2c] sm:$0xf] }
 0x1cc   : > { %2680 = vmatpush.bf16.msrb.mxu3 %v3943_v22  ;;  %v3751_v22 = vor.u32 %v4194_v9, %v3750_v4  ;;  %v4080_v4 = vld [vmem:[%s4922_s7 + $0x28c] sm:$0xf]  ;;  %v3432_v9 = vld [vmem:[%s4922_s7 + $0x398] sm:$0xf0] }
 0x1cd   : > { %v3288_v23 = vld [vmem:[%s4922_s7 + $0x278] sm:$0xf0]  ;;  %v4036_v58 = vld [vmem:[%s4922_s7 + $0x12c] sm:$0xf] }
 0x1ce   : > { %2642 = vmatpush.bf16.msrb.mxu0 %v3543_v28  ;;  %2655 = vmatpush.bf16.msrb.mxu1 %v3671_v30  ;;  %v2389_v63 = vpop.f32.mrf.mxu0  ;;  %v2402_v5 = vpop.f32.mrf.mxu1  ;;  %v3227_v30 = vor.u32 %v4060_v15, %v3224_v17  ;;  %v4012_v15 = vld [vmem:[%s4922_s7 + $0x6c] sm:$0xf]  ;;  %v3416_v25 = vld [vmem:[%s4922_s7 + $0x378] sm:$0xf0] }
 0x1cf   : > { %2668 = vmatpush.bf16.msrb.mxu2 %v3799_v31  ;;  %v2428_v28 = vpop.f32.mrf.mxu3  ;;  %v3355_v31 = vor.u32 %v4092_v18, %v3352_v20  ;;  %v4016_v63 = vld [vmem:[%s4922_s7 + $0x8c] sm:$0xf]  ;;  %v3304_v5 = vld [vmem:[%s4922_s7 + $0x298] sm:$0xf0] }
 0x1d0   : > { %2681 = vmatpush.bf16.msrb.mxu3 %v3927_v37  ;;  %v4056_v37 = vld [vmem:[%s4922_s7 + $0x1cc] sm:$0xf]  ;;  %v3307_v12 = vor.u32 %v4080_v4, %v3304_v5  ;;  %v3000_v52 = vld [vmem:[%s4922_s7 + $0x38] sm:$0xf0] }
 0x1d1   : > { %v4044_v17 = vld [vmem:[%s4922_s7 + $0x16c] sm:$0xf]  ;;  %v3003_v5 = vor.u32 %v4004_v56, %v3000_v52 }
 0x1d2   : > { %2643 = vmatpush.bf16.msrb.mxu0 %v3527_v46  ;;  %2656 = vmatpush.bf16.msrb.mxu1 %v3655_v47  ;;  %v3464_v46 = vld [vmem:[%s4922_s7 + $0x3d8] sm:$0xf0]  ;;  %v3211_v47 = vor.u32 %v4056_v37, %v3208_v39  ;;  %v4040_v37 = vld [vmem:[%s4922_s7 + $0x14c] sm:$0xf]  ;;  %v5439_v39 = vld [vmem:[%s798_s28] sm:$0xf] }
 0x1d3   : > { %2669 = vmatpush.bf16.msrb.mxu2 %v3783_v48  ;;  %v3339_v48 = vor.u32 %v4088_v40, %v3336_v43  ;;  %v3419_v40 = vor.u32 %v4108_v24, %v3416_v25  ;;  %v2810_v51 = vperm.slane %v5439_v39, 0  ;;  %v4188_v24 = vld [vmem:[%s4922_s7 + $0x5ec] sm:$0xf] }
 0x1d4   : > { %2682 = vmatpush.bf16.msrb.mxu3 %v3911_v53  ;;  %v3467_v53 = vor.u32 %v4120_v45, %v3464_v46  ;;  %v4072_v45 = vld [vmem:[%s4922_s7 + $0x24c] sm:$0xf]  ;;  %v3272_v46 = vld [vmem:[%s4922_s7 + $0x258] sm:$0xf0] }
 0x1d5   : > { %v3275_v55 = vor.u32 %v4072_v45, %v3272_v46  ;;  %v4152_v46 = vld [vmem:[%s4922_s7 + $0x4cc] sm:$0xf] }
 0x1d6   : > { %2644 = vmatpush.bf16.msrb.mxu0 %v3511_v60  ;;  %2657 = vmatpush.bf16.msrb.mxu1 %v3639_v0  ;;  %v2427_v60 = vadd.f32 %v5352_v57, %v2414_v36  ;;  %v3048_v0 = vld [vmem:[%s4922_s7 + $0x98] sm:$0xf0]  ;;  %v4148_v52 = vld [vmem:[%s4922_s7 + $0x4ac] sm:$0xf] }
 0x1d7   : > { %2670 = vmatpush.bf16.msrb.mxu2 %v3767_v1  ;;  %v4048_v1 = vld [vmem:[%s4922_s7 + $0x18c] sm:$0xf]  ;;  %v3051_v57 = vor.u32 %v4016_v63, %v3048_v0  ;;  %v3256_v0 = vld [vmem:[%s4922_s7 + $0x238] sm:$0xf0] }
 0x1d8   : > { %2683 = vmatpush.bf16.msrb.mxu3 %v3895_v6  ;;  %v4112_v6 = vld [vmem:[%s4922_s7 + $0x38c] sm:$0xf]  ;;  %v3179_v11 = vor.u32 %v4048_v1, %v3176_v3 }
 0x1d9   : > { %v3435_v20 = vor.u32 %v4112_v6, %v3432_v9  ;;  %v4068_v63 = vld [vmem:[%s4922_s7 + $0x22c] sm:$0xf]  ;;  %v2984_v6 = vld [vmem:[%s4922_s7 + $0x18] sm:$0xf0] }
 0x1da   : > { %2645 = vmatpush.bf16.msrb.mxu0 %v3495_v16  ;;  %2658 = vmatpush.bf16.msrb.mxu1 %v3623_v21  ;;  %v3032_v16 = vld [vmem:[%s4922_s7 + $0x78] sm:$0xf0]  ;;  %v4100_v1 = vld [vmem:[%s4922_s7 + $0x32c] sm:$0xf] }
 0x1db   : > { %2671 = vmatpush.bf16.msrb.mxu2 %v3751_v22  ;;  %v3160_v21 = vld [vmem:[%s4922_s7 + $0x178] sm:$0xf0]  ;;  %v4076_v22 = vld [vmem:[%s4922_s7 + $0x26c] sm:$0xf]  ;;  %v3035_v28 = vor.u32 %v4012_v15, %v3032_v16 }
 0x1dc   : > { %2684 = vmatpush.bf16.msrb.mxu3 %v3879_v26  ;;  %v2439_v10 = vpop.f32.mrf.mxu0  ;;  %v3163_v32 = vor.u32 %v4044_v17, %v3160_v21  ;;  %v3291_v33 = vor.u32 %v4076_v22, %v3288_v23  ;;  %v4000_v3 = vld [vmem:[%s4922_s7 + $0xc] sm:$0xf]  ;;  %v3608_v23 = vld [vmem:[%s4922_s7 + $0x4f8] sm:$0xf0] }
 0x1dd   : > { %2646 = vmatmul.bf16.vlgmr.msrb.gmra.mxu0 %v5094_v41  ;;  %2659 = vmatmul.bf16.vlgmr.msrb.gmra.mxu1 %v5098_v44  ;;  %v2440_v13 = vadd.f32 %v2439_v10, %v2427_v60  ;;  %v4032_v9 = vld [vmem:[%s4922_s7 + $0x10c] sm:$0xf] }
 0x1de   : > { %2690 = vmatpush.bf16.msra.mxu0 %v3099_v27  ;;  %2703 = vmatpush.bf16.msra.mxu1 %v3227_v30  ;;  %v2452_v18 = vpop.f32.mrf.mxu1  ;;  %v5433_v27 = vld [vmem:[%s793_s25] sm:$0xf]  ;;  %v4008_v30 = vld [vmem:[%s4922_s7 + $0x4c] sm:$0xf] }
 0x1df   : > { %2716 = vmatpush.bf16.msra.mxu2 %v3355_v31  ;;  %2685 = vmatmul.bf16.vlgmr.msrb.gmra.mxu3 %v5096_v42  ;;  %v2453_v26 = vadd.f32 %v2452_v18, %v2440_v13  ;;  %v3016_v31 = vld [vmem:[%s4922_s7 + $0x58] sm:$0xf0]  ;;  %v2796_v36 = vperm.slane %v5433_v27, 0  ;;  %v4096_v15 = vld [vmem:[%s4922_s7 + $0x30c] sm:$0xf] }
 0x1e0   : > { %2729 = vmatpush.bf16.msra.mxu3 %v3483_v38  ;;  %2672 = vmatmul.bf16.vlgmr.msrb.gmra.mxu2 %v5087_v35  ;;  %v3144_v38 = vld [vmem:[%s4922_s7 + $0x158] sm:$0xf0]  ;;  %v3019_v49 = vor.u32 %v4008_v30, %v3016_v31  ;;  %v4156_v22 = vld [vmem:[%s4922_s7 + $0x4ec] sm:$0xf] }
 0x1e1   : > { %v3147_v54 = vor.u32 %v4040_v37, %v3144_v38  ;;  %v3240_v13 = vld [vmem:[%s4922_s7 + $0x218] sm:$0xf0]  ;;  %v4220_v30 = vld [vmem:[%s4922_s7 + $0x6ec] sm:$0xf] }
 0x1e2   : > { %2691 = vmatpush.bf16.msra.mxu0 %v3083_v29  ;;  %2704 = vmatpush.bf16.msra.mxu1 %v3211_v47  ;;  %v4104_v47 = vld [vmem:[%s4922_s7 + $0x34c] sm:$0xf]  ;;  %v3864_v31 = vld [vmem:[%s4922_s7 + $0x6f8] sm:$0xf0] }
 0x1e3   : > { %2717 = vmatpush.bf16.msra.mxu2 %v3339_v48  ;;  %v2465_v34 = vpop.f32.mrf.mxu2  ;;  %v3400_v48 = vld [vmem:[%s4922_s7 + $0x358] sm:$0xf0]  ;;  %v3867_v45 = vor.u32 %v4220_v30, %v3864_v31 }
 0x1e4   : > { %2730 = vmatpush.bf16.msra.mxu3 %v3467_v53  ;;  %v2466_v43 = vadd.f32 %v2465_v34, %v2453_v26  ;;  %v2478_v29 = vpop.f32.mrf.mxu3  ;;  %v2441_v53 = vpop.f32.mrf.mxu0  ;;  %v3403_v60 = vor.u32 %v4104_v47, %v3400_v48  ;;  %v2987_v26 = vor.u32 %v4000_v3, %v2984_v6  ;;  %v4252_v34 = vld [vmem:[%s4922_s7 + $0x7ec] sm:$0xf]  ;;  %v3992_v37 = vld [vmem:[%s4922_s7 + $0x7f8] sm:$0xf0] }
 0x1e5   : > { %v3995_v47 = vor.u32 %v4252_v34, %v3992_v37  ;;  %v3720_v48 = vld [vmem:[%s4922_s7 + $0x5d8] sm:$0xf0]  ;;  %v4176_v6 = vld [vmem:[%s4922_s7 + $0x58c] sm:$0xf] }
 0x1e6   : > { %2692 = vmatpush.bf16.msra.mxu0 %v3067_v59  ;;  %2705 = vmatpush.bf16.msra.mxu1 %v3195_v61  ;;  %v2479_v50 = vadd.f32 %v2478_v29, %v2466_v43  ;;  %v2454_v59 = vpop.f32.mrf.mxu1  ;;  %v3592_v29 = vld [vmem:[%s4922_s7 + $0x4d8] sm:$0xf0]  ;;  %v4168_v34 = vld [vmem:[%s4922_s7 + $0x54c] sm:$0xf] }
 0x1e7   : > { %2718 = vmatpush.bf16.msra.mxu2 %v3323_v62  ;;  %v3128_v62 = vld [vmem:[%s4922_s7 + $0x138] sm:$0xf0]  ;;  %v4180_v59 = vld [vmem:[%s4922_s7 + $0x5ac] sm:$0xf] }
 0x1e8   : > { %2731 = vmatpush.bf16.msra.mxu3 %v3451_v2  ;;  %v2804_v61 = vmul.f32 %v2796_v36, %v2479_v50  ;;  %v3384_v2 = vld [vmem:[%s4922_s7 + $0x338] sm:$0xf0]  ;;  %v3131_v10 = vor.u32 %v4036_v58, %v3128_v62  ;;  %v4184_v36 = vld [vmem:[%s4922_s7 + $0x5cc] sm:$0xf] }
 0x1e9   : > { %v3387_v18 = vor.u32 %v4100_v1, %v3384_v2  ;;  %v3848_v50 = vld [vmem:[%s4922_s7 + $0x6d8] sm:$0xf0]  ;;  %v4212_v62 = vld [vmem:[%s4922_s7 + $0x6ac] sm:$0xf] }
 0x1ea   : > { %2693 = vmatpush.bf16.msra.mxu0 %v3051_v57  ;;  %2706 = vmatpush.bf16.msra.mxu1 %v3179_v11  ;;  %v2818_v4 = vadd.f32 %v2810_v51, %v2804_v61  ;;  %v3112_v57 = vld [vmem:[%s4922_s7 + $0x118] sm:$0xf0]  ;;  %v3259_v11 = vor.u32 %v4068_v63, %v3256_v0  ;;  %v4248_v51 = vld [vmem:[%s4922_s7 + $0x7cc] sm:$0xf] }
 0x1eb   : > { %2719 = vmatpush.bf16.msra.mxu2 %v3307_v12  ;;  %v4064_v12 = vld [vmem:[%s4922_s7 + $0x20c] sm:$0xf]  ;;  %v2467_v16 = vpop.f32.mrf.mxu2  ;;  %v3976_v53 = vld [vmem:[%s4922_s7 + $0x7d8] sm:$0xf0] }
 0x1ec   : > { %2732 = vmatpush.bf16.msra.mxu3 %v3435_v20  ;;  %vm2822_vm0 = vcmp.gt.f32.partialorder %v2818_v4, 0.0  ;;  %v2826_v17 = vmul.f32 0.01, %v2818_v4  ;;  %v3368_v20 = vld [vmem:[%s4922_s7 + $0x318] sm:$0xf0]  ;;  %v2480_v21 = vpop.f32.mrf.mxu3 }
 0x1ed   : > { %v3371_v38 = vor.u32 %v4096_v15, %v3368_v20  ;;  %v3576_v58 = vld [vmem:[%s4922_s7 + $0x4b8] sm:$0xf0]  ;;  %v4244_v0 = vld [vmem:[%s4922_s7 + $0x7ac] sm:$0xf] }
 0x1ee   : > { %2694 = vmatpush.bf16.msra.mxu0 %v3035_v28  ;;  %2707 = vmatpush.bf16.msra.mxu1 %v3163_v32  ;;  %v2830_v25 = vsel %vm2822_vm0, %v2818_v4, %v2826_v17  ;;  %v3736_v28 = vld [vmem:[%s4922_s7 + $0x5f8] sm:$0xf0]  ;;  %v3115_v32 = vor.u32 %v4032_v9, %v3112_v57  ;;  %v3579_v2 = vor.u32 %v4148_v52, %v3576_v58  ;;  %v4144_v4 = vld [vmem:[%s4922_s7 + $0x48c] sm:$0xf] }
 0x1ef   : > { %2720 = vmatpush.bf16.msra.mxu2 %v3291_v33  ;;  %2834 = vst [vmem:[%s5468_s6] sm:$0xff] %v2830_v25  ;;  %v3243_v33 = vor.u32 %v4064_v12, %v3240_v13  ;;  %v3739_v43 = vor.u32 %v4188_v24, %v3736_v28  ;;  %v3704_v61 = vld [vmem:[%s4922_s7 + $0x5b8] sm:$0xf0]  ;;  %v4140_v16 = vld [vmem:[%s4922_s7 + $0x46c] sm:$0xf] }
 0x1f0   : > { %2733 = vmatpush.bf16.msra.mxu3 %v3419_v40  ;;  %v3611_v40 = vor.u32 %v4156_v22, %v3608_v23  ;;  %v3832_v63 = vld [vmem:[%s4922_s7 + $0x6b8] sm:$0xf0]  ;;  %v4204_v23 = vld [vmem:[%s4922_s7 + $0x66c] sm:$0xf] }
 0x1f1   : > { %v3960_v1 = vld [vmem:[%s4922_s7 + $0x7b8] sm:$0xf0]  ;;  %v3835_v3 = vor.u32 %v4212_v62, %v3832_v63  ;;  %v4236_v25 = vld [vmem:[%s4922_s7 + $0x76c] sm:$0xf] }
 0x1f2   : > { %2695 = vmatpush.bf16.msra.mxu0 %v3019_v49  ;;  %2708 = vmatpush.bf16.msra.mxu1 %v3147_v54  ;;  %v4216_v49 = vld [vmem:[%s4922_s7 + $0x6cc] sm:$0xf]  ;;  %v3595_v54 = vor.u32 %v4152_v46, %v3592_v29  ;;  %v3688_v9 = vld [vmem:[%s4922_s7 + $0x598] sm:$0xf0] }
 0x1f3   : > { %2721 = vmatpush.bf16.msra.mxu2 %v3275_v55  ;;  %v3723_v55 = vor.u32 %v4184_v36, %v3720_v48  ;;  %v3851_v56 = vor.u32 %v4216_v49, %v3848_v50  ;;  %v3816_v57 = vld [vmem:[%s4922_s7 + $0x698] sm:$0xf0]  ;;  %v3691_v13 = vor.u32 %v4176_v6, %v3688_v9  ;;  %v4232_v29 = vld [vmem:[%s4922_s7 + $0x74c] sm:$0xf] }
 0x1f4   : > { %2734 = vmatpush.bf16.msra.mxu3 %v3403_v60  ;;  %v3979_v60 = vor.u32 %v4248_v51, %v3976_v53  ;;  %v3544_v17 = vld [vmem:[%s4922_s7 + $0x478] sm:$0xf0]  ;;  %v4132_v51 = vld [vmem:[%s4922_s7 + $0x42c] sm:$0xf] }
 0x1f5   : > { %v3672_v22 = vld [vmem:[%s4922_s7 + $0x578] sm:$0xf0]  ;;  %v3547_v28 = vor.u32 %v4140_v16, %v3544_v17  ;;  %v4196_v58 = vld [vmem:[%s4922_s7 + $0x62c] sm:$0xf] }
 0x1f6   : > { %2696 = vmatpush.bf16.msra.mxu0 %v3003_v5  ;;  %2709 = vmatpush.bf16.msra.mxu1 %v3131_v10  ;;  %v3560_v5 = vld [vmem:[%s4922_s7 + $0x498] sm:$0xf0]  ;;  %v4240_v10 = vld [vmem:[%s4922_s7 + $0x78c] sm:$0xf] }
 0x1f7   : > { %2722 = vmatpush.bf16.msra.mxu2 %v3259_v11  ;;  %v3944_v11 = vld [vmem:[%s4922_s7 + $0x798] sm:$0xf0]  ;;  %v4192_v6 = vld [vmem:[%s4922_s7 + $0x60c] sm:$0xf] }
 0x1f8   : > { %2735 = vmatpush.bf16.msra.mxu3 %v3387_v18  ;;  %v4172_v18 = vld [vmem:[%s4922_s7 + $0x56c] sm:$0xf]  ;;  %v3947_v21 = vor.u32 %v4240_v10, %v3944_v11  ;;  %v3800_v24 = vld [vmem:[%s4922_s7 + $0x678] sm:$0xf0] }
 0x1f9   : > { %v3675_v30 = vor.u32 %v4172_v18, %v3672_v22  ;;  %v3803_v31 = vor.u32 %v4204_v23, %v3800_v24  ;;  %v3912_v36 = vld [vmem:[%s4922_s7 + $0x758] sm:$0xf0] }
 0x1fa   : > { %2697 = vmatpush.bf16.msra.mxu0 %v2987_v26  ;;  %2710 = vmatpush.bf16.msra.mxu1 %v3115_v32  ;;  %v5508_v12 = vpop.f32.mrf.mxu0  ;;  %v5513_v20 = vpop.f32.mrf.mxu1  ;;  %v3928_v26 = vld [vmem:[%s4922_s7 + $0x778] sm:$0xf0]  ;;  %v4136_v32 = vld [vmem:[%s4922_s7 + $0x44c] sm:$0xf] }
 0x1fb   : > { %2723 = vmatpush.bf16.msra.mxu2 %v3243_v33  ;;  %v3528_v33 = vld [vmem:[%s4922_s7 + $0x458] sm:$0xf0] }
 0x1fc   : > { %2736 = vmatpush.bf16.msra.mxu3 %v3371_v38  ;;  %v3931_v38 = vor.u32 %v4236_v25, %v3928_v26  ;;  %v3512_v53 = vld [vmem:[%s4922_s7 + $0x438] sm:$0xf0]  ;;  %v2797_v25 = vperm.slane %v5433_v27, 1 }
 0x1fd   : > { %2698 = vmatmul.bf16.vlgmr.msra.gmra.mxu0 %v5025_v14  ;;  %2711 = vmatmul.bf16.vlgmr.msra.gmra.mxu1 %v5031_v19  ;;  %v3963_v14 = vor.u32 %v4244_v0, %v3960_v1  ;;  %v3563_v19 = vor.u32 %v4144_v4, %v3560_v5  ;;  %v3640_v52 = vld [vmem:[%s4922_s7 + $0x538] sm:$0xf0]  ;;  %v3515_v62 = vor.u32 %v4132_v51, %v3512_v53  ;;  %v4128_v1 = vld [vmem:[%s4922_s7 + $0x40c] sm:$0xf] }
 0x1fe   : > { %2742 = vmatpush.bf16.msrb.mxu0 %v3611_v40  ;;  %2755 = vmatpush.bf16.msrb.mxu1 %v3739_v43  ;;  %v3656_v40 = vld [vmem:[%s4922_s7 + $0x558] sm:$0xf0]  ;;  %v4200_v43 = vld [vmem:[%s4922_s7 + $0x64c] sm:$0xf] }
 0x1ff   : > { %2768 = vmatpush.bf16.msrb.mxu2 %v3867_v45  ;;  %2737 = vmatmul.bf16.vlgmr.msra.gmra.mxu3 %v5020_v8  ;;  %v4208_v8 = vld [vmem:[%s4922_s7 + $0x68c] sm:$0xf]  ;;  %v3784_v45 = vld [vmem:[%s4922_s7 + $0x658] sm:$0xf0]  ;;  %v3659_v49 = vor.u32 %v4168_v34, %v3656_v40 }
 0x200   : > { %2781 = vmatpush.bf16.msrb.mxu3 %v3995_v47  ;;  %2724 = vmatmul.bf16.vlgmr.msra.gmra.mxu2 %v5018_v7  ;;  %v3707_v7 = vor.u32 %v4180_v59, %v3704_v61  ;;  %v3819_v15 = vor.u32 %v4208_v8, %v3816_v57  ;;  %v3531_v47 = vor.u32 %v4136_v32, %v3528_v33  ;;  %v3768_v59 = vld [vmem:[%s4922_s7 + $0x638] sm:$0xf0]  ;;  %v4224_v8 = vld [vmem:[%s4922_s7 + $0x70c] sm:$0xf] }
 0x201   : > { %v3787_v50 = vor.u32 %v4200_v43, %v3784_v45  ;;  %v3896_v61 = vld [vmem:[%s4922_s7 + $0x738] sm:$0xf0]  ;;  %v3771_v0 = vor.u32 %v4196_v58, %v3768_v59  ;;  %v2812_v59 = vperm.slane %v5439_v39, 2 }
 0x202   : > { %2743 = vmatpush.bf16.msrb.mxu0 %v3595_v54  ;;  %2756 = vmatpush.bf16.msrb.mxu1 %v3723_v55  ;;  %v2530_v46 = vpop.f32.mrf.mxu3  ;;  %v2493_v48 = vpop.f32.mrf.mxu0  ;;  %v4164_v54 = vld [vmem:[%s4922_s7 + $0x52c] sm:$0xf]  ;;  %v3624_v5 = vld [vmem:[%s4922_s7 + $0x518] sm:$0xf0] }
 0x203   : > { %2769 = vmatpush.bf16.msrb.mxu2 %v3851_v56  ;;  %v2517_v37 = vpop.f32.mrf.mxu2  ;;  %v2506_v55 = vpop.f32.mrf.mxu1  ;;  %v3915_v56 = vor.u32 %v4232_v29, %v3912_v36  ;;  %v3643_v63 = vor.u32 %v4164_v54, %v3640_v52  ;;  %v3880_v57 = vld [vmem:[%s4922_s7 + $0x718] sm:$0xf0]  ;;  %v2798_v52 = vperm.slane %v5433_v27, 2 }
 0x204   : > { %2782 = vmatpush.bf16.msrb.mxu3 %v3979_v60  ;;  %v4228_v60 = vld [vmem:[%s4922_s7 + $0x72c] sm:$0xf] }
 0x205   : > { %v3899_v4 = vor.u32 %v4228_v60, %v3896_v61 }
 0x206   : > { %2744 = vmatpush.bf16.msrb.mxu0 %v3579_v2  ;;  %2757 = vmatpush.bf16.msrb.mxu1 %v3707_v7  ;;  %v3496_v2 = vld [vmem:[%s4922_s7 + $0x418] sm:$0xf0]  ;;  %v4160_v7 = vld [vmem:[%s4922_s7 + $0x50c] sm:$0xf] }
 0x207   : > { %2770 = vmatpush.bf16.msrb.mxu2 %v3835_v3  ;;  %v3499_v10 = vor.u32 %v4128_v1, %v3496_v2  ;;  %v3627_v11 = vor.u32 %v4160_v7, %v3624_v5 }
 0x208   : > { %2783 = vmatpush.bf16.msrb.mxu3 %v3963_v14  ;;  %v3752_v14 = vld [vmem:[%s4922_s7 + $0x618] sm:$0xf0] }
 0x20a   : > { %2745 = vmatpush.bf16.msrb.mxu0 %v3563_v19  ;;  %2758 = vmatpush.bf16.msrb.mxu1 %v3691_v13  ;;  %v2532_v9 = vpop.f32.mrf.mxu3  ;;  %v3755_v19 = vor.u32 %v4192_v6, %v3752_v14  ;;  %v3883_v13 = vor.u32 %v4224_v8, %v3880_v57 }
 0x20b   : > { %2771 = vmatpush.bf16.msrb.mxu2 %v3819_v15  ;;  %v2519_v3 = vpop.f32.mrf.mxu2  ;;  %v2505_v15 = vadd.f32 %v5513_v20, %v5508_v12 }
 0x20c   : > { %2784 = vmatpush.bf16.msrb.mxu3 %v3947_v21 }
 0x20d   : > { %v2518_v16 = vadd.f32 %v2517_v37, %v2505_v15 }
 0x20e   : > { %2746 = vmatpush.bf16.msrb.mxu0 %v3547_v28  ;;  %2759 = vmatpush.bf16.msrb.mxu1 %v3675_v30 }
 0x20f   : > { %2772 = vmatpush.bf16.msrb.mxu2 %v3803_v31  ;;  %v2531_v17 = vadd.f32 %v2530_v46, %v2518_v16 }
 0x210   : > { %2785 = vmatpush.bf16.msrb.mxu3 %v3931_v38 }
 0x212   : > { %2747 = vmatpush.bf16.msrb.mxu0 %v3531_v47  ;;  %2760 = vmatpush.bf16.msrb.mxu1 %v3659_v49 }
 0x213   : > { %2773 = vmatpush.bf16.msrb.mxu2 %v3787_v50 }
 0x214   : > { %2786 = vmatpush.bf16.msrb.mxu3 %v3915_v56 }
 0x216   : > { %2748 = vmatpush.bf16.msrb.mxu0 %v3515_v62  ;;  %2761 = vmatpush.bf16.msrb.mxu1 %v3643_v63 }
 0x217   : > { %2774 = vmatpush.bf16.msrb.mxu2 %v3771_v0 }
 0x218   : > { %2787 = vmatpush.bf16.msrb.mxu3 %v3899_v4 }
 0x21a   : > { %2749 = vmatpush.bf16.msrb.mxu0 %v3499_v10  ;;  %2762 = vmatpush.bf16.msrb.mxu1 %v3627_v11  ;;  %v2543_v18 = vpop.f32.mrf.mxu0  ;;  %v2556_v22 = vpop.f32.mrf.mxu1 }
 0x21b   : > { %2775 = vmatpush.bf16.msrb.mxu2 %v3755_v19  ;;  %v2544_v21 = vadd.f32 %v2543_v18, %v2531_v17 }
 0x21c   : > { %2788 = vmatpush.bf16.msrb.mxu3 %v3883_v13 }
 0x21d   : > { %2750 = vmatmul.bf16.vlgmr.msrb.gmra.mxu0 %v5094_v41  ;;  %2763 = vmatmul.bf16.vlgmr.msrb.gmra.mxu1 %v5098_v44  ;;  %v2557_v23 = vadd.f32 %v2556_v22, %v2544_v21  ;;  %v2811_v41 = vperm.slane %v5439_v39, 1 }
 0x21e   : > { %2776 = vmatmul.bf16.vlgmr.msrb.gmra.mxu2 %v5087_v35 }
 0x21f   : > { %2789 = vmatmul.bf16.vlgmr.msrb.gmra.mxu3 %v5096_v42 }
 0x222   : > { %v2582_v24 = vpop.f32.mrf.mxu3  ;;  %v2545_v28 = vpop.f32.mrf.mxu0 }
 0x223   : > { %v2569_v12 = vpop.f32.mrf.mxu2  ;;  %v2558_v44 = vpop.f32.mrf.mxu1 }
 0x224   : > { %v2570_v20 = vadd.f32 %v2569_v12, %v2557_v23  ;;  %v2799_v23 = vperm.slane %v5433_v27, 3 }
 0x226   : > { %v2583_v26 = vadd.f32 %v2582_v24, %v2570_v20 }
 0x228   : > { %v2805_v30 = vmul.f32 %v2797_v25, %v2583_v26  ;;  %v2813_v25 = vperm.slane %v5439_v39, 3 }
 0x22a   : > { %v2819_v35 = vadd.f32 %v2811_v41, %v2805_v30  ;;  %v2584_v32 = vpop.f32.mrf.mxu3 }
 0x22b   : > { %v2571_v31 = vpop.f32.mrf.mxu2 }
 0x22c   : > { %vm2823_vm1 = vcmp.gt.f32.partialorder %v2819_v35, 0.0  ;;  %v2827_v42 = vmul.f32 0.01, %v2819_v35 }
 0x22e   : > { %v2831_v33 = vsel %vm2823_vm1, %v2819_v35, %v2827_v42 }
 0x22f   : > { %2835 = vst [vmem:[%s5468_s6 + $0x8] sm:$0xff] %v2831_v33 }
 0x23a   : > { %v2595_v34 = vpop.f32.mrf.mxu0  ;;  %v2608_v37 = vpop.f32.mrf.mxu1 }
 0x23b   : > { %v2609_v36 = vadd.f32 %v2608_v37, %v2595_v34 }
 0x242   : > { %v2634_v40 = vpop.f32.mrf.mxu3  ;;  %v2597_v43 = vpop.f32.mrf.mxu0 }
 0x243   : > { %v2621_v38 = vpop.f32.mrf.mxu2  ;;  %v2610_v45 = vpop.f32.mrf.mxu1 }
 0x244   : > { %v2622_v47 = vadd.f32 %v2621_v38, %v2609_v36 }
 0x246   : > { %v2635_v48 = vadd.f32 %v2634_v40, %v2622_v47 }
 0x24a   : > { %v2636_v29 = vpop.f32.mrf.mxu3 }
 0x24b   : > { %v2623_v46 = vpop.f32.mrf.mxu2 }
 0x25a   : > { %v2647_v49 = vpop.f32.mrf.mxu0  ;;  %v2660_v51 = vpop.f32.mrf.mxu1 }
 0x25b   : > { %v2648_v50 = vadd.f32 %v2647_v49, %v2635_v48 }
 0x25d   : > { %v2661_v53 = vadd.f32 %v2660_v51, %v2648_v50 }
 0x262   : > { %v2686_v56 = vpop.f32.mrf.mxu3  ;;  %v2649_v60 = vpop.f32.mrf.mxu0 }
 0x263   : > { %v2673_v54 = vpop.f32.mrf.mxu2  ;;  %v2662_v61 = vpop.f32.mrf.mxu1 }
 0x264   : > { %v2674_v55 = vadd.f32 %v2673_v54, %v2661_v53 }
 0x266   : > { %v2687_v58 = vadd.f32 %v2686_v56, %v2674_v55 }
 0x268   : > { %v2806_v62 = vmul.f32 %v2798_v52, %v2687_v58 }
 0x26a   : > { %v2820_v63 = vadd.f32 %v2812_v59, %v2806_v62  ;;  %v2688_v2 = vpop.f32.mrf.mxu3 }
 0x26b   : > { %v2675_v0 = vpop.f32.mrf.mxu2 }
 0x26c   : > { %vm2824_vm2 = vcmp.gt.f32.partialorder %v2820_v63, 0.0  ;;  %v2828_v1 = vmul.f32 0.01, %v2820_v63 }
 0x26e   : > { %v2832_v7 = vsel %vm2824_vm2, %v2820_v63, %v2828_v1 }
 0x26f   : > { %2836 = vst [vmem:[%s5468_s6 + $0x10] sm:$0xff] %v2832_v7 }
 0x27a   : > { %v2699_v3 = vpop.f32.mrf.mxu0  ;;  %v2712_v4 = vpop.f32.mrf.mxu1 }
 0x27b   : > { %v2713_v10 = vadd.f32 %v2712_v4, %v2699_v3 }
 0x282   : > { %v2738_v6 = vpop.f32.mrf.mxu3  ;;  %v2701_v14 = vpop.f32.mrf.mxu0 }
 0x283   : > { %v2725_v5 = vpop.f32.mrf.mxu2  ;;  %v2714_v9 = vpop.f32.mrf.mxu1 }
 0x284   : > { %v2726_v11 = vadd.f32 %v2725_v5, %v2713_v10 }
 0x286   : > { %v2739_v19 = vadd.f32 %v2738_v6, %v2726_v11 }
 0x28a   : > { %v2740_v57 = vpop.f32.mrf.mxu3 }
 0x28b   : > { %v2727_v8 = vpop.f32.mrf.mxu2 }
 0x29a   : > { %v2751_v13 = vpop.f32.mrf.mxu0  ;;  %v2764_v15 = vpop.f32.mrf.mxu1 }
 0x29b   : > { %v2752_v16 = vadd.f32 %v2751_v13, %v2739_v19 }
 0x29d   : > { %v2765_v17 = vadd.f32 %v2764_v15, %v2752_v16 }
 0x2a1   : > { %v2777_v18 = vpop.f32.mrf.mxu2 }
 0x2a2   : > { %v2778_v21 = vadd.f32 %v2777_v18, %v2765_v17  ;;  %v2790_v22 = vpop.f32.mrf.mxu3  ;;  %v2753_v12 = vpop.f32.mrf.mxu0 }
 0x2a3   : > { %v2766_v20 = vpop.f32.mrf.mxu1 }
 0x2a4   : > { %v2791_v24 = vadd.f32 %v2790_v22, %v2778_v21 }
 0x2a6   : > { %v2807_v26 = vmul.f32 %v2799_v23, %v2791_v24 }
 0x2a8   : > { %v2821_v41 = vadd.f32 %v2813_v25, %v2807_v26 }
 0x2a9   : > { %v2779_v28 = vpop.f32.mrf.mxu2 }
 0x2aa   : > { %vm2825_vm3 = vcmp.gt.f32.partialorder %v2821_v41, 0.0  ;;  %v2829_v44 = vmul.f32 0.01, %v2821_v41  ;;  %v2792_v30 = vpop.f32.mrf.mxu3 }
 0x2ac   : > { %v2833_v35 = vsel %vm2825_vm3, %v2821_v41, %v2829_v44 }
 0x2ad   : > { %2837 = vst [vmem:[%s5468_s6 + $0x18] sm:$0xff] %v2833_v35 }
 0x2ae PF: > { %s14_s19 = sadd.s32 1, %s4333_s19   ;;  %s5580_s15 = smov %s4321_s16 }
 0x2af   : > { %p11_p10 = scmp.ge.s32.totalorder %s14_s19, 6   ;;  %s5581_s16 = smov %s4395_s23 }
 0x2b0   : > { %s5582_s17 = smov %s4329_s18  ;;  %s5583_s18 = smov %s5585_s20 }
 0x2b1   :  { %13 = sbr.rel (!%p11_p10) target bundleno = 3 (0x3), region = 103 }

// kernel: model_naive_forward.15
= control target key start
LH: loop header
LB: loop body
LE: loop exit
PB: predicated region body
PF: predicated region fallthrough
CT: control target
= control target key end

     0   :  { %s1240_s1 = inlined_call_operand.vmem [shape: bf16[1024,128], index: 1, kind: input, shape index: {}]   ;;  %s1241_s0 = inlined_call_operand.vmem [shape: bf16[8,1024], index: 0, kind: input, shape index: {}]   ;;  %s1242_s2 = inlined_call_operand.vmem [shape: f32[1,128], index: 2, kind: input, shape index: {}]   ;;  %s1243_s3 = inlined_call_operand.vmem [shape: f32[1,128], index: 3, kind: input, shape index: {}]   ;;  %s1244_s4 = inlined_call_operand.vmem [shape: f32[8,128], index: 4, kind: output, shape index: {}]  }
   0x1   :  { %v943_v0 = vld [vmem:[%s1240_s1 + $0x38] sm:$0xff]  ;;  %v942_v4 = vld [vmem:[%s1240_s1 + $0x30] sm:$0xff]  ;;  %v941_v8 = vld [vmem:[%s1240_s1 + $0x28] sm:$0xff] }
   0x2   :  { %v951_v1 = vld [vmem:[%s1240_s1 + $0x78] sm:$0xff]  ;;  %561 = vmatpush.bf16.msra.mxu0 %v943_v0  ;;  %v950_v5 = vld [vmem:[%s1240_s1 + $0x70] sm:$0xff]  ;;  %v949_v9 = vld [vmem:[%s1240_s1 + $0x68] sm:$0xff] }
   0x3   :  { %v959_v2 = vld [vmem:[%s1240_s1 + $0xb8] sm:$0xff]  ;;  %574 = vmatpush.bf16.msra.mxu1 %v951_v1  ;;  %v958_v6 = vld [vmem:[%s1240_s1 + $0xb0] sm:$0xff]  ;;  %v957_v10 = vld [vmem:[%s1240_s1 + $0xa8] sm:$0xff] }
   0x4   :  { %v967_v3 = vld [vmem:[%s1240_s1 + $0xf8] sm:$0xff]  ;;  %587 = vmatpush.bf16.msra.mxu2 %v959_v2  ;;  %v966_v7 = vld [vmem:[%s1240_s1 + $0xf0] sm:$0xff]  ;;  %v965_v11 = vld [vmem:[%s1240_s1 + $0xe8] sm:$0xff] }
   0x5   :  { %600 = vmatpush.bf16.msra.mxu3 %v967_v3  ;;  %v940_v12 = vld [vmem:[%s1240_s1 + $0x20] sm:$0xff]  ;;  %v939_v16 = vld [vmem:[%s1240_s1 + $0x18] sm:$0xff]  ;;  %v938_v20 = vld [vmem:[%s1240_s1 + $0x10] sm:$0xff] }
   0x6   :  { %562 = vmatpush.bf16.msra.mxu0 %v942_v4  ;;  %v948_v13 = vld [vmem:[%s1240_s1 + $0x60] sm:$0xff]  ;;  %v947_v17 = vld [vmem:[%s1240_s1 + $0x58] sm:$0xff]  ;;  %v946_v21 = vld [vmem:[%s1240_s1 + $0x50] sm:$0xff] }
   0x7   :  { %575 = vmatpush.bf16.msra.mxu1 %v950_v5  ;;  %v956_v14 = vld [vmem:[%s1240_s1 + $0xa0] sm:$0xff]  ;;  %v955_v18 = vld [vmem:[%s1240_s1 + $0x98] sm:$0xff]  ;;  %v954_v22 = vld [vmem:[%s1240_s1 + $0x90] sm:$0xff] }
   0x8   :  { %588 = vmatpush.bf16.msra.mxu2 %v958_v6  ;;  %v964_v15 = vld [vmem:[%s1240_s1 + $0xe0] sm:$0xff]  ;;  %v963_v19 = vld [vmem:[%s1240_s1 + $0xd8] sm:$0xff]  ;;  %v962_v23 = vld [vmem:[%s1240_s1 + $0xd0] sm:$0xff] }
   0x9   :  { %601 = vmatpush.bf16.msra.mxu3 %v966_v7  ;;  %v937_v24 = vld [vmem:[%s1240_s1 + $0x8] sm:$0xff]  ;;  %v17_v29 = vld [vmem:[%s1241_s0] sm:$0xff]  ;;  %v975_v38 = vld [vmem:[%s1240_s1 + $0x138] sm:$0xff] }
   0xa   :  { %563 = vmatpush.bf16.msra.mxu0 %v941_v8  ;;  %v945_v25 = vld [vmem:[%s1240_s1 + $0x48] sm:$0xff]  ;;  %v936_v30 = vld [vmem:[%s1240_s1] sm:$0xff]  ;;  %v153_v36 = vunpack.c.l.b16 %v17_v29  ;;  %v154_v37 = vunpack.c.h.b16 %v17_v29  ;;  %v983_v39 = vld [vmem:[%s1240_s1 + $0x178] sm:$0xff] }
   0xb   :  { %576 = vmatpush.bf16.msra.mxu1 %v949_v9  ;;  %v953_v26 = vld [vmem:[%s1240_s1 + $0x88] sm:$0xff]  ;;  %v944_v31 = vld [vmem:[%s1240_s1 + $0x40] sm:$0xff]  ;;  %v991_v40 = vld [vmem:[%s1240_s1 + $0x1b8] sm:$0xff] }
   0xc   :  { %589 = vmatpush.bf16.msra.mxu2 %v957_v10  ;;  %v961_v27 = vld [vmem:[%s1240_s1 + $0xc8] sm:$0xff]  ;;  %v952_v34 = vld [vmem:[%s1240_s1 + $0x80] sm:$0xff]  ;;  %v999_v41 = vld [vmem:[%s1240_s1 + $0x1f8] sm:$0xff]  ;;  %v161_v44 = vpack.c.b16 %v153_v36, %v153_v36  ;;  %v162_v45 = vpack.c.b16 %v154_v37, %v154_v37 }
   0xd   :  { %602 = vmatpush.bf16.msra.mxu3 %v965_v11  ;;  %v18_v28 = vld [vmem:[%s1241_s0 + $0x8] sm:$0xff]  ;;  %v960_v35 = vld [vmem:[%s1240_s1 + $0xc0] sm:$0xff]  ;;  %v974_v46 = vld [vmem:[%s1240_s1 + $0x130] sm:$0xff] }
   0xe   :  { %564 = vmatpush.bf16.msra.mxu0 %v940_v12  ;;  %v155_v32 = vunpack.c.l.b16 %v18_v28  ;;  %v156_v33 = vunpack.c.h.b16 %v18_v28  ;;  %v982_v47 = vld [vmem:[%s1240_s1 + $0x170] sm:$0xff]  ;;  %v973_v50 = vld [vmem:[%s1240_s1 + $0x128] sm:$0xff]  ;;  %v972_v54 = vld [vmem:[%s1240_s1 + $0x120] sm:$0xff] }
   0xf   :  { %577 = vmatpush.bf16.msra.mxu1 %v948_v13  ;;  %v990_v48 = vld [vmem:[%s1240_s1 + $0x1b0] sm:$0xff]  ;;  %v981_v51 = vld [vmem:[%s1240_s1 + $0x168] sm:$0xff]  ;;  %v980_v55 = vld [vmem:[%s1240_s1 + $0x160] sm:$0xff] }
  0x10   :  { %590 = vmatpush.bf16.msra.mxu2 %v956_v14  ;;  %v163_v42 = vpack.c.b16 %v155_v32, %v155_v32  ;;  %v164_v43 = vpack.c.b16 %v156_v33, %v156_v33  ;;  %v998_v49 = vld [vmem:[%s1240_s1 + $0x1f0] sm:$0xff]  ;;  %v989_v52 = vld [vmem:[%s1240_s1 + $0x1a8] sm:$0xff]  ;;  %v988_v56 = vld [vmem:[%s1240_s1 + $0x1a0] sm:$0xff] }
  0x11   :  { %603 = vmatpush.bf16.msra.mxu3 %v964_v15  ;;  %v997_v53 = vld [vmem:[%s1240_s1 + $0x1e8] sm:$0xff]  ;;  %v996_v57 = vld [vmem:[%s1240_s1 + $0x1e0] sm:$0xff]  ;;  %v971_v58 = vld [vmem:[%s1240_s1 + $0x118] sm:$0xff] }
  0x12   :  { %565 = vmatpush.bf16.msra.mxu0 %v939_v16  ;;  %v979_v59 = vld [vmem:[%s1240_s1 + $0x158] sm:$0xff]  ;;  %v970_v62 = vld [vmem:[%s1240_s1 + $0x110] sm:$0xff]  ;;  %v969_v2 = vld [vmem:[%s1240_s1 + $0x108] sm:$0xff] }
  0x13   :  { %578 = vmatpush.bf16.msra.mxu1 %v947_v17  ;;  %v987_v60 = vld [vmem:[%s1240_s1 + $0x198] sm:$0xff]  ;;  %v978_v63 = vld [vmem:[%s1240_s1 + $0x150] sm:$0xff]  ;;  %v977_v3 = vld [vmem:[%s1240_s1 + $0x148] sm:$0xff] }
  0x14   :  { %591 = vmatpush.bf16.msra.mxu2 %v955_v18  ;;  %v995_v61 = vld [vmem:[%s1240_s1 + $0x1d8] sm:$0xff]  ;;  %v986_v0 = vld [vmem:[%s1240_s1 + $0x190] sm:$0xff]  ;;  %v985_v5 = vld [vmem:[%s1240_s1 + $0x188] sm:$0xff] }
  0x15   :  { %604 = vmatpush.bf16.msra.mxu3 %v963_v19  ;;  %v994_v1 = vld [vmem:[%s1240_s1 + $0x1d0] sm:$0xff]  ;;  %v993_v6 = vld [vmem:[%s1240_s1 + $0x1c8] sm:$0xff]  ;;  %v20_v7 = vld [vmem:[%s1241_s0 + $0x18] sm:$0xff] }
  0x16   :  { %566 = vmatpush.bf16.msra.mxu0 %v938_v20  ;;  %v19_v4 = vld [vmem:[%s1241_s0 + $0x10] sm:$0xff]  ;;  %v968_v10 = vld [vmem:[%s1240_s1 + $0x100] sm:$0xff]  ;;  %v159_v12 = vunpack.c.l.b16 %v20_v7  ;;  %v160_v13 = vunpack.c.h.b16 %v20_v7 }
  0x17   :  { %579 = vmatpush.bf16.msra.mxu1 %v946_v21  ;;  %v157_v8 = vunpack.c.l.b16 %v19_v4  ;;  %v158_v9 = vunpack.c.h.b16 %v19_v4  ;;  %v976_v11 = vld [vmem:[%s1240_s1 + $0x140] sm:$0xff] }
  0x18   :  { %592 = vmatpush.bf16.msra.mxu2 %v954_v22  ;;  %v984_v14 = vld [vmem:[%s1240_s1 + $0x180] sm:$0xff]  ;;  %v167_v18 = vpack.c.b16 %v159_v12, %v159_v12  ;;  %v168_v19 = vpack.c.b16 %v160_v13, %v160_v13 }
  0x19   :  { %605 = vmatpush.bf16.msra.mxu3 %v962_v23  ;;  %v992_v15 = vld [vmem:[%s1240_s1 + $0x1c0] sm:$0xff]  ;;  %v165_v16 = vpack.c.b16 %v157_v8, %v157_v8  ;;  %v166_v17 = vpack.c.b16 %v158_v9, %v158_v9 }
  0x1a   :  { %567 = vmatpush.bf16.msra.mxu0 %v937_v24 }
  0x1b   :  { %580 = vmatpush.bf16.msra.mxu1 %v945_v25 }
  0x1c   :  { %593 = vmatpush.bf16.msra.mxu2 %v953_v26 }
  0x1d   :  { %606 = vmatpush.bf16.msra.mxu3 %v961_v27 }
  0x1e   :  { %568 = vmatpush.bf16.msra.mxu0 %v936_v30 }
  0x1f   :  { %581 = vmatpush.bf16.msra.mxu1 %v944_v31 }
  0x20   :  { %594 = vmatpush.bf16.msra.mxu2 %v952_v34 }
  0x21   :  { %607 = vmatpush.bf16.msra.mxu3 %v960_v35  ;;  %569 = vmatmul.bf16.vlgmr.msra.gmra.mxu0 %v161_v44 }
  0x22   :  { %613 = vmatpush.bf16.msrb.mxu0 %v975_v38  ;;  %582 = vmatmul.bf16.vlgmr.msra.gmra.mxu1 %v162_v45  ;;  %v1000_v38 = vld [vmem:[%s1242_s2] ss:$0 sm:$0xff] }
  0x23   :  { %626 = vmatpush.bf16.msrb.mxu1 %v983_v39  ;;  %595 = vmatmul.bf16.vlgmr.msra.gmra.mxu2 %v163_v42  ;;  %v1001_v42 = vld [vmem:[%s1243_s3] ss:$0 sm:$0xff] }
  0x24   :  { %639 = vmatpush.bf16.msrb.mxu2 %v991_v40  ;;  %608 = vmatmul.bf16.vlgmr.msra.gmra.mxu3 %v164_v43 }
  0x25   :  { %652 = vmatpush.bf16.msrb.mxu3 %v999_v41 }
  0x26   :  { %614 = vmatpush.bf16.msrb.mxu0 %v974_v46 }
  0x27   :  { %627 = vmatpush.bf16.msrb.mxu1 %v982_v47 }
  0x28   :  { %640 = vmatpush.bf16.msrb.mxu2 %v990_v48 }
  0x29   :  { %653 = vmatpush.bf16.msrb.mxu3 %v998_v49 }
  0x2a   :  { %615 = vmatpush.bf16.msrb.mxu0 %v973_v50 }
  0x2b   :  { %628 = vmatpush.bf16.msrb.mxu1 %v981_v51 }
  0x2c   :  { %641 = vmatpush.bf16.msrb.mxu2 %v989_v52 }
  0x2d   :  { %654 = vmatpush.bf16.msrb.mxu3 %v997_v53 }
  0x2e   :  { %616 = vmatpush.bf16.msrb.mxu0 %v972_v54 }
  0x2f   :  { %629 = vmatpush.bf16.msrb.mxu1 %v980_v55 }
  0x30   :  { %642 = vmatpush.bf16.msrb.mxu2 %v988_v56 }
  0x31   :  { %655 = vmatpush.bf16.msrb.mxu3 %v996_v57 }
  0x32   :  { %617 = vmatpush.bf16.msrb.mxu0 %v971_v58 }
  0x33   :  { %630 = vmatpush.bf16.msrb.mxu1 %v979_v59 }
  0x34   :  { %643 = vmatpush.bf16.msrb.mxu2 %v987_v60 }
  0x35   :  { %656 = vmatpush.bf16.msrb.mxu3 %v995_v61 }
  0x36   :  { %618 = vmatpush.bf16.msrb.mxu0 %v970_v62 }
  0x37   :  { %631 = vmatpush.bf16.msrb.mxu1 %v978_v63 }
  0x38   :  { %644 = vmatpush.bf16.msrb.mxu2 %v986_v0 }
  0x39   :  { %657 = vmatpush.bf16.msrb.mxu3 %v994_v1 }
  0x3a   :  { %619 = vmatpush.bf16.msrb.mxu0 %v969_v2 }
  0x3b   :  { %632 = vmatpush.bf16.msrb.mxu1 %v977_v3 }
  0x3c   :  { %645 = vmatpush.bf16.msrb.mxu2 %v985_v5 }
  0x3d   :  { %658 = vmatpush.bf16.msrb.mxu3 %v993_v6 }
  0x3e   :  { %620 = vmatpush.bf16.msrb.mxu0 %v968_v10 }
  0x3f   :  { %633 = vmatpush.bf16.msrb.mxu1 %v976_v11 }
  0x40   :  { %646 = vmatpush.bf16.msrb.mxu2 %v984_v14 }
  0x41   :  { %659 = vmatpush.bf16.msrb.mxu3 %v992_v15  ;;  %621 = vmatmul.bf16.vlgmr.msrb.gmra.mxu0 %v165_v16 }
  0x42   :  { %634 = vmatmul.bf16.vlgmr.msrb.gmra.mxu1 %v166_v17 }
  0x43   :  { %647 = vmatmul.bf16.vlgmr.msrb.gmra.mxu2 %v167_v18 }
  0x44   :  { %660 = vmatmul.bf16.vlgmr.msrb.gmra.mxu3 %v168_v19 }
  0x9e   :  { %v570_v20 = vpop.f32.mrf.mxu0 }
  0x9f   :  { %v583_v21 = vpop.f32.mrf.mxu1 }
  0xa0   :  { %v584_v28 = vadd.f32 %v583_v21, %v570_v20 }
  0xa6   :  { %v596_v22 = vpop.f32.mrf.mxu2  ;;  %v572_v24 = vpop.f32.mrf.mxu0 }
  0xa7   :  { %v609_v23 = vpop.f32.mrf.mxu3  ;;  %v585_v25 = vpop.f32.mrf.mxu1  ;;  %v597_v29 = vadd.f32 %v596_v22, %v584_v28 }
  0xa9   :  { %v610_v30 = vadd.f32 %v609_v23, %v597_v29 }
  0xae   :  { %v598_v26 = vpop.f32.mrf.mxu2 }
  0xaf   :  { %v611_v27 = vpop.f32.mrf.mxu3 }
  0xbe   :  { %v622_v31 = vpop.f32.mrf.mxu0 }
  0xbf   :  { %v635_v32 = vpop.f32.mrf.mxu1  ;;  %v623_v33 = vadd.f32 %v622_v31, %v610_v30 }
  0xc1   :  { %v636_v34 = vadd.f32 %v635_v32, %v623_v33 }
  0xc6   :  { %v648_v35 = vpop.f32.mrf.mxu2  ;;  %v624_v39 = vpop.f32.mrf.mxu0 }
  0xc7   :  { %v661_v36 = vpop.f32.mrf.mxu3  ;;  %v649_v37 = vadd.f32 %v648_v35, %v636_v34  ;;  %v637_v40 = vpop.f32.mrf.mxu1 }
  0xc9   :  { %v662_v41 = vadd.f32 %v661_v36, %v649_v37 }
  0xcb   :  { %v669_v43 = vmul.f32 %v1000_v38, %v662_v41 }
  0xcd   :  { %v674_v44 = vadd.f32 %v1001_v42, %v669_v43 }
  0xce   :  { %v650_v45 = vpop.f32.mrf.mxu2 }
  0xcf   :  { %v663_v46 = vpop.f32.mrf.mxu3  ;;  %675 = vst [vmem:[%s1244_s4] sm:$0xff] %v674_v44 }

// kernel: model_naive_forward.14
= control target key start
LH: loop header
LB: loop body
LE: loop exit
PB: predicated region body
PF: predicated region fallthrough
CT: control target
= control target key end

     0   :  { %s8772_s15 = smov 0   ;;  %s8774_s16 = smov 0   ;;  %s10680_s0 = inlined_call_operand.vmem [shape: bf16[8,2048], index: 0, kind: input, shape index: {}]   ;;  %s10681_s1 = inlined_call_operand.vmem [shape: bf16[2048,1024], index: 1, kind: input, shape index: {}]   ;;  %s10682_s2 = inlined_call_operand.vmem [shape: f32[1,1024], index: 2, kind: input, shape index: {}]   ;;  %s10683_s3 = inlined_call_operand.vmem [shape: f32[1,1024], index: 3, kind: input, shape index: {}]   ;;  %s10684_s4 = inlined_call_operand.vmem [shape: f32[8,1024], index: 4, kind: output, shape index: {}]  }
   0x1   :  { %s8776_s17 = smov 0   ;;  %s8778_s18 = smov 0  }
   0x2   :  { %s8780_s19 = smov 0  }
   0x3 LB: > { %s23_s20 = sadd.s32 1, %s8725_s18  ;;  %p66_p1 = scmp.ne.s32.totalorder %s8717_s16, %s8713_s15  ;;  %s8729_s19 = sphi %s8780_s19, %s14_s19   ;;  %s8725_s18 = sphi %s8778_s18, %s10694_s18   ;;  %s8721_s17 = sphi %s8776_s17, %s10693_s17   ;;  %s8717_s16 = sphi %s8774_s16, %s10692_s16   ;;  %s8713_s15 = sphi %s8772_s15, %s10691_s15  }
   0x4   : > { %p24_p0 = scmp.ge.s32.totalorder %s23_s20, 2  ;;  %p67_p2 = scmp.eq.s32.totalorder %s8729_s19, 0 }
   0x5   : > { %s59_s22 = sadd.s32 1, %s8717_s16  ;;  %p6024_p5 = scmp.ge.s32.totalorder %s8729_s19, 2 }
   0x6   : > { %s10696_s20 = smov (%p24_p0, %s23_s20), 0  ;;  %p68_p3 = por %p67_p2, %p66_p1 }
   0x7   : > { %s56_s21 = ssub.s32 %s8725_s18, %s10696_s20  ;;  %180 = sbr.rel (%p6024_p5) target bundleno = 274 (0x112), region = 20 }
   0x8   : > { %p57_p4 = scmp.eq.s32.totalorder %s56_s21, 0 }
   0xa   : > { %s8807_s23 = scalar_select %p57_p4, %s8717_s16, %s59_s22  }
   0xc   : > { %183 = sbr.rel (!%p68_p3) target bundleno = 274 (0x112), region = 24  ;;  %s185_s24 = sand.u32 (%p68_p3), 1, %s8717_s16  }
   0xd   : > { %s8086_s25 = sshll.u32 (%p68_p3), %s8725_s18, 4  ;;  %s8812_s26 = sshll.u32 (%p68_p3), %s185_s24, 12 }
   0xe   : > { %s8817_s29 = scalar_lea.vmem (%p68_p3), %s10681_s1, %s8086_s25   ;;  %s187_s30 = scalar_lea.vmem (%p68_p3), [#allocation2], %s8812_s26  }
   0xf   : > { %s10685_s5 = smov (%p68_p3), %s187_s30  ;;  %s10686_s6 = smov (%p68_p3), %s8817_s29 }
  0x10   : > { %s8827_s7 = smov (%p68_p3), 0   ;;  %s8829_s8 = smov (%p68_p3), 0  }
  0x11 LB: >> { %v204_v0 = vld [vmem:[%s8737_s6] sm:$0xff]  ;;  %s716_s9 = sadd.s32 1, %s8741_s7  ;;  %s200_s8 = sadd.s32 1, %s8745_s8   ;;  %s8745_s8 = sphi %s8829_s8, %s200_s8   ;;  %s8741_s7 = sphi %s8827_s7, %s10689_s7   ;;  %s8737_s6 = sphi %s10686_s6, %s10688_s6   ;;  %s8733_s5 = sphi %s10685_s5, %s10687_s5  }
  0x12   : >> { %v206_v1 = vld [vmem:[%s8737_s6 + $0x20] sm:$0xff]  ;;  %205 = vst [vmem:[%s8733_s5] sm:$0xff] %v204_v0  ;;  %p717_p6 = scmp.ge.s32.totalorder %s716_s9, 2  ;;  %p197_p7 = scmp.ge.s32.totalorder %s200_s8, 2  }
  0x13   : >> { %v208_v2 = vld [vmem:[%s8737_s6 + $0x40] sm:$0xff]  ;;  %207 = vst [vmem:[%s8733_s5 + $0x10] sm:$0xff] %v206_v1 }
  0x14   : >> { %v210_v3 = vld [vmem:[%s8737_s6 + $0x60] sm:$0xff]  ;;  %209 = vst [vmem:[%s8733_s5 + $0x20] sm:$0xff] %v208_v2  ;;  %s10698_s9 = smov (%p717_p6, %s716_s9), 0 }
  0x15   : >> { %v212_v4 = vld [vmem:[%s8737_s6 + $0x80] sm:$0xff]  ;;  %211 = vst [vmem:[%s8733_s5 + $0x30] sm:$0xff] %v210_v3  ;;  %s6028_s10 = sshll.u32 %s10698_s9, 3  ;;  %s10689_s7 = smov %s10698_s9 }
  0x16   : >> { %v214_v5 = vld [vmem:[%s8737_s6 + $0xa0] sm:$0xff]  ;;  %213 = vst [vmem:[%s8733_s5 + $0x40] sm:$0xff] %v212_v4  ;;  %s9107_s11 = scalar_lea.vmem %s8817_s29, %s6028_s10   ;;  %s9111_s12 = scalar_lea.vmem %s187_s30, %s6028_s10 [#allocation2]  }
  0x17   : >> { %v216_v6 = vld [vmem:[%s8737_s6 + $0xc0] sm:$0xff]  ;;  %215 = vst [vmem:[%s8733_s5 + $0x50] sm:$0xff] %v214_v5 }
  0x18   : >> { %v218_v7 = vld [vmem:[%s8737_s6 + $0xe0] sm:$0xff]  ;;  %217 = vst [vmem:[%s8733_s5 + $0x60] sm:$0xff] %v216_v6 }
  0x19   : >> { %v220_v8 = vld [vmem:[%s8737_s6 + $0x100] sm:$0xff]  ;;  %219 = vst [vmem:[%s8733_s5 + $0x70] sm:$0xff] %v218_v7 }
  0x1a   : >> { %v222_v9 = vld [vmem:[%s8737_s6 + $0x120] sm:$0xff]  ;;  %221 = vst [vmem:[%s8733_s5 + $0x80] sm:$0xff] %v220_v8 }
  0x1b   : >> { %v224_v10 = vld [vmem:[%s8737_s6 + $0x140] sm:$0xff]  ;;  %223 = vst [vmem:[%s8733_s5 + $0x90] sm:$0xff] %v222_v9 }
  0x1c   : >> { %v226_v11 = vld [vmem:[%s8737_s6 + $0x160] sm:$0xff]  ;;  %225 = vst [vmem:[%s8733_s5 + $0xa0] sm:$0xff] %v224_v10 }
  0x1d   : >> { %v228_v12 = vld [vmem:[%s8737_s6 + $0x180] sm:$0xff]  ;;  %227 = vst [vmem:[%s8733_s5 + $0xb0] sm:$0xff] %v226_v11 }
  0x1e   : >> { %v230_v13 = vld [vmem:[%s8737_s6 + $0x1a0] sm:$0xff]  ;;  %229 = vst [vmem:[%s8733_s5 + $0xc0] sm:$0xff] %v228_v12 }
  0x1f   : >> { %v232_v14 = vld [vmem:[%s8737_s6 + $0x1c0] sm:$0xff]  ;;  %231 = vst [vmem:[%s8733_s5 + $0xd0] sm:$0xff] %v230_v13 }
  0x20   : >> { %v234_v15 = vld [vmem:[%s8737_s6 + $0x1e0] sm:$0xff]  ;;  %233 = vst [vmem:[%s8733_s5 + $0xe0] sm:$0xff] %v232_v14 }
  0x21   : >> { %v236_v16 = vld [vmem:[%s8737_s6 + $0x200] sm:$0xff]  ;;  %235 = vst [vmem:[%s8733_s5 + $0xf0] sm:$0xff] %v234_v15 }
  0x22   : >> { %v238_v17 = vld [vmem:[%s8737_s6 + $0x220] sm:$0xff]  ;;  %237 = vst [vmem:[%s8733_s5 + $0x100] sm:$0xff] %v236_v16 }
  0x23   : >> { %v240_v18 = vld [vmem:[%s8737_s6 + $0x240] sm:$0xff]  ;;  %239 = vst [vmem:[%s8733_s5 + $0x110] sm:$0xff] %v238_v17 }
  0x24   : >> { %v242_v19 = vld [vmem:[%s8737_s6 + $0x260] sm:$0xff]  ;;  %241 = vst [vmem:[%s8733_s5 + $0x120] sm:$0xff] %v240_v18 }
  0x25   : >> { %v244_v20 = vld [vmem:[%s8737_s6 + $0x280] sm:$0xff]  ;;  %243 = vst [vmem:[%s8733_s5 + $0x130] sm:$0xff] %v242_v19 }
  0x26   : >> { %v246_v21 = vld [vmem:[%s8737_s6 + $0x2a0] sm:$0xff]  ;;  %245 = vst [vmem:[%s8733_s5 + $0x140] sm:$0xff] %v244_v20 }
  0x27   : >> { %v248_v22 = vld [vmem:[%s8737_s6 + $0x2c0] sm:$0xff]  ;;  %247 = vst [vmem:[%s8733_s5 + $0x150] sm:$0xff] %v246_v21 }
  0x28   : >> { %v250_v23 = vld [vmem:[%s8737_s6 + $0x2e0] sm:$0xff]  ;;  %249 = vst [vmem:[%s8733_s5 + $0x160] sm:$0xff] %v248_v22 }
  0x29   : >> { %v252_v24 = vld [vmem:[%s8737_s6 + $0x300] sm:$0xff]  ;;  %251 = vst [vmem:[%s8733_s5 + $0x170] sm:$0xff] %v250_v23 }
  0x2a   : >> { %v254_v25 = vld [vmem:[%s8737_s6 + $0x320] sm:$0xff]  ;;  %253 = vst [vmem:[%s8733_s5 + $0x180] sm:$0xff] %v252_v24 }
  0x2b   : >> { %v256_v26 = vld [vmem:[%s8737_s6 + $0x340] sm:$0xff]  ;;  %255 = vst [vmem:[%s8733_s5 + $0x190] sm:$0xff] %v254_v25 }
  0x2c   : >> { %v258_v27 = vld [vmem:[%s8737_s6 + $0x360] sm:$0xff]  ;;  %257 = vst [vmem:[%s8733_s5 + $0x1a0] sm:$0xff] %v256_v26 }
  0x2d   : >> { %v260_v28 = vld [vmem:[%s8737_s6 + $0x380] sm:$0xff]  ;;  %259 = vst [vmem:[%s8733_s5 + $0x1b0] sm:$0xff] %v258_v27 }
  0x2e   : >> { %v262_v29 = vld [vmem:[%s8737_s6 + $0x3a0] sm:$0xff]  ;;  %261 = vst [vmem:[%s8733_s5 + $0x1c0] sm:$0xff] %v260_v28 }
  0x2f   : >> { %v264_v30 = vld [vmem:[%s8737_s6 + $0x3c0] sm:$0xff]  ;;  %263 = vst [vmem:[%s8733_s5 + $0x1d0] sm:$0xff] %v262_v29 }
  0x30   : >> { %v266_v31 = vld [vmem:[%s8737_s6 + $0x3e0] sm:$0xff]  ;;  %265 = vst [vmem:[%s8733_s5 + $0x1e0] sm:$0xff] %v264_v30 }
  0x31   : >> { %v268_v32 = vld [vmem:[%s8737_s6 + $0x400] sm:$0xff]  ;;  %267 = vst [vmem:[%s8733_s5 + $0x1f0] sm:$0xff] %v266_v31 }
  0x32   : >> { %v270_v33 = vld [vmem:[%s8737_s6 + $0x420] sm:$0xff]  ;;  %269 = vst [vmem:[%s8733_s5 + $0x200] sm:$0xff] %v268_v32 }
  0x33   : >> { %v272_v34 = vld [vmem:[%s8737_s6 + $0x440] sm:$0xff]  ;;  %271 = vst [vmem:[%s8733_s5 + $0x210] sm:$0xff] %v270_v33 }
  0x34   : >> { %v274_v35 = vld [vmem:[%s8737_s6 + $0x460] sm:$0xff]  ;;  %273 = vst [vmem:[%s8733_s5 + $0x220] sm:$0xff] %v272_v34 }
  0x35   : >> { %v276_v36 = vld [vmem:[%s8737_s6 + $0x480] sm:$0xff]  ;;  %275 = vst [vmem:[%s8733_s5 + $0x230] sm:$0xff] %v274_v35 }
  0x36   : >> { %v278_v37 = vld [vmem:[%s8737_s6 + $0x4a0] sm:$0xff]  ;;  %277 = vst [vmem:[%s8733_s5 + $0x240] sm:$0xff] %v276_v36 }
  0x37   : >> { %v280_v38 = vld [vmem:[%s8737_s6 + $0x4c0] sm:$0xff]  ;;  %279 = vst [vmem:[%s8733_s5 + $0x250] sm:$0xff] %v278_v37 }
  0x38   : >> { %v282_v39 = vld [vmem:[%s8737_s6 + $0x4e0] sm:$0xff]  ;;  %281 = vst [vmem:[%s8733_s5 + $0x260] sm:$0xff] %v280_v38 }
  0x39   : >> { %v284_v40 = vld [vmem:[%s8737_s6 + $0x500] sm:$0xff]  ;;  %283 = vst [vmem:[%s8733_s5 + $0x270] sm:$0xff] %v282_v39 }
  0x3a   : >> { %v286_v41 = vld [vmem:[%s8737_s6 + $0x520] sm:$0xff]  ;;  %285 = vst [vmem:[%s8733_s5 + $0x280] sm:$0xff] %v284_v40 }
  0x3b   : >> { %v288_v42 = vld [vmem:[%s8737_s6 + $0x540] sm:$0xff]  ;;  %287 = vst [vmem:[%s8733_s5 + $0x290] sm:$0xff] %v286_v41 }
  0x3c   : >> { %v290_v43 = vld [vmem:[%s8737_s6 + $0x560] sm:$0xff]  ;;  %289 = vst [vmem:[%s8733_s5 + $0x2a0] sm:$0xff] %v288_v42 }
  0x3d   : >> { %v292_v44 = vld [vmem:[%s8737_s6 + $0x580] sm:$0xff]  ;;  %291 = vst [vmem:[%s8733_s5 + $0x2b0] sm:$0xff] %v290_v43 }
  0x3e   : >> { %v294_v45 = vld [vmem:[%s8737_s6 + $0x5a0] sm:$0xff]  ;;  %293 = vst [vmem:[%s8733_s5 + $0x2c0] sm:$0xff] %v292_v44 }
  0x3f   : >> { %v296_v46 = vld [vmem:[%s8737_s6 + $0x5c0] sm:$0xff]  ;;  %295 = vst [vmem:[%s8733_s5 + $0x2d0] sm:$0xff] %v294_v45 }
  0x40   : >> { %v298_v47 = vld [vmem:[%s8737_s6 + $0x5e0] sm:$0xff]  ;;  %297 = vst [vmem:[%s8733_s5 + $0x2e0] sm:$0xff] %v296_v46 }
  0x41   : >> { %v300_v48 = vld [vmem:[%s8737_s6 + $0x600] sm:$0xff]  ;;  %299 = vst [vmem:[%s8733_s5 + $0x2f0] sm:$0xff] %v298_v47 }
  0x42   : >> { %v302_v49 = vld [vmem:[%s8737_s6 + $0x620] sm:$0xff]  ;;  %301 = vst [vmem:[%s8733_s5 + $0x300] sm:$0xff] %v300_v48 }
  0x43   : >> { %v304_v50 = vld [vmem:[%s8737_s6 + $0x640] sm:$0xff]  ;;  %303 = vst [vmem:[%s8733_s5 + $0x310] sm:$0xff] %v302_v49 }
  0x44   : >> { %v306_v51 = vld [vmem:[%s8737_s6 + $0x660] sm:$0xff]  ;;  %305 = vst [vmem:[%s8733_s5 + $0x320] sm:$0xff] %v304_v50 }
  0x45   : >> { %v308_v52 = vld [vmem:[%s8737_s6 + $0x680] sm:$0xff]  ;;  %307 = vst [vmem:[%s8733_s5 + $0x330] sm:$0xff] %v306_v51 }
  0x46   : >> { %v310_v53 = vld [vmem:[%s8737_s6 + $0x6a0] sm:$0xff]  ;;  %309 = vst [vmem:[%s8733_s5 + $0x340] sm:$0xff] %v308_v52 }
  0x47   : >> { %v312_v54 = vld [vmem:[%s8737_s6 + $0x6c0] sm:$0xff]  ;;  %311 = vst [vmem:[%s8733_s5 + $0x350] sm:$0xff] %v310_v53 }
  0x48   : >> { %v314_v55 = vld [vmem:[%s8737_s6 + $0x6e0] sm:$0xff]  ;;  %313 = vst [vmem:[%s8733_s5 + $0x360] sm:$0xff] %v312_v54 }
  0x49   : >> { %v316_v56 = vld [vmem:[%s8737_s6 + $0x700] sm:$0xff]  ;;  %315 = vst [vmem:[%s8733_s5 + $0x370] sm:$0xff] %v314_v55 }
  0x4a   : >> { %v318_v57 = vld [vmem:[%s8737_s6 + $0x720] sm:$0xff]  ;;  %317 = vst [vmem:[%s8733_s5 + $0x380] sm:$0xff] %v316_v56 }
  0x4b   : >> { %v320_v58 = vld [vmem:[%s8737_s6 + $0x740] sm:$0xff]  ;;  %319 = vst [vmem:[%s8733_s5 + $0x390] sm:$0xff] %v318_v57 }
  0x4c   : >> { %v322_v59 = vld [vmem:[%s8737_s6 + $0x760] sm:$0xff]  ;;  %321 = vst [vmem:[%s8733_s5 + $0x3a0] sm:$0xff] %v320_v58 }
  0x4d   : >> { %v324_v60 = vld [vmem:[%s8737_s6 + $0x780] sm:$0xff]  ;;  %323 = vst [vmem:[%s8733_s5 + $0x3b0] sm:$0xff] %v322_v59 }
  0x4e   : >> { %v326_v61 = vld [vmem:[%s8737_s6 + $0x7a0] sm:$0xff]  ;;  %325 = vst [vmem:[%s8733_s5 + $0x3c0] sm:$0xff] %v324_v60 }
  0x4f   : >> { %v328_v62 = vld [vmem:[%s8737_s6 + $0x7c0] sm:$0xff]  ;;  %327 = vst [vmem:[%s8733_s5 + $0x3d0] sm:$0xff] %v326_v61 }
  0x50   : >> { %v330_v63 = vld [vmem:[%s8737_s6 + $0x7e0] sm:$0xff]  ;;  %329 = vst [vmem:[%s8733_s5 + $0x3e0] sm:$0xff] %v328_v62 }
  0x51   : >> { %v332_v0 = vld [vmem:[%s8737_s6 + $0x800] sm:$0xff]  ;;  %331 = vst [vmem:[%s8733_s5 + $0x3f0] sm:$0xff] %v330_v63 }
  0x52   : >> { %v334_v1 = vld [vmem:[%s8737_s6 + $0x820] sm:$0xff]  ;;  %333 = vst [vmem:[%s8733_s5 + $0x400] sm:$0xff] %v332_v0 }
  0x53   : >> { %v336_v2 = vld [vmem:[%s8737_s6 + $0x840] sm:$0xff]  ;;  %335 = vst [vmem:[%s8733_s5 + $0x410] sm:$0xff] %v334_v1 }
  0x54   : >> { %v338_v3 = vld [vmem:[%s8737_s6 + $0x860] sm:$0xff]  ;;  %337 = vst [vmem:[%s8733_s5 + $0x420] sm:$0xff] %v336_v2 }
  0x55   : >> { %v340_v4 = vld [vmem:[%s8737_s6 + $0x880] sm:$0xff]  ;;  %339 = vst [vmem:[%s8733_s5 + $0x430] sm:$0xff] %v338_v3 }
  0x56   : >> { %v342_v5 = vld [vmem:[%s8737_s6 + $0x8a0] sm:$0xff]  ;;  %341 = vst [vmem:[%s8733_s5 + $0x440] sm:$0xff] %v340_v4 }
  0x57   : >> { %v344_v6 = vld [vmem:[%s8737_s6 + $0x8c0] sm:$0xff]  ;;  %343 = vst [vmem:[%s8733_s5 + $0x450] sm:$0xff] %v342_v5 }
  0x58   : >> { %v346_v7 = vld [vmem:[%s8737_s6 + $0x8e0] sm:$0xff]  ;;  %345 = vst [vmem:[%s8733_s5 + $0x460] sm:$0xff] %v344_v6 }
  0x59   : >> { %v348_v8 = vld [vmem:[%s8737_s6 + $0x900] sm:$0xff]  ;;  %347 = vst [vmem:[%s8733_s5 + $0x470] sm:$0xff] %v346_v7 }
  0x5a   : >> { %v350_v9 = vld [vmem:[%s8737_s6 + $0x920] sm:$0xff]  ;;  %349 = vst [vmem:[%s8733_s5 + $0x480] sm:$0xff] %v348_v8 }
  0x5b   : >> { %v352_v10 = vld [vmem:[%s8737_s6 + $0x940] sm:$0xff]  ;;  %351 = vst [vmem:[%s8733_s5 + $0x490] sm:$0xff] %v350_v9 }
  0x5c   : >> { %v354_v11 = vld [vmem:[%s8737_s6 + $0x960] sm:$0xff]  ;;  %353 = vst [vmem:[%s8733_s5 + $0x4a0] sm:$0xff] %v352_v10 }
  0x5d   : >> { %v356_v12 = vld [vmem:[%s8737_s6 + $0x980] sm:$0xff]  ;;  %355 = vst [vmem:[%s8733_s5 + $0x4b0] sm:$0xff] %v354_v11 }
  0x5e   : >> { %v358_v13 = vld [vmem:[%s8737_s6 + $0x9a0] sm:$0xff]  ;;  %357 = vst [vmem:[%s8733_s5 + $0x4c0] sm:$0xff] %v356_v12 }
  0x5f   : >> { %v360_v14 = vld [vmem:[%s8737_s6 + $0x9c0] sm:$0xff]  ;;  %359 = vst [vmem:[%s8733_s5 + $0x4d0] sm:$0xff] %v358_v13 }
  0x60   : >> { %v362_v15 = vld [vmem:[%s8737_s6 + $0x9e0] sm:$0xff]  ;;  %361 = vst [vmem:[%s8733_s5 + $0x4e0] sm:$0xff] %v360_v14 }
  0x61   : >> { %v364_v16 = vld [vmem:[%s8737_s6 + $0xa00] sm:$0xff]  ;;  %363 = vst [vmem:[%s8733_s5 + $0x4f0] sm:$0xff] %v362_v15 }
  0x62   : >> { %v366_v17 = vld [vmem:[%s8737_s6 + $0xa20] sm:$0xff]  ;;  %365 = vst [vmem:[%s8733_s5 + $0x500] sm:$0xff] %v364_v16 }
  0x63   : >> { %v368_v18 = vld [vmem:[%s8737_s6 + $0xa40] sm:$0xff]  ;;  %367 = vst [vmem:[%s8733_s5 + $0x510] sm:$0xff] %v366_v17 }
  0x64   : >> { %v370_v19 = vld [vmem:[%s8737_s6 + $0xa60] sm:$0xff]  ;;  %369 = vst [vmem:[%s8733_s5 + $0x520] sm:$0xff] %v368_v18 }
  0x65   : >> { %v372_v20 = vld [vmem:[%s8737_s6 + $0xa80] sm:$0xff]  ;;  %371 = vst [vmem:[%s8733_s5 + $0x530] sm:$0xff] %v370_v19 }
  0x66   : >> { %v374_v21 = vld [vmem:[%s8737_s6 + $0xaa0] sm:$0xff]  ;;  %373 = vst [vmem:[%s8733_s5 + $0x540] sm:$0xff] %v372_v20 }
  0x67   : >> { %v376_v22 = vld [vmem:[%s8737_s6 + $0xac0] sm:$0xff]  ;;  %375 = vst [vmem:[%s8733_s5 + $0x550] sm:$0xff] %v374_v21 }
  0x68   : >> { %v378_v23 = vld [vmem:[%s8737_s6 + $0xae0] sm:$0xff]  ;;  %377 = vst [vmem:[%s8733_s5 + $0x560] sm:$0xff] %v376_v22 }
  0x69   : >> { %v380_v24 = vld [vmem:[%s8737_s6 + $0xb00] sm:$0xff]  ;;  %379 = vst [vmem:[%s8733_s5 + $0x570] sm:$0xff] %v378_v23 }
  0x6a   : >> { %v382_v25 = vld [vmem:[%s8737_s6 + $0xb20] sm:$0xff]  ;;  %381 = vst [vmem:[%s8733_s5 + $0x580] sm:$0xff] %v380_v24 }
  0x6b   : >> { %v384_v26 = vld [vmem:[%s8737_s6 + $0xb40] sm:$0xff]  ;;  %383 = vst [vmem:[%s8733_s5 + $0x590] sm:$0xff] %v382_v25 }
  0x6c   : >> { %v386_v27 = vld [vmem:[%s8737_s6 + $0xb60] sm:$0xff]  ;;  %385 = vst [vmem:[%s8733_s5 + $0x5a0] sm:$0xff] %v384_v26 }
  0x6d   : >> { %v388_v28 = vld [vmem:[%s8737_s6 + $0xb80] sm:$0xff]  ;;  %387 = vst [vmem:[%s8733_s5 + $0x5b0] sm:$0xff] %v386_v27 }
  0x6e   : >> { %v390_v29 = vld [vmem:[%s8737_s6 + $0xba0] sm:$0xff]  ;;  %389 = vst [vmem:[%s8733_s5 + $0x5c0] sm:$0xff] %v388_v28 }
  0x6f   : >> { %v392_v30 = vld [vmem:[%s8737_s6 + $0xbc0] sm:$0xff]  ;;  %391 = vst [vmem:[%s8733_s5 + $0x5d0] sm:$0xff] %v390_v29 }
  0x70   : >> { %v394_v31 = vld [vmem:[%s8737_s6 + $0xbe0] sm:$0xff]  ;;  %393 = vst [vmem:[%s8733_s5 + $0x5e0] sm:$0xff] %v392_v30 }
  0x71   : >> { %v396_v32 = vld [vmem:[%s8737_s6 + $0xc00] sm:$0xff]  ;;  %395 = vst [vmem:[%s8733_s5 + $0x5f0] sm:$0xff] %v394_v31 }
  0x72   : >> { %v398_v33 = vld [vmem:[%s8737_s6 + $0xc20] sm:$0xff]  ;;  %397 = vst [vmem:[%s8733_s5 + $0x600] sm:$0xff] %v396_v32 }
  0x73   : >> { %v400_v34 = vld [vmem:[%s8737_s6 + $0xc40] sm:$0xff]  ;;  %399 = vst [vmem:[%s8733_s5 + $0x610] sm:$0xff] %v398_v33 }
  0x74   : >> { %v402_v35 = vld [vmem:[%s8737_s6 + $0xc60] sm:$0xff]  ;;  %401 = vst [vmem:[%s8733_s5 + $0x620] sm:$0xff] %v400_v34 }
  0x75   : >> { %v404_v36 = vld [vmem:[%s8737_s6 + $0xc80] sm:$0xff]  ;;  %403 = vst [vmem:[%s8733_s5 + $0x630] sm:$0xff] %v402_v35 }
  0x76   : >> { %v406_v37 = vld [vmem:[%s8737_s6 + $0xca0] sm:$0xff]  ;;  %405 = vst [vmem:[%s8733_s5 + $0x640] sm:$0xff] %v404_v36 }
  0x77   : >> { %v408_v38 = vld [vmem:[%s8737_s6 + $0xcc0] sm:$0xff]  ;;  %407 = vst [vmem:[%s8733_s5 + $0x650] sm:$0xff] %v406_v37 }
  0x78   : >> { %v410_v39 = vld [vmem:[%s8737_s6 + $0xce0] sm:$0xff]  ;;  %409 = vst [vmem:[%s8733_s5 + $0x660] sm:$0xff] %v408_v38 }
  0x79   : >> { %v412_v40 = vld [vmem:[%s8737_s6 + $0xd00] sm:$0xff]  ;;  %411 = vst [vmem:[%s8733_s5 + $0x670] sm:$0xff] %v410_v39 }
  0x7a   : >> { %v414_v41 = vld [vmem:[%s8737_s6 + $0xd20] sm:$0xff]  ;;  %413 = vst [vmem:[%s8733_s5 + $0x680] sm:$0xff] %v412_v40 }
  0x7b   : >> { %v416_v42 = vld [vmem:[%s8737_s6 + $0xd40] sm:$0xff]  ;;  %415 = vst [vmem:[%s8733_s5 + $0x690] sm:$0xff] %v414_v41 }
  0x7c   : >> { %v418_v43 = vld [vmem:[%s8737_s6 + $0xd60] sm:$0xff]  ;;  %417 = vst [vmem:[%s8733_s5 + $0x6a0] sm:$0xff] %v416_v42 }
  0x7d   : >> { %v420_v44 = vld [vmem:[%s8737_s6 + $0xd80] sm:$0xff]  ;;  %419 = vst [vmem:[%s8733_s5 + $0x6b0] sm:$0xff] %v418_v43 }
  0x7e   : >> { %v422_v45 = vld [vmem:[%s8737_s6 + $0xda0] sm:$0xff]  ;;  %421 = vst [vmem:[%s8733_s5 + $0x6c0] sm:$0xff] %v420_v44 }
  0x7f   : >> { %v424_v46 = vld [vmem:[%s8737_s6 + $0xdc0] sm:$0xff]  ;;  %423 = vst [vmem:[%s8733_s5 + $0x6d0] sm:$0xff] %v422_v45 }
  0x80   : >> { %v426_v47 = vld [vmem:[%s8737_s6 + $0xde0] sm:$0xff]  ;;  %425 = vst [vmem:[%s8733_s5 + $0x6e0] sm:$0xff] %v424_v46 }
  0x81   : >> { %v428_v48 = vld [vmem:[%s8737_s6 + $0xe00] sm:$0xff]  ;;  %427 = vst [vmem:[%s8733_s5 + $0x6f0] sm:$0xff] %v426_v47 }
  0x82   : >> { %v430_v49 = vld [vmem:[%s8737_s6 + $0xe20] sm:$0xff]  ;;  %429 = vst [vmem:[%s8733_s5 + $0x700] sm:$0xff] %v428_v48 }
  0x83   : >> { %v432_v50 = vld [vmem:[%s8737_s6 + $0xe40] sm:$0xff]  ;;  %431 = vst [vmem:[%s8733_s5 + $0x710] sm:$0xff] %v430_v49 }
  0x84   : >> { %v434_v51 = vld [vmem:[%s8737_s6 + $0xe60] sm:$0xff]  ;;  %433 = vst [vmem:[%s8733_s5 + $0x720] sm:$0xff] %v432_v50 }
  0x85   : >> { %v436_v52 = vld [vmem:[%s8737_s6 + $0xe80] sm:$0xff]  ;;  %435 = vst [vmem:[%s8733_s5 + $0x730] sm:$0xff] %v434_v51 }
  0x86   : >> { %v438_v53 = vld [vmem:[%s8737_s6 + $0xea0] sm:$0xff]  ;;  %437 = vst [vmem:[%s8733_s5 + $0x740] sm:$0xff] %v436_v52 }
  0x87   : >> { %v440_v54 = vld [vmem:[%s8737_s6 + $0xec0] sm:$0xff]  ;;  %439 = vst [vmem:[%s8733_s5 + $0x750] sm:$0xff] %v438_v53 }
  0x88   : >> { %v442_v55 = vld [vmem:[%s8737_s6 + $0xee0] sm:$0xff]  ;;  %441 = vst [vmem:[%s8733_s5 + $0x760] sm:$0xff] %v440_v54 }
  0x89   : >> { %v444_v56 = vld [vmem:[%s8737_s6 + $0xf00] sm:$0xff]  ;;  %443 = vst [vmem:[%s8733_s5 + $0x770] sm:$0xff] %v442_v55 }
  0x8a   : >> { %v446_v57 = vld [vmem:[%s8737_s6 + $0xf20] sm:$0xff]  ;;  %445 = vst [vmem:[%s8733_s5 + $0x780] sm:$0xff] %v444_v56 }
  0x8b   : >> { %v448_v58 = vld [vmem:[%s8737_s6 + $0xf40] sm:$0xff]  ;;  %447 = vst [vmem:[%s8733_s5 + $0x790] sm:$0xff] %v446_v57 }
  0x8c   : >> { %v450_v59 = vld [vmem:[%s8737_s6 + $0xf60] sm:$0xff]  ;;  %449 = vst [vmem:[%s8733_s5 + $0x7a0] sm:$0xff] %v448_v58 }
  0x8d   : >> { %v452_v60 = vld [vmem:[%s8737_s6 + $0xf80] sm:$0xff]  ;;  %451 = vst [vmem:[%s8733_s5 + $0x7b0] sm:$0xff] %v450_v59 }
  0x8e   : >> { %v454_v61 = vld [vmem:[%s8737_s6 + $0xfa0] sm:$0xff]  ;;  %453 = vst [vmem:[%s8733_s5 + $0x7c0] sm:$0xff] %v452_v60 }
  0x8f   : >> { %v456_v62 = vld [vmem:[%s8737_s6 + $0xfc0] sm:$0xff]  ;;  %455 = vst [vmem:[%s8733_s5 + $0x7d0] sm:$0xff] %v454_v61 }
  0x90   : >> { %v458_v63 = vld [vmem:[%s8737_s6 + $0xfe0] sm:$0xff]  ;;  %457 = vst [vmem:[%s8733_s5 + $0x7e0] sm:$0xff] %v456_v62 }
  0x91   : >> { %v460_v0 = vld [vmem:[%s8737_s6 + $0x1000] sm:$0xff]  ;;  %459 = vst [vmem:[%s8733_s5 + $0x7f0] sm:$0xff] %v458_v63 }
  0x92   : >> { %v462_v1 = vld [vmem:[%s8737_s6 + $0x1020] sm:$0xff]  ;;  %461 = vst [vmem:[%s8733_s5 + $0x800] sm:$0xff] %v460_v0 }
  0x93   : >> { %v464_v2 = vld [vmem:[%s8737_s6 + $0x1040] sm:$0xff]  ;;  %463 = vst [vmem:[%s8733_s5 + $0x810] sm:$0xff] %v462_v1 }
  0x94   : >> { %v466_v3 = vld [vmem:[%s8737_s6 + $0x1060] sm:$0xff]  ;;  %465 = vst [vmem:[%s8733_s5 + $0x820] sm:$0xff] %v464_v2 }
  0x95   : >> { %v468_v4 = vld [vmem:[%s8737_s6 + $0x1080] sm:$0xff]  ;;  %467 = vst [vmem:[%s8733_s5 + $0x830] sm:$0xff] %v466_v3 }
  0x96   : >> { %v470_v5 = vld [vmem:[%s8737_s6 + $0x10a0] sm:$0xff]  ;;  %469 = vst [vmem:[%s8733_s5 + $0x840] sm:$0xff] %v468_v4 }
  0x97   : >> { %v472_v6 = vld [vmem:[%s8737_s6 + $0x10c0] sm:$0xff]  ;;  %471 = vst [vmem:[%s8733_s5 + $0x850] sm:$0xff] %v470_v5 }
  0x98   : >> { %v474_v7 = vld [vmem:[%s8737_s6 + $0x10e0] sm:$0xff]  ;;  %473 = vst [vmem:[%s8733_s5 + $0x860] sm:$0xff] %v472_v6 }
  0x99   : >> { %v476_v8 = vld [vmem:[%s8737_s6 + $0x1100] sm:$0xff]  ;;  %475 = vst [vmem:[%s8733_s5 + $0x870] sm:$0xff] %v474_v7 }
  0x9a   : >> { %v478_v9 = vld [vmem:[%s8737_s6 + $0x1120] sm:$0xff]  ;;  %477 = vst [vmem:[%s8733_s5 + $0x880] sm:$0xff] %v476_v8 }
  0x9b   : >> { %v480_v10 = vld [vmem:[%s8737_s6 + $0x1140] sm:$0xff]  ;;  %479 = vst [vmem:[%s8733_s5 + $0x890] sm:$0xff] %v478_v9 }
  0x9c   : >> { %v482_v11 = vld [vmem:[%s8737_s6 + $0x1160] sm:$0xff]  ;;  %481 = vst [vmem:[%s8733_s5 + $0x8a0] sm:$0xff] %v480_v10 }
  0x9d   : >> { %v484_v12 = vld [vmem:[%s8737_s6 + $0x1180] sm:$0xff]  ;;  %483 = vst [vmem:[%s8733_s5 + $0x8b0] sm:$0xff] %v482_v11 }
  0x9e   : >> { %v486_v13 = vld [vmem:[%s8737_s6 + $0x11a0] sm:$0xff]  ;;  %485 = vst [vmem:[%s8733_s5 + $0x8c0] sm:$0xff] %v484_v12 }
  0x9f   : >> { %v488_v14 = vld [vmem:[%s8737_s6 + $0x11c0] sm:$0xff]  ;;  %487 = vst [vmem:[%s8733_s5 + $0x8d0] sm:$0xff] %v486_v13 }
  0xa0   : >> { %v490_v15 = vld [vmem:[%s8737_s6 + $0x11e0] sm:$0xff]  ;;  %489 = vst [vmem:[%s8733_s5 + $0x8e0] sm:$0xff] %v488_v14 }
  0xa1   : >> { %v492_v16 = vld [vmem:[%s8737_s6 + $0x1200] sm:$0xff]  ;;  %491 = vst [vmem:[%s8733_s5 + $0x8f0] sm:$0xff] %v490_v15 }
  0xa2   : >> { %v494_v17 = vld [vmem:[%s8737_s6 + $0x1220] sm:$0xff]  ;;  %493 = vst [vmem:[%s8733_s5 + $0x900] sm:$0xff] %v492_v16 }
  0xa3   : >> { %v496_v18 = vld [vmem:[%s8737_s6 + $0x1240] sm:$0xff]  ;;  %495 = vst [vmem:[%s8733_s5 + $0x910] sm:$0xff] %v494_v17 }
  0xa4   : >> { %v498_v19 = vld [vmem:[%s8737_s6 + $0x1260] sm:$0xff]  ;;  %497 = vst [vmem:[%s8733_s5 + $0x920] sm:$0xff] %v496_v18 }
  0xa5   : >> { %v500_v20 = vld [vmem:[%s8737_s6 + $0x1280] sm:$0xff]  ;;  %499 = vst [vmem:[%s8733_s5 + $0x930] sm:$0xff] %v498_v19 }
  0xa6   : >> { %v502_v21 = vld [vmem:[%s8737_s6 + $0x12a0] sm:$0xff]  ;;  %501 = vst [vmem:[%s8733_s5 + $0x940] sm:$0xff] %v500_v20 }
  0xa7   : >> { %v504_v22 = vld [vmem:[%s8737_s6 + $0x12c0] sm:$0xff]  ;;  %503 = vst [vmem:[%s8733_s5 + $0x950] sm:$0xff] %v502_v21 }
  0xa8   : >> { %v506_v23 = vld [vmem:[%s8737_s6 + $0x12e0] sm:$0xff]  ;;  %505 = vst [vmem:[%s8733_s5 + $0x960] sm:$0xff] %v504_v22 }
  0xa9   : >> { %v508_v24 = vld [vmem:[%s8737_s6 + $0x1300] sm:$0xff]  ;;  %507 = vst [vmem:[%s8733_s5 + $0x970] sm:$0xff] %v506_v23 }
  0xaa   : >> { %v510_v25 = vld [vmem:[%s8737_s6 + $0x1320] sm:$0xff]  ;;  %509 = vst [vmem:[%s8733_s5 + $0x980] sm:$0xff] %v508_v24 }
  0xab   : >> { %v512_v26 = vld [vmem:[%s8737_s6 + $0x1340] sm:$0xff]  ;;  %511 = vst [vmem:[%s8733_s5 + $0x990] sm:$0xff] %v510_v25 }
  0xac   : >> { %v514_v27 = vld [vmem:[%s8737_s6 + $0x1360] sm:$0xff]  ;;  %513 = vst [vmem:[%s8733_s5 + $0x9a0] sm:$0xff] %v512_v26 }
  0xad   : >> { %v516_v28 = vld [vmem:[%s8737_s6 + $0x1380] sm:$0xff]  ;;  %515 = vst [vmem:[%s8733_s5 + $0x9b0] sm:$0xff] %v514_v27 }
  0xae   : >> { %v518_v29 = vld [vmem:[%s8737_s6 + $0x13a0] sm:$0xff]  ;;  %517 = vst [vmem:[%s8733_s5 + $0x9c0] sm:$0xff] %v516_v28 }
  0xaf   : >> { %v520_v30 = vld [vmem:[%s8737_s6 + $0x13c0] sm:$0xff]  ;;  %519 = vst [vmem:[%s8733_s5 + $0x9d0] sm:$0xff] %v518_v29 }
  0xb0   : >> { %v522_v31 = vld [vmem:[%s8737_s6 + $0x13e0] sm:$0xff]  ;;  %521 = vst [vmem:[%s8733_s5 + $0x9e0] sm:$0xff] %v520_v30 }
  0xb1   : >> { %v524_v32 = vld [vmem:[%s8737_s6 + $0x1400] sm:$0xff]  ;;  %523 = vst [vmem:[%s8733_s5 + $0x9f0] sm:$0xff] %v522_v31 }
  0xb2   : >> { %v526_v33 = vld [vmem:[%s8737_s6 + $0x1420] sm:$0xff]  ;;  %525 = vst [vmem:[%s8733_s5 + $0xa00] sm:$0xff] %v524_v32 }
  0xb3   : >> { %v528_v34 = vld [vmem:[%s8737_s6 + $0x1440] sm:$0xff]  ;;  %527 = vst [vmem:[%s8733_s5 + $0xa10] sm:$0xff] %v526_v33 }
  0xb4   : >> { %v530_v35 = vld [vmem:[%s8737_s6 + $0x1460] sm:$0xff]  ;;  %529 = vst [vmem:[%s8733_s5 + $0xa20] sm:$0xff] %v528_v34 }
  0xb5   : >> { %v532_v36 = vld [vmem:[%s8737_s6 + $0x1480] sm:$0xff]  ;;  %531 = vst [vmem:[%s8733_s5 + $0xa30] sm:$0xff] %v530_v35 }
  0xb6   : >> { %v534_v37 = vld [vmem:[%s8737_s6 + $0x14a0] sm:$0xff]  ;;  %533 = vst [vmem:[%s8733_s5 + $0xa40] sm:$0xff] %v532_v36 }
  0xb7   : >> { %v536_v38 = vld [vmem:[%s8737_s6 + $0x14c0] sm:$0xff]  ;;  %535 = vst [vmem:[%s8733_s5 + $0xa50] sm:$0xff] %v534_v37 }
  0xb8   : >> { %v538_v39 = vld [vmem:[%s8737_s6 + $0x14e0] sm:$0xff]  ;;  %537 = vst [vmem:[%s8733_s5 + $0xa60] sm:$0xff] %v536_v38 }
  0xb9   : >> { %v540_v40 = vld [vmem:[%s8737_s6 + $0x1500] sm:$0xff]  ;;  %539 = vst [vmem:[%s8733_s5 + $0xa70] sm:$0xff] %v538_v39 }
  0xba   : >> { %v542_v41 = vld [vmem:[%s8737_s6 + $0x1520] sm:$0xff]  ;;  %541 = vst [vmem:[%s8733_s5 + $0xa80] sm:$0xff] %v540_v40 }
  0xbb   : >> { %v544_v42 = vld [vmem:[%s8737_s6 + $0x1540] sm:$0xff]  ;;  %543 = vst [vmem:[%s8733_s5 + $0xa90] sm:$0xff] %v542_v41 }
  0xbc   : >> { %v546_v43 = vld [vmem:[%s8737_s6 + $0x1560] sm:$0xff]  ;;  %545 = vst [vmem:[%s8733_s5 + $0xaa0] sm:$0xff] %v544_v42 }
  0xbd   : >> { %v548_v44 = vld [vmem:[%s8737_s6 + $0x1580] sm:$0xff]  ;;  %547 = vst [vmem:[%s8733_s5 + $0xab0] sm:$0xff] %v546_v43 }
  0xbe   : >> { %v550_v45 = vld [vmem:[%s8737_s6 + $0x15a0] sm:$0xff]  ;;  %549 = vst [vmem:[%s8733_s5 + $0xac0] sm:$0xff] %v548_v44 }
  0xbf   : >> { %v552_v46 = vld [vmem:[%s8737_s6 + $0x15c0] sm:$0xff]  ;;  %551 = vst [vmem:[%s8733_s5 + $0xad0] sm:$0xff] %v550_v45 }
  0xc0   : >> { %v554_v47 = vld [vmem:[%s8737_s6 + $0x15e0] sm:$0xff]  ;;  %553 = vst [vmem:[%s8733_s5 + $0xae0] sm:$0xff] %v552_v46 }
  0xc1   : >> { %v556_v48 = vld [vmem:[%s8737_s6 + $0x1600] sm:$0xff]  ;;  %555 = vst [vmem:[%s8733_s5 + $0xaf0] sm:$0xff] %v554_v47 }
  0xc2   : >> { %v558_v49 = vld [vmem:[%s8737_s6 + $0x1620] sm:$0xff]  ;;  %557 = vst [vmem:[%s8733_s5 + $0xb00] sm:$0xff] %v556_v48 }
  0xc3   : >> { %v560_v50 = vld [vmem:[%s8737_s6 + $0x1640] sm:$0xff]  ;;  %559 = vst [vmem:[%s8733_s5 + $0xb10] sm:$0xff] %v558_v49 }
  0xc4   : >> { %v562_v51 = vld [vmem:[%s8737_s6 + $0x1660] sm:$0xff]  ;;  %561 = vst [vmem:[%s8733_s5 + $0xb20] sm:$0xff] %v560_v50 }
  0xc5   : >> { %v564_v52 = vld [vmem:[%s8737_s6 + $0x1680] sm:$0xff]  ;;  %563 = vst [vmem:[%s8733_s5 + $0xb30] sm:$0xff] %v562_v51 }
  0xc6   : >> { %v566_v53 = vld [vmem:[%s8737_s6 + $0x16a0] sm:$0xff]  ;;  %565 = vst [vmem:[%s8733_s5 + $0xb40] sm:$0xff] %v564_v52 }
  0xc7   : >> { %v568_v54 = vld [vmem:[%s8737_s6 + $0x16c0] sm:$0xff]  ;;  %567 = vst [vmem:[%s8733_s5 + $0xb50] sm:$0xff] %v566_v53 }
  0xc8   : >> { %v570_v55 = vld [vmem:[%s8737_s6 + $0x16e0] sm:$0xff]  ;;  %569 = vst [vmem:[%s8733_s5 + $0xb60] sm:$0xff] %v568_v54 }
  0xc9   : >> { %v572_v56 = vld [vmem:[%s8737_s6 + $0x1700] sm:$0xff]  ;;  %571 = vst [vmem:[%s8733_s5 + $0xb70] sm:$0xff] %v570_v55 }
  0xca   : >> { %v574_v57 = vld [vmem:[%s8737_s6 + $0x1720] sm:$0xff]  ;;  %573 = vst [vmem:[%s8733_s5 + $0xb80] sm:$0xff] %v572_v56 }
  0xcb   : >> { %v576_v58 = vld [vmem:[%s8737_s6 + $0x1740] sm:$0xff]  ;;  %575 = vst [vmem:[%s8733_s5 + $0xb90] sm:$0xff] %v574_v57 }
  0xcc   : >> { %v578_v59 = vld [vmem:[%s8737_s6 + $0x1760] sm:$0xff]  ;;  %577 = vst [vmem:[%s8733_s5 + $0xba0] sm:$0xff] %v576_v58 }
  0xcd   : >> { %v580_v60 = vld [vmem:[%s8737_s6 + $0x1780] sm:$0xff]  ;;  %579 = vst [vmem:[%s8733_s5 + $0xbb0] sm:$0xff] %v578_v59 }
  0xce   : >> { %v582_v61 = vld [vmem:[%s8737_s6 + $0x17a0] sm:$0xff]  ;;  %581 = vst [vmem:[%s8733_s5 + $0xbc0] sm:$0xff] %v580_v60 }
  0xcf   : >> { %v584_v62 = vld [vmem:[%s8737_s6 + $0x17c0] sm:$0xff]  ;;  %583 = vst [vmem:[%s8733_s5 + $0xbd0] sm:$0xff] %v582_v61 }
  0xd0   : >> { %v586_v63 = vld [vmem:[%s8737_s6 + $0x17e0] sm:$0xff]  ;;  %585 = vst [vmem:[%s8733_s5 + $0xbe0] sm:$0xff] %v584_v62 }
  0xd1   : >> { %v588_v0 = vld [vmem:[%s8737_s6 + $0x1800] sm:$0xff]  ;;  %587 = vst [vmem:[%s8733_s5 + $0xbf0] sm:$0xff] %v586_v63 }
  0xd2   : >> { %v590_v1 = vld [vmem:[%s8737_s6 + $0x1820] sm:$0xff]  ;;  %589 = vst [vmem:[%s8733_s5 + $0xc00] sm:$0xff] %v588_v0 }
  0xd3   : >> { %v592_v2 = vld [vmem:[%s8737_s6 + $0x1840] sm:$0xff]  ;;  %591 = vst [vmem:[%s8733_s5 + $0xc10] sm:$0xff] %v590_v1 }
  0xd4   : >> { %v594_v3 = vld [vmem:[%s8737_s6 + $0x1860] sm:$0xff]  ;;  %593 = vst [vmem:[%s8733_s5 + $0xc20] sm:$0xff] %v592_v2 }
  0xd5   : >> { %v596_v4 = vld [vmem:[%s8737_s6 + $0x1880] sm:$0xff]  ;;  %595 = vst [vmem:[%s8733_s5 + $0xc30] sm:$0xff] %v594_v3 }
  0xd6   : >> { %v598_v5 = vld [vmem:[%s8737_s6 + $0x18a0] sm:$0xff]  ;;  %597 = vst [vmem:[%s8733_s5 + $0xc40] sm:$0xff] %v596_v4 }
  0xd7   : >> { %v600_v6 = vld [vmem:[%s8737_s6 + $0x18c0] sm:$0xff]  ;;  %599 = vst [vmem:[%s8733_s5 + $0xc50] sm:$0xff] %v598_v5 }
  0xd8   : >> { %v602_v7 = vld [vmem:[%s8737_s6 + $0x18e0] sm:$0xff]  ;;  %601 = vst [vmem:[%s8733_s5 + $0xc60] sm:$0xff] %v600_v6 }
  0xd9   : >> { %v604_v8 = vld [vmem:[%s8737_s6 + $0x1900] sm:$0xff]  ;;  %603 = vst [vmem:[%s8733_s5 + $0xc70] sm:$0xff] %v602_v7 }
  0xda   : >> { %v606_v9 = vld [vmem:[%s8737_s6 + $0x1920] sm:$0xff]  ;;  %605 = vst [vmem:[%s8733_s5 + $0xc80] sm:$0xff] %v604_v8 }
  0xdb   : >> { %v608_v10 = vld [vmem:[%s8737_s6 + $0x1940] sm:$0xff]  ;;  %607 = vst [vmem:[%s8733_s5 + $0xc90] sm:$0xff] %v606_v9 }
  0xdc   : >> { %v610_v11 = vld [vmem:[%s8737_s6 + $0x1960] sm:$0xff]  ;;  %609 = vst [vmem:[%s8733_s5 + $0xca0] sm:$0xff] %v608_v10 }
  0xdd   : >> { %v612_v12 = vld [vmem:[%s8737_s6 + $0x1980] sm:$0xff]  ;;  %611 = vst [vmem:[%s8733_s5 + $0xcb0] sm:$0xff] %v610_v11 }
  0xde   : >> { %v614_v13 = vld [vmem:[%s8737_s6 + $0x19a0] sm:$0xff]  ;;  %613 = vst [vmem:[%s8733_s5 + $0xcc0] sm:$0xff] %v612_v12 }
  0xdf   : >> { %v616_v14 = vld [vmem:[%s8737_s6 + $0x19c0] sm:$0xff]  ;;  %615 = vst [vmem:[%s8733_s5 + $0xcd0] sm:$0xff] %v614_v13 }
  0xe0   : >> { %v618_v15 = vld [vmem:[%s8737_s6 + $0x19e0] sm:$0xff]  ;;  %617 = vst [vmem:[%s8733_s5 + $0xce0] sm:$0xff] %v616_v14 }
  0xe1   : >> { %v620_v16 = vld [vmem:[%s8737_s6 + $0x1a00] sm:$0xff]  ;;  %619 = vst [vmem:[%s8733_s5 + $0xcf0] sm:$0xff] %v618_v15 }
  0xe2   : >> { %v622_v17 = vld [vmem:[%s8737_s6 + $0x1a20] sm:$0xff]  ;;  %621 = vst [vmem:[%s8733_s5 + $0xd00] sm:$0xff] %v620_v16 }
  0xe3   : >> { %v624_v18 = vld [vmem:[%s8737_s6 + $0x1a40] sm:$0xff]  ;;  %623 = vst [vmem:[%s8733_s5 + $0xd10] sm:$0xff] %v622_v17 }
  0xe4   : >> { %v626_v19 = vld [vmem:[%s8737_s6 + $0x1a60] sm:$0xff]  ;;  %625 = vst [vmem:[%s8733_s5 + $0xd20] sm:$0xff] %v624_v18 }
  0xe5   : >> { %v628_v20 = vld [vmem:[%s8737_s6 + $0x1a80] sm:$0xff]  ;;  %627 = vst [vmem:[%s8733_s5 + $0xd30] sm:$0xff] %v626_v19 }
  0xe6   : >> { %v630_v21 = vld [vmem:[%s8737_s6 + $0x1aa0] sm:$0xff]  ;;  %629 = vst [vmem:[%s8733_s5 + $0xd40] sm:$0xff] %v628_v20 }
  0xe7   : >> { %v632_v22 = vld [vmem:[%s8737_s6 + $0x1ac0] sm:$0xff]  ;;  %631 = vst [vmem:[%s8733_s5 + $0xd50] sm:$0xff] %v630_v21 }
  0xe8   : >> { %v634_v23 = vld [vmem:[%s8737_s6 + $0x1ae0] sm:$0xff]  ;;  %633 = vst [vmem:[%s8733_s5 + $0xd60] sm:$0xff] %v632_v22 }
  0xe9   : >> { %v636_v24 = vld [vmem:[%s8737_s6 + $0x1b00] sm:$0xff]  ;;  %635 = vst [vmem:[%s8733_s5 + $0xd70] sm:$0xff] %v634_v23 }
  0xea   : >> { %v638_v25 = vld [vmem:[%s8737_s6 + $0x1b20] sm:$0xff]  ;;  %637 = vst [vmem:[%s8733_s5 + $0xd80] sm:$0xff] %v636_v24 }
  0xeb   : >> { %v640_v26 = vld [vmem:[%s8737_s6 + $0x1b40] sm:$0xff]  ;;  %639 = vst [vmem:[%s8733_s5 + $0xd90] sm:$0xff] %v638_v25 }
  0xec   : >> { %v642_v27 = vld [vmem:[%s8737_s6 + $0x1b60] sm:$0xff]  ;;  %641 = vst [vmem:[%s8733_s5 + $0xda0] sm:$0xff] %v640_v26 }
  0xed   : >> { %v644_v28 = vld [vmem:[%s8737_s6 + $0x1b80] sm:$0xff]  ;;  %643 = vst [vmem:[%s8733_s5 + $0xdb0] sm:$0xff] %v642_v27 }
  0xee   : >> { %v646_v29 = vld [vmem:[%s8737_s6 + $0x1ba0] sm:$0xff]  ;;  %645 = vst [vmem:[%s8733_s5 + $0xdc0] sm:$0xff] %v644_v28 }
  0xef   : >> { %v648_v30 = vld [vmem:[%s8737_s6 + $0x1bc0] sm:$0xff]  ;;  %647 = vst [vmem:[%s8733_s5 + $0xdd0] sm:$0xff] %v646_v29 }
  0xf0   : >> { %v650_v31 = vld [vmem:[%s8737_s6 + $0x1be0] sm:$0xff]  ;;  %649 = vst [vmem:[%s8733_s5 + $0xde0] sm:$0xff] %v648_v30 }
  0xf1   : >> { %v652_v32 = vld [vmem:[%s8737_s6 + $0x1c00] sm:$0xff]  ;;  %651 = vst [vmem:[%s8733_s5 + $0xdf0] sm:$0xff] %v650_v31 }
  0xf2   : >> { %v654_v33 = vld [vmem:[%s8737_s6 + $0x1c20] sm:$0xff]  ;;  %653 = vst [vmem:[%s8733_s5 + $0xe00] sm:$0xff] %v652_v32 }
  0xf3   : >> { %v656_v34 = vld [vmem:[%s8737_s6 + $0x1c40] sm:$0xff]  ;;  %655 = vst [vmem:[%s8733_s5 + $0xe10] sm:$0xff] %v654_v33 }
  0xf4   : >> { %v658_v35 = vld [vmem:[%s8737_s6 + $0x1c60] sm:$0xff]  ;;  %657 = vst [vmem:[%s8733_s5 + $0xe20] sm:$0xff] %v656_v34 }
  0xf5   : >> { %v660_v36 = vld [vmem:[%s8737_s6 + $0x1c80] sm:$0xff]  ;;  %659 = vst [vmem:[%s8733_s5 + $0xe30] sm:$0xff] %v658_v35 }
  0xf6   : >> { %v662_v37 = vld [vmem:[%s8737_s6 + $0x1ca0] sm:$0xff]  ;;  %661 = vst [vmem:[%s8733_s5 + $0xe40] sm:$0xff] %v660_v36 }
  0xf7   : >> { %v664_v38 = vld [vmem:[%s8737_s6 + $0x1cc0] sm:$0xff]  ;;  %663 = vst [vmem:[%s8733_s5 + $0xe50] sm:$0xff] %v662_v37 }
  0xf8   : >> { %v666_v39 = vld [vmem:[%s8737_s6 + $0x1ce0] sm:$0xff]  ;;  %665 = vst [vmem:[%s8733_s5 + $0xe60] sm:$0xff] %v664_v38 }
  0xf9   : >> { %v668_v40 = vld [vmem:[%s8737_s6 + $0x1d00] sm:$0xff]  ;;  %667 = vst [vmem:[%s8733_s5 + $0xe70] sm:$0xff] %v666_v39 }
  0xfa   : >> { %v670_v41 = vld [vmem:[%s8737_s6 + $0x1d20] sm:$0xff]  ;;  %669 = vst [vmem:[%s8733_s5 + $0xe80] sm:$0xff] %v668_v40 }
  0xfb   : >> { %v672_v42 = vld [vmem:[%s8737_s6 + $0x1d40] sm:$0xff]  ;;  %671 = vst [vmem:[%s8733_s5 + $0xe90] sm:$0xff] %v670_v41 }
  0xfc   : >> { %v674_v43 = vld [vmem:[%s8737_s6 + $0x1d60] sm:$0xff]  ;;  %673 = vst [vmem:[%s8733_s5 + $0xea0] sm:$0xff] %v672_v42 }
  0xfd   : >> { %v676_v44 = vld [vmem:[%s8737_s6 + $0x1d80] sm:$0xff]  ;;  %675 = vst [vmem:[%s8733_s5 + $0xeb0] sm:$0xff] %v674_v43 }
  0xfe   : >> { %v678_v45 = vld [vmem:[%s8737_s6 + $0x1da0] sm:$0xff]  ;;  %677 = vst [vmem:[%s8733_s5 + $0xec0] sm:$0xff] %v676_v44 }
  0xff   : >> { %v680_v46 = vld [vmem:[%s8737_s6 + $0x1dc0] sm:$0xff]  ;;  %679 = vst [vmem:[%s8733_s5 + $0xed0] sm:$0xff] %v678_v45 }
 0x100   : >> { %v682_v47 = vld [vmem:[%s8737_s6 + $0x1de0] sm:$0xff]  ;;  %681 = vst [vmem:[%s8733_s5 + $0xee0] sm:$0xff] %v680_v46 }
 0x101   : >> { %v684_v48 = vld [vmem:[%s8737_s6 + $0x1e00] sm:$0xff]  ;;  %683 = vst [vmem:[%s8733_s5 + $0xef0] sm:$0xff] %v682_v47 }
 0x102   : >> { %v686_v49 = vld [vmem:[%s8737_s6 + $0x1e20] sm:$0xff]  ;;  %685 = vst [vmem:[%s8733_s5 + $0xf00] sm:$0xff] %v684_v48 }
 0x103   : >> { %v688_v50 = vld [vmem:[%s8737_s6 + $0x1e40] sm:$0xff]  ;;  %687 = vst [vmem:[%s8733_s5 + $0xf10] sm:$0xff] %v686_v49 }
 0x104   : >> { %v690_v51 = vld [vmem:[%s8737_s6 + $0x1e60] sm:$0xff]  ;;  %689 = vst [vmem:[%s8733_s5 + $0xf20] sm:$0xff] %v688_v50 }
 0x105   : >> { %v692_v52 = vld [vmem:[%s8737_s6 + $0x1e80] sm:$0xff]  ;;  %691 = vst [vmem:[%s8733_s5 + $0xf30] sm:$0xff] %v690_v51 }
 0x106   : >> { %v694_v53 = vld [vmem:[%s8737_s6 + $0x1ea0] sm:$0xff]  ;;  %693 = vst [vmem:[%s8733_s5 + $0xf40] sm:$0xff] %v692_v52 }
 0x107   : >> { %v696_v54 = vld [vmem:[%s8737_s6 + $0x1ec0] sm:$0xff]  ;;  %695 = vst [vmem:[%s8733_s5 + $0xf50] sm:$0xff] %v694_v53 }
 0x108   : >> { %v698_v55 = vld [vmem:[%s8737_s6 + $0x1ee0] sm:$0xff]  ;;  %697 = vst [vmem:[%s8733_s5 + $0xf60] sm:$0xff] %v696_v54 }
 0x109   : >> { %v700_v56 = vld [vmem:[%s8737_s6 + $0x1f00] sm:$0xff]  ;;  %699 = vst [vmem:[%s8733_s5 + $0xf70] sm:$0xff] %v698_v55 }
 0x10a   : >> { %v702_v57 = vld [vmem:[%s8737_s6 + $0x1f20] sm:$0xff]  ;;  %701 = vst [vmem:[%s8733_s5 + $0xf80] sm:$0xff] %v700_v56 }
 0x10b   : >> { %v704_v58 = vld [vmem:[%s8737_s6 + $0x1f40] sm:$0xff]  ;;  %703 = vst [vmem:[%s8733_s5 + $0xf90] sm:$0xff] %v702_v57 }
 0x10c   : >> { %v706_v59 = vld [vmem:[%s8737_s6 + $0x1f60] sm:$0xff]  ;;  %705 = vst [vmem:[%s8733_s5 + $0xfa0] sm:$0xff] %v704_v58 }
 0x10d   : >> { %v708_v60 = vld [vmem:[%s8737_s6 + $0x1f80] sm:$0xff]  ;;  %707 = vst [vmem:[%s8733_s5 + $0xfb0] sm:$0xff] %v706_v59  ;;  %199 = sbr.rel (!%p197_p7) target bundleno = 17 (0x11), region = 119 }
 0x10e   : >> { %v710_v61 = vld [vmem:[%s8737_s6 + $0x1fa0] sm:$0xff]  ;;  %709 = vst [vmem:[%s8733_s5 + $0xfc0] sm:$0xff] %v708_v60 }
 0x10f   : >> { %v712_v62 = vld [vmem:[%s8737_s6 + $0x1fc0] sm:$0xff]  ;;  %711 = vst [vmem:[%s8733_s5 + $0xfd0] sm:$0xff] %v710_v61 }
 0x110   : >> { %v714_v63 = vld [vmem:[%s8737_s6 + $0x1fe0] sm:$0xff]  ;;  %713 = vst [vmem:[%s8733_s5 + $0xfe0] sm:$0xff] %v712_v62  ;;  %s10688_s6 = smov %s9107_s11 }
 0x111   : >> { %715 = vst [vmem:[%s8733_s5 + $0xff0] sm:$0xff] %v714_v63  ;;  %s10687_s5 = smov %s9111_s12 }
 0x112 PF: > { %p6030_p8 = scmp.ge.s32.totalorder %s8729_s19, 1  ;;  %p1795_p9 = scmp.lt.s32.totalorder %s8729_s19, 3 }
 0x114   : > { %p1796_p10 = pnand %p6030_p8, %p1795_p9 }
 0x115   : > { %s1802_s13 = sand.u32 (!%p1796_p10), 1, %s8713_s15   ;;  %s6032_s12 = sshll.u32 (!%p1796_p10), %s8721_s17, 2 }
 0x116   : > { %1799 = sbr.rel (%p1796_p10) target bundleno = 945 (0x3b1), region = 69  ;;  %s6031_s14 = sshll.u32 (!%p1796_p10), %s1802_s13, 12 }
 0x117   : > { %s9381_s21 = scalar_lea.vmem (!%p1796_p10), [#allocation2], %s6031_s14  ;;  %p10031_p11 = scmp.lt.s32.totalorder (!%p1796_p10), %s6032_s12, 7 }
 0x11b   : > { %v6150_v0 = vld [vmem:[%s9381_s21 + $0xe0] sm:$0xf]  ;;  %v8117_v1 = vld [vmem:[%s9381_s21 + $0xec] sm:$0xf0]  ;;  %s10700_s12 = smov (!%p10031_p11, %s6032_s12), 7 }
 0x11c   : > { %v6278_v2 = vld [vmem:[%s9381_s21 + $0x1e0] sm:$0xf]  ;;  %v6151_v3 = vor.u32 %v8117_v1, %v6150_v0  ;;  %v8149_v4 = vld [vmem:[%s9381_s21 + $0x1ec] sm:$0xf0]  ;;  %s10071_s15 = scalar_lea.vmem %s10682_s2, %s10700_s12  ;;  %s10077_s25 = scalar_lea.vmem %s10683_s3, %s10700_s12 }
 0x11d   : > { %v6406_v5 = vld [vmem:[%s9381_s21 + $0x2e0] sm:$0xf]  ;;  %v8181_v6 = vld [vmem:[%s9381_s21 + $0x2ec] sm:$0xf0]  ;;  %v6279_v7 = vor.u32 %v8149_v4, %v6278_v2  ;;  %s6035_s26 = sshll.u32 %s10700_s12, 3 }
 0x11e   : > { %v6407_v8 = vor.u32 %v8181_v6, %v6406_v5  ;;  %v6534_v9 = vld [vmem:[%s9381_s21 + $0x3e0] sm:$0xf]  ;;  %v8213_v10 = vld [vmem:[%s9381_s21 + $0x3ec] sm:$0xf0]  ;;  %5006 = vmatpush.bf16.msra.mxu0 %v6151_v3  ;;  %s10118_s29 = scalar_lea.vmem %s10684_s4, %s6035_s26 }
 0x11f   : > { %v6134_v11 = vld [vmem:[%s9381_s21 + $0xc0] sm:$0xf]  ;;  %v6535_v12 = vor.u32 %v8213_v10, %v6534_v9  ;;  %v8113_v13 = vld [vmem:[%s9381_s21 + $0xcc] sm:$0xf0]  ;;  %5019 = vmatpush.bf16.msra.mxu1 %v6279_v7 }
 0x120   : > { %v6262_v14 = vld [vmem:[%s9381_s21 + $0x1c0] sm:$0xf]  ;;  %v8145_v15 = vld [vmem:[%s9381_s21 + $0x1cc] sm:$0xf0]  ;;  %5032 = vmatpush.bf16.msra.mxu2 %v6407_v8  ;;  %v6135_v16 = vor.u32 %v8113_v13, %v6134_v11 }
 0x121   : > { %v6263_v17 = vor.u32 %v8145_v15, %v6262_v14  ;;  %v6390_v18 = vld [vmem:[%s9381_s21 + $0x2c0] sm:$0xf]  ;;  %v8177_v19 = vld [vmem:[%s9381_s21 + $0x2cc] sm:$0xf0]  ;;  %5045 = vmatpush.bf16.msra.mxu3 %v6535_v12 }
 0x122   : > { %v6518_v20 = vld [vmem:[%s9381_s21 + $0x3c0] sm:$0xf]  ;;  %v6391_v21 = vor.u32 %v8177_v19, %v6390_v18  ;;  %v8209_v22 = vld [vmem:[%s9381_s21 + $0x3cc] sm:$0xf0]  ;;  %5007 = vmatpush.bf16.msra.mxu0 %v6135_v16 }
 0x123   : > { %v6118_v23 = vld [vmem:[%s9381_s21 + $0xa0] sm:$0xf]  ;;  %v8109_v24 = vld [vmem:[%s9381_s21 + $0xac] sm:$0xf0]  ;;  %v6519_v25 = vor.u32 %v8209_v22, %v6518_v20  ;;  %5020 = vmatpush.bf16.msra.mxu1 %v6263_v17 }
 0x124   : > { %v6246_v26 = vld [vmem:[%s9381_s21 + $0x1a0] sm:$0xf]  ;;  %v8141_v27 = vld [vmem:[%s9381_s21 + $0x1ac] sm:$0xf0]  ;;  %v6119_v29 = vor.u32 %v8109_v24, %v6118_v23  ;;  %5033 = vmatpush.bf16.msra.mxu2 %v6391_v21 }
 0x125   : > { %v6374_v28 = vld [vmem:[%s9381_s21 + $0x2a0] sm:$0xf]  ;;  %v8173_v30 = vld [vmem:[%s9381_s21 + $0x2ac] sm:$0xf0]  ;;  %v6247_v33 = vor.u32 %v8141_v27, %v6246_v26  ;;  %5046 = vmatpush.bf16.msra.mxu3 %v6519_v25 }
 0x126   : > { %v6502_v31 = vld [vmem:[%s9381_s21 + $0x3a0] sm:$0xf]  ;;  %v8205_v32 = vld [vmem:[%s9381_s21 + $0x3ac] sm:$0xf0]  ;;  %v6375_v34 = vor.u32 %v8173_v30, %v6374_v28  ;;  %5008 = vmatpush.bf16.msra.mxu0 %v6119_v29 }
 0x127   : > { %v6102_v35 = vld [vmem:[%s9381_s21 + $0x80] sm:$0xf]  ;;  %v8105_v36 = vld [vmem:[%s9381_s21 + $0x8c] sm:$0xf0]  ;;  %v6503_v38 = vor.u32 %v8205_v32, %v6502_v31  ;;  %5021 = vmatpush.bf16.msra.mxu1 %v6247_v33 }
 0x128   : > { %v6230_v37 = vld [vmem:[%s9381_s21 + $0x180] sm:$0xf]  ;;  %v8137_v39 = vld [vmem:[%s9381_s21 + $0x18c] sm:$0xf0]  ;;  %v6103_v44 = vor.u32 %v8105_v36, %v6102_v35  ;;  %5034 = vmatpush.bf16.msra.mxu2 %v6375_v34 }
 0x129   : > { %v6358_v40 = vld [vmem:[%s9381_s21 + $0x280] sm:$0xf]  ;;  %v8169_v41 = vld [vmem:[%s9381_s21 + $0x28c] sm:$0xf0]  ;;  %v6231_v45 = vor.u32 %v8137_v39, %v6230_v37  ;;  %5047 = vmatpush.bf16.msra.mxu3 %v6503_v38 }
 0x12a   : > { %v6486_v42 = vld [vmem:[%s9381_s21 + $0x380] sm:$0xf]  ;;  %v8201_v43 = vld [vmem:[%s9381_s21 + $0x38c] sm:$0xf0]  ;;  %v6359_v46 = vor.u32 %v8169_v41, %v6358_v40  ;;  %5009 = vmatpush.bf16.msra.mxu0 %v6103_v44 }
 0x12b   : > { %v6086_v47 = vld [vmem:[%s9381_s21 + $0x60] sm:$0xf]  ;;  %v8101_v48 = vld [vmem:[%s9381_s21 + $0x6c] sm:$0xf0]  ;;  %v6487_v50 = vor.u32 %v8201_v43, %v6486_v42  ;;  %5022 = vmatpush.bf16.msra.mxu1 %v6231_v45 }
 0x12c   : > { %v6214_v49 = vld [vmem:[%s9381_s21 + $0x160] sm:$0xf]  ;;  %v8133_v51 = vld [vmem:[%s9381_s21 + $0x16c] sm:$0xf0]  ;;  %v6087_v56 = vor.u32 %v8101_v48, %v6086_v47  ;;  %5035 = vmatpush.bf16.msra.mxu2 %v6359_v46 }
 0x12d   : > { %v6342_v52 = vld [vmem:[%s9381_s21 + $0x260] sm:$0xf]  ;;  %v8165_v53 = vld [vmem:[%s9381_s21 + $0x26c] sm:$0xf0]  ;;  %v6215_v57 = vor.u32 %v8133_v51, %v6214_v49  ;;  %5048 = vmatpush.bf16.msra.mxu3 %v6487_v50 }
 0x12e   : > { %v6470_v54 = vld [vmem:[%s9381_s21 + $0x360] sm:$0xf]  ;;  %v8197_v55 = vld [vmem:[%s9381_s21 + $0x36c] sm:$0xf0]  ;;  %v6343_v58 = vor.u32 %v8165_v53, %v6342_v52  ;;  %5010 = vmatpush.bf16.msra.mxu0 %v6087_v56 }
 0x12f   : > { %v6070_v59 = vld [vmem:[%s9381_s21 + $0x40] sm:$0xf]  ;;  %v8097_v60 = vld [vmem:[%s9381_s21 + $0x4c] sm:$0xf0]  ;;  %v6471_v62 = vor.u32 %v8197_v55, %v6470_v54  ;;  %5023 = vmatpush.bf16.msra.mxu1 %v6215_v57 }
 0x130   : > { %v6198_v61 = vld [vmem:[%s9381_s21 + $0x140] sm:$0xf]  ;;  %v8129_v63 = vld [vmem:[%s9381_s21 + $0x14c] sm:$0xf0]  ;;  %v6071_v4 = vor.u32 %v8097_v60, %v6070_v59  ;;  %5036 = vmatpush.bf16.msra.mxu2 %v6343_v58  ;;  %v1871_v58 = vld [vmem:[%s10680_s0 + $0x8] sm:$0xff] }
 0x131   : > { %v6326_v0 = vld [vmem:[%s9381_s21 + $0x240] sm:$0xf]  ;;  %v8161_v1 = vld [vmem:[%s9381_s21 + $0x24c] sm:$0xf0]  ;;  %v6199_v5 = vor.u32 %v8129_v63, %v6198_v61  ;;  %5049 = vmatpush.bf16.msra.mxu3 %v6471_v62  ;;  %v2400_v63 = vunpack.c.l.b16 %v1871_v58 }
 0x132   : > { %v6454_v2 = vld [vmem:[%s9381_s21 + $0x340] sm:$0xf]  ;;  %v8193_v3 = vld [vmem:[%s9381_s21 + $0x34c] sm:$0xf0]  ;;  %v6327_v6 = vor.u32 %v8161_v1, %v6326_v0  ;;  %5011 = vmatpush.bf16.msra.mxu0 %v6071_v4  ;;  %v2401_v0 = vunpack.c.h.b16 %v1871_v58 }
 0x133   : > { %v6054_v7 = vld [vmem:[%s9381_s21 + $0x20] sm:$0xf]  ;;  %v8093_v8 = vld [vmem:[%s9381_s21 + $0x2c] sm:$0xf0]  ;;  %v6455_v10 = vor.u32 %v8193_v3, %v6454_v2  ;;  %5024 = vmatpush.bf16.msra.mxu1 %v6199_v5  ;;  %v9474_v4 = vpack.c.b16 %v2400_v63, %v2400_v63 }
 0x134   : > { %v6182_v9 = vld [vmem:[%s9381_s21 + $0x120] sm:$0xf]  ;;  %v8125_v11 = vld [vmem:[%s9381_s21 + $0x12c] sm:$0xf0]  ;;  %v6055_v16 = vor.u32 %v8093_v8, %v6054_v7  ;;  %5037 = vmatpush.bf16.msra.mxu2 %v6327_v6  ;;  %v9479_v6 = vpack.c.b16 %v2401_v0, %v2401_v0 }
 0x135   : > { %v6310_v12 = vld [vmem:[%s9381_s21 + $0x220] sm:$0xf]  ;;  %v8157_v13 = vld [vmem:[%s9381_s21 + $0x22c] sm:$0xf0]  ;;  %v6183_v19 = vor.u32 %v8125_v11, %v6182_v9  ;;  %5050 = vmatpush.bf16.msra.mxu3 %v6455_v10 }
 0x136   : > { %v6438_v14 = vld [vmem:[%s9381_s21 + $0x320] sm:$0xf]  ;;  %v8189_v15 = vld [vmem:[%s9381_s21 + $0x32c] sm:$0xf0]  ;;  %v6311_v20 = vor.u32 %v8157_v13, %v6310_v12  ;;  %5012 = vmatpush.bf16.msra.mxu0 %v6055_v16 }
 0x137   : > { %v6038_v17 = vld [vmem:[%s9381_s21] sm:$0xf]  ;;  %v8089_v18 = vld [vmem:[%s9381_s21 + $0xc] sm:$0xf0]  ;;  %v6439_v24 = vor.u32 %v8189_v15, %v6438_v14  ;;  %5025 = vmatpush.bf16.msra.mxu1 %v6183_v19 }
 0x138   : > { %v6166_v21 = vld [vmem:[%s9381_s21 + $0x100] sm:$0xf]  ;;  %v8121_v22 = vld [vmem:[%s9381_s21 + $0x10c] sm:$0xf0]  ;;  %v6039_v31 = vor.u32 %v8089_v18, %v6038_v17  ;;  %5038 = vmatpush.bf16.msra.mxu2 %v6311_v20 }
 0x139   : > { %v6294_v23 = vld [vmem:[%s9381_s21 + $0x200] sm:$0xf]  ;;  %v8153_v25 = vld [vmem:[%s9381_s21 + $0x20c] sm:$0xf0]  ;;  %v6167_v35 = vor.u32 %v8121_v22, %v6166_v21  ;;  %5051 = vmatpush.bf16.msra.mxu3 %v6439_v24 }
 0x13a   : > { %v6422_v26 = vld [vmem:[%s9381_s21 + $0x300] sm:$0xf]  ;;  %v8185_v27 = vld [vmem:[%s9381_s21 + $0x30c] sm:$0xf0]  ;;  %v6295_v36 = vor.u32 %v8153_v25, %v6294_v23  ;;  %5013 = vmatpush.bf16.msra.mxu0 %v6039_v31 }
 0x13b   : > { %v6662_v28 = vld [vmem:[%s9381_s21 + $0x4e0] sm:$0xf]  ;;  %v8245_v29 = vld [vmem:[%s9381_s21 + $0x4ec] sm:$0xf0]  ;;  %v6423_v39 = vor.u32 %v8185_v27, %v6422_v26  ;;  %5026 = vmatpush.bf16.msra.mxu1 %v6167_v35 }
 0x13c   : > { %v6790_v30 = vld [vmem:[%s9381_s21 + $0x5e0] sm:$0xf]  ;;  %v8277_v32 = vld [vmem:[%s9381_s21 + $0x5ec] sm:$0xf0]  ;;  %v6663_v40 = vor.u32 %v8245_v29, %v6662_v28  ;;  %5039 = vmatpush.bf16.msra.mxu2 %v6295_v36 }
 0x13d   : > { %v6918_v33 = vld [vmem:[%s9381_s21 + $0x6e0] sm:$0xf]  ;;  %v8309_v34 = vld [vmem:[%s9381_s21 + $0x6ec] sm:$0xf0]  ;;  %v6791_v41 = vor.u32 %v8277_v32, %v6790_v30  ;;  %5052 = vmatpush.bf16.msra.mxu3 %v6423_v39 }
 0x13e   : > { %v7046_v37 = vld [vmem:[%s9381_s21 + $0x7e0] sm:$0xf]  ;;  %v8341_v38 = vld [vmem:[%s9381_s21 + $0x7ec] sm:$0xf0]  ;;  %v6919_v42 = vor.u32 %v8309_v34, %v6918_v33  ;;  %5058 = vmatpush.bf16.msrb.mxu0 %v6663_v40 }
 0x13f   : > { %v6646_v43 = vld [vmem:[%s9381_s21 + $0x4c0] sm:$0xf]  ;;  %v8241_v44 = vld [vmem:[%s9381_s21 + $0x4cc] sm:$0xf0]  ;;  %v7047_v46 = vor.u32 %v8341_v38, %v7046_v37  ;;  %5071 = vmatpush.bf16.msrb.mxu1 %v6791_v41  ;;  %5040 = vmatmul.bf16.vlgmr.msra.gmra.mxu2 %v9474_v4 }
 0x140   : > { %v6774_v45 = vld [vmem:[%s9381_s21 + $0x5c0] sm:$0xf]  ;;  %v8273_v47 = vld [vmem:[%s9381_s21 + $0x5cc] sm:$0xf0]  ;;  %v6647_v52 = vor.u32 %v8241_v44, %v6646_v43  ;;  %5084 = vmatpush.bf16.msrb.mxu2 %v6919_v42  ;;  %5053 = vmatmul.bf16.vlgmr.msra.gmra.mxu3 %v9479_v6 }
 0x141   : > { %v6902_v48 = vld [vmem:[%s9381_s21 + $0x6c0] sm:$0xf]  ;;  %v8305_v49 = vld [vmem:[%s9381_s21 + $0x6cc] sm:$0xf0]  ;;  %v6775_v54 = vor.u32 %v8273_v47, %v6774_v45  ;;  %5097 = vmatpush.bf16.msrb.mxu3 %v7047_v46 }
 0x142   : > { %v7030_v50 = vld [vmem:[%s9381_s21 + $0x7c0] sm:$0xf]  ;;  %v8337_v51 = vld [vmem:[%s9381_s21 + $0x7cc] sm:$0xf0]  ;;  %v6903_v55 = vor.u32 %v8305_v49, %v6902_v48  ;;  %5059 = vmatpush.bf16.msrb.mxu0 %v6647_v52 }
 0x143   : > { %v6630_v53 = vld [vmem:[%s9381_s21 + $0x4a0] sm:$0xf]  ;;  %v8237_v56 = vld [vmem:[%s9381_s21 + $0x4ac] sm:$0xf0]  ;;  %v7031_v59 = vor.u32 %v8337_v51, %v7030_v50  ;;  %5072 = vmatpush.bf16.msrb.mxu1 %v6775_v54 }
 0x144   : > { %v6758_v57 = vld [vmem:[%s9381_s21 + $0x5a0] sm:$0xf]  ;;  %v8269_v60 = vld [vmem:[%s9381_s21 + $0x5ac] sm:$0xf0]  ;;  %v6631_v3 = vor.u32 %v8237_v56, %v6630_v53  ;;  %5085 = vmatpush.bf16.msrb.mxu2 %v6903_v55 }
 0x145   : > { %v6886_v61 = vld [vmem:[%s9381_s21 + $0x6a0] sm:$0xf]  ;;  %v8301_v62 = vld [vmem:[%s9381_s21 + $0x6ac] sm:$0xf0]  ;;  %v6759_v7 = vor.u32 %v8269_v60, %v6758_v57  ;;  %5098 = vmatpush.bf16.msrb.mxu3 %v7031_v59 }
 0x146   : > { %v7014_v1 = vld [vmem:[%s9381_s21 + $0x7a0] sm:$0xf]  ;;  %v8333_v2 = vld [vmem:[%s9381_s21 + $0x7ac] sm:$0xf0]  ;;  %v6887_v8 = vor.u32 %v8301_v62, %v6886_v61  ;;  %5060 = vmatpush.bf16.msrb.mxu0 %v6631_v3  ;;  %v1873_v3 = vld [vmem:[%s10680_s0 + $0x18] sm:$0xff] }
 0x147   : > { %v1870_v5 = vld [vmem:[%s10680_s0] sm:$0xff]  ;;  %v8233_v10 = vld [vmem:[%s9381_s21 + $0x48c] sm:$0xf0]  ;;  %v7015_v14 = vor.u32 %v8333_v2, %v7014_v1  ;;  %5073 = vmatpush.bf16.msrb.mxu1 %v6759_v7 }
 0x148   : > { %v6614_v9 = vld [vmem:[%s9381_s21 + $0x480] sm:$0xf]  ;;  %v2398_v12 = vunpack.c.l.b16 %v1870_v5  ;;  %v2399_v13 = vunpack.c.h.b16 %v1870_v5  ;;  %v8265_v15 = vld [vmem:[%s9381_s21 + $0x58c] sm:$0xf0]  ;;  %5086 = vmatpush.bf16.msrb.mxu2 %v6887_v8 }
 0x149   : > { %v6742_v11 = vld [vmem:[%s9381_s21 + $0x580] sm:$0xf]  ;;  %v8297_v17 = vld [vmem:[%s9381_s21 + $0x68c] sm:$0xf0]  ;;  %v6615_v22 = vor.u32 %v8233_v10, %v6614_v9  ;;  %5099 = vmatpush.bf16.msrb.mxu3 %v7015_v14 }
 0x14a   : > { %v6870_v16 = vld [vmem:[%s9381_s21 + $0x680] sm:$0xf]  ;;  %v8329_v19 = vld [vmem:[%s9381_s21 + $0x78c] sm:$0xf0]  ;;  %v9490_v20 = vpack.c.b16 %v2398_v12, %v2398_v12  ;;  %v9493_v21 = vpack.c.b16 %v2399_v13, %v2399_v13  ;;  %v6743_v23 = vor.u32 %v8265_v15, %v6742_v11 }
 0x14b   : > { %v6998_v18 = vld [vmem:[%s9381_s21 + $0x780] sm:$0xf]  ;;  %v6871_v24 = vor.u32 %v8297_v17, %v6870_v16  ;;  %v8229_v26 = vld [vmem:[%s9381_s21 + $0x46c] sm:$0xf0]  ;;  %5061 = vmatpush.bf16.msrb.mxu0 %v6615_v22  ;;  %v2404_v17 = vunpack.c.l.b16 %v1873_v3 }
 0x14c   : > { %v6598_v25 = vld [vmem:[%s9381_s21 + $0x460] sm:$0xf]  ;;  %v6999_v28 = vor.u32 %v8329_v19, %v6998_v18  ;;  %v8261_v29 = vld [vmem:[%s9381_s21 + $0x56c] sm:$0xf0]  ;;  %5014 = vmatmul.bf16.vlgmr.msra.gmra.mxu0 %v9490_v20  ;;  %5027 = vmatmul.bf16.vlgmr.msra.gmra.mxu1 %v9493_v21 }
 0x14d   : > { %v6726_v27 = vld [vmem:[%s9381_s21 + $0x560] sm:$0xf]  ;;  %v8293_v31 = vld [vmem:[%s9381_s21 + $0x66c] sm:$0xf0]  ;;  %v6599_v34 = vor.u32 %v8229_v26, %v6598_v25  ;;  %5074 = vmatpush.bf16.msrb.mxu1 %v6743_v23  ;;  %5087 = vmatpush.bf16.msrb.mxu2 %v6871_v24  ;;  %v2405_v25 = vunpack.c.h.b16 %v1873_v3 }
 0x14e   : > { %v6854_v30 = vld [vmem:[%s9381_s21 + $0x660] sm:$0xf]  ;;  %v8325_v33 = vld [vmem:[%s9381_s21 + $0x76c] sm:$0xf0]  ;;  %v6727_v35 = vor.u32 %v8261_v29, %v6726_v27  ;;  %5100 = vmatpush.bf16.msrb.mxu3 %v6999_v28 }
 0x14f   : > { %v6982_v32 = vld [vmem:[%s9381_s21 + $0x760] sm:$0xf]  ;;  %v6855_v36 = vor.u32 %v8293_v31, %v6854_v30  ;;  %v8225_v38 = vld [vmem:[%s9381_s21 + $0x44c] sm:$0xf0]  ;;  %5062 = vmatpush.bf16.msrb.mxu0 %v6599_v34 }
 0x150   : > { %v6582_v37 = vld [vmem:[%s9381_s21 + $0x440] sm:$0xf]  ;;  %v6983_v40 = vor.u32 %v8325_v33, %v6982_v32  ;;  %v8257_v41 = vld [vmem:[%s9381_s21 + $0x54c] sm:$0xf0] }
 0x151   : > { %v6710_v39 = vld [vmem:[%s9381_s21 + $0x540] sm:$0xf]  ;;  %v8289_v43 = vld [vmem:[%s9381_s21 + $0x64c] sm:$0xf0]  ;;  %v6583_v46 = vor.u32 %v8225_v38, %v6582_v37  ;;  %5075 = vmatpush.bf16.msrb.mxu1 %v6727_v35  ;;  %5088 = vmatpush.bf16.msrb.mxu2 %v6855_v36  ;;  %v9549_v38 = vpack.c.b16 %v2404_v17, %v2404_v17 }
 0x152   : > { %v6838_v42 = vld [vmem:[%s9381_s21 + $0x640] sm:$0xf]  ;;  %v8321_v45 = vld [vmem:[%s9381_s21 + $0x74c] sm:$0xf0]  ;;  %v6711_v47 = vor.u32 %v8257_v41, %v6710_v39  ;;  %5101 = vmatpush.bf16.msrb.mxu3 %v6983_v40 }
 0x153   : > { %v6966_v44 = vld [vmem:[%s9381_s21 + $0x740] sm:$0xf]  ;;  %v6839_v48 = vor.u32 %v8289_v43, %v6838_v42  ;;  %v8221_v50 = vld [vmem:[%s9381_s21 + $0x42c] sm:$0xf0]  ;;  %5063 = vmatpush.bf16.msrb.mxu0 %v6583_v46  ;;  %v9555_v42 = vpack.c.b16 %v2405_v25, %v2405_v25 }
 0x154   : > { %v6566_v49 = vld [vmem:[%s9381_s21 + $0x420] sm:$0xf]  ;;  %v6967_v52 = vor.u32 %v8321_v45, %v6966_v44  ;;  %v8253_v53 = vld [vmem:[%s9381_s21 + $0x52c] sm:$0xf0] }
 0x155   : > { %v6694_v51 = vld [vmem:[%s9381_s21 + $0x520] sm:$0xf]  ;;  %v8285_v55 = vld [vmem:[%s9381_s21 + $0x62c] sm:$0xf0]  ;;  %v6567_v59 = vor.u32 %v8221_v50, %v6566_v49  ;;  %5076 = vmatpush.bf16.msrb.mxu1 %v6711_v47  ;;  %5089 = vmatpush.bf16.msrb.mxu2 %v6839_v48 }
 0x156   : > { %v6822_v54 = vld [vmem:[%s9381_s21 + $0x620] sm:$0xf]  ;;  %v8317_v57 = vld [vmem:[%s9381_s21 + $0x72c] sm:$0xf0]  ;;  %v6695_v63 = vor.u32 %v8253_v53, %v6694_v51  ;;  %5102 = vmatpush.bf16.msrb.mxu3 %v6967_v52 }
 0x157   : > { %v6950_v56 = vld [vmem:[%s9381_s21 + $0x720] sm:$0xf]  ;;  %v8217_v60 = vld [vmem:[%s9381_s21 + $0x40c] sm:$0xf0]  ;;  %v6823_v0 = vor.u32 %v8285_v55, %v6822_v54  ;;  %5064 = vmatpush.bf16.msrb.mxu0 %v6567_v59 }
 0x158   : > { %v6550_v58 = vld [vmem:[%s9381_s21 + $0x400] sm:$0xf]  ;;  %v8249_v62 = vld [vmem:[%s9381_s21 + $0x50c] sm:$0xf0]  ;;  %v6951_v5 = vor.u32 %v8317_v57, %v6950_v56 }
 0x159   : > { %v6678_v61 = vld [vmem:[%s9381_s21 + $0x500] sm:$0xf]  ;;  %v8281_v2 = vld [vmem:[%s9381_s21 + $0x60c] sm:$0xf0]  ;;  %v6551_v13 = vor.u32 %v8217_v60, %v6550_v58  ;;  %5077 = vmatpush.bf16.msrb.mxu1 %v6695_v63  ;;  %5090 = vmatpush.bf16.msrb.mxu2 %v6823_v0 }
 0x15a   : > { %v6806_v1 = vld [vmem:[%s9381_s21 + $0x600] sm:$0xf]  ;;  %v8313_v8 = vld [vmem:[%s9381_s21 + $0x70c] sm:$0xf0]  ;;  %v6679_v18 = vor.u32 %v8249_v62, %v6678_v61  ;;  %5103 = vmatpush.bf16.msrb.mxu3 %v6951_v5 }
 0x15b   : > { %v6934_v7 = vld [vmem:[%s9381_s21 + $0x700] sm:$0xf]  ;;  %v1872_v9 = vld [vmem:[%s10680_s0 + $0x10] sm:$0xff]  ;;  %v6807_v19 = vor.u32 %v8281_v2, %v6806_v1  ;;  %5065 = vmatpush.bf16.msrb.mxu0 %v6551_v13 }
 0x15c   : > { %v7174_v10 = vld [vmem:[%s9381_s21 + $0x8e0] sm:$0xf]  ;;  %v8373_v11 = vld [vmem:[%s9381_s21 + $0x8ec] sm:$0xf0]  ;;  %v2402_v24 = vunpack.c.l.b16 %v1872_v9  ;;  %v6935_v26 = vor.u32 %v8313_v8, %v6934_v7  ;;  %v2403_v28 = vunpack.c.h.b16 %v1872_v9 }
 0x15d   : > { %v7302_v12 = vld [vmem:[%s9381_s21 + $0x9e0] sm:$0xf]  ;;  %v8405_v14 = vld [vmem:[%s9381_s21 + $0x9ec] sm:$0xf0]  ;;  %v7175_v27 = vor.u32 %v8373_v11, %v7174_v10  ;;  %5078 = vmatpush.bf16.msrb.mxu1 %v6679_v18  ;;  %5091 = vmatpush.bf16.msrb.mxu2 %v6807_v19 }
 0x15e   : > { %v7430_v15 = vld [vmem:[%s9381_s21 + $0xae0] sm:$0xf]  ;;  %v8437_v16 = vld [vmem:[%s9381_s21 + $0xaec] sm:$0xf0]  ;;  %v7303_v29 = vor.u32 %v8405_v14, %v7302_v12  ;;  %v9553_v41 = vpack.c.b16 %v2402_v24, %v2402_v24  ;;  %5104 = vmatpush.bf16.msrb.mxu3 %v6935_v26  ;;  %v9557_v44 = vpack.c.b16 %v2403_v28, %v2403_v28 }
 0x15f   : > { %v7558_v22 = vld [vmem:[%s9381_s21 + $0xbe0] sm:$0xf]  ;;  %v8469_v23 = vld [vmem:[%s9381_s21 + $0xbec] sm:$0xf0]  ;;  %v7431_v30 = vor.u32 %v8437_v16, %v7430_v15  ;;  %5110 = vmatpush.bf16.msra.mxu0 %v7175_v27 }
 0x160   : > { %v7158_v31 = vld [vmem:[%s9381_s21 + $0x8c0] sm:$0xf]  ;;  %v8369_v32 = vld [vmem:[%s9381_s21 + $0x8cc] sm:$0xf0]  ;;  %v7559_v34 = vor.u32 %v8469_v23, %v7558_v22  ;;  %5092 = vmatmul.bf16.vlgmr.msrb.gmra.mxu2 %v9549_v38  ;;  %5066 = vmatmul.bf16.vlgmr.msrb.gmra.mxu0 %v9553_v41 }
 0x161   : > { %v7286_v33 = vld [vmem:[%s9381_s21 + $0x9c0] sm:$0xf]  ;;  %v8401_v35 = vld [vmem:[%s9381_s21 + $0x9cc] sm:$0xf0]  ;;  %v7159_v43 = vor.u32 %v8369_v32, %v7158_v31  ;;  %5123 = vmatpush.bf16.msra.mxu1 %v7303_v29  ;;  %5136 = vmatpush.bf16.msra.mxu2 %v7431_v30 }
 0x162   : > { %v7414_v36 = vld [vmem:[%s9381_s21 + $0xac0] sm:$0xf]  ;;  %v8433_v37 = vld [vmem:[%s9381_s21 + $0xacc] sm:$0xf0]  ;;  %v7287_v45 = vor.u32 %v8401_v35, %v7286_v33  ;;  %5149 = vmatpush.bf16.msra.mxu3 %v7559_v34  ;;  %5079 = vmatmul.bf16.vlgmr.msrb.gmra.mxu1 %v9557_v44 }
 0x163   : > { %v7542_v39 = vld [vmem:[%s9381_s21 + $0xbc0] sm:$0xf]  ;;  %v8465_v40 = vld [vmem:[%s9381_s21 + $0xbcc] sm:$0xf0]  ;;  %v7415_v46 = vor.u32 %v8433_v37, %v7414_v36  ;;  %5105 = vmatmul.bf16.vlgmr.msrb.gmra.mxu3 %v9555_v42  ;;  %5111 = vmatpush.bf16.msra.mxu0 %v7159_v43 }
 0x164   : > { %v7142_v47 = vld [vmem:[%s9381_s21 + $0x8a0] sm:$0xf]  ;;  %v8365_v48 = vld [vmem:[%s9381_s21 + $0x8ac] sm:$0xf0]  ;;  %v7543_v50 = vor.u32 %v8465_v40, %v7542_v39 }
 0x165   : > { %v7270_v49 = vld [vmem:[%s9381_s21 + $0x9a0] sm:$0xf]  ;;  %v8397_v51 = vld [vmem:[%s9381_s21 + $0x9ac] sm:$0xf0]  ;;  %v7143_v56 = vor.u32 %v8365_v48, %v7142_v47  ;;  %5124 = vmatpush.bf16.msra.mxu1 %v7287_v45  ;;  %5137 = vmatpush.bf16.msra.mxu2 %v7415_v46 }
 0x166   : > { %v7398_v52 = vld [vmem:[%s9381_s21 + $0xaa0] sm:$0xf]  ;;  %v8429_v53 = vld [vmem:[%s9381_s21 + $0xaac] sm:$0xf0]  ;;  %v7271_v57 = vor.u32 %v8397_v51, %v7270_v49  ;;  %5150 = vmatpush.bf16.msra.mxu3 %v7543_v50 }
 0x167   : > { %v7526_v54 = vld [vmem:[%s9381_s21 + $0xba0] sm:$0xf]  ;;  %v8461_v55 = vld [vmem:[%s9381_s21 + $0xbac] sm:$0xf0]  ;;  %v7399_v58 = vor.u32 %v8429_v53, %v7398_v52  ;;  %5112 = vmatpush.bf16.msra.mxu0 %v7143_v56 }
 0x168   : > { %v7126_v59 = vld [vmem:[%s9381_s21 + $0x880] sm:$0xf]  ;;  %v8361_v60 = vld [vmem:[%s9381_s21 + $0x88c] sm:$0xf0]  ;;  %v7527_v62 = vor.u32 %v8461_v55, %v7526_v54 }
 0x169   : > { %v7254_v61 = vld [vmem:[%s9381_s21 + $0x980] sm:$0xf]  ;;  %v8393_v63 = vld [vmem:[%s9381_s21 + $0x98c] sm:$0xf0]  ;;  %v7127_v5 = vor.u32 %v8361_v60, %v7126_v59  ;;  %5125 = vmatpush.bf16.msra.mxu1 %v7271_v57  ;;  %5138 = vmatpush.bf16.msra.mxu2 %v7399_v58 }
 0x16a   : > { %v7382_v0 = vld [vmem:[%s9381_s21 + $0xa80] sm:$0xf]  ;;  %v8425_v1 = vld [vmem:[%s9381_s21 + $0xa8c] sm:$0xf0]  ;;  %v7255_v7 = vor.u32 %v8393_v63, %v7254_v61  ;;  %5151 = vmatpush.bf16.msra.mxu3 %v7527_v62  ;;  %v1875_v61 = vld [vmem:[%s10680_s0 + $0x28] sm:$0xff] }
 0x16b   : > { %v7510_v2 = vld [vmem:[%s9381_s21 + $0xb80] sm:$0xf]  ;;  %v8457_v3 = vld [vmem:[%s9381_s21 + $0xb8c] sm:$0xf0]  ;;  %v7383_v8 = vor.u32 %v8425_v1, %v7382_v0  ;;  %5113 = vmatpush.bf16.msra.mxu0 %v7127_v5 }
 0x16c   : > { %v7110_v9 = vld [vmem:[%s9381_s21 + $0x860] sm:$0xf]  ;;  %v8357_v10 = vld [vmem:[%s9381_s21 + $0x86c] sm:$0xf0]  ;;  %v7511_v12 = vor.u32 %v8457_v3, %v7510_v2 }
 0x16d   : > { %v7238_v11 = vld [vmem:[%s9381_s21 + $0x960] sm:$0xf]  ;;  %v8389_v13 = vld [vmem:[%s9381_s21 + $0x96c] sm:$0xf0]  ;;  %v7111_v18 = vor.u32 %v8357_v10, %v7110_v9  ;;  %5126 = vmatpush.bf16.msra.mxu1 %v7255_v7  ;;  %5139 = vmatpush.bf16.msra.mxu2 %v7383_v8 }
 0x16e   : > { %v7366_v14 = vld [vmem:[%s9381_s21 + $0xa60] sm:$0xf]  ;;  %v8421_v15 = vld [vmem:[%s9381_s21 + $0xa6c] sm:$0xf0]  ;;  %v7239_v19 = vor.u32 %v8389_v13, %v7238_v11  ;;  %5152 = vmatpush.bf16.msra.mxu3 %v7511_v12  ;;  %v2408_v12 = vunpack.c.l.b16 %v1875_v61 }
 0x16f   : > { %v7494_v16 = vld [vmem:[%s9381_s21 + $0xb60] sm:$0xf]  ;;  %v8453_v17 = vld [vmem:[%s9381_s21 + $0xb6c] sm:$0xf0]  ;;  %v7367_v22 = vor.u32 %v8421_v15, %v7366_v14  ;;  %5114 = vmatpush.bf16.msra.mxu0 %v7111_v18 }
 0x170   : > { %v7094_v23 = vld [vmem:[%s9381_s21 + $0x840] sm:$0xf]  ;;  %v8353_v24 = vld [vmem:[%s9381_s21 + $0x84c] sm:$0xf0]  ;;  %v7495_v26 = vor.u32 %v8453_v17, %v7494_v16  ;;  %v2409_v16 = vunpack.c.h.b16 %v1875_v61 }
 0x171   : > { %v7222_v25 = vld [vmem:[%s9381_s21 + $0x940] sm:$0xf]  ;;  %v8385_v27 = vld [vmem:[%s9381_s21 + $0x94c] sm:$0xf0]  ;;  %v7095_v32 = vor.u32 %v8353_v24, %v7094_v23  ;;  %5127 = vmatpush.bf16.msra.mxu1 %v7239_v19  ;;  %5140 = vmatpush.bf16.msra.mxu2 %v7367_v22 }
 0x172   : > { %v7350_v28 = vld [vmem:[%s9381_s21 + $0xa40] sm:$0xf]  ;;  %v8417_v29 = vld [vmem:[%s9381_s21 + $0xa4c] sm:$0xf0]  ;;  %v7223_v33 = vor.u32 %v8385_v27, %v7222_v25  ;;  %5153 = vmatpush.bf16.msra.mxu3 %v7495_v26 }
 0x173   : > { %v7478_v30 = vld [vmem:[%s9381_s21 + $0xb40] sm:$0xf]  ;;  %v8449_v31 = vld [vmem:[%s9381_s21 + $0xb4c] sm:$0xf0]  ;;  %v7351_v34 = vor.u32 %v8417_v29, %v7350_v28  ;;  %5115 = vmatpush.bf16.msra.mxu0 %v7095_v32  ;;  %v9633_v29 = vpack.c.b16 %v2408_v12, %v2408_v12 }
 0x174   : > { %v7078_v35 = vld [vmem:[%s9381_s21 + $0x820] sm:$0xf]  ;;  %v8349_v36 = vld [vmem:[%s9381_s21 + $0x82c] sm:$0xf0]  ;;  %v7479_v39 = vor.u32 %v8449_v31, %v7478_v30 }
 0x175   : > { %v7206_v37 = vld [vmem:[%s9381_s21 + $0x920] sm:$0xf]  ;;  %v8381_v40 = vld [vmem:[%s9381_s21 + $0x92c] sm:$0xf0]  ;;  %v7079_v49 = vor.u32 %v8349_v36, %v7078_v35  ;;  %5128 = vmatpush.bf16.msra.mxu1 %v7223_v33  ;;  %5141 = vmatpush.bf16.msra.mxu2 %v7351_v34  ;;  %v9639_v33 = vpack.c.b16 %v2409_v16, %v2409_v16 }
 0x176   : > { %v7334_v43 = vld [vmem:[%s9381_s21 + $0xa20] sm:$0xf]  ;;  %v8413_v45 = vld [vmem:[%s9381_s21 + $0xa2c] sm:$0xf0]  ;;  %v7207_v53 = vor.u32 %v8381_v40, %v7206_v37  ;;  %5154 = vmatpush.bf16.msra.mxu3 %v7479_v39 }
 0x177   : > { %v7462_v46 = vld [vmem:[%s9381_s21 + $0xb20] sm:$0xf]  ;;  %v8445_v47 = vld [vmem:[%s9381_s21 + $0xb2c] sm:$0xf0]  ;;  %v7335_v54 = vor.u32 %v8413_v45, %v7334_v43  ;;  %5116 = vmatpush.bf16.msra.mxu0 %v7079_v49 }
 0x178   : > { %v7062_v48 = vld [vmem:[%s9381_s21 + $0x800] sm:$0xf]  ;;  %v8345_v50 = vld [vmem:[%s9381_s21 + $0x80c] sm:$0xf0]  ;;  %v7463_v58 = vor.u32 %v8445_v47, %v7462_v46 }
 0x179   : > { %v7190_v51 = vld [vmem:[%s9381_s21 + $0x900] sm:$0xf]  ;;  %v8377_v52 = vld [vmem:[%s9381_s21 + $0x90c] sm:$0xf0]  ;;  %v7063_v1 = vor.u32 %v8345_v50, %v7062_v48  ;;  %5129 = vmatpush.bf16.msra.mxu1 %v7207_v53  ;;  %5142 = vmatpush.bf16.msra.mxu2 %v7335_v54 }
 0x17a   : > { %v7318_v55 = vld [vmem:[%s9381_s21 + $0xa00] sm:$0xf]  ;;  %v8409_v56 = vld [vmem:[%s9381_s21 + $0xa0c] sm:$0xf0]  ;;  %v7191_v8 = vor.u32 %v8377_v52, %v7190_v51  ;;  %5155 = vmatpush.bf16.msra.mxu3 %v7463_v58 }
 0x17b   : > { %v1874_v57 = vld [vmem:[%s10680_s0 + $0x20] sm:$0xff]  ;;  %v8441_v60 = vld [vmem:[%s9381_s21 + $0xb0c] sm:$0xf0]  ;;  %v7319_v9 = vor.u32 %v8409_v56, %v7318_v55  ;;  %5117 = vmatpush.bf16.msra.mxu0 %v7063_v1 }
 0x17c   : > { %v7446_v59 = vld [vmem:[%s9381_s21 + $0xb00] sm:$0xf]  ;;  %v8501_v63 = vld [vmem:[%s9381_s21 + $0xcec] sm:$0xf0]  ;;  %v2406_v7 = vunpack.c.l.b16 %v1874_v57  ;;  %v2407_v13 = vunpack.c.h.b16 %v1874_v57 }
 0x17d   : > { %v7686_v62 = vld [vmem:[%s9381_s21 + $0xce0] sm:$0xf]  ;;  %v8533_v2 = vld [vmem:[%s9381_s21 + $0xdec] sm:$0xf0]  ;;  %v7447_v14 = vor.u32 %v8441_v60, %v7446_v59  ;;  %5130 = vmatpush.bf16.msra.mxu1 %v7191_v8  ;;  %5143 = vmatpush.bf16.msra.mxu2 %v7319_v9 }
 0x17e   : > { %v7814_v0 = vld [vmem:[%s9381_s21 + $0xde0] sm:$0xf]  ;;  %v8565_v5 = vld [vmem:[%s9381_s21 + $0xeec] sm:$0xf0]  ;;  %v7687_v15 = vor.u32 %v8501_v63, %v7686_v62  ;;  %v9628_v25 = vpack.c.b16 %v2406_v7, %v2406_v7  ;;  %v9635_v30 = vpack.c.b16 %v2407_v13, %v2407_v13 }
 0x17f   : > { %v7942_v3 = vld [vmem:[%s9381_s21 + $0xee0] sm:$0xf]  ;;  %v8597_v11 = vld [vmem:[%s9381_s21 + $0xfec] sm:$0xf0]  ;;  %v7815_v17 = vor.u32 %v8533_v2, %v7814_v0  ;;  %5156 = vmatpush.bf16.msra.mxu3 %v7447_v14 }
 0x180   : > { %v8070_v10 = vld [vmem:[%s9381_s21 + $0xfe0] sm:$0xf]  ;;  %v7943_v18 = vor.u32 %v8565_v5, %v7942_v3  ;;  %v8497_v22 = vld [vmem:[%s9381_s21 + $0xccc] sm:$0xf0]  ;;  %5162 = vmatpush.bf16.msrb.mxu0 %v7687_v15  ;;  %5144 = vmatmul.bf16.vlgmr.msra.gmra.mxu2 %v9633_v29 }
 0x181   : > { %v7670_v19 = vld [vmem:[%s9381_s21 + $0xcc0] sm:$0xf]  ;;  %v8071_v24 = vor.u32 %v8597_v11, %v8070_v10  ;;  %v8529_v26 = vld [vmem:[%s9381_s21 + $0xdcc] sm:$0xf0]  ;;  %5175 = vmatpush.bf16.msrb.mxu1 %v7815_v17  ;;  %5118 = vmatmul.bf16.vlgmr.msra.gmra.mxu0 %v9628_v25 }
 0x182   : > { %v7798_v23 = vld [vmem:[%s9381_s21 + $0xdc0] sm:$0xf]  ;;  %v8561_v28 = vld [vmem:[%s9381_s21 + $0xecc] sm:$0xf0]  ;;  %v7671_v34 = vor.u32 %v8497_v22, %v7670_v19  ;;  %5188 = vmatpush.bf16.msrb.mxu2 %v7943_v18  ;;  %5131 = vmatmul.bf16.vlgmr.msra.gmra.mxu1 %v9635_v30 }
 0x183   : > { %v7926_v27 = vld [vmem:[%s9381_s21 + $0xec0] sm:$0xf]  ;;  %v8593_v32 = vld [vmem:[%s9381_s21 + $0xfcc] sm:$0xf0]  ;;  %v7799_v35 = vor.u32 %v8529_v26, %v7798_v23  ;;  %5201 = vmatpush.bf16.msrb.mxu3 %v8071_v24 }
 0x184   : > { %v8054_v31 = vld [vmem:[%s9381_s21 + $0xfc0] sm:$0xf]  ;;  %v7927_v36 = vor.u32 %v8561_v28, %v7926_v27  ;;  %v8493_v39 = vld [vmem:[%s9381_s21 + $0xcac] sm:$0xf0]  ;;  %5157 = vmatmul.bf16.vlgmr.msra.gmra.mxu3 %v9639_v33  ;;  %5163 = vmatpush.bf16.msrb.mxu0 %v7671_v34 }
 0x185   : > { %v7654_v37 = vld [vmem:[%s9381_s21 + $0xca0] sm:$0xf]  ;;  %v8055_v43 = vor.u32 %v8593_v32, %v8054_v31  ;;  %v8525_v45 = vld [vmem:[%s9381_s21 + $0xdac] sm:$0xf0]  ;;  %5176 = vmatpush.bf16.msrb.mxu1 %v7799_v35 }
 0x186   : > { %v7782_v40 = vld [vmem:[%s9381_s21 + $0xda0] sm:$0xf]  ;;  %v8557_v47 = vld [vmem:[%s9381_s21 + $0xeac] sm:$0xf0]  ;;  %v7655_v50 = vor.u32 %v8493_v39, %v7654_v37  ;;  %5189 = vmatpush.bf16.msrb.mxu2 %v7927_v36 }
 0x187   : > { %v7910_v46 = vld [vmem:[%s9381_s21 + $0xea0] sm:$0xf]  ;;  %v8589_v49 = vld [vmem:[%s9381_s21 + $0xfac] sm:$0xf0]  ;;  %v7783_v51 = vor.u32 %v8525_v45, %v7782_v40  ;;  %5202 = vmatpush.bf16.msrb.mxu3 %v8055_v43 }
 0x188   : > { %v8038_v48 = vld [vmem:[%s9381_s21 + $0xfa0] sm:$0xf]  ;;  %v7911_v52 = vor.u32 %v8557_v47, %v7910_v46  ;;  %v8489_v54 = vld [vmem:[%s9381_s21 + $0xc8c] sm:$0xf0]  ;;  %5164 = vmatpush.bf16.msrb.mxu0 %v7655_v50 }
 0x189   : > { %v7638_v53 = vld [vmem:[%s9381_s21 + $0xc80] sm:$0xf]  ;;  %v8039_v56 = vor.u32 %v8589_v49, %v8038_v48  ;;  %v8521_v57 = vld [vmem:[%s9381_s21 + $0xd8c] sm:$0xf0]  ;;  %5177 = vmatpush.bf16.msrb.mxu1 %v7783_v51 }
 0x18a   : > { %v7766_v55 = vld [vmem:[%s9381_s21 + $0xd80] sm:$0xf]  ;;  %v8553_v59 = vld [vmem:[%s9381_s21 + $0xe8c] sm:$0xf0]  ;;  %v7639_v62 = vor.u32 %v8489_v54, %v7638_v53  ;;  %5190 = vmatpush.bf16.msrb.mxu2 %v7911_v52 }
 0x18b   : > { %v7894_v58 = vld [vmem:[%s9381_s21 + $0xe80] sm:$0xf]  ;;  %v8585_v61 = vld [vmem:[%s9381_s21 + $0xf8c] sm:$0xf0]  ;;  %v7767_v63 = vor.u32 %v8521_v57, %v7766_v55  ;;  %5203 = vmatpush.bf16.msrb.mxu3 %v8039_v56 }
 0x18c   : > { %v8022_v60 = vld [vmem:[%s9381_s21 + $0xf80] sm:$0xf]  ;;  %v7895_v0 = vor.u32 %v8553_v59, %v7894_v58  ;;  %v8485_v2 = vld [vmem:[%s9381_s21 + $0xc6c] sm:$0xf0]  ;;  %5165 = vmatpush.bf16.msrb.mxu0 %v7639_v62  ;;  %v1877_v59 = vld [vmem:[%s10680_s0 + $0x38] sm:$0xff] }
 0x18d   : > { %v7622_v1 = vld [vmem:[%s9381_s21 + $0xc60] sm:$0xf]  ;;  %v8023_v5 = vor.u32 %v8585_v61, %v8022_v60  ;;  %v8517_v7 = vld [vmem:[%s9381_s21 + $0xd6c] sm:$0xf0]  ;;  %5178 = vmatpush.bf16.msrb.mxu1 %v7767_v63  ;;  %v8115_v60 = vld [vmem:[%s9381_s21 + $0xe4] sm:$0xf] }
 0x18e   : > { %v7750_v3 = vld [vmem:[%s9381_s21 + $0xd60] sm:$0xf]  ;;  %v8549_v9 = vld [vmem:[%s9381_s21 + $0xe6c] sm:$0xf0]  ;;  %v7623_v12 = vor.u32 %v8485_v2, %v7622_v1  ;;  %5191 = vmatpush.bf16.msrb.mxu2 %v7895_v0  ;;  %v6152_v61 = vld [vmem:[%s9381_s21 + $0xf0] sm:$0xf0] }
 0x18f   : > { %v7878_v8 = vld [vmem:[%s9381_s21 + $0xe60] sm:$0xf]  ;;  %v8581_v11 = vld [vmem:[%s9381_s21 + $0xf6c] sm:$0xf0]  ;;  %v7751_v13 = vor.u32 %v8517_v7, %v7750_v3  ;;  %5204 = vmatpush.bf16.msrb.mxu3 %v8023_v5  ;;  %v8147_v62 = vld [vmem:[%s9381_s21 + $0x1e4] sm:$0xf] }
 0x190   : > { %v8006_v10 = vld [vmem:[%s9381_s21 + $0xf60] sm:$0xf]  ;;  %v7879_v14 = vor.u32 %v8549_v9, %v7878_v8  ;;  %v8481_v16 = vld [vmem:[%s9381_s21 + $0xc4c] sm:$0xf0]  ;;  %5166 = vmatpush.bf16.msrb.mxu0 %v7623_v12  ;;  %v6280_v0 = vld [vmem:[%s9381_s21 + $0x1f0] sm:$0xf0] }
 0x191   : > { %v7606_v15 = vld [vmem:[%s9381_s21 + $0xc40] sm:$0xf]  ;;  %v8007_v18 = vor.u32 %v8581_v11, %v8006_v10  ;;  %v8513_v19 = vld [vmem:[%s9381_s21 + $0xd4c] sm:$0xf0]  ;;  %5179 = vmatpush.bf16.msrb.mxu1 %v7751_v13  ;;  %v8179_v1 = vld [vmem:[%s9381_s21 + $0x2e4] sm:$0xf]  ;;  %v2412_v10 = vunpack.c.l.b16 %v1877_v59  ;;  %v6155_v13 = vor.u32 %v8115_v60, %v6152_v61 }
 0x192   : > { %v7734_v17 = vld [vmem:[%s9381_s21 + $0xd40] sm:$0xf]  ;;  %v8545_v23 = vld [vmem:[%s9381_s21 + $0xe4c] sm:$0xf0]  ;;  %v7607_v27 = vor.u32 %v8481_v16, %v7606_v15  ;;  %5192 = vmatpush.bf16.msrb.mxu2 %v7879_v14  ;;  %v6408_v2 = vld [vmem:[%s9381_s21 + $0x2f0] sm:$0xf0]  ;;  %v2413_v14 = vunpack.c.h.b16 %v1877_v59  ;;  %v6283_v15 = vor.u32 %v8147_v62, %v6280_v0 }
 0x193   : > { %v7862_v22 = vld [vmem:[%s9381_s21 + $0xe40] sm:$0xf]  ;;  %v8577_v26 = vld [vmem:[%s9381_s21 + $0xf4c] sm:$0xf0]  ;;  %v7735_v28 = vor.u32 %v8513_v19, %v7734_v17  ;;  %5205 = vmatpush.bf16.msrb.mxu3 %v8007_v18  ;;  %v8211_v8 = vld [vmem:[%s9381_s21 + $0x3e4] sm:$0xf]  ;;  %v6411_v16 = vor.u32 %v8179_v1, %v6408_v2 }
 0x194   : > { %v7990_v24 = vld [vmem:[%s9381_s21 + $0xf40] sm:$0xf]  ;;  %v7863_v31 = vor.u32 %v8545_v23, %v7862_v22  ;;  %v8477_v34 = vld [vmem:[%s9381_s21 + $0xc2c] sm:$0xf0]  ;;  %5167 = vmatpush.bf16.msrb.mxu0 %v7607_v27  ;;  %v6536_v9 = vld [vmem:[%s9381_s21 + $0x3f0] sm:$0xf0] }
 0x195   : > { %v7590_v32 = vld [vmem:[%s9381_s21 + $0xc20] sm:$0xf]  ;;  %v7991_v36 = vor.u32 %v8577_v26, %v7990_v24  ;;  %v8509_v37 = vld [vmem:[%s9381_s21 + $0xd2c] sm:$0xf0]  ;;  %5180 = vmatpush.bf16.msrb.mxu1 %v7735_v28  ;;  %v8111_v17 = vld [vmem:[%s9381_s21 + $0xc4] sm:$0xf]  ;;  %v6539_v22 = vor.u32 %v8211_v8, %v6536_v9  ;;  %v9715_v28 = vpack.c.b16 %v2412_v10, %v2412_v10 }
 0x196   : > { %v7718_v35 = vld [vmem:[%s9381_s21 + $0xd20] sm:$0xf]  ;;  %v8541_v40 = vld [vmem:[%s9381_s21 + $0xe2c] sm:$0xf0]  ;;  %v7591_v47 = vor.u32 %v8477_v34, %v7590_v32  ;;  %5193 = vmatpush.bf16.msrb.mxu2 %v7863_v31  ;;  %v6136_v18 = vld [vmem:[%s9381_s21 + $0xd0] sm:$0xf0] }
 0x197   : > { %v7846_v39 = vld [vmem:[%s9381_s21 + $0xe20] sm:$0xf]  ;;  %v8573_v45 = vld [vmem:[%s9381_s21 + $0xf2c] sm:$0xf0]  ;;  %v7719_v51 = vor.u32 %v8509_v37, %v7718_v35  ;;  %5206 = vmatpush.bf16.msrb.mxu3 %v7991_v36  ;;  %v8143_v19 = vld [vmem:[%s9381_s21 + $0x1c4] sm:$0xf]  ;;  %v9721_v35 = vpack.c.b16 %v2413_v14, %v2413_v14  ;;  %v6139_v36 = vor.u32 %v8111_v17, %v6136_v18 }
 0x198   : > { %v7974_v43 = vld [vmem:[%s9381_s21 + $0xf20] sm:$0xf]  ;;  %v8473_v48 = vld [vmem:[%s9381_s21 + $0xc0c] sm:$0xf0]  ;;  %v7847_v52 = vor.u32 %v8541_v40, %v7846_v39  ;;  %5168 = vmatpush.bf16.msrb.mxu0 %v7591_v47  ;;  %v6264_v24 = vld [vmem:[%s9381_s21 + $0x1d0] sm:$0xf0] }
 0x199   : > { %v7574_v46 = vld [vmem:[%s9381_s21 + $0xc00] sm:$0xf]  ;;  %v8505_v50 = vld [vmem:[%s9381_s21 + $0xd0c] sm:$0xf0]  ;;  %v7975_v56 = vor.u32 %v8573_v45, %v7974_v43  ;;  %5181 = vmatpush.bf16.msrb.mxu1 %v7719_v51  ;;  %v8175_v26 = vld [vmem:[%s9381_s21 + $0x2c4] sm:$0xf]  ;;  %v6267_v37 = vor.u32 %v8143_v19, %v6264_v24 }
 0x19a   : > { %v7702_v49 = vld [vmem:[%s9381_s21 + $0xd00] sm:$0xf]  ;;  %v8537_v54 = vld [vmem:[%s9381_s21 + $0xe0c] sm:$0xf0]  ;;  %v7575_v63 = vor.u32 %v8473_v48, %v7574_v46  ;;  %5194 = vmatpush.bf16.msrb.mxu2 %v7847_v52  ;;  %v6392_v27 = vld [vmem:[%s9381_s21 + $0x2d0] sm:$0xf0] }
 0x19b   : > { %v7830_v53 = vld [vmem:[%s9381_s21 + $0xe00] sm:$0xf]  ;;  %v1876_v55 = vld [vmem:[%s10680_s0 + $0x30] sm:$0xff]  ;;  %v7703_v5 = vor.u32 %v8505_v50, %v7702_v49  ;;  %5207 = vmatpush.bf16.msrb.mxu3 %v7975_v56  ;;  %v8207_v32 = vld [vmem:[%s9381_s21 + $0x3c4] sm:$0xf]  ;;  %v6395_v39 = vor.u32 %v8175_v26, %v6392_v27 }
 0x19c   : > { %v7958_v57 = vld [vmem:[%s9381_s21 + $0xf00] sm:$0xf]  ;;  %v8569_v58 = vld [vmem:[%s9381_s21 + $0xf0c] sm:$0xf0]  ;;  %v2410_v3 = vunpack.c.l.b16 %v1876_v55  ;;  %v7831_v7 = vor.u32 %v8537_v54, %v7830_v53  ;;  %v2411_v11 = vunpack.c.h.b16 %v1876_v55  ;;  %5169 = vmatpush.bf16.msrb.mxu0 %v7575_v63  ;;  %v6520_v34 = vld [vmem:[%s9381_s21 + $0x3d0] sm:$0xf0] }
 0x19d   : > { %v7959_v12 = vor.u32 %v8569_v58, %v7958_v57  ;;  %5182 = vmatpush.bf16.msrb.mxu1 %v7703_v5  ;;  %v8107_v40 = vld [vmem:[%s9381_s21 + $0xa4] sm:$0xf]  ;;  %v6120_v43 = vld [vmem:[%s9381_s21 + $0xb0] sm:$0xf0]  ;;  %v6523_v46 = vor.u32 %v8207_v32, %v6520_v34 }
 0x19e   : > { %v9710_v23 = vpack.c.b16 %v2410_v3, %v2410_v3  ;;  %5195 = vmatpush.bf16.msrb.mxu2 %v7831_v7  ;;  %v9717_v31 = vpack.c.b16 %v2411_v11, %v2411_v11  ;;  %v8139_v45 = vld [vmem:[%s9381_s21 + $0x1a4] sm:$0xf]  ;;  %v6248_v47 = vld [vmem:[%s9381_s21 + $0x1b0] sm:$0xf0]  ;;  %v6123_v52 = vor.u32 %v8107_v40, %v6120_v43 }
 0x19f   : > { %5208 = vmatpush.bf16.msrb.mxu3 %v7959_v12  ;;  %v8171_v48 = vld [vmem:[%s9381_s21 + $0x2a4] sm:$0xf]  ;;  %v6376_v49 = vld [vmem:[%s9381_s21 + $0x2b0] sm:$0xf0]  ;;  %v6251_v53 = vor.u32 %v8139_v45, %v6248_v47 }
 0x1a0   : > { %5214 = vmatpush.bf16.msra.mxu0 %v6155_v13  ;;  %5183 = vmatmul.bf16.vlgmr.msrb.gmra.mxu1 %v9717_v31  ;;  %v8203_v50 = vld [vmem:[%s9381_s21 + $0x3a4] sm:$0xf]  ;;  %v6504_v51 = vld [vmem:[%s9381_s21 + $0x3b0] sm:$0xf0]  ;;  %v6379_v54 = vor.u32 %v8171_v48, %v6376_v49 }
 0x1a1   : > { %5227 = vmatpush.bf16.msra.mxu1 %v6283_v15  ;;  %5170 = vmatmul.bf16.vlgmr.msrb.gmra.mxu0 %v9710_v23  ;;  %v8103_v55 = vld [vmem:[%s9381_s21 + $0x84] sm:$0xf]  ;;  %v6104_v56 = vld [vmem:[%s9381_s21 + $0x90] sm:$0xf0]  ;;  %v6507_v58 = vor.u32 %v8203_v50, %v6504_v51 }
 0x1a2   : > { %5240 = vmatpush.bf16.msra.mxu2 %v6411_v16  ;;  %5209 = vmatmul.bf16.vlgmr.msrb.gmra.mxu3 %v9721_v35  ;;  %v8135_v57 = vld [vmem:[%s9381_s21 + $0x184] sm:$0xf]  ;;  %v6232_v59 = vld [vmem:[%s9381_s21 + $0x190] sm:$0xf0]  ;;  %v6107_v0 = vor.u32 %v8103_v55, %v6104_v56 }
 0x1a3   : > { %5253 = vmatpush.bf16.msra.mxu3 %v6539_v22  ;;  %5196 = vmatmul.bf16.vlgmr.msrb.gmra.mxu2 %v9715_v28  ;;  %v8167_v60 = vld [vmem:[%s9381_s21 + $0x284] sm:$0xf]  ;;  %v6360_v61 = vld [vmem:[%s9381_s21 + $0x290] sm:$0xf0]  ;;  %v6235_v1 = vor.u32 %v8135_v57, %v6232_v59 }
 0x1a4   : > { %5215 = vmatpush.bf16.msra.mxu0 %v6139_v36  ;;  %v8199_v62 = vld [vmem:[%s9381_s21 + $0x384] sm:$0xf]  ;;  %v6488_v63 = vld [vmem:[%s9381_s21 + $0x390] sm:$0xf0]  ;;  %v6363_v2 = vor.u32 %v8167_v60, %v6360_v61 }
 0x1a5   : > { %5228 = vmatpush.bf16.msra.mxu1 %v6267_v37  ;;  %v8099_v3 = vld [vmem:[%s9381_s21 + $0x64] sm:$0xf]  ;;  %v6088_v5 = vld [vmem:[%s9381_s21 + $0x70] sm:$0xf0]  ;;  %v6491_v8 = vor.u32 %v8199_v62, %v6488_v63 }
 0x1a6   : > { %5241 = vmatpush.bf16.msra.mxu2 %v6395_v39  ;;  %v8131_v7 = vld [vmem:[%s9381_s21 + $0x164] sm:$0xf]  ;;  %v6216_v9 = vld [vmem:[%s9381_s21 + $0x170] sm:$0xf0]  ;;  %v6091_v14 = vor.u32 %v8099_v3, %v6088_v5 }
 0x1a7   : > { %5254 = vmatpush.bf16.msra.mxu3 %v6523_v46  ;;  %v8163_v10 = vld [vmem:[%s9381_s21 + $0x264] sm:$0xf]  ;;  %v6344_v11 = vld [vmem:[%s9381_s21 + $0x270] sm:$0xf0]  ;;  %v6219_v15 = vor.u32 %v8131_v7, %v6216_v9 }
 0x1a8   : > { %5216 = vmatpush.bf16.msra.mxu0 %v6123_v52  ;;  %v8195_v12 = vld [vmem:[%s9381_s21 + $0x364] sm:$0xf]  ;;  %v6472_v13 = vld [vmem:[%s9381_s21 + $0x370] sm:$0xf0]  ;;  %v6347_v16 = vor.u32 %v8163_v10, %v6344_v11 }
 0x1a9   : > { %5229 = vmatpush.bf16.msra.mxu1 %v6251_v53  ;;  %v8095_v17 = vld [vmem:[%s9381_s21 + $0x44] sm:$0xf]  ;;  %v6072_v18 = vld [vmem:[%s9381_s21 + $0x50] sm:$0xf0]  ;;  %v6475_v22 = vor.u32 %v8195_v12, %v6472_v13 }
 0x1aa   : > { %5242 = vmatpush.bf16.msra.mxu2 %v6379_v54  ;;  %v8127_v19 = vld [vmem:[%s9381_s21 + $0x144] sm:$0xf]  ;;  %v6200_v24 = vld [vmem:[%s9381_s21 + $0x150] sm:$0xf0]  ;;  %v6075_v36 = vor.u32 %v8095_v17, %v6072_v18 }
 0x1ab   : > { %5255 = vmatpush.bf16.msra.mxu3 %v6507_v58  ;;  %v8159_v26 = vld [vmem:[%s9381_s21 + $0x244] sm:$0xf]  ;;  %v6328_v27 = vld [vmem:[%s9381_s21 + $0x250] sm:$0xf0]  ;;  %v6203_v37 = vor.u32 %v8127_v19, %v6200_v24 }
 0x1ac   : > { %5217 = vmatpush.bf16.msra.mxu0 %v6107_v0  ;;  %v8191_v32 = vld [vmem:[%s9381_s21 + $0x344] sm:$0xf]  ;;  %v6456_v34 = vld [vmem:[%s9381_s21 + $0x350] sm:$0xf0]  ;;  %v6331_v39 = vor.u32 %v8159_v26, %v6328_v27 }
 0x1ad   : > { %5230 = vmatpush.bf16.msra.mxu1 %v6235_v1  ;;  %v8091_v40 = vld [vmem:[%s9381_s21 + $0x24] sm:$0xf]  ;;  %v6056_v43 = vld [vmem:[%s9381_s21 + $0x30] sm:$0xf0]  ;;  %v6459_v46 = vor.u32 %v8191_v32, %v6456_v34 }
 0x1ae   : > { %5243 = vmatpush.bf16.msra.mxu2 %v6363_v2  ;;  %v8123_v45 = vld [vmem:[%s9381_s21 + $0x124] sm:$0xf]  ;;  %v6184_v47 = vld [vmem:[%s9381_s21 + $0x130] sm:$0xf0]  ;;  %v6059_v52 = vor.u32 %v8091_v40, %v6056_v43 }
 0x1af   : > { %5256 = vmatpush.bf16.msra.mxu3 %v6491_v8  ;;  %v8155_v48 = vld [vmem:[%s9381_s21 + $0x224] sm:$0xf]  ;;  %v6312_v49 = vld [vmem:[%s9381_s21 + $0x230] sm:$0xf0]  ;;  %v6187_v55 = vor.u32 %v8123_v45, %v6184_v47 }
 0x1b0   : > { %5218 = vmatpush.bf16.msra.mxu0 %v6091_v14  ;;  %v8187_v50 = vld [vmem:[%s9381_s21 + $0x324] sm:$0xf]  ;;  %v6440_v51 = vld [vmem:[%s9381_s21 + $0x330] sm:$0xf0]  ;;  %v6315_v56 = vor.u32 %v8155_v48, %v6312_v49 }
 0x1b1   : > { %5231 = vmatpush.bf16.msra.mxu1 %v6219_v15  ;;  %v8087_v53 = vld [vmem:[%s9381_s21 + $0x4] sm:$0xf]  ;;  %v6040_v54 = vld [vmem:[%s9381_s21 + $0x10] sm:$0xf0]  ;;  %v6443_v60 = vor.u32 %v8187_v50, %v6440_v51 }
 0x1b2   : > { %5244 = vmatpush.bf16.msra.mxu2 %v6347_v16  ;;  %v8119_v57 = vld [vmem:[%s9381_s21 + $0x104] sm:$0xf]  ;;  %v6168_v58 = vld [vmem:[%s9381_s21 + $0x110] sm:$0xf0]  ;;  %v6043_v3 = vor.u32 %v8087_v53, %v6040_v54 }
 0x1b3   : > { %5257 = vmatpush.bf16.msra.mxu3 %v6475_v22  ;;  %v8151_v59 = vld [vmem:[%s9381_s21 + $0x204] sm:$0xf]  ;;  %v6296_v61 = vld [vmem:[%s9381_s21 + $0x210] sm:$0xf0]  ;;  %v6171_v9 = vor.u32 %v8119_v57, %v6168_v58 }
 0x1b4   : > { %5219 = vmatpush.bf16.msra.mxu0 %v6075_v36  ;;  %v8183_v62 = vld [vmem:[%s9381_s21 + $0x304] sm:$0xf]  ;;  %v6424_v63 = vld [vmem:[%s9381_s21 + $0x310] sm:$0xf0]  ;;  %v6299_v10 = vor.u32 %v8151_v59, %v6296_v61 }
 0x1b5   : > { %5232 = vmatpush.bf16.msra.mxu1 %v6203_v37  ;;  %v8243_v0 = vld [vmem:[%s9381_s21 + $0x4e4] sm:$0xf]  ;;  %v6664_v1 = vld [vmem:[%s9381_s21 + $0x4f0] sm:$0xf0]  ;;  %v6427_v13 = vor.u32 %v8183_v62, %v6424_v63 }
 0x1b6   : > { %5245 = vmatpush.bf16.msra.mxu2 %v6331_v39  ;;  %v8275_v2 = vld [vmem:[%s9381_s21 + $0x5e4] sm:$0xf]  ;;  %v6792_v5 = vld [vmem:[%s9381_s21 + $0x5f0] sm:$0xf0]  ;;  %v6667_v14 = vor.u32 %v8243_v0, %v6664_v1 }
 0x1b7   : > { %5258 = vmatpush.bf16.msra.mxu3 %v6459_v46  ;;  %v8307_v7 = vld [vmem:[%s9381_s21 + $0x6e4] sm:$0xf]  ;;  %v6920_v8 = vld [vmem:[%s9381_s21 + $0x6f0] sm:$0xf0]  ;;  %v6795_v15 = vor.u32 %v8275_v2, %v6792_v5 }
 0x1b8   : > { %5220 = vmatpush.bf16.msra.mxu0 %v6059_v52  ;;  %v8339_v11 = vld [vmem:[%s9381_s21 + $0x7e4] sm:$0xf]  ;;  %v7048_v12 = vld [vmem:[%s9381_s21 + $0x7f0] sm:$0xf0]  ;;  %v6923_v16 = vor.u32 %v8307_v7, %v6920_v8 }
 0x1b9   : > { %5233 = vmatpush.bf16.msra.mxu1 %v6187_v55  ;;  %v8239_v17 = vld [vmem:[%s9381_s21 + $0x4c4] sm:$0xf]  ;;  %v6648_v18 = vld [vmem:[%s9381_s21 + $0x4d0] sm:$0xf0]  ;;  %v7051_v22 = vor.u32 %v8339_v11, %v7048_v12 }
 0x1ba   : > { %5246 = vmatpush.bf16.msra.mxu2 %v6315_v56  ;;  %v8271_v19 = vld [vmem:[%s9381_s21 + $0x5c4] sm:$0xf]  ;;  %v6776_v24 = vld [vmem:[%s9381_s21 + $0x5d0] sm:$0xf0]  ;;  %v6651_v36 = vor.u32 %v8239_v17, %v6648_v18 }
 0x1bb   : > { %5259 = vmatpush.bf16.msra.mxu3 %v6443_v60  ;;  %v8303_v26 = vld [vmem:[%s9381_s21 + $0x6c4] sm:$0xf]  ;;  %v6904_v27 = vld [vmem:[%s9381_s21 + $0x6d0] sm:$0xf0]  ;;  %v6779_v37 = vor.u32 %v8271_v19, %v6776_v24 }
 0x1bc   : > { %5221 = vmatpush.bf16.msra.mxu0 %v6043_v3  ;;  %v8335_v32 = vld [vmem:[%s9381_s21 + $0x7c4] sm:$0xf]  ;;  %v7032_v34 = vld [vmem:[%s9381_s21 + $0x7d0] sm:$0xf0]  ;;  %v6907_v39 = vor.u32 %v8303_v26, %v6904_v27 }
 0x1bd   : > { %5234 = vmatpush.bf16.msra.mxu1 %v6171_v9  ;;  %v8235_v40 = vld [vmem:[%s9381_s21 + $0x4a4] sm:$0xf]  ;;  %v6632_v43 = vld [vmem:[%s9381_s21 + $0x4b0] sm:$0xf0]  ;;  %v7035_v46 = vor.u32 %v8335_v32, %v7032_v34 }
 0x1be   : > { %5247 = vmatpush.bf16.msra.mxu2 %v6299_v10  ;;  %v8267_v45 = vld [vmem:[%s9381_s21 + $0x5a4] sm:$0xf]  ;;  %v6760_v47 = vld [vmem:[%s9381_s21 + $0x5b0] sm:$0xf0]  ;;  %v6635_v52 = vor.u32 %v8235_v40, %v6632_v43 }
 0x1bf   : > { %5260 = vmatpush.bf16.msra.mxu3 %v6427_v13  ;;  %v8299_v48 = vld [vmem:[%s9381_s21 + $0x6a4] sm:$0xf]  ;;  %v6888_v49 = vld [vmem:[%s9381_s21 + $0x6b0] sm:$0xf0]  ;;  %5222 = vmatmul.bf16.vlgmr.msra.gmra.mxu0 %v9490_v20  ;;  %v6763_v53 = vor.u32 %v8267_v45, %v6760_v47 }
 0x1c0   : > { %5266 = vmatpush.bf16.msrb.mxu0 %v6667_v14  ;;  %v8331_v50 = vld [vmem:[%s9381_s21 + $0x7a4] sm:$0xf]  ;;  %v7016_v51 = vld [vmem:[%s9381_s21 + $0x7b0] sm:$0xf0]  ;;  %5235 = vmatmul.bf16.vlgmr.msra.gmra.mxu1 %v9493_v21  ;;  %v6891_v54 = vor.u32 %v8299_v48, %v6888_v49 }
 0x1c1   : > { %5279 = vmatpush.bf16.msrb.mxu1 %v6795_v15  ;;  %5248 = vmatmul.bf16.vlgmr.msra.gmra.mxu2 %v9474_v4  ;;  %v8231_v55 = vld [vmem:[%s9381_s21 + $0x484] sm:$0xf]  ;;  %v6616_v56 = vld [vmem:[%s9381_s21 + $0x490] sm:$0xf0]  ;;  %v7019_v58 = vor.u32 %v8331_v50, %v7016_v51 }
 0x1c2   : > { %5292 = vmatpush.bf16.msrb.mxu2 %v6923_v16  ;;  %5261 = vmatmul.bf16.vlgmr.msra.gmra.mxu3 %v9479_v6  ;;  %v8263_v57 = vld [vmem:[%s9381_s21 + $0x584] sm:$0xf]  ;;  %v6744_v59 = vld [vmem:[%s9381_s21 + $0x590] sm:$0xf0]  ;;  %v6619_v0 = vor.u32 %v8231_v55, %v6616_v56  ;;  %v9834_v48 = vpop.f32.mrf.mxu2 }
 0x1c3   : > { %5305 = vmatpush.bf16.msrb.mxu3 %v7051_v22  ;;  %v8295_v60 = vld [vmem:[%s9381_s21 + $0x684] sm:$0xf]  ;;  %v6872_v61 = vld [vmem:[%s9381_s21 + $0x690] sm:$0xf0]  ;;  %v6747_v1 = vor.u32 %v8263_v57, %v6744_v59 }
 0x1c4   : > { %5267 = vmatpush.bf16.msrb.mxu0 %v6651_v36  ;;  %v8327_v62 = vld [vmem:[%s9381_s21 + $0x784] sm:$0xf]  ;;  %v7000_v63 = vld [vmem:[%s9381_s21 + $0x790] sm:$0xf0]  ;;  %v6875_v2 = vor.u32 %v8295_v60, %v6872_v61 }
 0x1c5   : > { %5280 = vmatpush.bf16.msrb.mxu1 %v6779_v37  ;;  %v8227_v3 = vld [vmem:[%s9381_s21 + $0x464] sm:$0xf]  ;;  %v6600_v5 = vld [vmem:[%s9381_s21 + $0x470] sm:$0xf0]  ;;  %v7003_v8 = vor.u32 %v8327_v62, %v7000_v63 }
 0x1c6   : > { %5293 = vmatpush.bf16.msrb.mxu2 %v6907_v39  ;;  %v8259_v7 = vld [vmem:[%s9381_s21 + $0x564] sm:$0xf]  ;;  %v6728_v9 = vld [vmem:[%s9381_s21 + $0x570] sm:$0xf0]  ;;  %v6603_v14 = vor.u32 %v8227_v3, %v6600_v5 }
 0x1c7   : > { %5306 = vmatpush.bf16.msrb.mxu3 %v7035_v46  ;;  %v8291_v10 = vld [vmem:[%s9381_s21 + $0x664] sm:$0xf]  ;;  %v6856_v11 = vld [vmem:[%s9381_s21 + $0x670] sm:$0xf0]  ;;  %v6731_v15 = vor.u32 %v8259_v7, %v6728_v9 }
 0x1c8   : > { %5268 = vmatpush.bf16.msrb.mxu0 %v6635_v52  ;;  %v8323_v12 = vld [vmem:[%s9381_s21 + $0x764] sm:$0xf]  ;;  %v6984_v13 = vld [vmem:[%s9381_s21 + $0x770] sm:$0xf0]  ;;  %v6859_v16 = vor.u32 %v8291_v10, %v6856_v11 }
 0x1c9   : > { %5281 = vmatpush.bf16.msrb.mxu1 %v6763_v53  ;;  %v8223_v17 = vld [vmem:[%s9381_s21 + $0x444] sm:$0xf]  ;;  %v6584_v18 = vld [vmem:[%s9381_s21 + $0x450] sm:$0xf0]  ;;  %v6987_v22 = vor.u32 %v8323_v12, %v6984_v13  ;;  %v9827_v36 = vpop.f32.mrf.mxu0  ;;  %v9829_v39 = vpop.f32.mrf.mxu1 }
 0x1ca   : > { %5294 = vmatpush.bf16.msrb.mxu2 %v6891_v54  ;;  %v8255_v19 = vld [vmem:[%s9381_s21 + $0x544] sm:$0xf]  ;;  %v6712_v24 = vld [vmem:[%s9381_s21 + $0x550] sm:$0xf0]  ;;  %v6587_v37 = vor.u32 %v8223_v17, %v6584_v18  ;;  %v9839_v53 = vpop.f32.mrf.mxu3 }
 0x1cb   : > { %5307 = vmatpush.bf16.msrb.mxu3 %v7019_v58  ;;  %v8287_v26 = vld [vmem:[%s9381_s21 + $0x644] sm:$0xf]  ;;  %v6840_v27 = vld [vmem:[%s9381_s21 + $0x650] sm:$0xf0]  ;;  %v6715_v40 = vor.u32 %v8255_v19, %v6712_v24  ;;  %v5043_v19 = vpop.f32.mrf.mxu2 }
 0x1cc   : > { %5269 = vmatpush.bf16.msrb.mxu0 %v6619_v0  ;;  %v8319_v32 = vld [vmem:[%s9381_s21 + $0x744] sm:$0xf]  ;;  %v6968_v34 = vld [vmem:[%s9381_s21 + $0x750] sm:$0xf0]  ;;  %v6843_v43 = vor.u32 %v8287_v26, %v6840_v27 }
 0x1cd   : > { %5282 = vmatpush.bf16.msrb.mxu1 %v6747_v1  ;;  %v8219_v45 = vld [vmem:[%s9381_s21 + $0x424] sm:$0xf]  ;;  %v6568_v46 = vld [vmem:[%s9381_s21 + $0x430] sm:$0xf0]  ;;  %v6971_v49 = vor.u32 %v8319_v32, %v6968_v34 }
 0x1ce   : > { %5295 = vmatpush.bf16.msrb.mxu2 %v6875_v2  ;;  %v8251_v47 = vld [vmem:[%s9381_s21 + $0x524] sm:$0xf]  ;;  %v6696_v50 = vld [vmem:[%s9381_s21 + $0x530] sm:$0xf0]  ;;  %v6571_v56 = vor.u32 %v8219_v45, %v6568_v46 }
 0x1cf   : > { %5308 = vmatpush.bf16.msrb.mxu3 %v7003_v8  ;;  %v8283_v51 = vld [vmem:[%s9381_s21 + $0x624] sm:$0xf]  ;;  %v6824_v52 = vld [vmem:[%s9381_s21 + $0x630] sm:$0xf0]  ;;  %v6699_v59 = vor.u32 %v8251_v47, %v6696_v50 }
 0x1d0   : > { %5270 = vmatpush.bf16.msrb.mxu0 %v6603_v14  ;;  %v8315_v54 = vld [vmem:[%s9381_s21 + $0x724] sm:$0xf]  ;;  %v6952_v55 = vld [vmem:[%s9381_s21 + $0x730] sm:$0xf0]  ;;  %v6827_v60 = vor.u32 %v8283_v51, %v6824_v52 }
 0x1d1   : > { %5283 = vmatpush.bf16.msrb.mxu1 %v6731_v15  ;;  %v8215_v57 = vld [vmem:[%s9381_s21 + $0x404] sm:$0xf]  ;;  %v6552_v58 = vld [vmem:[%s9381_s21 + $0x410] sm:$0xf0]  ;;  %v6955_v0 = vor.u32 %v8315_v54, %v6952_v55  ;;  %v5017_v9 = vpop.f32.mrf.mxu0  ;;  %v5030_v14 = vpop.f32.mrf.mxu1 }
 0x1d2   : > { %5296 = vmatpush.bf16.msrb.mxu2 %v6859_v16  ;;  %v8247_v61 = vld [vmem:[%s9381_s21 + $0x504] sm:$0xf]  ;;  %v6680_v62 = vld [vmem:[%s9381_s21 + $0x510] sm:$0xf0]  ;;  %v6555_v10 = vor.u32 %v8215_v57, %v6552_v58  ;;  %v5056_v26 = vpop.f32.mrf.mxu3 }
 0x1d3   : > { %5309 = vmatpush.bf16.msrb.mxu3 %v6987_v22  ;;  %v8279_v63 = vld [vmem:[%s9381_s21 + $0x604] sm:$0xf]  ;;  %v6808_v1 = vld [vmem:[%s9381_s21 + $0x610] sm:$0xf0]  ;;  %v6683_v15 = vor.u32 %v8247_v61, %v6680_v62 }
 0x1d4   : > { %5271 = vmatpush.bf16.msrb.mxu0 %v6587_v37  ;;  %v8311_v2 = vld [vmem:[%s9381_s21 + $0x704] sm:$0xf]  ;;  %v6936_v3 = vld [vmem:[%s9381_s21 + $0x710] sm:$0xf0]  ;;  %v6811_v16 = vor.u32 %v8279_v63, %v6808_v1 }
 0x1d5   : > { %5284 = vmatpush.bf16.msrb.mxu1 %v6715_v40  ;;  %v8371_v5 = vld [vmem:[%s9381_s21 + $0x8e4] sm:$0xf]  ;;  %v7176_v7 = vld [vmem:[%s9381_s21 + $0x8f0] sm:$0xf0]  ;;  %v6939_v22 = vor.u32 %v8311_v2, %v6936_v3 }
 0x1d6   : > { %5297 = vmatpush.bf16.msrb.mxu2 %v6843_v43  ;;  %v8403_v8 = vld [vmem:[%s9381_s21 + $0x9e4] sm:$0xf]  ;;  %v7304_v11 = vld [vmem:[%s9381_s21 + $0x9f0] sm:$0xf0]  ;;  %v7179_v24 = vor.u32 %v8371_v5, %v7176_v7 }
 0x1d7   : > { %5310 = vmatpush.bf16.msrb.mxu3 %v6971_v49  ;;  %v8435_v12 = vld [vmem:[%s9381_s21 + $0xae4] sm:$0xf]  ;;  %v7432_v13 = vld [vmem:[%s9381_s21 + $0xaf0] sm:$0xf0]  ;;  %v7307_v27 = vor.u32 %v8403_v8, %v7304_v11 }
 0x1d8   : > { %5272 = vmatpush.bf16.msrb.mxu0 %v6571_v56  ;;  %v8467_v17 = vld [vmem:[%s9381_s21 + $0xbe4] sm:$0xf]  ;;  %v7560_v18 = vld [vmem:[%s9381_s21 + $0xbf0] sm:$0xf0]  ;;  %v7435_v32 = vor.u32 %v8435_v12, %v7432_v13 }
 0x1d9   : > { %5285 = vmatpush.bf16.msrb.mxu1 %v6699_v59  ;;  %v8367_v34 = vld [vmem:[%s9381_s21 + $0x8c4] sm:$0xf]  ;;  %v7160_v37 = vld [vmem:[%s9381_s21 + $0x8d0] sm:$0xf0]  ;;  %v7563_v43 = vor.u32 %v8467_v17, %v7560_v18 }
 0x1da   : > { %5298 = vmatpush.bf16.msrb.mxu2 %v6827_v60  ;;  %v8399_v40 = vld [vmem:[%s9381_s21 + $0x9c4] sm:$0xf]  ;;  %v7288_v45 = vld [vmem:[%s9381_s21 + $0x9d0] sm:$0xf0]  ;;  %v7163_v51 = vor.u32 %v8367_v34, %v7160_v37 }
 0x1db   : > { %5311 = vmatpush.bf16.msrb.mxu3 %v6955_v0  ;;  %v8431_v46 = vld [vmem:[%s9381_s21 + $0xac4] sm:$0xf]  ;;  %v7416_v47 = vld [vmem:[%s9381_s21 + $0xad0] sm:$0xf0]  ;;  %v7291_v52 = vor.u32 %v8399_v40, %v7288_v45 }
 0x1dc   : > { %5273 = vmatpush.bf16.msrb.mxu0 %v6555_v10  ;;  %v8463_v49 = vld [vmem:[%s9381_s21 + $0xbc4] sm:$0xf]  ;;  %v7544_v50 = vld [vmem:[%s9381_s21 + $0xbd0] sm:$0xf0]  ;;  %v7419_v54 = vor.u32 %v8431_v46, %v7416_v47 }
 0x1dd   : > { %5286 = vmatpush.bf16.msrb.mxu1 %v6683_v15  ;;  %v8363_v55 = vld [vmem:[%s9381_s21 + $0x8a4] sm:$0xf]  ;;  %v7144_v56 = vld [vmem:[%s9381_s21 + $0x8b0] sm:$0xf0]  ;;  %v7547_v58 = vor.u32 %v8463_v49, %v7544_v50  ;;  %v9887_v15 = vpop.f32.mrf.mxu0 }
 0x1de   : > { %5299 = vmatpush.bf16.msrb.mxu2 %v6811_v16  ;;  %v8395_v57 = vld [vmem:[%s9381_s21 + $0x9a4] sm:$0xf]  ;;  %v7272_v59 = vld [vmem:[%s9381_s21 + $0x9b0] sm:$0xf0]  ;;  %v7147_v0 = vor.u32 %v8363_v55, %v7144_v56 }
 0x1df   : > { %5312 = vmatpush.bf16.msrb.mxu3 %v6939_v22  ;;  %v8427_v60 = vld [vmem:[%s9381_s21 + $0xaa4] sm:$0xf]  ;;  %v7400_v61 = vld [vmem:[%s9381_s21 + $0xab0] sm:$0xf0]  ;;  %5274 = vmatmul.bf16.vlgmr.msrb.gmra.mxu0 %v9553_v41  ;;  %v7275_v1 = vor.u32 %v8395_v57, %v7272_v59 }
 0x1e0   : > { %5318 = vmatpush.bf16.msra.mxu0 %v7179_v24  ;;  %v8459_v62 = vld [vmem:[%s9381_s21 + $0xba4] sm:$0xf]  ;;  %v7528_v63 = vld [vmem:[%s9381_s21 + $0xbb0] sm:$0xf0]  ;;  %5287 = vmatmul.bf16.vlgmr.msrb.gmra.mxu1 %v9557_v44  ;;  %v7403_v2 = vor.u32 %v8427_v60, %v7400_v61  ;;  %v9892_v24 = vpop.f32.mrf.mxu1 }
 0x1e1   : > { %5331 = vmatpush.bf16.msra.mxu1 %v7307_v27  ;;  %5300 = vmatmul.bf16.vlgmr.msrb.gmra.mxu2 %v9549_v38  ;;  %v8359_v3 = vld [vmem:[%s9381_s21 + $0x884] sm:$0xf]  ;;  %v7128_v5 = vld [vmem:[%s9381_s21 + $0x890] sm:$0xf0]  ;;  %v7531_v8 = vor.u32 %v8459_v62, %v7528_v63 }
 0x1e2   : > { %5344 = vmatpush.bf16.msra.mxu2 %v7435_v32  ;;  %5313 = vmatmul.bf16.vlgmr.msrb.gmra.mxu3 %v9555_v42  ;;  %v8391_v7 = vld [vmem:[%s9381_s21 + $0x984] sm:$0xf]  ;;  %v7256_v9 = vld [vmem:[%s9381_s21 + $0x990] sm:$0xf0]  ;;  %v7131_v14 = vor.u32 %v8359_v3, %v7128_v5 }
 0x1e3   : > { %5357 = vmatpush.bf16.msra.mxu3 %v7563_v43  ;;  %v8423_v10 = vld [vmem:[%s9381_s21 + $0xa84] sm:$0xf]  ;;  %v7384_v11 = vld [vmem:[%s9381_s21 + $0xa90] sm:$0xf0]  ;;  %v7259_v16 = vor.u32 %v8391_v7, %v7256_v9 }
 0x1e4   : > { %5319 = vmatpush.bf16.msra.mxu0 %v7163_v51  ;;  %v8455_v12 = vld [vmem:[%s9381_s21 + $0xb84] sm:$0xf]  ;;  %v7512_v13 = vld [vmem:[%s9381_s21 + $0xb90] sm:$0xf0]  ;;  %v7387_v17 = vor.u32 %v8423_v10, %v7384_v11  ;;  %v9902_v51 = vpop.f32.mrf.mxu2 }
 0x1e5   : > { %5332 = vmatpush.bf16.msra.mxu1 %v7291_v52  ;;  %v8355_v18 = vld [vmem:[%s9381_s21 + $0x864] sm:$0xf]  ;;  %v7112_v19 = vld [vmem:[%s9381_s21 + $0x870] sm:$0xf0]  ;;  %v7515_v26 = vor.u32 %v8455_v12, %v7512_v13  ;;  %v5069_v61 = vpop.f32.mrf.mxu0 }
 0x1e6   : > { %5345 = vmatpush.bf16.msra.mxu2 %v7419_v54  ;;  %v8387_v22 = vld [vmem:[%s9381_s21 + $0x964] sm:$0xf]  ;;  %v7240_v27 = vld [vmem:[%s9381_s21 + $0x970] sm:$0xf0]  ;;  %v7115_v43 = vor.u32 %v8355_v18, %v7112_v19  ;;  %v9907_v57 = vpop.f32.mrf.mxu3 }
 0x1e7   : > { %5358 = vmatpush.bf16.msra.mxu3 %v7547_v58  ;;  %v8419_v32 = vld [vmem:[%s9381_s21 + $0xa64] sm:$0xf]  ;;  %v7368_v34 = vld [vmem:[%s9381_s21 + $0xa70] sm:$0xf0]  ;;  %v7243_v45 = vor.u32 %v8387_v22, %v7240_v27 }
 0x1e8   : > { %5320 = vmatpush.bf16.msra.mxu0 %v7147_v0  ;;  %v8451_v37 = vld [vmem:[%s9381_s21 + $0xb64] sm:$0xf]  ;;  %v7496_v40 = vld [vmem:[%s9381_s21 + $0xb70] sm:$0xf0]  ;;  %v7371_v46 = vor.u32 %v8419_v32, %v7368_v34  ;;  %v5082_v3 = vpop.f32.mrf.mxu1 }
 0x1e9   : > { %5333 = vmatpush.bf16.msra.mxu1 %v7275_v1  ;;  %v8351_v47 = vld [vmem:[%s9381_s21 + $0x844] sm:$0xf]  ;;  %v7096_v49 = vld [vmem:[%s9381_s21 + $0x850] sm:$0xf0]  ;;  %v7499_v52 = vor.u32 %v8451_v37, %v7496_v40 }
 0x1ea   : > { %5346 = vmatpush.bf16.msra.mxu2 %v7403_v2  ;;  %v8383_v50 = vld [vmem:[%s9381_s21 + $0x944] sm:$0xf]  ;;  %v7224_v54 = vld [vmem:[%s9381_s21 + $0x950] sm:$0xf0]  ;;  %v7099_v60 = vor.u32 %v8351_v47, %v7096_v49 }
 0x1eb   : > { %5359 = vmatpush.bf16.msra.mxu3 %v7531_v8  ;;  %v8415_v55 = vld [vmem:[%s9381_s21 + $0xa44] sm:$0xf]  ;;  %v7352_v56 = vld [vmem:[%s9381_s21 + $0xa50] sm:$0xf0]  ;;  %v7227_v62 = vor.u32 %v8383_v50, %v7224_v54 }
 0x1ec   : > { %5321 = vmatpush.bf16.msra.mxu0 %v7131_v14  ;;  %v8447_v58 = vld [vmem:[%s9381_s21 + $0xb44] sm:$0xf]  ;;  %v7480_v59 = vld [vmem:[%s9381_s21 + $0xb50] sm:$0xf0]  ;;  %v7355_v63 = vor.u32 %v8415_v55, %v7352_v56 }
 0x1ed   : > { %5334 = vmatpush.bf16.msra.mxu1 %v7259_v16  ;;  %v8347_v0 = vld [vmem:[%s9381_s21 + $0x824] sm:$0xf]  ;;  %v7080_v1 = vld [vmem:[%s9381_s21 + $0x830] sm:$0xf0]  ;;  %v7483_v5 = vor.u32 %v8447_v58, %v7480_v59 }
 0x1ee   : > { %5347 = vmatpush.bf16.msra.mxu2 %v7387_v17  ;;  %v8379_v2 = vld [vmem:[%s9381_s21 + $0x924] sm:$0xf]  ;;  %v7208_v7 = vld [vmem:[%s9381_s21 + $0x930] sm:$0xf0]  ;;  %v7083_v12 = vor.u32 %v8347_v0, %v7080_v1  ;;  %v5108_v40 = vpop.f32.mrf.mxu3 }
 0x1ef   : > { %5360 = vmatpush.bf16.msra.mxu3 %v7515_v26  ;;  %v8411_v8 = vld [vmem:[%s9381_s21 + $0xa24] sm:$0xf]  ;;  %v7336_v9 = vld [vmem:[%s9381_s21 + $0xa30] sm:$0xf0]  ;;  %v7211_v16 = vor.u32 %v8379_v2, %v7208_v7  ;;  %v5095_v26 = vpop.f32.mrf.mxu2 }
 0x1f0   : > { %5322 = vmatpush.bf16.msra.mxu0 %v7115_v43  ;;  %v8443_v10 = vld [vmem:[%s9381_s21 + $0xb24] sm:$0xf]  ;;  %v7464_v11 = vld [vmem:[%s9381_s21 + $0xb30] sm:$0xf0]  ;;  %v7339_v17 = vor.u32 %v8411_v8, %v7336_v9 }
 0x1f1   : > { %5335 = vmatpush.bf16.msra.mxu1 %v7243_v45  ;;  %v8343_v13 = vld [vmem:[%s9381_s21 + $0x804] sm:$0xf]  ;;  %v7064_v14 = vld [vmem:[%s9381_s21 + $0x810] sm:$0xf0]  ;;  %v7467_v27 = vor.u32 %v8443_v10, %v7464_v11  ;;  %v5029_v11 = vadd.f32 %v9829_v39, %v9827_v36 }
 0x1f2   : > { %5348 = vmatpush.bf16.msra.mxu2 %v7371_v46  ;;  %v8375_v18 = vld [vmem:[%s9381_s21 + $0x904] sm:$0xf]  ;;  %v7192_v19 = vld [vmem:[%s9381_s21 + $0x910] sm:$0xf0]  ;;  %v7067_v47 = vor.u32 %v8343_v13, %v7064_v14 }
 0x1f3   : > { %5361 = vmatpush.bf16.msra.mxu3 %v7499_v52  ;;  %v8407_v22 = vld [vmem:[%s9381_s21 + $0xa04] sm:$0xf]  ;;  %v7320_v32 = vld [vmem:[%s9381_s21 + $0xa10] sm:$0xf0]  ;;  %v7195_v54 = vor.u32 %v8375_v18, %v7192_v19 }
 0x1f4   : > { %5323 = vmatpush.bf16.msra.mxu0 %v7099_v60  ;;  %v8439_v34 = vld [vmem:[%s9381_s21 + $0xb04] sm:$0xf]  ;;  %v7448_v37 = vld [vmem:[%s9381_s21 + $0xb10] sm:$0xf0]  ;;  %v7323_v55 = vor.u32 %v8407_v22, %v7320_v32  ;;  %v5042_v32 = vadd.f32 %v9834_v48, %v5029_v11 }
 0x1f5   : > { %5336 = vmatpush.bf16.msra.mxu1 %v7227_v62  ;;  %v8499_v43 = vld [vmem:[%s9381_s21 + $0xce4] sm:$0xf]  ;;  %v7688_v45 = vld [vmem:[%s9381_s21 + $0xcf0] sm:$0xf0]  ;;  %v7451_v59 = vor.u32 %v8439_v34, %v7448_v37 }
 0x1f6   : > { %5349 = vmatpush.bf16.msra.mxu2 %v7355_v63  ;;  %v8531_v46 = vld [vmem:[%s9381_s21 + $0xde4] sm:$0xf]  ;;  %v7816_v49 = vld [vmem:[%s9381_s21 + $0xdf0] sm:$0xf0]  ;;  %v7691_v60 = vor.u32 %v8499_v43, %v7688_v45 }
 0x1f7   : > { %5362 = vmatpush.bf16.msra.mxu3 %v7483_v5  ;;  %v8563_v50 = vld [vmem:[%s9381_s21 + $0xee4] sm:$0xf]  ;;  %v7944_v52 = vld [vmem:[%s9381_s21 + $0xef0] sm:$0xf0]  ;;  %v7819_v61 = vor.u32 %v8531_v46, %v7816_v49 }
 0x1f8   : > { %5324 = vmatpush.bf16.msra.mxu0 %v7083_v12  ;;  %v8595_v56 = vld [vmem:[%s9381_s21 + $0xfe4] sm:$0xf]  ;;  %v8072_v58 = vld [vmem:[%s9381_s21 + $0xff0] sm:$0xf0]  ;;  %v7947_v62 = vor.u32 %v8563_v50, %v7944_v52 }
 0x1f9   : > { %5337 = vmatpush.bf16.msra.mxu1 %v7211_v16  ;;  %v8495_v63 = vld [vmem:[%s9381_s21 + $0xcc4] sm:$0xf]  ;;  %v7672_v0 = vld [vmem:[%s9381_s21 + $0xcd0] sm:$0xf0]  ;;  %v8075_v2 = vor.u32 %v8595_v56, %v8072_v58  ;;  %v5055_v58 = vadd.f32 %v9839_v53, %v5042_v32 }
 0x1fa   : > { %5350 = vmatpush.bf16.msra.mxu2 %v7339_v17  ;;  %v8527_v1 = vld [vmem:[%s9381_s21 + $0xdc4] sm:$0xf]  ;;  %v7800_v3 = vld [vmem:[%s9381_s21 + $0xdd0] sm:$0xf0]  ;;  %v7675_v10 = vor.u32 %v8495_v63, %v7672_v0 }
 0x1fb   : > { %5363 = vmatpush.bf16.msra.mxu3 %v7467_v27  ;;  %v8559_v5 = vld [vmem:[%s9381_s21 + $0xec4] sm:$0xf]  ;;  %v7928_v7 = vld [vmem:[%s9381_s21 + $0xed0] sm:$0xf0]  ;;  %v7803_v12 = vor.u32 %v8527_v1, %v7800_v3 }
 0x1fc   : > { %5325 = vmatpush.bf16.msra.mxu0 %v7067_v47  ;;  %v8591_v8 = vld [vmem:[%s9381_s21 + $0xfc4] sm:$0xf]  ;;  %v8056_v9 = vld [vmem:[%s9381_s21 + $0xfd0] sm:$0xf0]  ;;  %v7931_v13 = vor.u32 %v8559_v5, %v7928_v7 }
 0x1fd   : > { %5338 = vmatpush.bf16.msra.mxu1 %v7195_v54  ;;  %v8491_v14 = vld [vmem:[%s9381_s21 + $0xca4] sm:$0xf]  ;;  %v7656_v16 = vld [vmem:[%s9381_s21 + $0xcb0] sm:$0xf0]  ;;  %v8059_v18 = vor.u32 %v8591_v8, %v8056_v9  ;;  %v5068_v8 = vadd.f32 %v9887_v15, %v5055_v58 }
 0x1fe   : > { %5351 = vmatpush.bf16.msra.mxu2 %v7323_v55  ;;  %v8523_v17 = vld [vmem:[%s9381_s21 + $0xda4] sm:$0xf]  ;;  %v7784_v19 = vld [vmem:[%s9381_s21 + $0xdb0] sm:$0xf0]  ;;  %v7659_v27 = vor.u32 %v8491_v14, %v7656_v16  ;;  %v9964_v52 = vpop.f32.mrf.mxu0 }
 0x1ff   : > { %5364 = vmatpush.bf16.msra.mxu3 %v7451_v59  ;;  %5326 = vmatmul.bf16.vlgmr.msra.gmra.mxu0 %v9628_v25  ;;  %v8555_v22 = vld [vmem:[%s9381_s21 + $0xea4] sm:$0xf]  ;;  %v7912_v26 = vld [vmem:[%s9381_s21 + $0xeb0] sm:$0xf0]  ;;  %v7787_v34 = vor.u32 %v8523_v17, %v7784_v19  ;;  %v9968_v56 = vpop.f32.mrf.mxu1  ;;  %v5081_v32 = vadd.f32 %v9892_v24, %v5068_v8  ;;  %v6286_v8 = vld [vmem:[%s9381_s21 + $0x1e8] sm:$0xf] }
 0x200   : > { %5370 = vmatpush.bf16.msrb.mxu0 %v7691_v60  ;;  %5339 = vmatmul.bf16.vlgmr.msra.gmra.mxu1 %v9635_v30  ;;  %v8587_v36 = vld [vmem:[%s9381_s21 + $0xfa4] sm:$0xf]  ;;  %v8040_v39 = vld [vmem:[%s9381_s21 + $0xfb0] sm:$0xf0]  ;;  %v7915_v37 = vor.u32 %v8555_v22, %v7912_v26 }
 0x201   : > { %5383 = vmatpush.bf16.msrb.mxu1 %v7819_v61  ;;  %5352 = vmatmul.bf16.vlgmr.msra.gmra.mxu2 %v9633_v29  ;;  %v8487_v40 = vld [vmem:[%s9381_s21 + $0xc84] sm:$0xf]  ;;  %v7640_v43 = vld [vmem:[%s9381_s21 + $0xc90] sm:$0xf0]  ;;  %v8043_v46 = vor.u32 %v8587_v36, %v8040_v39 }
 0x202   : > { %5396 = vmatpush.bf16.msrb.mxu2 %v7947_v62  ;;  %5365 = vmatmul.bf16.vlgmr.msra.gmra.mxu3 %v9639_v33  ;;  %v8519_v45 = vld [vmem:[%s9381_s21 + $0xd84] sm:$0xf]  ;;  %v7768_v47 = vld [vmem:[%s9381_s21 + $0xd90] sm:$0xf0]  ;;  %v7643_v55 = vor.u32 %v8487_v40, %v7640_v43 }
 0x203   : > { %5409 = vmatpush.bf16.msrb.mxu3 %v8075_v2  ;;  %v8551_v49 = vld [vmem:[%s9381_s21 + $0xe84] sm:$0xf]  ;;  %v7896_v50 = vld [vmem:[%s9381_s21 + $0xe90] sm:$0xf0]  ;;  %v7771_v59 = vor.u32 %v8519_v45, %v7768_v47  ;;  %v9983_v16 = vpop.f32.mrf.mxu2 }
 0x204   : > { %5371 = vmatpush.bf16.msrb.mxu0 %v7675_v10  ;;  %v8583_v54 = vld [vmem:[%s9381_s21 + $0xf84] sm:$0xf]  ;;  %v8024_v48 = vld [vmem:[%s9381_s21 + $0xf90] sm:$0xf0]  ;;  %v7899_v60 = vor.u32 %v8551_v49, %v7896_v50 }
 0x205   : > { %5384 = vmatpush.bf16.msrb.mxu1 %v7803_v12  ;;  %v8483_v61 = vld [vmem:[%s9381_s21 + $0xc64] sm:$0xf]  ;;  %v7624_v62 = vld [vmem:[%s9381_s21 + $0xc70] sm:$0xf0]  ;;  %v8027_v0 = vor.u32 %v8583_v54, %v8024_v48 }
 0x206   : > { %5397 = vmatpush.bf16.msrb.mxu2 %v7931_v13  ;;  %v8515_v63 = vld [vmem:[%s9381_s21 + $0xd64] sm:$0xf]  ;;  %v7752_v1 = vld [vmem:[%s9381_s21 + $0xd70] sm:$0xf0]  ;;  %v7627_v53 = vor.u32 %v8483_v61, %v7624_v62  ;;  %v5121_v36 = vpop.f32.mrf.mxu0 }
 0x207   : > { %5410 = vmatpush.bf16.msrb.mxu3 %v8059_v18  ;;  %v8547_v2 = vld [vmem:[%s9381_s21 + $0xe64] sm:$0xf]  ;;  %v7880_v3 = vld [vmem:[%s9381_s21 + $0xe70] sm:$0xf0]  ;;  %v7755_v9 = vor.u32 %v8515_v63, %v7752_v1  ;;  %v9988_v22 = vpop.f32.mrf.mxu3 }
 0x208   : > { %5372 = vmatpush.bf16.msrb.mxu0 %v7659_v27  ;;  %v8579_v5 = vld [vmem:[%s9381_s21 + $0xf64] sm:$0xf]  ;;  %v8008_v7 = vld [vmem:[%s9381_s21 + $0xf70] sm:$0xf0]  ;;  %v7883_v10 = vor.u32 %v8547_v2, %v7880_v3  ;;  %v5134_v27 = vpop.f32.mrf.mxu1 }
 0x209   : > { %5385 = vmatpush.bf16.msrb.mxu1 %v7787_v34  ;;  %v8479_v11 = vld [vmem:[%s9381_s21 + $0xc44] sm:$0xf]  ;;  %v7608_v12 = vld [vmem:[%s9381_s21 + $0xc50] sm:$0xf0]  ;;  %v8011_v14 = vor.u32 %v8579_v5, %v8008_v7 }
 0x20a   : > { %5398 = vmatpush.bf16.msrb.mxu2 %v7915_v37  ;;  %v8511_v13 = vld [vmem:[%s9381_s21 + $0xd44] sm:$0xf]  ;;  %v7736_v17 = vld [vmem:[%s9381_s21 + $0xd50] sm:$0xf0]  ;;  %v7611_v39 = vor.u32 %v8479_v11, %v7608_v12  ;;  %v8150_v11 = vld [vmem:[%s9381_s21 + $0x1f4] sm:$0xf0] }
 0x20b   : > { %5411 = vmatpush.bf16.msrb.mxu3 %v8043_v46  ;;  %v8543_v18 = vld [vmem:[%s9381_s21 + $0xe44] sm:$0xf]  ;;  %v7864_v19 = vld [vmem:[%s9381_s21 + $0xe50] sm:$0xf0]  ;;  %v7739_v34 = vor.u32 %v8511_v13, %v7736_v17  ;;  %v5147_v7 = vpop.f32.mrf.mxu2  ;;  %v6414_v12 = vld [vmem:[%s9381_s21 + $0x2e8] sm:$0xf]  ;;  %v6287_v27 = vor.u32 %v8150_v11, %v6286_v8 }
 0x20c   : > { %5373 = vmatpush.bf16.msrb.mxu0 %v7643_v55  ;;  %v8575_v15 = vld [vmem:[%s9381_s21 + $0xf44] sm:$0xf]  ;;  %v7992_v26 = vld [vmem:[%s9381_s21 + $0xf50] sm:$0xf0]  ;;  %v7867_v37 = vor.u32 %v8543_v18, %v7864_v19  ;;  %v8182_v13 = vld [vmem:[%s9381_s21 + $0x2f4] sm:$0xf0] }
 0x20d   : > { %5386 = vmatpush.bf16.msrb.mxu1 %v7771_v59  ;;  %v8475_v40 = vld [vmem:[%s9381_s21 + $0xc24] sm:$0xf]  ;;  %v7592_v43 = vld [vmem:[%s9381_s21 + $0xc30] sm:$0xf0]  ;;  %v7995_v46 = vor.u32 %v8575_v15, %v7992_v26  ;;  %v5094_v59 = vadd.f32 %v9902_v51, %v5081_v32  ;;  %v6158_v51 = vld [vmem:[%s9381_s21 + $0xe8] sm:$0xf] }
 0x20e   : > { %5399 = vmatpush.bf16.msrb.mxu2 %v7899_v60  ;;  %v8507_v45 = vld [vmem:[%s9381_s21 + $0xd24] sm:$0xf]  ;;  %v7720_v47 = vld [vmem:[%s9381_s21 + $0xd30] sm:$0xf0]  ;;  %v7595_v48 = vor.u32 %v8475_v40, %v7592_v43  ;;  %v6542_v19 = vld [vmem:[%s9381_s21 + $0x3e8] sm:$0xf] }
 0x20f   : > { %5412 = vmatpush.bf16.msrb.mxu3 %v8027_v0  ;;  %v8539_v49 = vld [vmem:[%s9381_s21 + $0xe24] sm:$0xf]  ;;  %v7848_v50 = vld [vmem:[%s9381_s21 + $0xe30] sm:$0xf0]  ;;  %v7723_v60 = vor.u32 %v8507_v45, %v7720_v47  ;;  %v8214_v15 = vld [vmem:[%s9381_s21 + $0x3f4] sm:$0xf0] }
 0x210   : > { %5374 = vmatpush.bf16.msrb.mxu0 %v7627_v53  ;;  %v8571_v54 = vld [vmem:[%s9381_s21 + $0xf24] sm:$0xf]  ;;  %v7976_v24 = vld [vmem:[%s9381_s21 + $0xf30] sm:$0xf0]  ;;  %v7851_v61 = vor.u32 %v8539_v49, %v7848_v50  ;;  %v8118_v53 = vld [vmem:[%s9381_s21 + $0xf4] sm:$0xf0]  ;;  %v6543_v40 = vor.u32 %v8214_v15, %v6542_v19 }
 0x211   : > { %5387 = vmatpush.bf16.msrb.mxu1 %v7755_v9  ;;  %v8471_v55 = vld [vmem:[%s9381_s21 + $0xc04] sm:$0xf]  ;;  %v7576_v58 = vld [vmem:[%s9381_s21 + $0xc10] sm:$0xf0]  ;;  %v7979_v1 = vor.u32 %v8571_v54, %v7976_v24  ;;  %v5160_v9 = vpop.f32.mrf.mxu3  ;;  %v6159_v36 = vor.u32 %v8118_v53, %v6158_v51  ;;  %v6142_v32 = vld [vmem:[%s9381_s21 + $0xc8] sm:$0xf] }
 0x212   : > { %5400 = vmatpush.bf16.msrb.mxu2 %v7883_v10  ;;  %v8503_v62 = vld [vmem:[%s9381_s21 + $0xd04] sm:$0xf]  ;;  %v7704_v63 = vld [vmem:[%s9381_s21 + $0xd10] sm:$0xf0]  ;;  %v7579_v10 = vor.u32 %v8471_v55, %v7576_v58  ;;  %v8146_v43 = vld [vmem:[%s9381_s21 + $0x1d4] sm:$0xf0] }
 0x213   : > { %5413 = vmatpush.bf16.msrb.mxu3 %v8011_v14  ;;  %v8535_v0 = vld [vmem:[%s9381_s21 + $0xe04] sm:$0xf]  ;;  %v7832_v2 = vld [vmem:[%s9381_s21 + $0xe10] sm:$0xf0]  ;;  %v5107_v14 = vadd.f32 %v9907_v57, %v5094_v59  ;;  %v7707_v17 = vor.u32 %v8503_v62, %v7704_v63  ;;  %v6415_v57 = vor.u32 %v8182_v13, %v6414_v12  ;;  %v6398_v45 = vld [vmem:[%s9381_s21 + $0x2c8] sm:$0xf] }
 0x214   : > { %5375 = vmatpush.bf16.msrb.mxu0 %v7611_v39  ;;  %v8567_v3 = vld [vmem:[%s9381_s21 + $0xf04] sm:$0xf]  ;;  %v7960_v5 = vld [vmem:[%s9381_s21 + $0xf10] sm:$0xf0]  ;;  %v7835_v18 = vor.u32 %v8535_v0, %v7832_v2  ;;  %v6526_v47 = vld [vmem:[%s9381_s21 + $0x3c8] sm:$0xf] }
 0x215   : > { %5388 = vmatpush.bf16.msrb.mxu1 %v7739_v34  ;;  %v7963_v26 = vor.u32 %v8567_v3, %v7960_v5  ;;  %v5120_v39 = vadd.f32 %v9964_v52, %v5107_v14  ;;  %v8114_v34 = vld [vmem:[%s9381_s21 + $0xd4] sm:$0xf0]  ;;  %v6254_v58 = vld [vmem:[%s9381_s21 + $0x1a8] sm:$0xf] }
 0x216   : > { %5401 = vmatpush.bf16.msrb.mxu2 %v7867_v37  ;;  %v6270_v37 = vld [vmem:[%s9381_s21 + $0x1c8] sm:$0xf]  ;;  %v8210_v49 = vld [vmem:[%s9381_s21 + $0x3d4] sm:$0xf0]  ;;  %v6143_v52 = vor.u32 %v8114_v34, %v6142_v32 }
 0x217   : > { %5414 = vmatpush.bf16.msrb.mxu3 %v7995_v46  ;;  %v8178_v46 = vld [vmem:[%s9381_s21 + $0x2d4] sm:$0xf0]  ;;  %v5133_v50 = vadd.f32 %v9968_v56, %v5120_v39  ;;  %v6271_v54 = vor.u32 %v8146_v43, %v6270_v37  ;;  %v6527_v59 = vor.u32 %v8210_v49, %v6526_v47  ;;  %v6510_v63 = vld [vmem:[%s9381_s21 + $0x3a8] sm:$0xf]  ;;  %v5838_v43 = vld [vmem:[%s10071_s15] sm:$0xf] }
 0x218   : > { %5376 = vmatpush.bf16.msrb.mxu0 %v7595_v48  ;;  %v6399_v24 = vor.u32 %v8178_v46, %v6398_v45  ;;  %v6126_v48 = vld [vmem:[%s9381_s21 + $0xa8] sm:$0xf]  ;;  %v8110_v55 = vld [vmem:[%s9381_s21 + $0xb4] sm:$0xf0]  ;;  %v5852_v45 = vld [vmem:[%s10077_s25] sm:$0xf] }
 0x219   : > { %5389 = vmatpush.bf16.msrb.mxu1 %v7723_v60  ;;  %v8142_v60 = vld [vmem:[%s9381_s21 + $0x1b4] sm:$0xf0]  ;;  %v5146_v62 = vadd.f32 %v9983_v16, %v5133_v50  ;;  %v6110_v3 = vld [vmem:[%s9381_s21 + $0x88] sm:$0xf] }
 0x21a   : > { %5402 = vmatpush.bf16.msrb.mxu2 %v7851_v61  ;;  %v6382_v61 = vld [vmem:[%s9381_s21 + $0x2a8] sm:$0xf]  ;;  %v8174_v56 = vld [vmem:[%s9381_s21 + $0x2b4] sm:$0xf0]  ;;  %v6255_v16 = vor.u32 %v8142_v60, %v6254_v58 }
 0x21b   : > { %5415 = vmatpush.bf16.msrb.mxu3 %v7979_v1  ;;  %v8206_v0 = vld [vmem:[%s9381_s21 + $0x3b4] sm:$0xf0]  ;;  %v6127_v1 = vor.u32 %v8110_v55, %v6126_v48  ;;  %v6383_v2 = vor.u32 %v8174_v56, %v6382_v61  ;;  %v6238_v7 = vld [vmem:[%s9381_s21 + $0x188] sm:$0xf]  ;;  %v5840_v56 = vperm.slane %v5838_v43, 0 }
 0x21c   : > { %5377 = vmatpush.bf16.msrb.mxu0 %v7579_v10  ;;  %v8106_v5 = vld [vmem:[%s9381_s21 + $0x94] sm:$0xf0]  ;;  %v6511_v51 = vor.u32 %v8206_v0, %v6510_v63  ;;  %v6366_v8 = vld [vmem:[%s9381_s21 + $0x288] sm:$0xf]  ;;  %v5159_v10 = vadd.f32 %v9988_v22, %v5146_v62 }
 0x21d   : > { %5390 = vmatpush.bf16.msrb.mxu1 %v7707_v17  ;;  %v8138_v53 = vld [vmem:[%s9381_s21 + $0x194] sm:$0xf0]  ;;  %v6494_v12 = vld [vmem:[%s9381_s21 + $0x388] sm:$0xf]  ;;  %v6111_v14 = vor.u32 %v8106_v5, %v6110_v3  ;;  %v5184_v17 = vpop.f32.mrf.mxu1 }
 0x21e   : > { %5403 = vmatpush.bf16.msrb.mxu2 %v7835_v18  ;;  %v8170_v9 = vld [vmem:[%s9381_s21 + $0x294] sm:$0xf0]  ;;  %v5171_v11 = vpop.f32.mrf.mxu0  ;;  %v6239_v19 = vor.u32 %v8138_v53, %v6238_v7  ;;  %v6222_v22 = vld [vmem:[%s9381_s21 + $0x168] sm:$0xf] }
 0x21f   : > { %5416 = vmatpush.bf16.msrb.mxu3 %v7963_v26  ;;  %5378 = vmatmul.bf16.vlgmr.msrb.gmra.mxu0 %v9710_v23  ;;  %v8202_v13 = vld [vmem:[%s9381_s21 + $0x394] sm:$0xf0]  ;;  %v5172_v18 = vadd.f32 %v5171_v11, %v5159_v10  ;;  %v6367_v15 = vor.u32 %v8170_v9, %v6366_v8  ;;  %v6094_v26 = vld [vmem:[%s9381_s21 + $0x68] sm:$0xf] }
 0x220   : > { %5422 = vmatpush.bf16.msra.mxu0 %v6159_v36  ;;  %5391 = vmatmul.bf16.vlgmr.msrb.gmra.mxu1 %v9717_v31  ;;  %v8102_v36 = vld [vmem:[%s9381_s21 + $0x74] sm:$0xf0]  ;;  %v6495_v39 = vor.u32 %v8202_v13, %v6494_v12  ;;  %v6478_v34 = vld [vmem:[%s9381_s21 + $0x368] sm:$0xf] }
 0x221   : > { %5435 = vmatpush.bf16.msra.mxu1 %v6287_v27  ;;  %5404 = vmatmul.bf16.vlgmr.msrb.gmra.mxu2 %v9715_v28  ;;  %v8134_v27 = vld [vmem:[%s9381_s21 + $0x174] sm:$0xf0]  ;;  %v5185_v46 = vadd.f32 %v5184_v17, %v5172_v18  ;;  %v6334_v58 = vld [vmem:[%s9381_s21 + $0x248] sm:$0xf] }
 0x222   : > { %5448 = vmatpush.bf16.msra.mxu2 %v6415_v57  ;;  %5417 = vmatmul.bf16.vlgmr.msrb.gmra.mxu3 %v9721_v35  ;;  %v6350_v57 = vld [vmem:[%s9381_s21 + $0x268] sm:$0xf]  ;;  %v8166_v32 = vld [vmem:[%s9381_s21 + $0x274] sm:$0xf0]  ;;  %v6223_v47 = vor.u32 %v8134_v27, %v6222_v22 }
 0x223   : > { %5461 = vmatpush.bf16.msra.mxu3 %v6543_v40  ;;  %v8198_v37 = vld [vmem:[%s9381_s21 + $0x374] sm:$0xf0]  ;;  %v6095_v40 = vor.u32 %v8102_v36, %v6094_v26  ;;  %v6351_v49 = vor.u32 %v8166_v32, %v6350_v57  ;;  %v6462_v62 = vld [vmem:[%s9381_s21 + $0x348] sm:$0xf] }
 0x224   : > { %5423 = vmatpush.bf16.msra.mxu0 %v6143_v52  ;;  %v6078_v52 = vld [vmem:[%s9381_s21 + $0x48] sm:$0xf]  ;;  %v8098_v50 = vld [vmem:[%s9381_s21 + $0x54] sm:$0xf0] }
 0x225   : > { %5436 = vmatpush.bf16.msra.mxu1 %v6271_v54  ;;  %v6206_v54 = vld [vmem:[%s9381_s21 + $0x148] sm:$0xf]  ;;  %v8130_v55 = vld [vmem:[%s9381_s21 + $0x154] sm:$0xf0]  ;;  %v5210_v61 = vpop.f32.mrf.mxu3 }
 0x226   : > { %5449 = vmatpush.bf16.msra.mxu2 %v6399_v24  ;;  %v6479_v24 = vor.u32 %v8198_v37, %v6478_v34  ;;  %v5197_v48 = vpop.f32.mrf.mxu2  ;;  %v8194_v63 = vld [vmem:[%s9381_s21 + $0x354] sm:$0xf0]  ;;  %v5173_v0 = vpop.f32.mrf.mxu0  ;;  %v6207_v5 = vor.u32 %v8130_v55, %v6206_v54  ;;  %v6190_v8 = vld [vmem:[%s9381_s21 + $0x128] sm:$0xf] }
 0x227   : > { %5462 = vmatpush.bf16.msra.mxu3 %v6527_v59  ;;  %v8162_v59 = vld [vmem:[%s9381_s21 + $0x254] sm:$0xf0]  ;;  %v5198_v60 = vadd.f32 %v5197_v48, %v5185_v46  ;;  %v6463_v9 = vor.u32 %v8194_v63, %v6462_v62  ;;  %v6318_v11 = vld [vmem:[%s9381_s21 + $0x228] sm:$0xf] }
 0x228   : > { %5424 = vmatpush.bf16.msra.mxu0 %v6127_v1  ;;  %v5854_v1 = vperm.slane %v5852_v45, 0  ;;  %v6335_v7 = vor.u32 %v8162_v59, %v6334_v58  ;;  %v8094_v53 = vld [vmem:[%s9381_s21 + $0x34] sm:$0xf0]  ;;  %v6046_v18 = vld [vmem:[%s9381_s21 + $0x8] sm:$0xf] }
 0x229   : > { %5437 = vmatpush.bf16.msra.mxu1 %v6255_v16  ;;  %v6079_v16 = vor.u32 %v8098_v50, %v6078_v52  ;;  %v5211_v3 = vadd.f32 %v5210_v61, %v5198_v60  ;;  %v8126_v10 = vld [vmem:[%s9381_s21 + $0x134] sm:$0xf0]  ;;  %v6174_v26 = vld [vmem:[%s9381_s21 + $0x108] sm:$0xf] }
 0x22a   : > { %5450 = vmatpush.bf16.msra.mxu2 %v6383_v2  ;;  %v5186_v2 = vpop.f32.mrf.mxu1  ;;  %v8158_v12 = vld [vmem:[%s9381_s21 + $0x234] sm:$0xf0]  ;;  %v6302_v57 = vld [vmem:[%s9381_s21 + $0x208] sm:$0xf] }
 0x22b   : > { %5463 = vmatpush.bf16.msra.mxu3 %v6511_v51  ;;  %v6062_v51 = vld [vmem:[%s9381_s21 + $0x28] sm:$0xf]  ;;  %v5848_v13 = vmul.f32 %v5840_v56, %v5211_v3  ;;  %v8190_v17 = vld [vmem:[%s9381_s21 + $0x334] sm:$0xf0]  ;;  %v6319_v27 = vor.u32 %v8158_v12, %v6318_v11 }
 0x22c   : > { %5425 = vmatpush.bf16.msra.mxu0 %v6111_v14  ;;  %v6446_v14 = vld [vmem:[%s9381_s21 + $0x328] sm:$0xf]  ;;  %v8122_v36 = vld [vmem:[%s9381_s21 + $0x114] sm:$0xf0] }
 0x22d   : > { %5438 = vmatpush.bf16.msra.mxu1 %v6239_v19  ;;  %v6063_v19 = vor.u32 %v8094_v53, %v6062_v51  ;;  %v5862_v22 = vadd.f32 %v5854_v1, %v5848_v13  ;;  %v8154_v32 = vld [vmem:[%s9381_s21 + $0x214] sm:$0xf0]  ;;  %v6430_v34 = vld [vmem:[%s9381_s21 + $0x308] sm:$0xf]  ;;  %v6447_v37 = vor.u32 %v8190_v17, %v6446_v14  ;;  %v5212_v52 = vpop.f32.mrf.mxu3  ;;  %v6175_v58 = vor.u32 %v8122_v36, %v6174_v26 }
 0x22e   : > { %5451 = vmatpush.bf16.msra.mxu2 %v6367_v15  ;;  %v8090_v15 = vld [vmem:[%s9381_s21 + $0x14] sm:$0xf0]  ;;  %v6670_v43 = vld [vmem:[%s9381_s21 + $0x4e8] sm:$0xf]  ;;  %v5199_v46 = vpop.f32.mrf.mxu2  ;;  %v6303_v59 = vor.u32 %v8154_v32, %v6302_v57 }
 0x22f   : > { %5464 = vmatpush.bf16.msra.mxu3 %v6495_v39  ;;  %v6191_v39 = vor.u32 %v8126_v10, %v6190_v8  ;;  %v8246_v45 = vld [vmem:[%s9381_s21 + $0x4f4] sm:$0xf0]  ;;  %vm5866_vm0 = vcmp.gt.f32.partialorder %v5862_v22, 0.0  ;;  %v6047_v50 = vor.u32 %v8090_v15, %v6046_v18  ;;  %v7054_v60 = vld [vmem:[%s9381_s21 + $0x7e8] sm:$0xf] }
 0x230   : > { %5426 = vmatpush.bf16.msra.mxu0 %v6095_v40  ;;  %v8186_v40 = vld [vmem:[%s9381_s21 + $0x314] sm:$0xf0]  ;;  %v6671_v62 = vor.u32 %v8246_v45, %v6670_v43  ;;  %v6654_v1 = vld [vmem:[%s9381_s21 + $0x4c8] sm:$0xf] }
 0x231   : > { %5439 = vmatpush.bf16.msra.mxu1 %v6223_v47  ;;  %v5870_v47 = vmul.f32 0.01, %v5862_v22  ;;  %v8278_v54 = vld [vmem:[%s9381_s21 + $0x5f4] sm:$0xf0]  ;;  %v6431_v56 = vor.u32 %v8186_v40, %v6430_v34  ;;  %v6782_v2 = vld [vmem:[%s9381_s21 + $0x5c8] sm:$0xf] }
 0x232   : > { %5452 = vmatpush.bf16.msra.mxu2 %v6351_v49  ;;  %v6798_v49 = vld [vmem:[%s9381_s21 + $0x5e8] sm:$0xf]  ;;  %v8310_v48 = vld [vmem:[%s9381_s21 + $0x6f4] sm:$0xf0] }
 0x233   : > { %5465 = vmatpush.bf16.msra.mxu3 %v6479_v24  ;;  %v6926_v24 = vld [vmem:[%s9381_s21 + $0x6e8] sm:$0xf]  ;;  %v5874_v55 = vsel %vm5866_vm0, %v5862_v22, %v5870_v47  ;;  %v8342_v61 = vld [vmem:[%s9381_s21 + $0x7f4] sm:$0xf0]  ;;  %v6799_v63 = vor.u32 %v8278_v54, %v6798_v49 }
 0x234   : > { %5427 = vmatpush.bf16.msra.mxu0 %v6079_v16  ;;  %5878 = vst [vmem:[%s10118_s29] sm:$0xff] %v5874_v55  ;;  %v6927_v0 = vor.u32 %v8310_v48, %v6926_v24  ;;  %v8242_v16 = vld [vmem:[%s9381_s21 + $0x4d4] sm:$0xf0]  ;;  %v7055_v3 = vor.u32 %v8342_v61, %v7054_v60  ;;  %v7038_v53 = vld [vmem:[%s9381_s21 + $0x7c8] sm:$0xf] }
 0x235   : > { %5440 = vmatpush.bf16.msra.mxu1 %v6207_v5  ;;  %v8274_v5 = vld [vmem:[%s9381_s21 + $0x5d4] sm:$0xf0]  ;;  %v6638_v12 = vld [vmem:[%s9381_s21 + $0x4a8] sm:$0xf] }
 0x236   : > { %5453 = vmatpush.bf16.msra.mxu2 %v6335_v7  ;;  %v6910_v7 = vld [vmem:[%s9381_s21 + $0x6c8] sm:$0xf]  ;;  %v8306_v51 = vld [vmem:[%s9381_s21 + $0x6d4] sm:$0xf0]  ;;  %v6783_v10 = vor.u32 %v8274_v5, %v6782_v2 }
 0x237   : > { %5466 = vmatpush.bf16.msra.mxu3 %v6463_v9  ;;  %v8338_v8 = vld [vmem:[%s9381_s21 + $0x7d4] sm:$0xf0]  ;;  %v6655_v9 = vor.u32 %v8242_v16, %v6654_v1  ;;  %v6911_v11 = vor.u32 %v8306_v51, %v6910_v7  ;;  %v6766_v14 = vld [vmem:[%s9381_s21 + $0x5a8] sm:$0xf] }
 0x238   : > { %5428 = vmatpush.bf16.msra.mxu0 %v6063_v19  ;;  %v8238_v13 = vld [vmem:[%s9381_s21 + $0x4b4] sm:$0xf0]  ;;  %v7039_v17 = vor.u32 %v8338_v8, %v7038_v53  ;;  %v6894_v19 = vld [vmem:[%s9381_s21 + $0x6a8] sm:$0xf] }
 0x239   : > { %5441 = vmatpush.bf16.msra.mxu1 %v6191_v39  ;;  %v8270_v18 = vld [vmem:[%s9381_s21 + $0x5b4] sm:$0xf0]  ;;  %v7022_v26 = vld [vmem:[%s9381_s21 + $0x7a8] sm:$0xf]  ;;  %v6639_v22 = vor.u32 %v8238_v13, %v6638_v12 }
 0x23a   : > { %5454 = vmatpush.bf16.msra.mxu2 %v6319_v27  ;;  %v8302_v15 = vld [vmem:[%s9381_s21 + $0x6b4] sm:$0xf0]  ;;  %v6767_v39 = vor.u32 %v8270_v18, %v6766_v14  ;;  %v6622_v57 = vld [vmem:[%s9381_s21 + $0x488] sm:$0xf] }
 0x23b   : > { %5467 = vmatpush.bf16.msra.mxu3 %v6447_v37  ;;  %v8334_v36 = vld [vmem:[%s9381_s21 + $0x7b4] sm:$0xf0]  ;;  %v6895_v27 = vor.u32 %v8302_v15, %v6894_v19  ;;  %v6750_v34 = vld [vmem:[%s9381_s21 + $0x588] sm:$0xf] }
 0x23c   : > { %5429 = vmatpush.bf16.msra.mxu0 %v6047_v50  ;;  %v8234_v32 = vld [vmem:[%s9381_s21 + $0x494] sm:$0xf0]  ;;  %v7023_v37 = vor.u32 %v8334_v36, %v7022_v26  ;;  %v6878_v43 = vld [vmem:[%s9381_s21 + $0x688] sm:$0xf]  ;;  %v5223_v52 = vpop.f32.mrf.mxu0 }
 0x23d   : > { %5442 = vmatpush.bf16.msra.mxu1 %v6175_v58  ;;  %v8266_v40 = vld [vmem:[%s9381_s21 + $0x594] sm:$0xf0]  ;;  %v7006_v46 = vld [vmem:[%s9381_s21 + $0x788] sm:$0xf]  ;;  %v6623_v49 = vor.u32 %v8234_v32, %v6622_v57  ;;  %v5236_v58 = vpop.f32.mrf.mxu1 }
 0x23e   : > { %5455 = vmatpush.bf16.msra.mxu2 %v6303_v59  ;;  %v8298_v45 = vld [vmem:[%s9381_s21 + $0x694] sm:$0xf0]  ;;  %v6751_v50 = vor.u32 %v8266_v40, %v6750_v34  ;;  %v6606_v24 = vld [vmem:[%s9381_s21 + $0x468] sm:$0xf] }
 0x23f   : > { %5468 = vmatpush.bf16.msra.mxu3 %v6431_v56  ;;  %5430 = vmatmul.bf16.vlgmr.msra.gmra.mxu0 %v9490_v20  ;;  %v8330_v47 = vld [vmem:[%s9381_s21 + $0x794] sm:$0xf0]  ;;  %v6879_v54 = vor.u32 %v8298_v45, %v6878_v43  ;;  %v6734_v55 = vld [vmem:[%s9381_s21 + $0x568] sm:$0xf] }
 0x240   : > { %5474 = vmatpush.bf16.msrb.mxu0 %v6671_v62  ;;  %5443 = vmatmul.bf16.vlgmr.msra.gmra.mxu1 %v9493_v21  ;;  %v8230_v48 = vld [vmem:[%s9381_s21 + $0x474] sm:$0xf0]  ;;  %v7007_v59 = vor.u32 %v8330_v47, %v7006_v46  ;;  %v6862_v61 = vld [vmem:[%s9381_s21 + $0x668] sm:$0xf]  ;;  %v5237_v62 = vadd.f32 %v5236_v58, %v5223_v52 }
 0x241   : > { %5487 = vmatpush.bf16.msrb.mxu1 %v6799_v63  ;;  %5456 = vmatmul.bf16.vlgmr.msra.gmra.mxu2 %v9474_v4  ;;  %v8262_v60 = vld [vmem:[%s9381_s21 + $0x574] sm:$0xf0]  ;;  %v6990_v63 = vld [vmem:[%s9381_s21 + $0x768] sm:$0xf]  ;;  %v6607_v1 = vor.u32 %v8230_v48, %v6606_v24 }
 0x242   : > { %5500 = vmatpush.bf16.msrb.mxu2 %v6927_v0  ;;  %5469 = vmatmul.bf16.vlgmr.msra.gmra.mxu3 %v9479_v6  ;;  %v8294_v56 = vld [vmem:[%s9381_s21 + $0x674] sm:$0xf0]  ;;  %v6735_v16 = vor.u32 %v8262_v60, %v6734_v55  ;;  %v6718_v7 = vld [vmem:[%s9381_s21 + $0x548] sm:$0xf] }
 0x243   : > { %5513 = vmatpush.bf16.msrb.mxu3 %v7055_v3  ;;  %v8326_v0 = vld [vmem:[%s9381_s21 + $0x774] sm:$0xf0]  ;;  %v6863_v2 = vor.u32 %v8294_v56, %v6862_v61  ;;  %v6590_v3 = vld [vmem:[%s9381_s21 + $0x448] sm:$0xf] }
 0x244   : > { %5475 = vmatpush.bf16.msrb.mxu0 %v6655_v9  ;;  %v8226_v5 = vld [vmem:[%s9381_s21 + $0x454] sm:$0xf0]  ;;  %v5249_v51 = vpop.f32.mrf.mxu2  ;;  %v6991_v53 = vor.u32 %v8326_v0, %v6990_v63  ;;  %v6846_v9 = vld [vmem:[%s9381_s21 + $0x648] sm:$0xf]  ;;  %v5225_v19 = vpop.f32.mrf.mxu0 }
 0x245   : > { %5488 = vmatpush.bf16.msrb.mxu1 %v6783_v10  ;;  %v8258_v8 = vld [vmem:[%s9381_s21 + $0x554] sm:$0xf0]  ;;  %v5262_v12 = vpop.f32.mrf.mxu3  ;;  %v6974_v13 = vld [vmem:[%s9381_s21 + $0x748] sm:$0xf] }
 0x246   : > { %5501 = vmatpush.bf16.msrb.mxu2 %v6911_v11  ;;  %v8290_v10 = vld [vmem:[%s9381_s21 + $0x654] sm:$0xf0]  ;;  %v5250_v11 = vadd.f32 %v5249_v51, %v5237_v62  ;;  %v6719_v15 = vor.u32 %v8258_v8, %v6718_v7  ;;  %v6574_v36 = vld [vmem:[%s9381_s21 + $0x428] sm:$0xf] }
 0x247   : > { %5514 = vmatpush.bf16.msrb.mxu3 %v7039_v17  ;;  %v8322_v14 = vld [vmem:[%s9381_s21 + $0x754] sm:$0xf0]  ;;  %v6591_v17 = vor.u32 %v8226_v5, %v6590_v3  ;;  %v6847_v26 = vor.u32 %v8290_v10, %v6846_v9  ;;  %v6830_v34 = vld [vmem:[%s9381_s21 + $0x628] sm:$0xf] }
 0x248   : > { %5476 = vmatpush.bf16.msrb.mxu0 %v6639_v22  ;;  %v10171_v18 = vadd.f32 %v5262_v12, %v5250_v11  ;;  %v8222_v22 = vld [vmem:[%s9381_s21 + $0x434] sm:$0xf0]  ;;  %v6975_v57 = vor.u32 %v8322_v14, %v6974_v13  ;;  %v6958_v40 = vld [vmem:[%s9381_s21 + $0x728] sm:$0xf] }
 0x249   : > { %5489 = vmatpush.bf16.msrb.mxu1 %v6767_v39  ;;  %v6702_v39 = vld [vmem:[%s9381_s21 + $0x528] sm:$0xf]  ;;  %v8254_v32 = vld [vmem:[%s9381_s21 + $0x534] sm:$0xf0]  ;;  %v6575_v45 = vor.u32 %v8222_v22, %v6574_v36 }
 0x24a   : > { %5502 = vmatpush.bf16.msrb.mxu2 %v6895_v27  ;;  %v5238_v27 = vpop.f32.mrf.mxu1  ;;  %v8318_v43 = vld [vmem:[%s9381_s21 + $0x734] sm:$0xf0]  ;;  %v6558_v46 = vld [vmem:[%s9381_s21 + $0x408] sm:$0xf] }
 0x24b   : > { %5515 = vmatpush.bf16.msrb.mxu3 %v7023_v37  ;;  %v8286_v37 = vld [vmem:[%s9381_s21 + $0x634] sm:$0xf0]  ;;  %v6814_v24 = vld [vmem:[%s9381_s21 + $0x608] sm:$0xf]  ;;  %v6959_v55 = vor.u32 %v8318_v43, %v6958_v40 }
 0x24c   : > { %5477 = vmatpush.bf16.msrb.mxu0 %v6623_v49  ;;  %v8218_v47 = vld [vmem:[%s9381_s21 + $0x414] sm:$0xf0]  ;;  %v6703_v49 = vor.u32 %v8254_v32, %v6702_v39  ;;  %v6831_v52 = vor.u32 %v8286_v37, %v6830_v34  ;;  %v5251_v48 = vpop.f32.mrf.mxu2  ;;  %v7182_v56 = vld [vmem:[%s9381_s21 + $0x8e8] sm:$0xf] }
 0x24d   : > { %5490 = vmatpush.bf16.msrb.mxu1 %v6751_v50  ;;  %v6686_v50 = vld [vmem:[%s9381_s21 + $0x508] sm:$0xf]  ;;  %v8282_v58 = vld [vmem:[%s9381_s21 + $0x614] sm:$0xf0]  ;;  %v5264_v61 = vpop.f32.mrf.mxu3  ;;  %v6559_v0 = vor.u32 %v8218_v47, %v6558_v46 }
 0x24e   : > { %5503 = vmatpush.bf16.msrb.mxu2 %v6879_v54  ;;  %v8250_v54 = vld [vmem:[%s9381_s21 + $0x514] sm:$0xf0]  ;;  %v7310_v63 = vld [vmem:[%s9381_s21 + $0x9e8] sm:$0xf]  ;;  %v6815_v5 = vor.u32 %v8282_v58, %v6814_v24 }
 0x24f   : > { %5516 = vmatpush.bf16.msrb.mxu3 %v7007_v59  ;;  %v6942_v59 = vld [vmem:[%s9381_s21 + $0x708] sm:$0xf]  ;;  %v8314_v60 = vld [vmem:[%s9381_s21 + $0x714] sm:$0xf0]  ;;  %v6687_v3 = vor.u32 %v8250_v54, %v6686_v50 }
 0x250   : > { %5478 = vmatpush.bf16.msrb.mxu0 %v6607_v1  ;;  %v8374_v62 = vld [vmem:[%s9381_s21 + $0x8f4] sm:$0xf0]  ;;  %v7566_v7 = vld [vmem:[%s9381_s21 + $0xbe8] sm:$0xf] }
 0x251   : > { %5491 = vmatpush.bf16.msrb.mxu1 %v6735_v16  ;;  %v8406_v1 = vld [vmem:[%s9381_s21 + $0x9f4] sm:$0xf0]  ;;  %v7438_v16 = vld [vmem:[%s9381_s21 + $0xae8] sm:$0xf]  ;;  %v7183_v8 = vor.u32 %v8374_v62, %v7182_v56 }
 0x252   : > { %5504 = vmatpush.bf16.msrb.mxu2 %v6863_v2  ;;  %v8438_v2 = vld [vmem:[%s9381_s21 + $0xaf4] sm:$0xf0]  ;;  %v7311_v9 = vor.u32 %v8406_v1, %v7310_v63  ;;  %v7166_v11 = vld [vmem:[%s9381_s21 + $0x8c8] sm:$0xf] }
 0x253   : > { %5517 = vmatpush.bf16.msrb.mxu3 %v6991_v53  ;;  %v8470_v51 = vld [vmem:[%s9381_s21 + $0xbf4] sm:$0xf0]  ;;  %v6943_v53 = vor.u32 %v8314_v60, %v6942_v59  ;;  %v7439_v10 = vor.u32 %v8438_v2, %v7438_v16  ;;  %v7294_v13 = vld [vmem:[%s9381_s21 + $0x9c8] sm:$0xf] }
 0x254   : > { %5479 = vmatpush.bf16.msrb.mxu0 %v6591_v17  ;;  %v8370_v12 = vld [vmem:[%s9381_s21 + $0x8d4] sm:$0xf0]  ;;  %v7567_v14 = vor.u32 %v8470_v51, %v7566_v7  ;;  %v7422_v19 = vld [vmem:[%s9381_s21 + $0xac8] sm:$0xf] }
 0x255   : > { %5492 = vmatpush.bf16.msrb.mxu1 %v6719_v15  ;;  %v8402_v17 = vld [vmem:[%s9381_s21 + $0x9d4] sm:$0xf0]  ;;  %v7167_v22 = vor.u32 %v8370_v12, %v7166_v11  ;;  %v7278_v34 = vld [vmem:[%s9381_s21 + $0x9a8] sm:$0xf] }
 0x256   : > { %5505 = vmatpush.bf16.msrb.mxu2 %v6847_v26  ;;  %v8434_v15 = vld [vmem:[%s9381_s21 + $0xad4] sm:$0xf0]  ;;  %v7550_v26 = vld [vmem:[%s9381_s21 + $0xbc8] sm:$0xf]  ;;  %v7295_v39 = vor.u32 %v8402_v17, %v7294_v13 }
 0x257   : > { %5518 = vmatpush.bf16.msrb.mxu3 %v6975_v57  ;;  %v8466_v36 = vld [vmem:[%s9381_s21 + $0xbd4] sm:$0xf0]  ;;  %v7423_v27 = vor.u32 %v8434_v15, %v7422_v19  ;;  %v7150_v57 = vld [vmem:[%s9381_s21 + $0x8a8] sm:$0xf] }
 0x258   : > { %5480 = vmatpush.bf16.msrb.mxu0 %v6575_v45  ;;  %v8366_v32 = vld [vmem:[%s9381_s21 + $0x8b4] sm:$0xf0]  ;;  %v7551_v37 = vor.u32 %v8466_v36, %v7550_v26  ;;  %v7406_v43 = vld [vmem:[%s9381_s21 + $0xaa8] sm:$0xf] }
 0x259   : > { %5493 = vmatpush.bf16.msrb.mxu1 %v6703_v49  ;;  %v8398_v40 = vld [vmem:[%s9381_s21 + $0x9b4] sm:$0xf0]  ;;  %v7534_v46 = vld [vmem:[%s9381_s21 + $0xba8] sm:$0xf]  ;;  %v7151_v49 = vor.u32 %v8366_v32, %v7150_v57 }
 0x25a   : > { %5506 = vmatpush.bf16.msrb.mxu2 %v6831_v52  ;;  %v8430_v45 = vld [vmem:[%s9381_s21 + $0xab4] sm:$0xf0]  ;;  %v7279_v52 = vor.u32 %v8398_v40, %v7278_v34  ;;  %v7134_v54 = vld [vmem:[%s9381_s21 + $0x888] sm:$0xf] }
 0x25b   : > { %5519 = vmatpush.bf16.msrb.mxu3 %v6959_v55  ;;  %v8462_v47 = vld [vmem:[%s9381_s21 + $0xbb4] sm:$0xf0]  ;;  %v7407_v50 = vor.u32 %v8430_v45, %v7406_v43  ;;  %v7262_v48 = vld [vmem:[%s9381_s21 + $0x988] sm:$0xf] }
 0x25c   : > { %5481 = vmatpush.bf16.msrb.mxu0 %v6559_v0  ;;  %v8362_v24 = vld [vmem:[%s9381_s21 + $0x894] sm:$0xf0]  ;;  %v7535_v55 = vor.u32 %v8462_v47, %v7534_v46  ;;  %v7390_v59 = vld [vmem:[%s9381_s21 + $0xa88] sm:$0xf]  ;;  %v10225_v63 = vpop.f32.mrf.mxu0 }
 0x25d   : > { %5494 = vmatpush.bf16.msrb.mxu1 %v6687_v3  ;;  %v8394_v58 = vld [vmem:[%s9381_s21 + $0x994] sm:$0xf0]  ;;  %v7518_v61 = vld [vmem:[%s9381_s21 + $0xb88] sm:$0xf]  ;;  %v7135_v62 = vor.u32 %v8362_v24, %v7134_v54 }
 0x25e   : > { %5507 = vmatpush.bf16.msrb.mxu2 %v6815_v5  ;;  %v8426_v60 = vld [vmem:[%s9381_s21 + $0xa94] sm:$0xf0]  ;;  %v7263_v0 = vor.u32 %v8394_v58, %v7262_v48  ;;  %v7118_v16 = vld [vmem:[%s9381_s21 + $0x868] sm:$0xf]  ;;  %v10230_v5 = vpop.f32.mrf.mxu1 }
 0x25f   : > { %5520 = vmatpush.bf16.msrb.mxu3 %v6943_v53  ;;  %5482 = vmatmul.bf16.vlgmr.msrb.gmra.mxu0 %v9553_v41  ;;  %v8458_v56 = vld [vmem:[%s9381_s21 + $0xb94] sm:$0xf0]  ;;  %v7391_v1 = vor.u32 %v8426_v60, %v7390_v59  ;;  %v7246_v3 = vld [vmem:[%s9381_s21 + $0x968] sm:$0xf] }
 0x260   : > { %5526 = vmatpush.bf16.msra.mxu0 %v7183_v8  ;;  %5495 = vmatmul.bf16.vlgmr.msrb.gmra.mxu1 %v9557_v44  ;;  %v8358_v2 = vld [vmem:[%s9381_s21 + $0x874] sm:$0xf0]  ;;  %v7519_v7 = vor.u32 %v8458_v56, %v7518_v61  ;;  %v7374_v53 = vld [vmem:[%s9381_s21 + $0xa68] sm:$0xf] }
 0x261   : > { %5539 = vmatpush.bf16.msra.mxu1 %v7311_v9  ;;  %5508 = vmatmul.bf16.vlgmr.msrb.gmra.mxu2 %v9549_v38  ;;  %v8390_v51 = vld [vmem:[%s9381_s21 + $0x974] sm:$0xf0]  ;;  %v7502_v9 = vld [vmem:[%s9381_s21 + $0xb68] sm:$0xf]  ;;  %v7119_v11 = vor.u32 %v8358_v2, %v7118_v16 }
 0x262   : > { %5552 = vmatpush.bf16.msra.mxu2 %v7439_v10  ;;  %5521 = vmatmul.bf16.vlgmr.msrb.gmra.mxu3 %v9555_v42  ;;  %v8422_v8 = vld [vmem:[%s9381_s21 + $0xa74] sm:$0xf0]  ;;  %v7247_v12 = vor.u32 %v8390_v51, %v7246_v3  ;;  %v7230_v19 = vld [vmem:[%s9381_s21 + $0x948] sm:$0xf] }
 0x263   : > { %5565 = vmatpush.bf16.msra.mxu3 %v7567_v14  ;;  %v8454_v10 = vld [vmem:[%s9381_s21 + $0xb74] sm:$0xf0]  ;;  %v7375_v13 = vor.u32 %v8422_v8, %v7374_v53  ;;  %v7102_v14 = vld [vmem:[%s9381_s21 + $0x848] sm:$0xf] }
 0x264   : > { %5527 = vmatpush.bf16.msra.mxu0 %v7167_v22  ;;  %v8354_v17 = vld [vmem:[%s9381_s21 + $0x854] sm:$0xf0]  ;;  %v10240_v15 = vpop.f32.mrf.mxu2  ;;  %v7503_v26 = vor.u32 %v8454_v10, %v7502_v9  ;;  %v7358_v22 = vld [vmem:[%s9381_s21 + $0xa48] sm:$0xf] }
 0x265   : > { %5540 = vmatpush.bf16.msra.mxu1 %v7295_v39  ;;  %v8386_v36 = vld [vmem:[%s9381_s21 + $0x954] sm:$0xf0]  ;;  %v7486_v57 = vld [vmem:[%s9381_s21 + $0xb48] sm:$0xf]  ;;  %v7103_v34 = vor.u32 %v8354_v17, %v7102_v14 }
 0x266   : > { %5553 = vmatpush.bf16.msra.mxu2 %v7423_v27  ;;  %v8418_v39 = vld [vmem:[%s9381_s21 + $0xa54] sm:$0xf0]  ;;  %v10245_v27 = vpop.f32.mrf.mxu3  ;;  %v7231_v40 = vor.u32 %v8386_v36, %v7230_v19  ;;  %v7086_v45 = vld [vmem:[%s9381_s21 + $0x828] sm:$0xf] }
 0x267   : > { %5566 = vmatpush.bf16.msra.mxu3 %v7551_v37  ;;  %v8450_v32 = vld [vmem:[%s9381_s21 + $0xb54] sm:$0xf0]  ;;  %v5277_v37 = vpop.f32.mrf.mxu0  ;;  %v7359_v43 = vor.u32 %v8418_v39, %v7358_v22  ;;  %v7214_v47 = vld [vmem:[%s9381_s21 + $0x928] sm:$0xf] }
 0x268   : > { %5528 = vmatpush.bf16.msra.mxu0 %v7151_v49  ;;  %v8350_v46 = vld [vmem:[%s9381_s21 + $0x834] sm:$0xf0]  ;;  %v5290_v49 = vpop.f32.mrf.mxu1  ;;  %v7342_v54 = vld [vmem:[%s9381_s21 + $0xa28] sm:$0xf] }
 0x269   : > { %5541 = vmatpush.bf16.msra.mxu1 %v7279_v52  ;;  %v7487_v52 = vor.u32 %v8450_v32, %v7486_v57  ;;  %v8414_v24 = vld [vmem:[%s9381_s21 + $0xa34] sm:$0xf0]  ;;  %v7470_v48 = vld [vmem:[%s9381_s21 + $0xb28] sm:$0xf]  ;;  %v7087_v58 = vor.u32 %v8350_v46, %v7086_v45 }
 0x26a   : > { %5554 = vmatpush.bf16.msra.mxu2 %v7407_v50  ;;  %v8382_v50 = vld [vmem:[%s9381_s21 + $0x934] sm:$0xf0]  ;;  %v7070_v59 = vld [vmem:[%s9381_s21 + $0x808] sm:$0xf]  ;;  %v7343_v56 = vor.u32 %v8414_v24, %v7342_v54 }
 0x26b   : > { %5567 = vmatpush.bf16.msra.mxu3 %v7535_v55  ;;  %v8446_v55 = vld [vmem:[%s9381_s21 + $0xb34] sm:$0xf0]  ;;  %v7215_v61 = vor.u32 %v8382_v50, %v7214_v47  ;;  %v7694_v8 = vld [vmem:[%s9381_s21 + $0xce8] sm:$0xf] }
 0x26c   : > { %5529 = vmatpush.bf16.msra.mxu0 %v7135_v62  ;;  %v8346_v60 = vld [vmem:[%s9381_s21 + $0x814] sm:$0xf0]  ;;  %v7198_v62 = vld [vmem:[%s9381_s21 + $0x908] sm:$0xf]  ;;  %v5303_v16 = vpop.f32.mrf.mxu2  ;;  %v7471_v2 = vor.u32 %v8446_v55, %v7470_v48 }
 0x26d   : > { %5542 = vmatpush.bf16.msra.mxu1 %v7263_v0  ;;  %v8378_v0 = vld [vmem:[%s9381_s21 + $0x914] sm:$0xf0]  ;;  %v7822_v10 = vld [vmem:[%s9381_s21 + $0xde8] sm:$0xf] }
 0x26e   : > { %5555 = vmatpush.bf16.msra.mxu2 %v7391_v1  ;;  %v7326_v1 = vld [vmem:[%s9381_s21 + $0xa08] sm:$0xf]  ;;  %v8410_v3 = vld [vmem:[%s9381_s21 + $0xa14] sm:$0xf0]  ;;  %v5316_v53 = vpop.f32.mrf.mxu3  ;;  %v7199_v17 = vor.u32 %v8378_v0, %v7198_v62 }
 0x26f   : > { %5568 = vmatpush.bf16.msra.mxu3 %v7519_v7  ;;  %v7454_v7 = vld [vmem:[%s9381_s21 + $0xb08] sm:$0xf]  ;;  %v8442_v51 = vld [vmem:[%s9381_s21 + $0xb14] sm:$0xf0]  ;;  %v7327_v19 = vor.u32 %v8410_v3, %v7326_v1 }
 0x270   : > { %5530 = vmatpush.bf16.msra.mxu0 %v7119_v11  ;;  %v8502_v9 = vld [vmem:[%s9381_s21 + $0xcf4] sm:$0xf0]  ;;  %v7071_v11 = vor.u32 %v8346_v60, %v7070_v59  ;;  %v7455_v22 = vor.u32 %v8442_v51, %v7454_v7  ;;  %v7934_v46 = vld [vmem:[%s9381_s21 + $0xec8] sm:$0xf] }
 0x271   : > { %5543 = vmatpush.bf16.msra.mxu1 %v7247_v12  ;;  %v8534_v12 = vld [vmem:[%s9381_s21 + $0xdf4] sm:$0xf0]  ;;  %v7695_v39 = vor.u32 %v8502_v9, %v7694_v8  ;;  %v8062_v49 = vld [vmem:[%s9381_s21 + $0xfc8] sm:$0xf] }
 0x272   : > { %5556 = vmatpush.bf16.msra.mxu2 %v7375_v13  ;;  %v7950_v13 = vld [vmem:[%s9381_s21 + $0xee8] sm:$0xf]  ;;  %v8566_v14 = vld [vmem:[%s9381_s21 + $0xef4] sm:$0xf0]  ;;  %v7823_v57 = vor.u32 %v8534_v12, %v7822_v10 }
 0x273   : > { %5569 = vmatpush.bf16.msra.mxu3 %v7503_v26  ;;  %v8078_v26 = vld [vmem:[%s9381_s21 + $0xfe8] sm:$0xf]  ;;  %v8598_v36 = vld [vmem:[%s9381_s21 + $0xff4] sm:$0xf0]  ;;  %v7951_v32 = vor.u32 %v8566_v14, %v7950_v13 }
 0x274   : > { %5531 = vmatpush.bf16.msra.mxu0 %v7103_v34  ;;  %v7678_v34 = vld [vmem:[%s9381_s21 + $0xcc8] sm:$0xf]  ;;  %v8498_v37 = vld [vmem:[%s9381_s21 + $0xcd4] sm:$0xf0] }
 0x275   : > { %5544 = vmatpush.bf16.msra.mxu1 %v7231_v40  ;;  %v7806_v40 = vld [vmem:[%s9381_s21 + $0xdc8] sm:$0xf]  ;;  %v8530_v45 = vld [vmem:[%s9381_s21 + $0xdd4] sm:$0xf0]  ;;  %v7679_v50 = vor.u32 %v8498_v37, %v7678_v34 }
 0x276   : > { %5557 = vmatpush.bf16.msra.mxu2 %v7359_v43  ;;  %v8079_v43 = vor.u32 %v8598_v36, %v8078_v26  ;;  %v8562_v47 = vld [vmem:[%s9381_s21 + $0xed4] sm:$0xf0]  ;;  %v7807_v54 = vor.u32 %v8530_v45, %v7806_v40  ;;  %v7662_v48 = vld [vmem:[%s9381_s21 + $0xca8] sm:$0xf] }
 0x277   : > { %5570 = vmatpush.bf16.msra.mxu3 %v7487_v52  ;;  %v8594_v52 = vld [vmem:[%s9381_s21 + $0xfd4] sm:$0xf0]  ;;  %v7935_v24 = vor.u32 %v8562_v47, %v7934_v46  ;;  %v8046_v62 = vld [vmem:[%s9381_s21 + $0xfa8] sm:$0xf]  ;;  %v5276_v46 = vadd.f32 %v10225_v63, %v10171_v18 }
 0x278   : > { %5532 = vmatpush.bf16.msra.mxu0 %v7087_v58  ;;  %v8494_v55 = vld [vmem:[%s9381_s21 + $0xcb4] sm:$0xf0]  ;;  %v7790_v58 = vld [vmem:[%s9381_s21 + $0xda8] sm:$0xf]  ;;  %v8063_v59 = vor.u32 %v8594_v52, %v8062_v49 }
 0x279   : > { %5545 = vmatpush.bf16.msra.mxu1 %v7215_v61  ;;  %v8526_v60 = vld [vmem:[%s9381_s21 + $0xdb4] sm:$0xf0]  ;;  %v7918_v61 = vld [vmem:[%s9381_s21 + $0xea8] sm:$0xf]  ;;  %v7663_v1 = vor.u32 %v8494_v55, %v7662_v48 }
 0x27a   : > { %5558 = vmatpush.bf16.msra.mxu2 %v7343_v56  ;;  %v8558_v56 = vld [vmem:[%s9381_s21 + $0xeb4] sm:$0xf0]  ;;  %v7791_v16 = vor.u32 %v8526_v60, %v7790_v58  ;;  %v7646_v3 = vld [vmem:[%s9381_s21 + $0xc88] sm:$0xf] }
 0x27b   : > { %5571 = vmatpush.bf16.msra.mxu3 %v7471_v2  ;;  %v8590_v0 = vld [vmem:[%s9381_s21 + $0xfb4] sm:$0xf0]  ;;  %v7919_v2 = vor.u32 %v8558_v56, %v7918_v61  ;;  %v7774_v51 = vld [vmem:[%s9381_s21 + $0xd88] sm:$0xf] }
 0x27c   : > { %5533 = vmatpush.bf16.msra.mxu0 %v7071_v11  ;;  %v8490_v7 = vld [vmem:[%s9381_s21 + $0xc94] sm:$0xf0]  ;;  %v8047_v53 = vor.u32 %v8590_v0, %v8046_v62  ;;  %v7902_v9 = vld [vmem:[%s9381_s21 + $0xe88] sm:$0xf]  ;;  %v10299_v11 = vpop.f32.mrf.mxu0  ;;  %v5289_v0 = vadd.f32 %v10230_v5, %v5276_v46  ;;  %v8148_v46 = vld [vmem:[%s9381_s21 + $0x1ec] sm:$0xf] }
 0x27d   : > { %5546 = vmatpush.bf16.msra.mxu1 %v7199_v17  ;;  %v8522_v8 = vld [vmem:[%s9381_s21 + $0xd94] sm:$0xf0]  ;;  %v8030_v12 = vld [vmem:[%s9381_s21 + $0xf88] sm:$0xf]  ;;  %v7647_v14 = vor.u32 %v8490_v7, %v7646_v3  ;;  %v10303_v17 = vpop.f32.mrf.mxu1 }
 0x27e   : > { %5559 = vmatpush.bf16.msra.mxu2 %v7327_v19  ;;  %v8554_v10 = vld [vmem:[%s9381_s21 + $0xe94] sm:$0xf0]  ;;  %v7775_v19 = vor.u32 %v8522_v8, %v7774_v51  ;;  %v7630_v36 = vld [vmem:[%s9381_s21 + $0xc68] sm:$0xf] }
 0x27f   : > { %5572 = vmatpush.bf16.msra.mxu3 %v7455_v22  ;;  %5534 = vmatmul.bf16.vlgmr.msra.gmra.mxu0 %v9628_v25  ;;  %v8586_v13 = vld [vmem:[%s9381_s21 + $0xf94] sm:$0xf0]  ;;  %v7903_v26 = vor.u32 %v8554_v10, %v7902_v9  ;;  %v7886_v34 = vld [vmem:[%s9381_s21 + $0xe68] sm:$0xf] }
 0x280   : > { %5578 = vmatpush.bf16.msrb.mxu0 %v7695_v39  ;;  %5547 = vmatmul.bf16.vlgmr.msra.gmra.mxu1 %v9635_v30  ;;  %v8486_v22 = vld [vmem:[%s9381_s21 + $0xc74] sm:$0xf0]  ;;  %v7758_v39 = vld [vmem:[%s9381_s21 + $0xd68] sm:$0xf] }
 0x281   : > { %5591 = vmatpush.bf16.msrb.mxu1 %v7823_v57  ;;  %5560 = vmatmul.bf16.vlgmr.msra.gmra.mxu2 %v9633_v29  ;;  %v8031_v57 = vor.u32 %v8586_v13, %v8030_v12  ;;  %v8550_v37 = vld [vmem:[%s9381_s21 + $0xe74] sm:$0xf0]  ;;  %v8014_v40 = vld [vmem:[%s9381_s21 + $0xf68] sm:$0xf]  ;;  %v7631_v45 = vor.u32 %v8486_v22, %v7630_v36 }
 0x282   : > { %5604 = vmatpush.bf16.msrb.mxu2 %v7951_v32  ;;  %5573 = vmatmul.bf16.vlgmr.msra.gmra.mxu3 %v9639_v33  ;;  %v8518_v32 = vld [vmem:[%s9381_s21 + $0xd74] sm:$0xf0]  ;;  %v7887_v49 = vor.u32 %v8550_v37, %v7886_v34  ;;  %v7614_v52 = vld [vmem:[%s9381_s21 + $0xc48] sm:$0xf] }
 0x283   : > { %5617 = vmatpush.bf16.msrb.mxu3 %v8079_v43  ;;  %v8582_v43 = vld [vmem:[%s9381_s21 + $0xf74] sm:$0xf0]  ;;  %v7759_v47 = vor.u32 %v8518_v32, %v7758_v39  ;;  %v7870_v58 = vld [vmem:[%s9381_s21 + $0xe48] sm:$0xf] }
 0x284   : > { %5579 = vmatpush.bf16.msrb.mxu0 %v7679_v50  ;;  %v8482_v50 = vld [vmem:[%s9381_s21 + $0xc54] sm:$0xf0]  ;;  %v10318_v48 = vpop.f32.mrf.mxu2  ;;  %v7998_v18 = vld [vmem:[%s9381_s21 + $0xf48] sm:$0xf]  ;;  %v5329_v61 = vpop.f32.mrf.mxu0 }
 0x285   : > { %5592 = vmatpush.bf16.msrb.mxu1 %v7807_v54  ;;  %v7742_v54 = vld [vmem:[%s9381_s21 + $0xd48] sm:$0xf]  ;;  %v8514_v55 = vld [vmem:[%s9381_s21 + $0xd54] sm:$0xf0]  ;;  %v10323_v60 = vpop.f32.mrf.mxu3  ;;  %v7615_v56 = vor.u32 %v8482_v50, %v7614_v52  ;;  %v5342_v62 = vpop.f32.mrf.mxu1  ;;  %v6288_v52 = vld [vmem:[%s9381_s21 + $0x1f8] sm:$0xf0] }
 0x286   : > { %5605 = vmatpush.bf16.msrb.mxu2 %v7935_v24  ;;  %v8015_v24 = vor.u32 %v8582_v43, %v8014_v40  ;;  %v8578_v63 = vld [vmem:[%s9381_s21 + $0xf54] sm:$0xf0]  ;;  %v7726_v7 = vld [vmem:[%s9381_s21 + $0xd28] sm:$0xf]  ;;  %v8180_v50 = vld [vmem:[%s9381_s21 + $0x2ec] sm:$0xf]  ;;  %v6291_v62 = vor.u32 %v8148_v46, %v6288_v52 }
 0x287   : > { %5618 = vmatpush.bf16.msrb.mxu3 %v8063_v59  ;;  %v8546_v59 = vld [vmem:[%s9381_s21 + $0xe54] sm:$0xf0]  ;;  %v7999_v51 = vor.u32 %v8578_v63, %v7998_v18  ;;  %v7854_v8 = vld [vmem:[%s9381_s21 + $0xe28] sm:$0xf]  ;;  %v6544_v18 = vld [vmem:[%s9381_s21 + $0x3f8] sm:$0xf0] }
 0x288   : > { %5580 = vmatpush.bf16.msrb.mxu0 %v7663_v1  ;;  %v7743_v1 = vor.u32 %v8514_v55, %v7742_v54  ;;  %v8478_v3 = vld [vmem:[%s9381_s21 + $0xc34] sm:$0xf0]  ;;  %v7982_v10 = vld [vmem:[%s9381_s21 + $0xf28] sm:$0xf]  ;;  %v6416_v54 = vld [vmem:[%s9381_s21 + $0x2f8] sm:$0xf0] }
 0x289   : > { %5593 = vmatpush.bf16.msrb.mxu1 %v7791_v16  ;;  %v7871_v16 = vor.u32 %v8546_v59, %v7870_v58  ;;  %v8542_v9 = vld [vmem:[%s9381_s21 + $0xe34] sm:$0xf0]  ;;  %v7582_v13 = vld [vmem:[%s9381_s21 + $0xc08] sm:$0xf]  ;;  %v8212_v59 = vld [vmem:[%s9381_s21 + $0x3ec] sm:$0xf] }
 0x28a   : > { %5606 = vmatpush.bf16.msrb.mxu2 %v7919_v2  ;;  %v7598_v2 = vld [vmem:[%s9381_s21 + $0xc28] sm:$0xf]  ;;  %v8574_v5 = vld [vmem:[%s9381_s21 + $0xf34] sm:$0xf0]  ;;  %v7855_v36 = vor.u32 %v8542_v9, %v7854_v8  ;;  %v6528_v8 = vld [vmem:[%s9381_s21 + $0x3d8] sm:$0xf0] }
 0x28b   : > { %5619 = vmatpush.bf16.msrb.mxu3 %v8047_v53  ;;  %v8510_v53 = vld [vmem:[%s9381_s21 + $0xd34] sm:$0xf0]  ;;  %v7599_v12 = vor.u32 %v8478_v3, %v7598_v2  ;;  %v7710_v22 = vld [vmem:[%s9381_s21 + $0xd08] sm:$0xf]  ;;  %v7983_v32 = vor.u32 %v8574_v5, %v7982_v10  ;;  %v6547_v2 = vor.u32 %v8212_v59, %v6544_v18  ;;  %v6272_v3 = vld [vmem:[%s9381_s21 + $0x1d8] sm:$0xf0] }
 0x28c   : > { %5581 = vmatpush.bf16.msrb.mxu0 %v7647_v14  ;;  %v8474_v14 = vld [vmem:[%s9381_s21 + $0xc14] sm:$0xf0]  ;;  %v7966_v37 = vld [vmem:[%s9381_s21 + $0xf08] sm:$0xf]  ;;  %v5355_v43 = vpop.f32.mrf.mxu2  ;;  %v8168_v46 = vld [vmem:[%s9381_s21 + $0x28c] sm:$0xf] }
 0x28d   : > { %5594 = vmatpush.bf16.msrb.mxu1 %v7775_v19  ;;  %v5302_v19 = vadd.f32 %v10240_v15, %v5289_v0  ;;  %v8506_v39 = vld [vmem:[%s9381_s21 + $0xd14] sm:$0xf0]  ;;  %v8116_v15 = vld [vmem:[%s9381_s21 + $0xec] sm:$0xf]  ;;  %v6419_v0 = vor.u32 %v8180_v50, %v6416_v54  ;;  %v6496_v54 = vld [vmem:[%s9381_s21 + $0x398] sm:$0xf0] }
 0x28e   : > { %5607 = vmatpush.bf16.msrb.mxu2 %v7903_v26  ;;  %v7727_v26 = vor.u32 %v8510_v53, %v7726_v7  ;;  %v8538_v34 = vld [vmem:[%s9381_s21 + $0xe14] sm:$0xf0]  ;;  %v7711_v55 = vor.u32 %v8506_v39, %v7710_v22  ;;  %v8176_v7 = vld [vmem:[%s9381_s21 + $0x2cc] sm:$0xf]  ;;  %v6384_v22 = vld [vmem:[%s9381_s21 + $0x2b8] sm:$0xf0] }
 0x28f   : > { %5620 = vmatpush.bf16.msrb.mxu3 %v8031_v57  ;;  %v7838_v57 = vld [vmem:[%s9381_s21 + $0xe08] sm:$0xf]  ;;  %v8570_v40 = vld [vmem:[%s9381_s21 + $0xf14] sm:$0xf0]  ;;  %v8208_v53 = vld [vmem:[%s9381_s21 + $0x3cc] sm:$0xf] }
 0x290   : > { %5582 = vmatpush.bf16.msrb.mxu0 %v7631_v45  ;;  %v6160_v45 = vld [vmem:[%s9381_s21 + $0xf8] sm:$0xf0]  ;;  %v7839_v58 = vor.u32 %v8538_v34, %v7838_v57  ;;  %v7967_v63 = vor.u32 %v8570_v40, %v7966_v37  ;;  %v8204_v39 = vld [vmem:[%s9381_s21 + $0x3ac] sm:$0xf] }
 0x291   : > { %5595 = vmatpush.bf16.msrb.mxu1 %v7759_v47  ;;  %v5368_v47 = vpop.f32.mrf.mxu3  ;;  %v6163_v61 = vor.u32 %v8116_v15, %v6160_v45  ;;  %v6512_v57 = vld [vmem:[%s9381_s21 + $0x3b8] sm:$0xf0]  ;;  %v8136_v43 = vld [vmem:[%s9381_s21 + $0x18c] sm:$0xf] }
 0x292   : > { %5608 = vmatpush.bf16.msrb.mxu2 %v7887_v49  ;;  %v7583_v49 = vor.u32 %v8474_v14, %v7582_v13  ;;  %v6128_v13 = vld [vmem:[%s9381_s21 + $0xb8] sm:$0xf0]  ;;  %v8140_v14 = vld [vmem:[%s9381_s21 + $0x1ac] sm:$0xf]  ;;  %v6515_v15 = vor.u32 %v8204_v39, %v6512_v57  ;;  %v10407_v57 = vld [vmem:[%s10077_s25] sm:$0xf] }
 0x293   : > { %5621 = vmatpush.bf16.msrb.mxu3 %v8015_v24  ;;  %v5315_v24 = vadd.f32 %v10245_v27, %v5302_v19  ;;  %v6144_v27 = vld [vmem:[%s9381_s21 + $0xd8] sm:$0xf0]  ;;  %v6531_v19 = vor.u32 %v8208_v53, %v6528_v8  ;;  %v8200_v50 = vld [vmem:[%s9381_s21 + $0x38c] sm:$0xf] }
 0x294   : > { %5583 = vmatpush.bf16.msrb.mxu0 %v7615_v56  ;;  %v6112_v40 = vld [vmem:[%s9381_s21 + $0x98] sm:$0xf0]  ;;  %v8096_v53 = vld [vmem:[%s9381_s21 + $0x4c] sm:$0xf] }
 0x295   : > { %5596 = vmatpush.bf16.msrb.mxu1 %v7743_v1  ;;  %v5328_v56 = vadd.f32 %v10299_v11, %v5315_v24  ;;  %v8112_v1 = vld [vmem:[%s9381_s21 + $0xcc] sm:$0xf]  ;;  %v6240_v45 = vld [vmem:[%s9381_s21 + $0x198] sm:$0xf0] }
 0x296   : > { %5609 = vmatpush.bf16.msrb.mxu2 %v7871_v16  ;;  %v8144_v16 = vld [vmem:[%s9381_s21 + $0x1cc] sm:$0xf]  ;;  %v6147_v11 = vor.u32 %v8112_v1, %v6144_v27  ;;  %v6368_v47 = vld [vmem:[%s9381_s21 + $0x298] sm:$0xf0]  ;;  %v6243_v59 = vor.u32 %v8136_v43, %v6240_v45 }
 0x297   : > { %5622 = vmatpush.bf16.msrb.mxu3 %v7999_v51  ;;  %v6400_v51 = vld [vmem:[%s9381_s21 + $0x2d8] sm:$0xf0]  ;;  %v5341_v9 = vadd.f32 %v10303_v17, %v5328_v56  ;;  %v6275_v10 = vor.u32 %v8144_v16, %v6272_v3  ;;  %v6371_v18 = vor.u32 %v8168_v46, %v6368_v47  ;;  %v6499_v56 = vor.u32 %v8200_v50, %v6496_v54  ;;  %v8196_v27 = vld [vmem:[%s9381_s21 + $0x36c] sm:$0xf] }
 0x298   : > { %5584 = vmatpush.bf16.msrb.mxu0 %v7599_v12  ;;  %v6403_v5 = vor.u32 %v8176_v7, %v6400_v51  ;;  %v8108_v12 = vld [vmem:[%s9381_s21 + $0xac] sm:$0xf]  ;;  %v6352_v1 = vld [vmem:[%s9381_s21 + $0x278] sm:$0xf0] }
 0x299   : > { %5597 = vmatpush.bf16.msrb.mxu1 %v7727_v26  ;;  %v6256_v26 = vld [vmem:[%s9381_s21 + $0x1b8] sm:$0xf0]  ;;  %v5354_v17 = vadd.f32 %v10318_v48, %v5341_v9  ;;  %v8104_v48 = vld [vmem:[%s9381_s21 + $0x8c] sm:$0xf] }
 0x29a   : > { %5610 = vmatpush.bf16.msrb.mxu2 %v7855_v36  ;;  %v8172_v36 = vld [vmem:[%s9381_s21 + $0x2ac] sm:$0xf]  ;;  %v6259_v34 = vor.u32 %v8140_v14, %v6256_v26  ;;  %v6115_v24 = vor.u32 %v8104_v48, %v6112_v40  ;;  %v6480_v16 = vld [vmem:[%s9381_s21 + $0x378] sm:$0xf0]  ;;  %v10401_v26 = vld [vmem:[%s10071_s15] sm:$0xf] }
 0x29b   : > { %5623 = vmatpush.bf16.msrb.mxu3 %v7983_v32  ;;  %v6131_v32 = vor.u32 %v8108_v12, %v6128_v13  ;;  %v6387_v37 = vor.u32 %v8172_v36, %v6384_v22  ;;  %v6080_v8 = vld [vmem:[%s9381_s21 + $0x58] sm:$0xf0]  ;;  %v6483_v9 = vor.u32 %v8196_v27, %v6480_v16  ;;  %v8160_v12 = vld [vmem:[%s9381_s21 + $0x24c] sm:$0xf]  ;;  %v5841_v36 = vperm.slane %v10401_v26, 1 }
 0x29c   : > { %5585 = vmatpush.bf16.msrb.mxu0 %v7583_v49  ;;  %v5367_v49 = vadd.f32 %v10323_v60, %v5354_v17  ;;  %v5379_v52 = vpop.f32.mrf.mxu0  ;;  %v8132_v60 = vld [vmem:[%s9381_s21 + $0x16c] sm:$0xf]  ;;  %v6336_v13 = vld [vmem:[%s9381_s21 + $0x258] sm:$0xf0] }
 0x29d   : > { %5598 = vmatpush.bf16.msrb.mxu1 %v7711_v55  ;;  %v5392_v55 = vpop.f32.mrf.mxu1  ;;  %v8192_v22 = vld [vmem:[%s9381_s21 + $0x34c] sm:$0xf]  ;;  %v6464_v17 = vld [vmem:[%s9381_s21 + $0x358] sm:$0xf0]  ;;  %v6339_v43 = vor.u32 %v8160_v12, %v6336_v13 }
 0x29e   : > { %5611 = vmatpush.bf16.msrb.mxu2 %v7839_v58  ;;  %v5380_v58 = vadd.f32 %v5379_v52, %v5367_v49  ;;  %v6064_v45 = vld [vmem:[%s9381_s21 + $0x38] sm:$0xf0]  ;;  %v8124_v46 = vld [vmem:[%s9381_s21 + $0x12c] sm:$0xf]  ;;  %v6467_v47 = vor.u32 %v8192_v22, %v6464_v17 }
 0x29f   : > { %5624 = vmatpush.bf16.msrb.mxu3 %v7967_v63  ;;  %5586 = vmatmul.bf16.vlgmr.msrb.gmra.mxu0 %v9710_v23  ;;  %v8100_v63 = vld [vmem:[%s9381_s21 + $0x6c] sm:$0xf]  ;;  %v6192_v49 = vld [vmem:[%s9381_s21 + $0x138] sm:$0xf0] }
 0x2a0   : > { %5630 = vmatpush.bf16.msra.mxu0 %v6163_v61  ;;  %5599 = vmatmul.bf16.vlgmr.msrb.gmra.mxu1 %v9717_v31  ;;  %v6096_v61 = vld [vmem:[%s9381_s21 + $0x78] sm:$0xf0]  ;;  %v5393_v3 = vadd.f32 %v5392_v55, %v5380_v58  ;;  %v8156_v52 = vld [vmem:[%s9381_s21 + $0x22c] sm:$0xf] }
 0x2a1   : > { %5643 = vmatpush.bf16.msra.mxu1 %v6291_v62  ;;  %5612 = vmatmul.bf16.vlgmr.msrb.gmra.mxu2 %v9715_v28  ;;  %v6224_v62 = vld [vmem:[%s9381_s21 + $0x178] sm:$0xf0]  ;;  %v8088_v58 = vld [vmem:[%s9381_s21 + $0xc] sm:$0xf] }
 0x2a2   : > { %5656 = vmatpush.bf16.msra.mxu2 %v6419_v0  ;;  %5625 = vmatmul.bf16.vlgmr.msrb.gmra.mxu3 %v9721_v35  ;;  %v8164_v0 = vld [vmem:[%s9381_s21 + $0x26c] sm:$0xf]  ;;  %v6227_v7 = vor.u32 %v8132_v60, %v6224_v62  ;;  %v6320_v50 = vld [vmem:[%s9381_s21 + $0x238] sm:$0xf0] }
 0x2a3   : > { %5669 = vmatpush.bf16.msra.mxu3 %v6547_v2  ;;  %v6099_v2 = vor.u32 %v8100_v63, %v6096_v61  ;;  %v6355_v51 = vor.u32 %v8164_v0, %v6352_v1  ;;  %v6448_v55 = vld [vmem:[%s9381_s21 + $0x338] sm:$0xf0]  ;;  %v8120_v63 = vld [vmem:[%s9381_s21 + $0x10c] sm:$0xf]  ;;  %v6323_v62 = vor.u32 %v8156_v52, %v6320_v50 }
 0x2a4   : > { %5631 = vmatpush.bf16.msra.mxu0 %v6147_v11  ;;  %v8128_v11 = vld [vmem:[%s9381_s21 + $0x14c] sm:$0xf]  ;;  %v5381_v39 = vpop.f32.mrf.mxu0  ;;  %v6176_v61 = vld [vmem:[%s9381_s21 + $0x118] sm:$0xf0] }
 0x2a5   : > { %5644 = vmatpush.bf16.msra.mxu1 %v6275_v10  ;;  %v5405_v10 = vpop.f32.mrf.mxu2  ;;  %v8152_v0 = vld [vmem:[%s9381_s21 + $0x20c] sm:$0xf]  ;;  %v6304_v1 = vld [vmem:[%s9381_s21 + $0x218] sm:$0xf0] }
 0x2a6   : > { %5657 = vmatpush.bf16.msra.mxu2 %v6403_v5  ;;  %v6208_v5 = vld [vmem:[%s9381_s21 + $0x158] sm:$0xf0]  ;;  %v5406_v14 = vadd.f32 %v5405_v10, %v5393_v3  ;;  %v8184_v27 = vld [vmem:[%s9381_s21 + $0x30c] sm:$0xf] }
 0x2a7   : > { %5670 = vmatpush.bf16.msra.mxu3 %v6531_v19  ;;  %v5418_v19 = vpop.f32.mrf.mxu3  ;;  %v6211_v40 = vor.u32 %v8128_v11, %v6208_v5  ;;  %v8244_v3 = vld [vmem:[%s9381_s21 + $0x4ec] sm:$0xf]  ;;  %v6800_v10 = vld [vmem:[%s9381_s21 + $0x5f8] sm:$0xf0] }
 0x2a8   : > { %5632 = vmatpush.bf16.msra.mxu0 %v6131_v32  ;;  %v5855_v32 = vperm.slane %v10407_v57, 1  ;;  %v5419_v48 = vadd.f32 %v5418_v19, %v5406_v14  ;;  %v8308_v5 = vld [vmem:[%s9381_s21 + $0x6ec] sm:$0xf]  ;;  %v6928_v12 = vld [vmem:[%s9381_s21 + $0x6f8] sm:$0xf0]  ;;  %v6179_v14 = vor.u32 %v8120_v63, %v6176_v61  ;;  %v6307_v19 = vor.u32 %v8152_v0, %v6304_v1 }
 0x2a9   : > { %5645 = vmatpush.bf16.msra.mxu1 %v6259_v34  ;;  %v6083_v34 = vor.u32 %v8096_v53, %v6080_v8  ;;  %v8276_v8 = vld [vmem:[%s9381_s21 + $0x5ec] sm:$0xf]  ;;  %v7056_v22 = vld [vmem:[%s9381_s21 + $0x7f8] sm:$0xf0] }
 0x2aa   : > { %5658 = vmatpush.bf16.msra.mxu2 %v6387_v37  ;;  %v5394_v37 = vpop.f32.mrf.mxu1  ;;  %v5849_v54 = vmul.f32 %v5841_v36, %v5419_v48  ;;  %v8340_v36 = vld [vmem:[%s9381_s21 + $0x7ec] sm:$0xf]  ;;  %v6656_v48 = vld [vmem:[%s9381_s21 + $0x4d8] sm:$0xf0] }
 0x2ab   : > { %5671 = vmatpush.bf16.msra.mxu3 %v6515_v15  ;;  %v8092_v15 = vld [vmem:[%s9381_s21 + $0x2c] sm:$0xf]  ;;  %v6896_v61 = vld [vmem:[%s9381_s21 + $0x6b8] sm:$0xf0] }
 0x2ac   : > { %5633 = vmatpush.bf16.msra.mxu0 %v6115_v24  ;;  %v8188_v24 = vld [vmem:[%s9381_s21 + $0x32c] sm:$0xf]  ;;  %v5863_v60 = vadd.f32 %v5855_v32, %v5849_v54  ;;  %v6803_v32 = vor.u32 %v8276_v8, %v6800_v10  ;;  %v6608_v10 = vld [vmem:[%s9381_s21 + $0x478] sm:$0xf0] }
 0x2ad   : > { %5646 = vmatpush.bf16.msra.mxu1 %v6243_v59  ;;  %v6067_v59 = vor.u32 %v8092_v15, %v6064_v45  ;;  %v6451_v16 = vor.u32 %v8188_v24, %v6448_v55  ;;  %v8240_v37 = vld [vmem:[%s9381_s21 + $0x4cc] sm:$0xf]  ;;  %v6784_v15 = vld [vmem:[%s9381_s21 + $0x5d8] sm:$0xf0] }
 0x2ae   : > { %5659 = vmatpush.bf16.msra.mxu2 %v6371_v18  ;;  %v6048_v18 = vld [vmem:[%s9381_s21 + $0x18] sm:$0xf0]  ;;  %vm5867_vm1 = vcmp.gt.f32.partialorder %v5863_v60, 0.0  ;;  %v5871_v53 = vmul.f32 0.01, %v5863_v60  ;;  %v6659_v52 = vor.u32 %v8240_v37, %v6656_v48 }
 0x2af   : > { %5672 = vmatpush.bf16.msra.mxu3 %v6499_v56  ;;  %v6195_v56 = vor.u32 %v8124_v46, %v6192_v49  ;;  %v5420_v11 = vpop.f32.mrf.mxu3  ;;  %v8304_v45 = vld [vmem:[%s9381_s21 + $0x6cc] sm:$0xf]  ;;  %v6912_v46 = vld [vmem:[%s9381_s21 + $0x6d8] sm:$0xf0] }
 0x2b0   : > { %5634 = vmatpush.bf16.msra.mxu0 %v6099_v2  ;;  %v6432_v2 = vld [vmem:[%s9381_s21 + $0x318] sm:$0xf0]  ;;  %v5875_v13 = vsel %vm5867_vm1, %v5863_v60, %v5871_v53  ;;  %v6915_v54 = vor.u32 %v8304_v45, %v6912_v46  ;;  %v8236_v24 = vld [vmem:[%s9381_s21 + $0x4ac] sm:$0xf] }
 0x2b1   : > { %5647 = vmatpush.bf16.msra.mxu1 %v6227_v7  ;;  %v6672_v7 = vld [vmem:[%s9381_s21 + $0x4f8] sm:$0xf0]  ;;  %5879 = vst [vmem:[%s10118_s29 + $0x8] sm:$0xff] %v5875_v13  ;;  %v6435_v17 = vor.u32 %v8184_v27, %v6432_v2  ;;  %v8300_v63 = vld [vmem:[%s9381_s21 + $0x6ac] sm:$0xf] }
 0x2b2   : > { %5660 = vmatpush.bf16.msra.mxu2 %v6355_v51  ;;  %v5407_v51 = vpop.f32.mrf.mxu2  ;;  %v6675_v39 = vor.u32 %v8244_v3, %v6672_v7  ;;  %v7040_v49 = vld [vmem:[%s9381_s21 + $0x7d8] sm:$0xf0]  ;;  %v8332_v60 = vld [vmem:[%s9381_s21 + $0x7ac] sm:$0xf]  ;;  %v6899_v1 = vor.u32 %v8300_v63, %v6896_v61 }
 0x2b3   : > { %5673 = vmatpush.bf16.msra.mxu3 %v6483_v9  ;;  %v6051_v9 = vor.u32 %v8088_v58, %v6048_v18  ;;  %v6640_v55 = vld [vmem:[%s9381_s21 + $0x4b8] sm:$0xf0]  ;;  %v8268_v58 = vld [vmem:[%s9381_s21 + $0x5ac] sm:$0xf] }
 0x2b4   : > { %5635 = vmatpush.bf16.msra.mxu0 %v6083_v34  ;;  %v6931_v34 = vor.u32 %v8308_v5, %v6928_v12  ;;  %v6768_v18 = vld [vmem:[%s9381_s21 + $0x5b8] sm:$0xf0]  ;;  %v8328_v7 = vld [vmem:[%s9381_s21 + $0x78c] sm:$0xf] }
 0x2b5   : > { %5648 = vmatpush.bf16.msra.mxu1 %v6211_v40  ;;  %v8272_v40 = vld [vmem:[%s9381_s21 + $0x5cc] sm:$0xf]  ;;  %v6771_v0 = vor.u32 %v8268_v58, %v6768_v18  ;;  %v6624_v27 = vld [vmem:[%s9381_s21 + $0x498] sm:$0xf0] }
 0x2b6   : > { %5661 = vmatpush.bf16.msra.mxu2 %v6339_v43  ;;  %v7059_v43 = vor.u32 %v8340_v36, %v7056_v22  ;;  %v6787_v50 = vor.u32 %v8272_v40, %v6784_v15  ;;  %v6752_v2 = vld [vmem:[%s9381_s21 + $0x598] sm:$0xf0]  ;;  %v8260_v5 = vld [vmem:[%s9381_s21 + $0x56c] sm:$0xf] }
 0x2b7   : > { %5674 = vmatpush.bf16.msra.mxu3 %v6467_v47  ;;  %v8336_v47 = vld [vmem:[%s9381_s21 + $0x7cc] sm:$0xf]  ;;  %v6880_v3 = vld [vmem:[%s9381_s21 + $0x698] sm:$0xf0] }
 0x2b8   : > { %5636 = vmatpush.bf16.msra.mxu0 %v6067_v59  ;;  %v7043_v59 = vor.u32 %v8336_v47, %v7040_v49  ;;  %v7008_v51 = vld [vmem:[%s9381_s21 + $0x798] sm:$0xf0]  ;;  %v8224_v48 = vld [vmem:[%s9381_s21 + $0x44c] sm:$0xf] }
 0x2b9   : > { %5649 = vmatpush.bf16.msra.mxu1 %v6195_v56  ;;  %v7024_v56 = vld [vmem:[%s9381_s21 + $0x7b8] sm:$0xf0]  ;;  %v7011_v13 = vor.u32 %v8328_v7, %v7008_v51  ;;  %v8288_v47 = vld [vmem:[%s9381_s21 + $0x64c] sm:$0xf] }
 0x2ba   : > { %5662 = vmatpush.bf16.msra.mxu2 %v6323_v62  ;;  %v6643_v62 = vor.u32 %v8236_v24, %v6640_v55  ;;  %v6864_v36 = vld [vmem:[%s9381_s21 + $0x678] sm:$0xf0]  ;;  %v8220_v61 = vld [vmem:[%s9381_s21 + $0x42c] sm:$0xf] }
 0x2bb   : > { %5675 = vmatpush.bf16.msra.mxu3 %v6451_v16  ;;  %v8264_v16 = vld [vmem:[%s9381_s21 + $0x58c] sm:$0xf]  ;;  %v6592_v40 = vld [vmem:[%s9381_s21 + $0x458] sm:$0xf0] }
 0x2bc   : > { %5637 = vmatpush.bf16.msra.mxu0 %v6051_v9  ;;  %v5431_v53 = vpop.f32.mrf.mxu0  ;;  %v6755_v8 = vor.u32 %v8264_v16, %v6752_v2  ;;  %v8228_v9 = vld [vmem:[%s9381_s21 + $0x46c] sm:$0xf]  ;;  %v6720_v46 = vld [vmem:[%s9381_s21 + $0x558] sm:$0xf0]  ;;  %v6595_v55 = vor.u32 %v8224_v48, %v6592_v40 }
 0x2bd   : > { %5650 = vmatpush.bf16.msra.mxu1 %v6179_v14  ;;  %v5444_v12 = vpop.f32.mrf.mxu1  ;;  %v6736_v14 = vld [vmem:[%s9381_s21 + $0x578] sm:$0xf0]  ;;  %v8316_v16 = vld [vmem:[%s9381_s21 + $0x72c] sm:$0xf] }
 0x2be   : > { %5663 = vmatpush.bf16.msra.mxu2 %v6307_v19  ;;  %v8292_v19 = vld [vmem:[%s9381_s21 + $0x66c] sm:$0xf]  ;;  %v5445_v22 = vadd.f32 %v5444_v12, %v5431_v53  ;;  %v6848_v49 = vld [vmem:[%s9381_s21 + $0x658] sm:$0xf0] }
 0x2bf   : > { %5676 = vmatpush.bf16.msra.mxu3 %v6435_v17  ;;  %5638 = vmatmul.bf16.vlgmr.msra.gmra.mxu0 %v9490_v20  ;;  %v7027_v20 = vor.u32 %v8332_v60, %v7024_v56  ;;  %v8324_v17 = vld [vmem:[%s9381_s21 + $0x76c] sm:$0xf]  ;;  %v6867_v37 = vor.u32 %v8292_v19, %v6864_v36  ;;  %v6976_v24 = vld [vmem:[%s9381_s21 + $0x758] sm:$0xf0]  ;;  %v6851_v63 = vor.u32 %v8288_v47, %v6848_v49 }
 0x2c0   : > { %5682 = vmatpush.bf16.msrb.mxu0 %v6675_v39  ;;  %5651 = vmatmul.bf16.vlgmr.msra.gmra.mxu1 %v9493_v21  ;;  %v6992_v39 = vld [vmem:[%s9381_s21 + $0x778] sm:$0xf0]  ;;  %v8252_v56 = vld [vmem:[%s9381_s21 + $0x52c] sm:$0xf] }
 0x2c1   : > { %5695 = vmatpush.bf16.msrb.mxu1 %v6803_v32  ;;  %5664 = vmatmul.bf16.vlgmr.msra.gmra.mxu2 %v9474_v4  ;;  %v8232_v4 = vld [vmem:[%s9381_s21 + $0x48c] sm:$0xf]  ;;  %v6611_v32 = vor.u32 %v8228_v9, %v6608_v10  ;;  %v6995_v45 = vor.u32 %v8324_v17, %v6992_v39  ;;  %v6576_v60 = vld [vmem:[%s9381_s21 + $0x438] sm:$0xf0] }
 0x2c2   : > { %5708 = vmatpush.bf16.msrb.mxu2 %v6931_v34  ;;  %5677 = vmatmul.bf16.vlgmr.msra.gmra.mxu3 %v9479_v6  ;;  %v8296_v6 = vld [vmem:[%s9381_s21 + $0x68c] sm:$0xf]  ;;  %v6627_v21 = vor.u32 %v8232_v4, %v6624_v27  ;;  %v6739_v34 = vor.u32 %v8260_v5, %v6736_v14  ;;  %v6832_v27 = vld [vmem:[%s9381_s21 + $0x638] sm:$0xf0]  ;;  %v6579_v2 = vor.u32 %v8220_v61, %v6576_v60 }
 0x2c3   : > { %5721 = vmatpush.bf16.msrb.mxu3 %v7059_v43  ;;  %v6883_v11 = vor.u32 %v8296_v6, %v6880_v3  ;;  %v8256_v43 = vld [vmem:[%s9381_s21 + $0x54c] sm:$0xf]  ;;  %v6560_v3 = vld [vmem:[%s9381_s21 + $0x418] sm:$0xf0] }
 0x2c4   : > { %5683 = vmatpush.bf16.msrb.mxu0 %v6659_v52  ;;  %v5457_v15 = vpop.f32.mrf.mxu2  ;;  %v6723_v18 = vor.u32 %v8256_v43, %v6720_v46  ;;  %v8284_v4 = vld [vmem:[%s9381_s21 + $0x62c] sm:$0xf]  ;;  %v6688_v53 = vld [vmem:[%s9381_s21 + $0x518] sm:$0xf0] }
 0x2c5   : > { %5696 = vmatpush.bf16.msrb.mxu1 %v6787_v50  ;;  %v5458_v52 = vadd.f32 %v5457_v15, %v5445_v22  ;;  %v5470_v50 = vpop.f32.mrf.mxu3  ;;  %v8216_v6 = vld [vmem:[%s9381_s21 + $0x40c] sm:$0xf]  ;;  %v6835_v51 = vor.u32 %v8284_v4, %v6832_v27  ;;  %v6816_v10 = vld [vmem:[%s9381_s21 + $0x618] sm:$0xf0] }
 0x2c6   : > { %5709 = vmatpush.bf16.msrb.mxu2 %v6915_v54  ;;  %v8320_v54 = vld [vmem:[%s9381_s21 + $0x74c] sm:$0xf]  ;;  %v6944_v12 = vld [vmem:[%s9381_s21 + $0x718] sm:$0xf0]  ;;  %v6563_v22 = vor.u32 %v8216_v6, %v6560_v3 }
 0x2c7   : > { %5722 = vmatpush.bf16.msrb.mxu3 %v7043_v59  ;;  %v10479_v58 = vadd.f32 %v5470_v50, %v5458_v52  ;;  %v5433_v59 = vpop.f32.mrf.mxu0  ;;  %v8312_v5 = vld [vmem:[%s9381_s21 + $0x70c] sm:$0xf]  ;;  %v7184_v19 = vld [vmem:[%s9381_s21 + $0x8f8] sm:$0xf0] }
 0x2c8   : > { %5684 = vmatpush.bf16.msrb.mxu0 %v6643_v62  ;;  %v5446_v62 = vpop.f32.mrf.mxu1  ;;  %v8372_v14 = vld [vmem:[%s9381_s21 + $0x8ec] sm:$0xf]  ;;  %v7312_v17 = vld [vmem:[%s9381_s21 + $0x9f8] sm:$0xf0]  ;;  %v6947_v43 = vor.u32 %v8312_v5, %v6944_v12 }
 0x2c9   : > { %5697 = vmatpush.bf16.msrb.mxu1 %v6771_v0  ;;  %v6979_v0 = vor.u32 %v8320_v54, %v6976_v24  ;;  %v8404_v36 = vld [vmem:[%s9381_s21 + $0x9ec] sm:$0xf]  ;;  %v7568_v40 = vld [vmem:[%s9381_s21 + $0xbf8] sm:$0xf0]  ;;  %v7187_v15 = vor.u32 %v8372_v14, %v7184_v19 }
 0x2ca   : > { %5710 = vmatpush.bf16.msrb.mxu2 %v6899_v1  ;;  %v6704_v1 = vld [vmem:[%s9381_s21 + $0x538] sm:$0xf0]  ;;  %v8436_v39 = vld [vmem:[%s9381_s21 + $0xaec] sm:$0xf] }
 0x2cb   : > { %5723 = vmatpush.bf16.msrb.mxu3 %v7027_v20  ;;  %v6960_v20 = vld [vmem:[%s9381_s21 + $0x738] sm:$0xf0]  ;;  %v6707_v7 = vor.u32 %v8252_v56, %v6704_v1  ;;  %v8468_v48 = vld [vmem:[%s9381_s21 + $0xbec] sm:$0xf] }
 0x2cc   : > { %5685 = vmatpush.bf16.msrb.mxu0 %v6627_v21  ;;  %v8248_v21 = vld [vmem:[%s9381_s21 + $0x50c] sm:$0xf]  ;;  %v6963_v9 = vor.u32 %v8316_v16, %v6960_v20  ;;  %v7168_v49 = vld [vmem:[%s9381_s21 + $0x8d8] sm:$0xf0]  ;;  %v7571_v50 = vor.u32 %v8468_v48, %v7568_v40 }
 0x2cd   : > { %5698 = vmatpush.bf16.msrb.mxu1 %v6755_v8  ;;  %v8280_v8 = vld [vmem:[%s9381_s21 + $0x60c] sm:$0xf]  ;;  %v7296_v54 = vld [vmem:[%s9381_s21 + $0x9d8] sm:$0xf0] }
 0x2ce   : > { %5711 = vmatpush.bf16.msrb.mxu2 %v6883_v11  ;;  %v5459_v11 = vpop.f32.mrf.mxu2  ;;  %v8368_v47 = vld [vmem:[%s9381_s21 + $0x8cc] sm:$0xf]  ;;  %v7152_v62 = vld [vmem:[%s9381_s21 + $0x8b8] sm:$0xf0] }
 0x2cf   : > { %5724 = vmatpush.bf16.msrb.mxu3 %v7011_v13  ;;  %v5472_v13 = vpop.f32.mrf.mxu3  ;;  %v8400_v52 = vld [vmem:[%s9381_s21 + $0x9cc] sm:$0xf]  ;;  %v7280_v4 = vld [vmem:[%s9381_s21 + $0x9b8] sm:$0xf0] }
 0x2d0   : > { %5686 = vmatpush.bf16.msrb.mxu0 %v6611_v32  ;;  %v7440_v32 = vld [vmem:[%s9381_s21 + $0xaf8] sm:$0xf0]  ;;  %v8432_v24 = vld [vmem:[%s9381_s21 + $0xacc] sm:$0xf]  ;;  %v7299_v61 = vor.u32 %v8400_v52, %v7296_v54 }
 0x2d1   : > { %5699 = vmatpush.bf16.msrb.mxu1 %v6739_v34  ;;  %v6691_v34 = vor.u32 %v8248_v21, %v6688_v53  ;;  %v7443_v46 = vor.u32 %v8436_v39, %v7440_v32  ;;  %v8464_v59 = vld [vmem:[%s9381_s21 + $0xbcc] sm:$0xf]  ;;  %v7408_v16 = vld [vmem:[%s9381_s21 + $0xab8] sm:$0xf0] }
 0x2d2   : > { %5712 = vmatpush.bf16.msrb.mxu2 %v6867_v37  ;;  %v6819_v37 = vor.u32 %v8280_v8, %v6816_v10  ;;  %v8364_v56 = vld [vmem:[%s9381_s21 + $0x8ac] sm:$0xf]  ;;  %v7264_v21 = vld [vmem:[%s9381_s21 + $0x998] sm:$0xf0] }
 0x2d3   : > { %5725 = vmatpush.bf16.msrb.mxu3 %v6995_v45  ;;  %v7315_v45 = vor.u32 %v8404_v36, %v7312_v17  ;;  %v8428_v27 = vld [vmem:[%s9381_s21 + $0xaac] sm:$0xf]  ;;  %v7155_v6 = vor.u32 %v8364_v56, %v7152_v62  ;;  %v7392_v8 = vld [vmem:[%s9381_s21 + $0xa98] sm:$0xf0] }
 0x2d4   : > { %5687 = vmatpush.bf16.msrb.mxu0 %v6595_v55  ;;  %v7424_v55 = vld [vmem:[%s9381_s21 + $0xad8] sm:$0xf0]  ;;  %v8460_v20 = vld [vmem:[%s9381_s21 + $0xbac] sm:$0xf]  ;;  %v7411_v3 = vor.u32 %v8428_v27, %v7408_v16 }
 0x2d5   : > { %5700 = vmatpush.bf16.msrb.mxu1 %v6723_v18  ;;  %v7552_v18 = vld [vmem:[%s9381_s21 + $0xbd8] sm:$0xf0]  ;;  %v7427_v60 = vor.u32 %v8432_v24, %v7424_v55  ;;  %v8424_v53 = vld [vmem:[%s9381_s21 + $0xa8c] sm:$0xf] }
 0x2d6   : > { %5713 = vmatpush.bf16.msrb.mxu2 %v6851_v63  ;;  %v7171_v63 = vor.u32 %v8368_v47, %v7168_v49  ;;  %v7555_v1 = vor.u32 %v8464_v59, %v7552_v18  ;;  %v8456_v11 = vld [vmem:[%s9381_s21 + $0xb8c] sm:$0xf]  ;;  %v7395_v12 = vor.u32 %v8424_v53, %v7392_v8  ;;  %v7120_v14 = vld [vmem:[%s9381_s21 + $0x878] sm:$0xf0] }
 0x2d7   : > { %5726 = vmatpush.bf16.msrb.mxu3 %v6979_v0  ;;  %v8396_v0 = vld [vmem:[%s9381_s21 + $0x9ac] sm:$0xf]  ;;  %v7248_v17 = vld [vmem:[%s9381_s21 + $0x978] sm:$0xf0] }
 0x2d8   : > { %5688 = vmatpush.bf16.msrb.mxu0 %v6579_v2  ;;  %v7536_v2 = vld [vmem:[%s9381_s21 + $0xbb8] sm:$0xf0]  ;;  %v8356_v13 = vld [vmem:[%s9381_s21 + $0x86c] sm:$0xf] }
 0x2d9   : > { %5701 = vmatpush.bf16.msrb.mxu1 %v6707_v7  ;;  %v8360_v7 = vld [vmem:[%s9381_s21 + $0x88c] sm:$0xf]  ;;  %v7376_v32 = vld [vmem:[%s9381_s21 + $0xa78] sm:$0xf0]  ;;  %v7123_v48 = vor.u32 %v8356_v13, %v7120_v14 }
 0x2da   : > { %5714 = vmatpush.bf16.msrb.mxu2 %v6835_v51  ;;  %v7136_v51 = vld [vmem:[%s9381_s21 + $0x898] sm:$0xf0]  ;;  %v8388_v19 = vld [vmem:[%s9381_s21 + $0x96c] sm:$0xf] }
 0x2db   : > { %5727 = vmatpush.bf16.msrb.mxu3 %v6963_v9  ;;  %v7520_v9 = vld [vmem:[%s9381_s21 + $0xb98] sm:$0xf0]  ;;  %v8420_v39 = vld [vmem:[%s9381_s21 + $0xa6c] sm:$0xf]  ;;  %v7251_v40 = vor.u32 %v8388_v19, %v7248_v17 }
 0x2dc   : > { %5689 = vmatpush.bf16.msrb.mxu0 %v6563_v22  ;;  %v10533_v10 = vpop.f32.mrf.mxu0  ;;  %v7523_v22 = vor.u32 %v8456_v11, %v7520_v9  ;;  %v7232_v52 = vld [vmem:[%s9381_s21 + $0x958] sm:$0xf0]  ;;  %v8448_v55 = vld [vmem:[%s9381_s21 + $0xb4c] sm:$0xf] }
 0x2dd   : > { %5702 = vmatpush.bf16.msrb.mxu1 %v6691_v34  ;;  %v10538_v36 = vpop.f32.mrf.mxu1  ;;  %v8452_v34 = vld [vmem:[%s9381_s21 + $0xb6c] sm:$0xf]  ;;  %v7360_v54 = vld [vmem:[%s9381_s21 + $0xa58] sm:$0xf0] }
 0x2de   : > { %5715 = vmatpush.bf16.msrb.mxu2 %v6819_v37  ;;  %v7504_v37 = vld [vmem:[%s9381_s21 + $0xb78] sm:$0xf0]  ;;  %v8348_v56 = vld [vmem:[%s9381_s21 + $0x82c] sm:$0xf] }
 0x2df   : > { %5728 = vmatpush.bf16.msrb.mxu3 %v6947_v43  ;;  %5690 = vmatmul.bf16.vlgmr.msrb.gmra.mxu0 %v9553_v41  ;;  %v8392_v41 = vld [vmem:[%s9381_s21 + $0x98c] sm:$0xf]  ;;  %v7379_v43 = vor.u32 %v8420_v39, %v7376_v32  ;;  %v7507_v49 = vor.u32 %v8452_v34, %v7504_v37  ;;  %v7488_v59 = vld [vmem:[%s9381_s21 + $0xb58] sm:$0xf0] }
 0x2e0   : > { %5734 = vmatpush.bf16.msra.mxu0 %v7187_v15  ;;  %5703 = vmatmul.bf16.vlgmr.msrb.gmra.mxu1 %v9557_v44  ;;  %v7139_v44 = vor.u32 %v8360_v7, %v7136_v51  ;;  %v7267_v5 = vor.u32 %v8392_v41, %v7264_v21  ;;  %v8352_v15 = vld [vmem:[%s9381_s21 + $0x84c] sm:$0xf]  ;;  %v7088_v62 = vld [vmem:[%s9381_s21 + $0x838] sm:$0xf0] }
 0x2e1   : > { %5747 = vmatpush.bf16.msra.mxu1 %v7315_v45  ;;  %5716 = vmatmul.bf16.vlgmr.msrb.gmra.mxu2 %v9549_v38  ;;  %v7283_v38 = vor.u32 %v8396_v0, %v7280_v4  ;;  %v7104_v45 = vld [vmem:[%s9381_s21 + $0x858] sm:$0xf0]  ;;  %v8380_v0 = vld [vmem:[%s9381_s21 + $0x92c] sm:$0xf]  ;;  %v7491_v4 = vor.u32 %v8448_v55, %v7488_v59 }
 0x2e2   : > { %5760 = vmatpush.bf16.msra.mxu2 %v7443_v46  ;;  %5729 = vmatmul.bf16.vlgmr.msrb.gmra.mxu3 %v9555_v42  ;;  %v7539_v42 = vor.u32 %v8460_v20, %v7536_v2  ;;  %v8384_v46 = vld [vmem:[%s9381_s21 + $0x94c] sm:$0xf]  ;;  %v7107_v18 = vor.u32 %v8352_v15, %v7104_v45  ;;  %v7216_v27 = vld [vmem:[%s9381_s21 + $0x938] sm:$0xf0] }
 0x2e3   : > { %5773 = vmatpush.bf16.msra.mxu3 %v7571_v50  ;;  %v8416_v50 = vld [vmem:[%s9381_s21 + $0xa4c] sm:$0xf]  ;;  %v7344_v20 = vld [vmem:[%s9381_s21 + $0xa38] sm:$0xf0]  ;;  %v7219_v51 = vor.u32 %v8380_v0, %v7216_v27 }
 0x2e4   : > { %5735 = vmatpush.bf16.msra.mxu0 %v7171_v63  ;;  %v10548_v47 = vpop.f32.mrf.mxu2  ;;  %v5485_v63 = vpop.f32.mrf.mxu0  ;;  %v8412_v16 = vld [vmem:[%s9381_s21 + $0xa2c] sm:$0xf]  ;;  %v7072_v7 = vld [vmem:[%s9381_s21 + $0x818] sm:$0xf0] }
 0x2e5   : > { %5748 = vmatpush.bf16.msra.mxu1 %v7299_v61  ;;  %v10553_v24 = vpop.f32.mrf.mxu3  ;;  %v7235_v61 = vor.u32 %v8384_v46, %v7232_v52  ;;  %v8444_v2 = vld [vmem:[%s9381_s21 + $0xb2c] sm:$0xf]  ;;  %v7347_v41 = vor.u32 %v8412_v16, %v7344_v20  ;;  %v7200_v21 = vld [vmem:[%s9381_s21 + $0x918] sm:$0xf0] }
 0x2e6   : > { %5761 = vmatpush.bf16.msra.mxu2 %v7427_v60  ;;  %v7363_v60 = vor.u32 %v8416_v50, %v7360_v54  ;;  %v8408_v53 = vld [vmem:[%s9381_s21 + $0xa0c] sm:$0xf]  ;;  %v7328_v9 = vld [vmem:[%s9381_s21 + $0xa18] sm:$0xf0] }
 0x2e7   : > { %5774 = vmatpush.bf16.msra.mxu3 %v7555_v1  ;;  %v5498_v1 = vpop.f32.mrf.mxu1  ;;  %v8500_v13 = vld [vmem:[%s9381_s21 + $0xcec] sm:$0xf]  ;;  %v7696_v14 = vld [vmem:[%s9381_s21 + $0xcf8] sm:$0xf0]  ;;  %v7331_v37 = vor.u32 %v8408_v53, %v7328_v9 }
 0x2e8   : > { %5736 = vmatpush.bf16.msra.mxu0 %v7155_v6  ;;  %v7472_v6 = vld [vmem:[%s9381_s21 + $0xb38] sm:$0xf0]  ;;  %v8532_v19 = vld [vmem:[%s9381_s21 + $0xdec] sm:$0xf]  ;;  %v7699_v15 = vor.u32 %v8500_v13, %v7696_v14 }
 0x2e9   : > { %5749 = vmatpush.bf16.msra.mxu1 %v7283_v38  ;;  %v7091_v38 = vor.u32 %v8348_v56, %v7088_v62  ;;  %v7475_v11 = vor.u32 %v8444_v2, %v7472_v6  ;;  %v7824_v17 = vld [vmem:[%s9381_s21 + $0xdf8] sm:$0xf0]  ;;  %v8564_v39 = vld [vmem:[%s9381_s21 + $0xeec] sm:$0xf] }
 0x2ea   : > { %5762 = vmatpush.bf16.msra.mxu2 %v7411_v3  ;;  %v8344_v3 = vld [vmem:[%s9381_s21 + $0x80c] sm:$0xf]  ;;  %v7952_v32 = vld [vmem:[%s9381_s21 + $0xef8] sm:$0xf0]  ;;  %v7827_v45 = vor.u32 %v8532_v19, %v7824_v17 }
 0x2eb   : > { %5775 = vmatpush.bf16.msra.mxu3 %v7539_v42  ;;  %v8376_v42 = vld [vmem:[%s9381_s21 + $0x90c] sm:$0xf]  ;;  %v7955_v46 = vor.u32 %v8564_v39, %v7952_v32  ;;  %v7680_v52 = vld [vmem:[%s9381_s21 + $0xcd8] sm:$0xf0] }
 0x2ec   : > { %5737 = vmatpush.bf16.msra.mxu0 %v7139_v44  ;;  %v5511_v8 = vpop.f32.mrf.mxu2  ;;  %v8440_v44 = vld [vmem:[%s9381_s21 + $0xb0c] sm:$0xf]  ;;  %v7203_v34 = vor.u32 %v8376_v42, %v7200_v21  ;;  %v7808_v55 = vld [vmem:[%s9381_s21 + $0xdd8] sm:$0xf0] }
 0x2ed   : > { %5750 = vmatpush.bf16.msra.mxu1 %v7267_v5  ;;  %v7456_v5 = vld [vmem:[%s9381_s21 + $0xb18] sm:$0xf0]  ;;  %v8528_v50 = vld [vmem:[%s9381_s21 + $0xdcc] sm:$0xf] }
 0x2ee   : > { %5763 = vmatpush.bf16.msra.mxu2 %v7395_v12  ;;  %v5524_v12 = vpop.f32.mrf.mxu3  ;;  %v8560_v59 = vld [vmem:[%s9381_s21 + $0xecc] sm:$0xf]  ;;  %v7811_v56 = vor.u32 %v8528_v50, %v7808_v55  ;;  %v7664_v1 = vld [vmem:[%s9381_s21 + $0xcb8] sm:$0xf0] }
 0x2ef   : > { %5776 = vmatpush.bf16.msra.mxu3 %v7523_v22  ;;  %v7075_v22 = vor.u32 %v8344_v3, %v7072_v7  ;;  %v8592_v63 = vld [vmem:[%s9381_s21 + $0xfcc] sm:$0xf]  ;;  %v7792_v16 = vld [vmem:[%s9381_s21 + $0xdb8] sm:$0xf0] }
 0x2f0   : > { %5738 = vmatpush.bf16.msra.mxu0 %v7123_v48  ;;  %v8596_v48 = vld [vmem:[%s9381_s21 + $0xfec] sm:$0xf]  ;;  %v7920_v2 = vld [vmem:[%s9381_s21 + $0xeb8] sm:$0xf0] }
 0x2f1   : > { %5751 = vmatpush.bf16.msra.mxu1 %v7251_v40  ;;  %v8080_v40 = vld [vmem:[%s9381_s21 + $0xff8] sm:$0xf0]  ;;  %v8492_v0 = vld [vmem:[%s9381_s21 + $0xcac] sm:$0xf] }
 0x2f2   : > { %5764 = vmatpush.bf16.msra.mxu2 %v7379_v43  ;;  %v7459_v43 = vor.u32 %v8440_v44, %v7456_v5  ;;  %v8083_v54 = vor.u32 %v8596_v48, %v8080_v40  ;;  %v8556_v20 = vld [vmem:[%s9381_s21 + $0xeac] sm:$0xf]  ;;  %v7776_v42 = vld [vmem:[%s9381_s21 + $0xd98] sm:$0xf0]  ;;  %v5484_v40 = vadd.f32 %v10533_v10, %v10479_v58 }
 0x2f3   : > { %5777 = vmatpush.bf16.msra.mxu3 %v7507_v49  ;;  %v8496_v49 = vld [vmem:[%s9381_s21 + $0xccc] sm:$0xf]  ;;  %v7923_v7 = vor.u32 %v8556_v20, %v7920_v2  ;;  %v7904_v53 = vld [vmem:[%s9381_s21 + $0xe98] sm:$0xf0] }
 0x2f4   : > { %5739 = vmatpush.bf16.msra.mxu0 %v7107_v18  ;;  %v7936_v18 = vld [vmem:[%s9381_s21 + $0xed8] sm:$0xf0]  ;;  %v8588_v6 = vld [vmem:[%s9381_s21 + $0xfac] sm:$0xf] }
 0x2f5   : > { %5752 = vmatpush.bf16.msra.mxu1 %v7235_v61  ;;  %v8064_v61 = vld [vmem:[%s9381_s21 + $0xfd8] sm:$0xf0]  ;;  %v7939_v62 = vor.u32 %v8560_v59, %v7936_v18  ;;  %v8552_v21 = vld [vmem:[%s9381_s21 + $0xe8c] sm:$0xf] }
 0x2f6   : > { %5765 = vmatpush.bf16.msra.mxu2 %v7363_v60  ;;  %v7683_v60 = vor.u32 %v8496_v49, %v7680_v52  ;;  %v8067_v27 = vor.u32 %v8592_v63, %v8064_v61  ;;  %v8584_v8 = vld [vmem:[%s9381_s21 + $0xf8c] sm:$0xf]  ;;  %v7907_v12 = vor.u32 %v8552_v21, %v7904_v53  ;;  %v7632_v14 = vld [vmem:[%s9381_s21 + $0xc78] sm:$0xf0] }
 0x2f7   : > { %5778 = vmatpush.bf16.msra.mxu3 %v7491_v4  ;;  %v8524_v4 = vld [vmem:[%s9381_s21 + $0xdac] sm:$0xf]  ;;  %v7760_v17 = vld [vmem:[%s9381_s21 + $0xd78] sm:$0xf0] }
 0x2f8   : > { %5740 = vmatpush.bf16.msra.mxu0 %v7091_v38  ;;  %v8048_v38 = vld [vmem:[%s9381_s21 + $0xfb8] sm:$0xf0]  ;;  %v7795_v3 = vor.u32 %v8524_v4, %v7792_v16  ;;  %v8484_v13 = vld [vmem:[%s9381_s21 + $0xc6c] sm:$0xf] }
 0x2f9   : > { %5753 = vmatpush.bf16.msra.mxu1 %v7219_v51  ;;  %v8488_v51 = vld [vmem:[%s9381_s21 + $0xc8c] sm:$0xf]  ;;  %v7888_v32 = vld [vmem:[%s9381_s21 + $0xe78] sm:$0xf0]  ;;  %v7635_v48 = vor.u32 %v8484_v13, %v7632_v14 }
 0x2fa   : > { %5766 = vmatpush.bf16.msra.mxu2 %v7347_v41  ;;  %v7648_v41 = vld [vmem:[%s9381_s21 + $0xc98] sm:$0xf0]  ;;  %v8516_v19 = vld [vmem:[%s9381_s21 + $0xd6c] sm:$0xf] }
 0x2fb   : > { %5779 = vmatpush.bf16.msra.mxu3 %v7475_v11  ;;  %v8032_v11 = vld [vmem:[%s9381_s21 + $0xf98] sm:$0xf0]  ;;  %v7651_v9 = vor.u32 %v8488_v51, %v7648_v41  ;;  %v8548_v39 = vld [vmem:[%s9381_s21 + $0xe6c] sm:$0xf] }
 0x2fc   : > { %5741 = vmatpush.bf16.msra.mxu0 %v7075_v22  ;;  %v8035_v22 = vor.u32 %v8584_v8, %v8032_v11  ;;  %v8512_v49 = vld [vmem:[%s9381_s21 + $0xd4c] sm:$0xf]  ;;  %v7872_v59 = vld [vmem:[%s9381_s21 + $0xe58] sm:$0xf0] }
 0x2fd   : > { %5754 = vmatpush.bf16.msra.mxu1 %v7203_v34  ;;  %v10611_v44 = vpop.f32.mrf.mxu1  ;;  %v8580_v34 = vld [vmem:[%s9381_s21 + $0xf6c] sm:$0xf]  ;;  %v8000_v10 = vld [vmem:[%s9381_s21 + $0xf58] sm:$0xf0] }
 0x2fe   : > { %5767 = vmatpush.bf16.msra.mxu2 %v7331_v37  ;;  %v8016_v37 = vld [vmem:[%s9381_s21 + $0xf78] sm:$0xf0]  ;;  %v8544_v55 = vld [vmem:[%s9381_s21 + $0xe4c] sm:$0xf] }
 0x2ff   : > { %5780 = vmatpush.bf16.msra.mxu3 %v7459_v43  ;;  %5742 = vmatmul.bf16.vlgmr.msra.gmra.mxu0 %v9628_v25  ;;  %v7667_v25 = vor.u32 %v8492_v0, %v7664_v1  ;;  %v7763_v43 = vor.u32 %v8516_v19, %v7760_v17  ;;  %v8019_v52 = vor.u32 %v8580_v34, %v8016_v37  ;;  %v8576_v58 = vld [vmem:[%s9381_s21 + $0xf4c] sm:$0xf]  ;;  %v7600_v4 = vld [vmem:[%s9381_s21 + $0xc38] sm:$0xf0] }
 0x300   : > { %5786 = vmatpush.bf16.msrb.mxu0 %v7699_v15  ;;  %5755 = vmatmul.bf16.vlgmr.msra.gmra.mxu1 %v9635_v30  ;;  %v8051_v30 = vor.u32 %v8588_v6, %v8048_v38  ;;  %v7891_v15 = vor.u32 %v8548_v39, %v7888_v32  ;;  %v7875_v0 = vor.u32 %v8544_v55, %v7872_v59  ;;  %v8476_v1 = vld [vmem:[%s9381_s21 + $0xc2c] sm:$0xf]  ;;  %v7728_v20 = vld [vmem:[%s9381_s21 + $0xd38] sm:$0xf0] }
 0x301   : > { %5799 = vmatpush.bf16.msrb.mxu1 %v7827_v45  ;;  %5768 = vmatmul.bf16.vlgmr.msra.gmra.mxu2 %v9633_v29  ;;  %v8520_v29 = vld [vmem:[%s9381_s21 + $0xd8c] sm:$0xf]  ;;  %v8003_v16 = vor.u32 %v8576_v58, %v8000_v10  ;;  %v7856_v6 = vld [vmem:[%s9381_s21 + $0xe38] sm:$0xf0] }
 0x302   : > { %5812 = vmatpush.bf16.msrb.mxu2 %v7955_v46  ;;  %5781 = vmatmul.bf16.vlgmr.msra.gmra.mxu3 %v9639_v33  ;;  %v10607_v33 = vpop.f32.mrf.mxu0  ;;  %v7779_v5 = vor.u32 %v8520_v29, %v7776_v42  ;;  %v8480_v45 = vld [vmem:[%s9381_s21 + $0xc4c] sm:$0xf]  ;;  %v7616_v46 = vld [vmem:[%s9381_s21 + $0xc58] sm:$0xf0] }
 0x303   : > { %5825 = vmatpush.bf16.msrb.mxu3 %v8083_v54  ;;  %v7744_v54 = vld [vmem:[%s9381_s21 + $0xd58] sm:$0xf0]  ;;  %v7619_v61 = vor.u32 %v8480_v45, %v7616_v46  ;;  %v8540_v2 = vld [vmem:[%s9381_s21 + $0xe2c] sm:$0xf] }
 0x304   : > { %5787 = vmatpush.bf16.msrb.mxu0 %v7683_v60  ;;  %v10626_v50 = vpop.f32.mrf.mxu2  ;;  %v8572_v38 = vld [vmem:[%s9381_s21 + $0xf2c] sm:$0xf]  ;;  %v7859_v51 = vor.u32 %v8540_v2, %v7856_v6  ;;  %v7584_v29 = vld [vmem:[%s9381_s21 + $0xc18] sm:$0xf0] }
 0x305   : > { %5800 = vmatpush.bf16.msrb.mxu1 %v7811_v56  ;;  %v5574_v18 = vpop.f32.mrf.mxu3  ;;  %v5550_v60 = vpop.f32.mrf.mxu1  ;;  %v5497_v56 = vadd.f32 %v10538_v36, %v5484_v40  ;;  %v7984_v36 = vld [vmem:[%s9381_s21 + $0xf38] sm:$0xf0]  ;;  %v8472_v41 = vld [vmem:[%s9381_s21 + $0xc0c] sm:$0xf] }
 0x306   : > { %5813 = vmatpush.bf16.msrb.mxu2 %v7939_v62  ;;  %v7747_v62 = vor.u32 %v8512_v49, %v7744_v54  ;;  %v7987_v42 = vor.u32 %v8572_v38, %v7984_v36  ;;  %v7712_v21 = vld [vmem:[%s9381_s21 + $0xd18] sm:$0xf0]  ;;  %v8536_v53 = vld [vmem:[%s9381_s21 + $0xe0c] sm:$0xf]  ;;  %v7587_v13 = vor.u32 %v8472_v41, %v7584_v29 }
 0x307   : > { %5826 = vmatpush.bf16.msrb.mxu3 %v8067_v27  ;;  %v8508_v27 = vld [vmem:[%s9381_s21 + $0xd2c] sm:$0xf]  ;;  %v7840_v8 = vld [vmem:[%s9381_s21 + $0xe18] sm:$0xf0] }
 0x308   : > { %5788 = vmatpush.bf16.msrb.mxu0 %v7667_v25  ;;  %v7603_v25 = vor.u32 %v8476_v1, %v7600_v4  ;;  %v7843_v19 = vor.u32 %v8536_v53, %v7840_v8 }
 0x309   : > { %5801 = vmatpush.bf16.msrb.mxu1 %v7795_v3  ;;  %v5510_v3 = vadd.f32 %v10548_v47, %v5497_v56 }
 0x30a   : > { %5814 = vmatpush.bf16.msrb.mxu2 %v7923_v7  ;;  %v5537_v63 = vpop.f32.mrf.mxu0  ;;  %v7731_v7 = vor.u32 %v8508_v27, %v7728_v20 }
 0x30b   : > { %5827 = vmatpush.bf16.msrb.mxu3 %v8051_v30  ;;  %v8504_v30 = vld [vmem:[%s9381_s21 + $0xd0c] sm:$0xf]  ;;  %v5523_v47 = vadd.f32 %v10553_v24, %v5510_v3 }
 0x30c   : > { %5789 = vmatpush.bf16.msrb.mxu0 %v7651_v9  ;;  %v5563_v11 = vpop.f32.mrf.mxu2  ;;  %v8568_v9 = vld [vmem:[%s9381_s21 + $0xf0c] sm:$0xf]  ;;  %v7715_v14 = vor.u32 %v8504_v30, %v7712_v21 }
 0x30d   : > { %5802 = vmatpush.bf16.msrb.mxu1 %v7779_v5  ;;  %v7968_v5 = vld [vmem:[%s9381_s21 + $0xf18] sm:$0xf0]  ;;  %v5536_v17 = vadd.f32 %v10607_v33, %v5523_v47 }
 0x30e   : > { %5815 = vmatpush.bf16.msrb.mxu2 %v7907_v12  ;;  %v5576_v12 = vpop.f32.mrf.mxu3 }
 0x30f   : > { %5828 = vmatpush.bf16.msrb.mxu3 %v8035_v22  ;;  %v7971_v22 = vor.u32 %v8568_v9, %v7968_v5  ;;  %v5549_v39 = vadd.f32 %v10611_v44, %v5536_v17  ;;  %v5842_v44 = vperm.slane %v10401_v26, 2  ;;  %v8673_v17 = vld [vmem:[%s10071_s15] sm:$0xf] }
 0x310   : > { %5790 = vmatpush.bf16.msrb.mxu0 %v7635_v48 }
 0x311   : > { %5803 = vmatpush.bf16.msrb.mxu1 %v7763_v43  ;;  %v5562_v24 = vadd.f32 %v10626_v50, %v5549_v39  ;;  %v5843_v39 = vperm.slane %v8673_v17, 3 }
 0x312   : > { %5816 = vmatpush.bf16.msrb.mxu2 %v7891_v15 }
 0x313   : > { %5829 = vmatpush.bf16.msrb.mxu3 %v8019_v52  ;;  %v5575_v32 = vadd.f32 %v5574_v18, %v5562_v24 }
 0x314   : > { %5791 = vmatpush.bf16.msrb.mxu0 %v7619_v61 }
 0x315   : > { %5804 = vmatpush.bf16.msrb.mxu1 %v7747_v62 }
 0x316   : > { %5817 = vmatpush.bf16.msrb.mxu2 %v7875_v0 }
 0x317   : > { %5830 = vmatpush.bf16.msrb.mxu3 %v8003_v16 }
 0x318   : > { %5792 = vmatpush.bf16.msrb.mxu0 %v7603_v25 }
 0x319   : > { %5805 = vmatpush.bf16.msrb.mxu1 %v7731_v7 }
 0x31a   : > { %5818 = vmatpush.bf16.msrb.mxu2 %v7859_v51 }
 0x31b   : > { %5831 = vmatpush.bf16.msrb.mxu3 %v7987_v42 }
 0x31c   : > { %5793 = vmatpush.bf16.msrb.mxu0 %v7587_v13  ;;  %v5587_v34 = vpop.f32.mrf.mxu0 }
 0x31d   : > { %5806 = vmatpush.bf16.msrb.mxu1 %v7715_v14  ;;  %v5600_v37 = vpop.f32.mrf.mxu1  ;;  %v5588_v33 = vadd.f32 %v5587_v34, %v5575_v32 }
 0x31e   : > { %5819 = vmatpush.bf16.msrb.mxu2 %v7843_v19 }
 0x31f   : > { %5832 = vmatpush.bf16.msrb.mxu3 %v7971_v22  ;;  %5794 = vmatmul.bf16.vlgmr.msrb.gmra.mxu0 %v9710_v23  ;;  %v5601_v48 = vadd.f32 %v5600_v37, %v5588_v33  ;;  %v8674_v37 = vld [vmem:[%s10077_s25] sm:$0xf] }
 0x320   : > { %5807 = vmatmul.bf16.vlgmr.msrb.gmra.mxu1 %v9717_v31  ;;  %v5857_v33 = vperm.slane %v8674_v37, 3 }
 0x321   : > { %5820 = vmatmul.bf16.vlgmr.msrb.gmra.mxu2 %v9715_v28  ;;  %v5856_v28 = vperm.slane %v10407_v57, 2 }
 0x322   : > { %5833 = vmatmul.bf16.vlgmr.msrb.gmra.mxu3 %v9721_v35 }
 0x324   : > { %v5613_v40 = vpop.f32.mrf.mxu2  ;;  %v5589_v23 = vpop.f32.mrf.mxu0 }
 0x325   : > { %v5614_v43 = vadd.f32 %v5613_v40, %v5601_v48  ;;  %v5626_v15 = vpop.f32.mrf.mxu3  ;;  %v5602_v45 = vpop.f32.mrf.mxu1 }
 0x327   : > { %v5627_v31 = vadd.f32 %v5626_v15, %v5614_v43 }
 0x329   : > { %v5850_v46 = vmul.f32 %v5842_v44, %v5627_v31 }
 0x32b   : > { %v5864_v49 = vadd.f32 %v5856_v28, %v5850_v46 }
 0x32c   : > { %v5615_v52 = vpop.f32.mrf.mxu2 }
 0x32d   : > { %vm5868_vm2 = vcmp.gt.f32.partialorder %v5864_v49, 0.0  ;;  %v5872_v35 = vmul.f32 0.01, %v5864_v49  ;;  %v5628_v50 = vpop.f32.mrf.mxu3 }
 0x32f   : > { %v5876_v54 = vsel %vm5868_vm2, %v5864_v49, %v5872_v35 }
 0x330   : > { %5880 = vst [vmem:[%s10118_s29 + $0x10] sm:$0xff] %v5876_v54 }
 0x33c   : > { %v5639_v55 = vpop.f32.mrf.mxu0 }
 0x33d   : > { %v5652_v59 = vpop.f32.mrf.mxu1 }
 0x33e   : > { %v5653_v18 = vadd.f32 %v5652_v59, %v5639_v55 }
 0x344   : > { %v5665_v58 = vpop.f32.mrf.mxu2  ;;  %v5641_v61 = vpop.f32.mrf.mxu0 }
 0x345   : > { %v5666_v10 = vadd.f32 %v5665_v58, %v5653_v18  ;;  %v5678_v63 = vpop.f32.mrf.mxu3  ;;  %v5654_v60 = vpop.f32.mrf.mxu1 }
 0x347   : > { %v5679_v26 = vadd.f32 %v5678_v63, %v5666_v10 }
 0x34c   : > { %v5667_v56 = vpop.f32.mrf.mxu2 }
 0x34d   : > { %v5680_v62 = vpop.f32.mrf.mxu3 }
 0x35c   : > { %v5691_v57 = vpop.f32.mrf.mxu0 }
 0x35d   : > { %v5704_v0 = vpop.f32.mrf.mxu1  ;;  %v5692_v36 = vadd.f32 %v5691_v57, %v5679_v26 }
 0x35f   : > { %v5705_v51 = vadd.f32 %v5704_v0, %v5692_v36 }
 0x364   : > { %v5717_v1 = vpop.f32.mrf.mxu2  ;;  %v5693_v27 = vpop.f32.mrf.mxu0 }
 0x365   : > { %v5730_v4 = vpop.f32.mrf.mxu3  ;;  %v5706_v16 = vpop.f32.mrf.mxu1  ;;  %v5718_v29 = vadd.f32 %v5717_v1, %v5705_v51 }
 0x367   : > { %v5731_v21 = vadd.f32 %v5730_v4, %v5718_v29 }
 0x36c   : > { %v5719_v20 = vpop.f32.mrf.mxu2 }
 0x36d   : > { %v5732_v2 = vpop.f32.mrf.mxu3 }
 0x37c   : > { %v5743_v6 = vpop.f32.mrf.mxu0 }
 0x37d   : > { %v5756_v38 = vpop.f32.mrf.mxu1  ;;  %v5744_v53 = vadd.f32 %v5743_v6, %v5731_v21 }
 0x37f   : > { %v5757_v8 = vadd.f32 %v5756_v38, %v5744_v53 }
 0x384   : > { %v5769_v25 = vpop.f32.mrf.mxu2  ;;  %v5745_v7 = vpop.f32.mrf.mxu0 }
 0x385   : > { %v5782_v3 = vpop.f32.mrf.mxu3  ;;  %v5758_v41 = vpop.f32.mrf.mxu1  ;;  %v5770_v11 = vadd.f32 %v5769_v25, %v5757_v8 }
 0x387   : > { %v5783_v9 = vadd.f32 %v5782_v3, %v5770_v11 }
 0x38c   : > { %v5771_v30 = vpop.f32.mrf.mxu2 }
 0x38d   : > { %v5784_v42 = vpop.f32.mrf.mxu3 }
 0x39c   : > { %v5795_v5 = vpop.f32.mrf.mxu0 }
 0x39d   : > { %v5808_v12 = vpop.f32.mrf.mxu1  ;;  %v5796_v13 = vadd.f32 %v5795_v5, %v5783_v9 }
 0x39f   : > { %v5809_v47 = vadd.f32 %v5808_v12, %v5796_v13 }
 0x3a4   : > { %v5821_v14 = vpop.f32.mrf.mxu2  ;;  %v5797_v24 = vpop.f32.mrf.mxu0 }
 0x3a5   : > { %v5822_v19 = vadd.f32 %v5821_v14, %v5809_v47  ;;  %v5834_v22 = vpop.f32.mrf.mxu3  ;;  %v5810_v32 = vpop.f32.mrf.mxu1 }
 0x3a7   : > { %v5835_v34 = vadd.f32 %v5834_v22, %v5822_v19 }
 0x3a9   : > { %v5851_v48 = vmul.f32 %v5843_v39, %v5835_v34 }
 0x3ab   : > { %v5865_v40 = vadd.f32 %v5857_v33, %v5851_v48 }
 0x3ac   : > { %v5823_v43 = vpop.f32.mrf.mxu2 }
 0x3ad   : > { %vm5869_vm3 = vcmp.gt.f32.partialorder %v5865_v40, 0.0  ;;  %v5873_v15 = vmul.f32 0.01, %v5865_v40  ;;  %v5836_v44 = vpop.f32.mrf.mxu3 }
 0x3af   : > { %v5877_v23 = vsel %vm5869_vm3, %v5865_v40, %v5873_v15 }
 0x3b0   : > { %5881 = vst [vmem:[%s10118_s29 + $0x18] sm:$0xff] %v5877_v23 }
 0x3b1 PF: > { %s14_s19 = sadd.s32 1, %s8729_s19   ;;  %s10691_s15 = smov %s8717_s16 }
 0x3b2   : > { %p11_p12 = scmp.ge.s32.totalorder %s14_s19, 4   ;;  %s10692_s16 = smov %s8807_s23 }
 0x3b3   : > { %s10693_s17 = smov %s8725_s18  ;;  %s10694_s18 = smov %s10696_s20 }
 0x3b4   :  { %13 = sbr.rel (!%p11_p12) target bundleno = 3 (0x3), region = 130 }

</bundles_post_ra>
